<compile_context>
chip_gen: v5e
topology: v5e:2x2
jax: 0.10.0
libtpu: 0.0.40
codegen_flags: <defaults>
</compile_context>

<pallas_src>
import functools

import numpy as np

import jax
import jax.numpy as jnp
from jax.experimental import pallas as pl
from jax.experimental.pallas import tpu as pltpu


# ------------------------------ fused kernel --------------------------------

def _fused_dqn_kernel(sd_ref, w1_ref, b1_ref, w2_ref, b2_ref, w3_ref, b3_ref,
                      w1c_ref, b1c_ref, w2c_ref, b2c_ref,
                      o_ref, h1_ref, h2_ref, h3_ref, *, n_actions, n_valid):
    f32, bf16 = jnp.float32, jnp.bfloat16
    dot = functools.partial(jnp.dot, preferred_element_type=f32)

    Hb, Wb, Bp, _ = sd_ref.shape
    H1, W1 = Hb - 1, Wb - 1                             # conv1 grid (10, 10)
    H2, W2 = (H1 - 4) // 2 + 1, (W1 - 4) // 2 + 1       # conv2 grid (4, 4)
    H3, W3 = H2 - 2, W2 - 2                             # conv3 grid (2, 2)
    C1 = h1_ref.shape[-1]                               # 32
    C2 = h2_ref.shape[-1]                               # 64

    # ---- conv1 (+ReLU): an 8x8/stride-4 conv is a 2x2 conv on the 4x4
    # space-to-depth grid -> im2col is 4 static slices + one K=256 GEMM.
    slabs = []
    for bi in range(2):
        for bj in range(2):
            s = sd_ref[bi:bi + H1, bj:bj + W1, :, :].astype(f32)   # (H1,W1,Bp,16C)
            slabs.append(s.reshape(H1 * W1 * Bp, s.shape[-1]))
    cols1 = jnp.concatenate(slabs, axis=-1).astype(bf16)           # (H1*W1*Bp, 64C)
    h1 = jnp.maximum(dot(cols1, w1_ref[...]) + b1_ref[...], 0.0)   # f32
    # Stash with the W axis phase-split (w = 2*wq + wphase; (wphase, batch)
    # packed into one aligned dim) so conv2's stride-2 taps are plain slices.
    h1_ref[...] = h1.reshape(H1, W1 // 2, 2 * Bp, C1)

    # ---- conv2 (+ReLU): im2col assembled along lanes, one K=512 GEMM.
    oh_chunks = []
    for oh in range(H2):
        taps = []
        for ki in range(4):
            for kj in range(4):
                p0 = (kj % 2) * Bp
                taps.append(h1_ref[2 * oh + ki,
                                   kj // 2:kj // 2 + W2,
                                   p0:p0 + Bp, :])                 # (W2, Bp, C1)
        oh_chunks.append(jnp.concatenate(taps, axis=-1))           # (W2, Bp, 16*C1)
    cols2 = jnp.stack(oh_chunks, axis=0).reshape(H2 * W2 * Bp, 16 * C1)
    h2 = jnp.maximum(dot(cols2.astype(bf16), w2_ref[...]) + b2_ref[...], 0.0)
    h2_ref[...] = h2.reshape(H2, W2, Bp, C2)

    # ---- conv3 (+ReLU): contiguous 3x3 windows, one K=576 GEMM.
    taps = []
    for ki in range(3):
        for kj in range(3):
            taps.append(h2_ref[ki:ki + H3, kj:kj + W3, :, :])      # (H3,W3,Bp,C2)
    cols3 = jnp.concatenate(taps, axis=-1).reshape(H3 * W3 * Bp, 9 * C2)
    h3 = jnp.maximum(dot(cols3.astype(bf16), w3_ref[...]) + b3_ref[...], 0.0)
    h3_ref[...] = h3.reshape(H3, W3, Bp, C2)

    # ---- fc1 (adv | val fused): one (B, 256) @ (256, 1024) GEMM.  The torch
    # NCHW flatten order is folded into the w1c row permutation on the host.
    flat = jnp.concatenate(
        [h3_ref[sh, sw, :, :] for sh in range(H3) for sw in range(W3)],
        axis=-1)                                                   # (Bp, S*C2)
    hc = jnp.maximum(dot(flat.astype(bf16), w1c_ref[...]) + b1c_ref[...], 0.0)

    # ---- fc2 + dueling combine: adv in lanes [0, n_actions), val in lane n_actions.
    q = dot(hc.astype(bf16), w2c_ref[...]) + b2c_ref[...]          # (Bp, 8) f32
    adv = q[:n_valid, :n_actions]
    val = q[:, n_actions:n_actions + 1]
    # Q = val + adv - adv.mean(); the PyTorch module uses a *global* mean over
    # (batch, actions).  Padded batch rows are excluded from the mean.
    o_ref[...] = q + val - jnp.mean(adv)


# ------------------------------ host-side glue -------------------------------

def dueling_dqn_forward(x, kp, *, n_actions):
    B, C, H, W = x.shape
    assert H % 4 == 0 and W % 4 == 0, "spatial dims must be multiples of 4"
    Hb, Wb = H // 4, W // 4
    H1, W1 = Hb - 1, Wb - 1
    assert H1 >= 4 and W1 >= 4 and W1 % 2 == 0, "unsupported spatial size"
    H2, W2 = (H1 - 4) // 2 + 1, (W1 - 4) // 2 + 1
    H3, W3 = H2 - 2, W2 - 2

    # Pad batch to a sublane tile (8) so the in-kernel reshapes stay
    # layout-preserving; padded rows are excluded from adv.mean() and sliced off.
    Bp = ((B + 7) // 8) * 8
    if Bp != B:
        x = jnp.pad(x, ((0, Bp - B), (0, 0), (0, 0), (0, 0)))

    # 4x4 space-to-depth, batch-minor, channels-last (a single cheap transpose);
    # pixel values are integers, so the bf16 cast is exact.
    sd = x.reshape(Bp, C, Hb, 4, Wb, 4).transpose(2, 4, 0, 3, 5, 1)
    sd = sd.reshape(Hb, Wb, Bp, 16 * C).astype(jnp.bfloat16)

    vmem = pl.BlockSpec(memory_space=pltpu.MemorySpace.VMEM)
    args = (sd, kp["w1"], kp["b1"], kp["w2"], kp["b2"], kp["w3"], kp["b3"],
            kp["w1c"], kp["b1c"], kp["w2c"], kp["b2c"])
    q = pl.pallas_call(
        functools.partial(_fused_dqn_kernel, n_actions=n_actions, n_valid=B),
        out_shape=jax.ShapeDtypeStruct((Bp, kp["w2c"].shape[1]), jnp.float32),
        in_specs=[vmem] * len(args),
        out_specs=vmem,
        scratch_shapes=[
            pltpu.VMEM((H1, W1 // 2, 2 * Bp, 32), jnp.float32),    # conv1 output
            pltpu.VMEM((H2, W2, Bp, 64), jnp.float32),             # conv2 output
            pltpu.VMEM((H3, W3, Bp, 64), jnp.float32),             # conv3 output
        ],
    )(*args)
    return q[:B, :n_actions]


# ----------------------- kernel-layout parameter prep ------------------------

def prepare_kernel_params(p, *, n_actions):
    """Fold layout / scale decisions into constants once, on the host.
    Nothing here depends on the batch size (per-image kernel design)."""
    bf16 = jnp.bfloat16
    C = np.asarray(p["cw1"]).shape[1]

    # conv1: fold the x/256 input scale; columns ordered to match the kernel's
    # space-to-depth im2col: ((bi*2+bj)*16 + di*4+dj)*C + c  with ki=4*bi+di.
    cw1 = np.asarray(p["cw1"], np.float32) / 256.0                 # (32, C, 8, 8)
    w1 = cw1.reshape(32, C, 2, 4, 2, 4).transpose(2, 4, 3, 5, 1, 0).reshape(64 * C, 32)
    b1 = np.asarray(p["cb1"], np.float32).reshape(1, -1)

    # conv2 / conv3: rows ordered (ki, kj, ci) to match the in-kernel lane order.
    w2 = np.asarray(p["cw2"], np.float32).transpose(2, 3, 1, 0).reshape(16 * 32, 64)
    b2 = np.asarray(p["cb2"], np.float32).reshape(1, -1)
    w3 = np.asarray(p["cw3"], np.float32).transpose(2, 3, 1, 0).reshape(9 * 64, 64)
    b3 = np.asarray(p["cb3"], np.float32).reshape(1, -1)

    # fc1: concat [adv | val]; re-order rows from torch's NCHW flatten order
    # (c*S + s) to the kernel's (s*64 + c) order.
    w1a = np.asarray(p["w1a"], np.float32)
    w1v = np.asarray(p["w1v"], np.float32)
    w1cat = np.concatenate([w1a, w1v], axis=1)                     # (256, Ha+Hv)
    cout3 = 64
    S = w1cat.shape[0] // cout3
    w1c = w1cat.reshape(cout3, S, -1).transpose(1, 0, 2).reshape(w1cat.shape[0], -1)
    b1c = np.concatenate([np.asarray(p["b1a"], np.float32),
                          np.asarray(p["b1v"], np.float32)]).reshape(1, -1)

    # fc2 block matrix: adv -> lanes [0, n_actions), val -> lane n_actions,
    # padded to 8 lanes only (was 128: ~0.5 MB of zero DMA per call, now ~16 KB).
    Ha, Hv = w1a.shape[1], w1v.shape[1]
    npad = 8
    assert n_actions + 1 <= npad, "n_actions must be <= 7 for the 8-lane fc2 head"
    w2c = np.zeros((Ha + Hv, npad), np.float32)
    w2c[:Ha, :n_actions] = np.asarray(p["w2a"], np.float32)
    w2c[Ha:, n_actions] = np.asarray(p["w2v"], np.float32)[:, 0]
    b2c = np.zeros((1, npad), np.float32)
    b2c[0, :n_actions] = np.asarray(p["b2a"], np.float32)
    b2c[0, n_actions] = np.asarray(p["b2v"], np.float32)[0]

    return dict(
        w1=jnp.asarray(w1, bf16), b1=jnp.asarray(b1),
        w2=jnp.asarray(w2, bf16), b2=jnp.asarray(b2),
        w3=jnp.asarray(w3, bf16), b3=jnp.asarray(b3),
        w1c=jnp.asarray(w1c, bf16), b1c=jnp.asarray(b1c),
        w2c=jnp.asarray(w2c, bf16), b2c=jnp.asarray(b2c),
    )


# ------------------------- deterministic parameters --------------------------

def init_params(key, in_channels, conv_out_size, n_actions):
    ks = jax.random.split(key, 14)

    def w(k, shape, fan_in):
        return jax.random.normal(k, shape, jnp.float32) / jnp.sqrt(float(fan_in))

    return {
        # conv (PyTorch OIHW layout)
        "cw1": w(ks[0], (32, in_channels, 8, 8), in_channels * 64),
        "cb1": 0.01 * jax.random.normal(ks[1], (32,), jnp.float32),
        "cw2": w(ks[2], (64, 32, 4, 4), 32 * 16),
        "cb2": 0.01 * jax.random.normal(ks[3], (64,), jnp.float32),
        "cw3": w(ks[4], (64, 64, 3, 3), 64 * 9),
        "cb3": 0.01 * jax.random.normal(ks[5], (64,), jnp.float32),
        # fc_adv (stored as (in, out) = torch weight.T)
        "w1a": w(ks[6], (conv_out_size, 512), conv_out_size),
        "b1a": 0.01 * jax.random.normal(ks[7], (512,), jnp.float32),
        "w2a": w(ks[8], (512, n_actions), 512),
        "b2a": 0.01 * jax.random.normal(ks[9], (n_actions,), jnp.float32),
        # fc_val
        "w1v": w(ks[10], (conv_out_size, 512), conv_out_size),
        "b1v": 0.01 * jax.random.normal(ks[11], (512,), jnp.float32),
        "w2v": w(ks[12], (512, 1), 512),
        "b2v": 0.01 * jax.random.normal(ks[13], (1,), jnp.float32),
    }


# --------------------------------- reference ---------------------------------

def reference_forward(x, p):
    h = x.astype(jnp.float32) / 256.0

    def conv(h, w, b, s):
        y = jax.lax.conv_general_dilated(
            h, w, (s, s), "VALID", dimension_numbers=("NCHW", "OIHW", "NCHW"))
        return jnp.maximum(y + b.reshape(1, -1, 1, 1), 0.0)

    h = conv(h, p["cw1"], p["cb1"], 4)
    h = conv(h, p["cw2"], p["cb2"], 2)
    h = conv(h, p["cw3"], p["cb3"], 1)
    flat = h.reshape(x.shape[0], -1)
    ha = jnp.maximum(flat @ p["w1a"] + p["b1a"], 0.0)
    hv = jnp.maximum(flat @ p["w1v"] + p["b1v"], 0.0)
    adv = ha @ p["w2a"] + p["b2a"]
    val = hv @ p["w2v"] + p["b2v"]
    # Global mean over (batch, actions), exactly as the PyTorch module's adv.mean().
    return val + adv - adv.mean()


# ----------------------------------- main -------------------------------------

if __name__ == "__main__":
    B, C, H, W = 8, 4, 44, 44          # conv stack: 44 -> 10 -> 4 -> 2; conv_out = 64*2*2
    n_actions = 6
    conv_out_size = 64 * 2 * 2

    key = jax.random.PRNGKey(0)
    k_x, k_p = jax.random.split(key)
    # integer "pixel" frames (exact in bf16)
    x = jax.random.randint(k_x, (B, C, H, W), 0, 256).astype(jnp.float32)
    params = init_params(k_p, C, conv_out_size, n_actions)
    kparams = prepare_kernel_params(params, n_actions=n_actions)

    fwd = jax.jit(functools.partial(dueling_dqn_forward, n_actions=n_actions))
    q = fwd(x, kparams)
    jax.block_until_ready(q)

    q_ref = reference_forward(x, params)
    assert q.shape == (B, n_actions)
    max_err = float(jnp.max(jnp.abs(q - q_ref)))
    assert jnp.allclose(q, q_ref, atol=2e-2, rtol=2e-2), \
        f"mismatch vs reference (max abs err {max_err})"

    print("KERNEL_OK")
</pallas_src>

<mosaic_0001>
module attributes {stable_mosaic.version = 11 : i64} {
  func.func @_fused_dqn_kernel(%arg0: memref<11x11x8x64xbf16, #tpu.memory_space<vmem>>, %arg1: memref<256x32xbf16, #tpu.memory_space<vmem>>, %arg2: memref<1x32xf32, #tpu.memory_space<vmem>>, %arg3: memref<512x64xbf16, #tpu.memory_space<vmem>>, %arg4: memref<1x64xf32, #tpu.memory_space<vmem>>, %arg5: memref<576x64xbf16, #tpu.memory_space<vmem>>, %arg6: memref<1x64xf32, #tpu.memory_space<vmem>>, %arg7: memref<256x1024xbf16, #tpu.memory_space<vmem>>, %arg8: memref<1x1024xf32, #tpu.memory_space<vmem>>, %arg9: memref<1024x8xbf16, #tpu.memory_space<vmem>>, %arg10: memref<1x8xf32, #tpu.memory_space<vmem>>, %arg11: memref<8x8xf32, #tpu.memory_space<vmem>>, %arg12: memref<10x5x16x32xf32, #tpu.memory_space<vmem>>, %arg13: memref<4x4x8x64xf32, #tpu.memory_space<vmem>>, %arg14: memref<2x2x8x64xf32, #tpu.memory_space<vmem>>) attributes {dimension_semantics = [], scalar_prefetch = 0 : i64, scratch_operands = 3 : i64, tpu.core_type = #tpu.core_type<tc>} {
    %c0 = arith.constant 0 : index
    %c0_0 = arith.constant 0 : index
    %c0_1 = arith.constant 0 : index
    %c0_2 = arith.constant 0 : index
    %0 = vector.load %arg0[%c0, %c0_0, %c0_1, %c0_2] : memref<11x11x8x64xbf16, #tpu.memory_space<vmem>>, vector<10x10x8x64xbf16>
    %1 = arith.extf %0 : vector<10x10x8x64xbf16> to vector<10x10x8x64xf32>
    %2 = vector.shape_cast %1 : vector<10x10x8x64xf32> to vector<800x64xf32>
    %c0_3 = arith.constant 0 : index
    %c1 = arith.constant 1 : index
    %c0_4 = arith.constant 0 : index
    %c0_5 = arith.constant 0 : index
    %3 = vector.load %arg0[%c0_3, %c1, %c0_4, %c0_5] : memref<11x11x8x64xbf16, #tpu.memory_space<vmem>>, vector<10x10x8x64xbf16>
    %4 = arith.extf %3 : vector<10x10x8x64xbf16> to vector<10x10x8x64xf32>
    %5 = vector.shape_cast %4 : vector<10x10x8x64xf32> to vector<800x64xf32>
    %c1_6 = arith.constant 1 : index
    %c0_7 = arith.constant 0 : index
    %c0_8 = arith.constant 0 : index
    %c0_9 = arith.constant 0 : index
    %6 = vector.load %arg0[%c1_6, %c0_7, %c0_8, %c0_9] : memref<11x11x8x64xbf16, #tpu.memory_space<vmem>>, vector<10x10x8x64xbf16>
    %7 = arith.extf %6 : vector<10x10x8x64xbf16> to vector<10x10x8x64xf32>
    %8 = vector.shape_cast %7 : vector<10x10x8x64xf32> to vector<800x64xf32>
    %c1_10 = arith.constant 1 : index
    %c1_11 = arith.constant 1 : index
    %c0_12 = arith.constant 0 : index
    %c0_13 = arith.constant 0 : index
    %9 = vector.load %arg0[%c1_10, %c1_11, %c0_12, %c0_13] : memref<11x11x8x64xbf16, #tpu.memory_space<vmem>>, vector<10x10x8x64xbf16>
    %10 = arith.extf %9 : vector<10x10x8x64xbf16> to vector<10x10x8x64xf32>
    %11 = vector.shape_cast %10 : vector<10x10x8x64xf32> to vector<800x64xf32>
    %12 = tpu.concatenate %2, %5, %8, %11 in 1 : vector<800x64xf32>, vector<800x64xf32>, vector<800x64xf32>, vector<800x64xf32> -> vector<800x256xf32>
    %13 = arith.truncf %12 : vector<800x256xf32> to vector<800x256xbf16>
    %c0_14 = arith.constant 0 : index
    %c0_15 = arith.constant 0 : index
    %14 = vector.load %arg1[%c0_14, %c0_15] : memref<256x32xbf16, #tpu.memory_space<vmem>>, vector<256x32xbf16>
    %cst = arith.constant dense<0.000000e+00> : vector<800x32xf32>
    %15 = tpu.matmul %13, %14, %cst {dimension_numbers = #tpu.dot_dimension_numbers<[1], [0], [0], [1], [0, 0, 1, 1], [], []>} : vector<800x256xbf16>, vector<256x32xbf16>, vector<800x32xf32> -> vector<800x32xf32>
    %c0_16 = arith.constant 0 : index
    %c0_17 = arith.constant 0 : index
    %16 = vector.load %arg2[%c0_16, %c0_17] : memref<1x32xf32, #tpu.memory_space<vmem>>, vector<1x32xf32>
    %17 = vector.broadcast %16 : vector<1x32xf32> to vector<800x32xf32>
    %18 = arith.addf %15, %17 : vector<800x32xf32>
    %cst_18 = arith.constant 0.000000e+00 : f32
    %19 = vector.broadcast %cst_18 : f32 to vector<800x32xf32>
    %20 = arith.maximumf %18, %19 : vector<800x32xf32>
    %21 = vector.shape_cast %20 : vector<800x32xf32> to vector<10x5x16x32xf32>
    %c0_19 = arith.constant 0 : index
    %c0_20 = arith.constant 0 : index
    %c0_21 = arith.constant 0 : index
    %c0_22 = arith.constant 0 : index
    %22 = vector.load %arg12[%c0_19, %c0_20, %c0_21, %c0_22] : memref<10x5x16x32xf32, #tpu.memory_space<vmem>>, vector<10x5x16x32xf32>
    tpu.vector_store %arg12[%c0_19, %c0_20, %c0_21, %c0_22], %21 {strides = array<i32>} : memref<10x5x16x32xf32, #tpu.memory_space<vmem>>, vector<10x5x16x32xf32>,
    %c0_23 = arith.constant 0 : index
    %c0_24 = arith.constant 0 : index
    %c0_25 = arith.constant 0 : index
    %c0_26 = arith.constant 0 : index
    %23 = vector.load %arg12[%c0_23, %c0_24, %c0_25, %c0_26] : memref<10x5x16x32xf32, #tpu.memory_space<vmem>>, vector<1x4x8x32xf32>
    %24 = vector.shape_cast %23 : vector<1x4x8x32xf32> to vector<4x8x32xf32>
    %c0_27 = arith.constant 0 : index
    %c0_28 = arith.constant 0 : index
    %c8 = arith.constant 8 : index
    %c0_29 = arith.constant 0 : index
    %25 = vector.load %arg12[%c0_27, %c0_28, %c8, %c0_29] : memref<10x5x16x32xf32, #tpu.memory_space<vmem>>, vector<1x4x8x32xf32>
    %26 = vector.shape_cast %25 : vector<1x4x8x32xf32> to vector<4x8x32xf32>
    %c0_30 = arith.constant 0 : index
    %c1_31 = arith.constant 1 : index
    %c0_32 = arith.constant 0 : index
    %c0_33 = arith.constant 0 : index
    %27 = vector.load %arg12[%c0_30, %c1_31, %c0_32, %c0_33] : memref<10x5x16x32xf32, #tpu.memory_space<vmem>>, vector<1x4x8x32xf32>
    %28 = vector.shape_cast %27 : vector<1x4x8x32xf32> to vector<4x8x32xf32>
    %c0_34 = arith.constant 0 : index
    %c1_35 = arith.constant 1 : index
    %c8_36 = arith.constant 8 : index
    %c0_37 = arith.constant 0 : index
    %29 = vector.load %arg12[%c0_34, %c1_35, %c8_36, %c0_37] : memref<10x5x16x32xf32, #tpu.memory_space<vmem>>, vector<1x4x8x32xf32>
    %30 = vector.shape_cast %29 : vector<1x4x8x32xf32> to vector<4x8x32xf32>
    %c1_38 = arith.constant 1 : index
    %c0_39 = arith.constant 0 : index
    %c0_40 = arith.constant 0 : index
    %c0_41 = arith.constant 0 : index
    %31 = vector.load %arg12[%c1_38, %c0_39, %c0_40, %c0_41] : memref<10x5x16x32xf32, #tpu.memory_space<vmem>>, vector<1x4x8x32xf32>
    %32 = vector.shape_cast %31 : vector<1x4x8x32xf32> to vector<4x8x32xf32>
    %c1_42 = arith.constant 1 : index
    %c0_43 = arith.constant 0 : index
    %c8_44 = arith.constant 8 : index
    %c0_45 = arith.constant 0 : index
    %33 = vector.load %arg12[%c1_42, %c0_43, %c8_44, %c0_45] : memref<10x5x16x32xf32, #tpu.memory_space<vmem>>, vector<1x4x8x32xf32>
    %34 = vector.shape_cast %33 : vector<1x4x8x32xf32> to vector<4x8x32xf32>
    %c1_46 = arith.constant 1 : index
    %c1_47 = arith.constant 1 : index
    %c0_48 = arith.constant 0 : index
    %c0_49 = arith.constant 0 : index
    %35 = vector.load %arg12[%c1_46, %c1_47, %c0_48, %c0_49] : memref<10x5x16x32xf32, #tpu.memory_space<vmem>>, vector<1x4x8x32xf32>
    %36 = vector.shape_cast %35 : vector<1x4x8x32xf32> to vector<4x8x32xf32>
    %c1_50 = arith.constant 1 : index
    %c1_51 = arith.constant 1 : index
    %c8_52 = arith.constant 8 : index
    %c0_53 = arith.constant 0 : index
    %37 = vector.load %arg12[%c1_50, %c1_51, %c8_52, %c0_53] : memref<10x5x16x32xf32, #tpu.memory_space<vmem>>, vector<1x4x8x32xf32>
    %38 = vector.shape_cast %37 : vector<1x4x8x32xf32> to vector<4x8x32xf32>
    %c2 = arith.constant 2 : index
    %c0_54 = arith.constant 0 : index
    %c0_55 = arith.constant 0 : index
    %c0_56 = arith.constant 0 : index
    %39 = vector.load %arg12[%c2, %c0_54, %c0_55, %c0_56] : memref<10x5x16x32xf32, #tpu.memory_space<vmem>>, vector<1x4x8x32xf32>
    %40 = vector.shape_cast %39 : vector<1x4x8x32xf32> to vector<4x8x32xf32>
    %c2_57 = arith.constant 2 : index
    %c0_58 = arith.constant 0 : index
    %c8_59 = arith.constant 8 : index
    %c0_60 = arith.constant 0 : index
    %41 = vector.load %arg12[%c2_57, %c0_58, %c8_59, %c0_60] : memref<10x5x16x32xf32, #tpu.memory_space<vmem>>, vector<1x4x8x32xf32>
    %42 = vector.shape_cast %41 : vector<1x4x8x32xf32> to vector<4x8x32xf32>
    %c2_61 = arith.constant 2 : index
    %c1_62 = arith.constant 1 : index
    %c0_63 = arith.constant 0 : index
    %c0_64 = arith.constant 0 : index
    %43 = vector.load %arg12[%c2_61, %c1_62, %c0_63, %c0_64] : memref<10x5x16x32xf32, #tpu.memory_space<vmem>>, vector<1x4x8x32xf32>
    %44 = vector.shape_cast %43 : vector<1x4x8x32xf32> to vector<4x8x32xf32>
    %c2_65 = arith.constant 2 : index
    %c1_66 = arith.constant 1 : index
    %c8_67 = arith.constant 8 : index
    %c0_68 = arith.constant 0 : index
    %45 = vector.load %arg12[%c2_65, %c1_66, %c8_67, %c0_68] : memref<10x5x16x32xf32, #tpu.memory_space<vmem>>, vector<1x4x8x32xf32>
    %46 = vector.shape_cast %45 : vector<1x4x8x32xf32> to vector<4x8x32xf32>
    %c3 = arith.constant 3 : index
    %c0_69 = arith.constant 0 : index
    %c0_70 = arith.constant 0 : index
    %c0_71 = arith.constant 0 : index
    %47 = vector.load %arg12[%c3, %c0_69, %c0_70, %c0_71] : memref<10x5x16x32xf32, #tpu.memory_space<vmem>>, vector<1x4x8x32xf32>
    %48 = vector.shape_cast %47 : vector<1x4x8x32xf32> to vector<4x8x32xf32>
    %c3_72 = arith.constant 3 : index
    %c0_73 = arith.constant 0 : index
    %c8_74 = arith.constant 8 : index
    %c0_75 = arith.constant 0 : index
    %49 = vector.load %arg12[%c3_72, %c0_73, %c8_74, %c0_75] : memref<10x5x16x32xf32, #tpu.memory_space<vmem>>, vector<1x4x8x32xf32>
    %50 = vector.shape_cast %49 : vector<1x4x8x32xf32> to vector<4x8x32xf32>
    %c3_76 = arith.constant 3 : index
    %c1_77 = arith.constant 1 : index
    %c0_78 = arith.constant 0 : index
    %c0_79 = arith.constant 0 : index
    %51 = vector.load %arg12[%c3_76, %c1_77, %c0_78, %c0_79] : memref<10x5x16x32xf32, #tpu.memory_space<vmem>>, vector<1x4x8x32xf32>
    %52 = vector.shape_cast %51 : vector<1x4x8x32xf32> to vector<4x8x32xf32>
    %c3_80 = arith.constant 3 : index
    %c1_81 = arith.constant 1 : index
    %c8_82 = arith.constant 8 : index
    %c0_83 = arith.constant 0 : index
    %53 = vector.load %arg12[%c3_80, %c1_81, %c8_82, %c0_83] : memref<10x5x16x32xf32, #tpu.memory_space<vmem>>, vector<1x4x8x32xf32>
    %54 = vector.shape_cast %53 : vector<1x4x8x32xf32> to vector<4x8x32xf32>
    %55 = tpu.concatenate %24, %26, %28, %30, %32, %34, %36, %38, %40, %42, %44, %46, %48, %50, %52, %54 in 2 : vector<4x8x32xf32>, vector<4x8x32xf32>, vector<4x8x32xf32>, vector<4x8x32xf32>, vector<4x8x32xf32>, vector<4x8x32xf32>, vector<4x8x32xf32>, vector<4x8x32xf32>, vector<4x8x32xf32>, vector<4x8x32xf32>, vector<4x8x32xf32>, vector<4x8x32xf32>, vector<4x8x32xf32>, vector<4x8x32xf32>, vector<4x8x32xf32>, vector<4x8x32xf32> -> vector<4x8x512xf32>
    %c2_84 = arith.constant 2 : index
    %c0_85 = arith.constant 0 : index
    %c0_86 = arith.constant 0 : index
    %c0_87 = arith.constant 0 : index
    %56 = vector.load %arg12[%c2_84, %c0_85, %c0_86, %c0_87] : memref<10x5x16x32xf32, #tpu.memory_space<vmem>>, vector<1x4x8x32xf32>
    %57 = vector.shape_cast %56 : vector<1x4x8x32xf32> to vector<4x8x32xf32>
    %c2_88 = arith.constant 2 : index
    %c0_89 = arith.constant 0 : index
    %c8_90 = arith.constant 8 : index
    %c0_91 = arith.constant 0 : index
    %58 = vector.load %arg12[%c2_88, %c0_89, %c8_90, %c0_91] : memref<10x5x16x32xf32, #tpu.memory_space<vmem>>, vector<1x4x8x32xf32>
    %59 = vector.shape_cast %58 : vector<1x4x8x32xf32> to vector<4x8x32xf32>
    %c2_92 = arith.constant 2 : index
    %c1_93 = arith.constant 1 : index
    %c0_94 = arith.constant 0 : index
    %c0_95 = arith.constant 0 : index
    %60 = vector.load %arg12[%c2_92, %c1_93, %c0_94, %c0_95] : memref<10x5x16x32xf32, #tpu.memory_space<vmem>>, vector<1x4x8x32xf32>
    %61 = vector.shape_cast %60 : vector<1x4x8x32xf32> to vector<4x8x32xf32>
    %c2_96 = arith.constant 2 : index
    %c1_97 = arith.constant 1 : index
    %c8_98 = arith.constant 8 : index
    %c0_99 = arith.constant 0 : index
    %62 = vector.load %arg12[%c2_96, %c1_97, %c8_98, %c0_99] : memref<10x5x16x32xf32, #tpu.memory_space<vmem>>, vector<1x4x8x32xf32>
    %63 = vector.shape_cast %62 : vector<1x4x8x32xf32> to vector<4x8x32xf32>
    %c3_100 = arith.constant 3 : index
    %c0_101 = arith.constant 0 : index
    %c0_102 = arith.constant 0 : index
    %c0_103 = arith.constant 0 : index
    %64 = vector.load %arg12[%c3_100, %c0_101, %c0_102, %c0_103] : memref<10x5x16x32xf32, #tpu.memory_space<vmem>>, vector<1x4x8x32xf32>
    %65 = vector.shape_cast %64 : vector<1x4x8x32xf32> to vector<4x8x32xf32>
    %c3_104 = arith.constant 3 : index
    %c0_105 = arith.constant 0 : index
    %c8_106 = arith.constant 8 : index
    %c0_107 = arith.constant 0 : index
    %66 = vector.load %arg12[%c3_104, %c0_105, %c8_106, %c0_107] : memref<10x5x16x32xf32, #tpu.memory_space<vmem>>, vector<1x4x8x32xf32>
    %67 = vector.shape_cast %66 : vector<1x4x8x32xf32> to vector<4x8x32xf32>
    %c3_108 = arith.constant 3 : index
    %c1_109 = arith.constant 1 : index
    %c0_110 = arith.constant 0 : index
    %c0_111 = arith.constant 0 : index
    %68 = vector.load %arg12[%c3_108, %c1_109, %c0_110, %c0_111] : memref<10x5x16x32xf32, #tpu.memory_space<vmem>>, vector<1x4x8x32xf32>
    %69 = vector.shape_cast %68 : vector<1x4x8x32xf32> to vector<4x8x32xf32>
    %c3_112 = arith.constant 3 : index
    %c1_113 = arith.constant 1 : index
    %c8_114 = arith.constant 8 : index
    %c0_115 = arith.constant 0 : index
    %70 = vector.load %arg12[%c3_112, %c1_113, %c8_114, %c0_115] : memref<10x5x16x32xf32, #tpu.memory_space<vmem>>, vector<1x4x8x32xf32>
    %71 = vector.shape_cast %70 : vector<1x4x8x32xf32> to vector<4x8x32xf32>
    %c4 = arith.constant 4 : index
    %c0_116 = arith.constant 0 : index
    %c0_117 = arith.constant 0 : index
    %c0_118 = arith.constant 0 : index
    %72 = vector.load %arg12[%c4, %c0_116, %c0_117, %c0_118] : memref<10x5x16x32xf32, #tpu.memory_space<vmem>>, vector<1x4x8x32xf32>
    %73 = vector.shape_cast %72 : vector<1x4x8x32xf32> to vector<4x8x32xf32>
    %c4_119 = arith.constant 4 : index
    %c0_120 = arith.constant 0 : index
    %c8_121 = arith.constant 8 : index
    %c0_122 = arith.constant 0 : index
    %74 = vector.load %arg12[%c4_119, %c0_120, %c8_121, %c0_122] : memref<10x5x16x32xf32, #tpu.memory_space<vmem>>, vector<1x4x8x32xf32>
    %75 = vector.shape_cast %74 : vector<1x4x8x32xf32> to vector<4x8x32xf32>
    %c4_123 = arith.constant 4 : index
    %c1_124 = arith.constant 1 : index
    %c0_125 = arith.constant 0 : index
    %c0_126 = arith.constant 0 : index
    %76 = vector.load %arg12[%c4_123, %c1_124, %c0_125, %c0_126] : memref<10x5x16x32xf32, #tpu.memory_space<vmem>>, vector<1x4x8x32xf32>
    %77 = vector.shape_cast %76 : vector<1x4x8x32xf32> to vector<4x8x32xf32>
    %c4_127 = arith.constant 4 : index
    %c1_128 = arith.constant 1 : index
    %c8_129 = arith.constant 8 : index
    %c0_130 = arith.constant 0 : index
    %78 = vector.load %arg12[%c4_127, %c1_128, %c8_129, %c0_130] : memref<10x5x16x32xf32, #tpu.memory_space<vmem>>, vector<1x4x8x32xf32>
    %79 = vector.shape_cast %78 : vector<1x4x8x32xf32> to vector<4x8x32xf32>
    %c5 = arith.constant 5 : index
    %c0_131 = arith.constant 0 : index
    %c0_132 = arith.constant 0 : index
    %c0_133 = arith.constant 0 : index
    %80 = vector.load %arg12[%c5, %c0_131, %c0_132, %c0_133] : memref<10x5x16x32xf32, #tpu.memory_space<vmem>>, vector<1x4x8x32xf32>
    %81 = vector.shape_cast %80 : vector<1x4x8x32xf32> to vector<4x8x32xf32>
    %c5_134 = arith.constant 5 : index
    %c0_135 = arith.constant 0 : index
    %c8_136 = arith.constant 8 : index
    %c0_137 = arith.constant 0 : index
    %82 = vector.load %arg12[%c5_134, %c0_135, %c8_136, %c0_137] : memref<10x5x16x32xf32, #tpu.memory_space<vmem>>, vector<1x4x8x32xf32>
    %83 = vector.shape_cast %82 : vector<1x4x8x32xf32> to vector<4x8x32xf32>
    %c5_138 = arith.constant 5 : index
    %c1_139 = arith.constant 1 : index
    %c0_140 = arith.constant 0 : index
    %c0_141 = arith.constant 0 : index
    %84 = vector.load %arg12[%c5_138, %c1_139, %c0_140, %c0_141] : memref<10x5x16x32xf32, #tpu.memory_space<vmem>>, vector<1x4x8x32xf32>
    %85 = vector.shape_cast %84 : vector<1x4x8x32xf32> to vector<4x8x32xf32>
    %c5_142 = arith.constant 5 : index
    %c1_143 = arith.constant 1 : index
    %c8_144 = arith.constant 8 : index
    %c0_145 = arith.constant 0 : index
    %86 = vector.load %arg12[%c5_142, %c1_143, %c8_144, %c0_145] : memref<10x5x16x32xf32, #tpu.memory_space<vmem>>, vector<1x4x8x32xf32>
    %87 = vector.shape_cast %86 : vector<1x4x8x32xf32> to vector<4x8x32xf32>
    %88 = tpu.concatenate %57, %59, %61, %63, %65, %67, %69, %71, %73, %75, %77, %79, %81, %83, %85, %87 in 2 : vector<4x8x32xf32>, vector<4x8x32xf32>, vector<4x8x32xf32>, vector<4x8x32xf32>, vector<4x8x32xf32>, vector<4x8x32xf32>, vector<4x8x32xf32>, vector<4x8x32xf32>, vector<4x8x32xf32>, vector<4x8x32xf32>, vector<4x8x32xf32>, vector<4x8x32xf32>, vector<4x8x32xf32>, vector<4x8x32xf32>, vector<4x8x32xf32>, vector<4x8x32xf32> -> vector<4x8x512xf32>
    %c4_146 = arith.constant 4 : index
    %c0_147 = arith.constant 0 : index
    %c0_148 = arith.constant 0 : index
    %c0_149 = arith.constant 0 : index
    %89 = vector.load %arg12[%c4_146, %c0_147, %c0_148, %c0_149] : memref<10x5x16x32xf32, #tpu.memory_space<vmem>>, vector<1x4x8x32xf32>
    %90 = vector.shape_cast %89 : vector<1x4x8x32xf32> to vector<4x8x32xf32>
    %c4_150 = arith.constant 4 : index
    %c0_151 = arith.constant 0 : index
    %c8_152 = arith.constant 8 : index
    %c0_153 = arith.constant 0 : index
    %91 = vector.load %arg12[%c4_150, %c0_151, %c8_152, %c0_153] : memref<10x5x16x32xf32, #tpu.memory_space<vmem>>, vector<1x4x8x32xf32>
    %92 = vector.shape_cast %91 : vector<1x4x8x32xf32> to vector<4x8x32xf32>
    %c4_154 = arith.constant 4 : index
    %c1_155 = arith.constant 1 : index
    %c0_156 = arith.constant 0 : index
    %c0_157 = arith.constant 0 : index
    %93 = vector.load %arg12[%c4_154, %c1_155, %c0_156, %c0_157] : memref<10x5x16x32xf32, #tpu.memory_space<vmem>>, vector<1x4x8x32xf32>
    %94 = vector.shape_cast %93 : vector<1x4x8x32xf32> to vector<4x8x32xf32>
    %c4_158 = arith.constant 4 : index
    %c1_159 = arith.constant 1 : index
    %c8_160 = arith.constant 8 : index
    %c0_161 = arith.constant 0 : index
    %95 = vector.load %arg12[%c4_158, %c1_159, %c8_160, %c0_161] : memref<10x5x16x32xf32, #tpu.memory_space<vmem>>, vector<1x4x8x32xf32>
    %96 = vector.shape_cast %95 : vector<1x4x8x32xf32> to vector<4x8x32xf32>
    %c5_162 = arith.constant 5 : index
    %c0_163 = arith.constant 0 : index
    %c0_164 = arith.constant 0 : index
    %c0_165 = arith.constant 0 : index
    %97 = vector.load %arg12[%c5_162, %c0_163, %c0_164, %c0_165] : memref<10x5x16x32xf32, #tpu.memory_space<vmem>>, vector<1x4x8x32xf32>
    %98 = vector.shape_cast %97 : vector<1x4x8x32xf32> to vector<4x8x32xf32>
    %c5_166 = arith.constant 5 : index
    %c0_167 = arith.constant 0 : index
    %c8_168 = arith.constant 8 : index
    %c0_169 = arith.constant 0 : index
    %99 = vector.load %arg12[%c5_166, %c0_167, %c8_168, %c0_169] : memref<10x5x16x32xf32, #tpu.memory_space<vmem>>, vector<1x4x8x32xf32>
    %100 = vector.shape_cast %99 : vector<1x4x8x32xf32> to vector<4x8x32xf32>
    %c5_170 = arith.constant 5 : index
    %c1_171 = arith.constant 1 : index
    %c0_172 = arith.constant 0 : index
    %c0_173 = arith.constant 0 : index
    %101 = vector.load %arg12[%c5_170, %c1_171, %c0_172, %c0_173] : memref<10x5x16x32xf32, #tpu.memory_space<vmem>>, vector<1x4x8x32xf32>
    %102 = vector.shape_cast %101 : vector<1x4x8x32xf32> to vector<4x8x32xf32>
    %c5_174 = arith.constant 5 : index
    %c1_175 = arith.constant 1 : index
    %c8_176 = arith.constant 8 : index
    %c0_177 = arith.constant 0 : index
    %103 = vector.load %arg12[%c5_174, %c1_175, %c8_176, %c0_177] : memref<10x5x16x32xf32, #tpu.memory_space<vmem>>, vector<1x4x8x32xf32>
    %104 = vector.shape_cast %103 : vector<1x4x8x32xf32> to vector<4x8x32xf32>
    %c6 = arith.constant 6 : index
    %c0_178 = arith.constant 0 : index
    %c0_179 = arith.constant 0 : index
    %c0_180 = arith.constant 0 : index
    %105 = vector.load %arg12[%c6, %c0_178, %c0_179, %c0_180] : memref<10x5x16x32xf32, #tpu.memory_space<vmem>>, vector<1x4x8x32xf32>
    %106 = vector.shape_cast %105 : vector<1x4x8x32xf32> to vector<4x8x32xf32>
    %c6_181 = arith.constant 6 : index
    %c0_182 = arith.constant 0 : index
    %c8_183 = arith.constant 8 : index
    %c0_184 = arith.constant 0 : index
    %107 = vector.load %arg12[%c6_181, %c0_182, %c8_183, %c0_184] : memref<10x5x16x32xf32, #tpu.memory_space<vmem>>, vector<1x4x8x32xf32>
    %108 = vector.shape_cast %107 : vector<1x4x8x32xf32> to vector<4x8x32xf32>
    %c6_185 = arith.constant 6 : index
    %c1_186 = arith.constant 1 : index
    %c0_187 = arith.constant 0 : index
    %c0_188 = arith.constant 0 : index
    %109 = vector.load %arg12[%c6_185, %c1_186, %c0_187, %c0_188] : memref<10x5x16x32xf32, #tpu.memory_space<vmem>>, vector<1x4x8x32xf32>
    %110 = vector.shape_cast %109 : vector<1x4x8x32xf32> to vector<4x8x32xf32>
    %c6_189 = arith.constant 6 : index
    %c1_190 = arith.constant 1 : index
    %c8_191 = arith.constant 8 : index
    %c0_192 = arith.constant 0 : index
    %111 = vector.load %arg12[%c6_189, %c1_190, %c8_191, %c0_192] : memref<10x5x16x32xf32, #tpu.memory_space<vmem>>, vector<1x4x8x32xf32>
    %112 = vector.shape_cast %111 : vector<1x4x8x32xf32> to vector<4x8x32xf32>
    %c7 = arith.constant 7 : index
    %c0_193 = arith.constant 0 : index
    %c0_194 = arith.constant 0 : index
    %c0_195 = arith.constant 0 : index
    %113 = vector.load %arg12[%c7, %c0_193, %c0_194, %c0_195] : memref<10x5x16x32xf32, #tpu.memory_space<vmem>>, vector<1x4x8x32xf32>
    %114 = vector.shape_cast %113 : vector<1x4x8x32xf32> to vector<4x8x32xf32>
    %c7_196 = arith.constant 7 : index
    %c0_197 = arith.constant 0 : index
    %c8_198 = arith.constant 8 : index
    %c0_199 = arith.constant 0 : index
    %115 = vector.load %arg12[%c7_196, %c0_197, %c8_198, %c0_199] : memref<10x5x16x32xf32, #tpu.memory_space<vmem>>, vector<1x4x8x32xf32>
    %116 = vector.shape_cast %115 : vector<1x4x8x32xf32> to vector<4x8x32xf32>
    %c7_200 = arith.constant 7 : index
    %c1_201 = arith.constant 1 : index
    %c0_202 = arith.constant 0 : index
    %c0_203 = arith.constant 0 : index
    %117 = vector.load %arg12[%c7_200, %c1_201, %c0_202, %c0_203] : memref<10x5x16x32xf32, #tpu.memory_space<vmem>>, vector<1x4x8x32xf32>
    %118 = vector.shape_cast %117 : vector<1x4x8x32xf32> to vector<4x8x32xf32>
    %c7_204 = arith.constant 7 : index
    %c1_205 = arith.constant 1 : index
    %c8_206 = arith.constant 8 : index
    %c0_207 = arith.constant 0 : index
    %119 = vector.load %arg12[%c7_204, %c1_205, %c8_206, %c0_207] : memref<10x5x16x32xf32, #tpu.memory_space<vmem>>, vector<1x4x8x32xf32>
    %120 = vector.shape_cast %119 : vector<1x4x8x32xf32> to vector<4x8x32xf32>
    %121 = tpu.concatenate %90, %92, %94, %96, %98, %100, %102, %104, %106, %108, %110, %112, %114, %116, %118, %120 in 2 : vector<4x8x32xf32>, vector<4x8x32xf32>, vector<4x8x32xf32>, vector<4x8x32xf32>, vector<4x8x32xf32>, vector<4x8x32xf32>, vector<4x8x32xf32>, vector<4x8x32xf32>, vector<4x8x32xf32>, vector<4x8x32xf32>, vector<4x8x32xf32>, vector<4x8x32xf32>, vector<4x8x32xf32>, vector<4x8x32xf32>, vector<4x8x32xf32>, vector<4x8x32xf32> -> vector<4x8x512xf32>
    %c6_208 = arith.constant 6 : index
    %c0_209 = arith.constant 0 : index
    %c0_210 = arith.constant 0 : index
    %c0_211 = arith.constant 0 : index
    %122 = vector.load %arg12[%c6_208, %c0_209, %c0_210, %c0_211] : memref<10x5x16x32xf32, #tpu.memory_space<vmem>>, vector<1x4x8x32xf32>
    %123 = vector.shape_cast %122 : vector<1x4x8x32xf32> to vector<4x8x32xf32>
    %c6_212 = arith.constant 6 : index
    %c0_213 = arith.constant 0 : index
    %c8_214 = arith.constant 8 : index
    %c0_215 = arith.constant 0 : index
    %124 = vector.load %arg12[%c6_212, %c0_213, %c8_214, %c0_215] : memref<10x5x16x32xf32, #tpu.memory_space<vmem>>, vector<1x4x8x32xf32>
    %125 = vector.shape_cast %124 : vector<1x4x8x32xf32> to vector<4x8x32xf32>
    %c6_216 = arith.constant 6 : index
    %c1_217 = arith.constant 1 : index
    %c0_218 = arith.constant 0 : index
    %c0_219 = arith.constant 0 : index
    %126 = vector.load %arg12[%c6_216, %c1_217, %c0_218, %c0_219] : memref<10x5x16x32xf32, #tpu.memory_space<vmem>>, vector<1x4x8x32xf32>
    %127 = vector.shape_cast %126 : vector<1x4x8x32xf32> to vector<4x8x32xf32>
    %c6_220 = arith.constant 6 : index
    %c1_221 = arith.constant 1 : index
    %c8_222 = arith.constant 8 : index
    %c0_223 = arith.constant 0 : index
    %128 = vector.load %arg12[%c6_220, %c1_221, %c8_222, %c0_223] : memref<10x5x16x32xf32, #tpu.memory_space<vmem>>, vector<1x4x8x32xf32>
    %129 = vector.shape_cast %128 : vector<1x4x8x32xf32> to vector<4x8x32xf32>
    %c7_224 = arith.constant 7 : index
    %c0_225 = arith.constant 0 : index
    %c0_226 = arith.constant 0 : index
    %c0_227 = arith.constant 0 : index
    %130 = vector.load %arg12[%c7_224, %c0_225, %c0_226, %c0_227] : memref<10x5x16x32xf32, #tpu.memory_space<vmem>>, vector<1x4x8x32xf32>
    %131 = vector.shape_cast %130 : vector<1x4x8x32xf32> to vector<4x8x32xf32>
    %c7_228 = arith.constant 7 : index
    %c0_229 = arith.constant 0 : index
    %c8_230 = arith.constant 8 : index
    %c0_231 = arith.constant 0 : index
    %132 = vector.load %arg12[%c7_228, %c0_229, %c8_230, %c0_231] : memref<10x5x16x32xf32, #tpu.memory_space<vmem>>, vector<1x4x8x32xf32>
    %133 = vector.shape_cast %132 : vector<1x4x8x32xf32> to vector<4x8x32xf32>
    %c7_232 = arith.constant 7 : index
    %c1_233 = arith.constant 1 : index
    %c0_234 = arith.constant 0 : index
    %c0_235 = arith.constant 0 : index
    %134 = vector.load %arg12[%c7_232, %c1_233, %c0_234, %c0_235] : memref<10x5x16x32xf32, #tpu.memory_space<vmem>>, vector<1x4x8x32xf32>
    %135 = vector.shape_cast %134 : vector<1x4x8x32xf32> to vector<4x8x32xf32>
    %c7_236 = arith.constant 7 : index
    %c1_237 = arith.constant 1 : index
    %c8_238 = arith.constant 8 : index
    %c0_239 = arith.constant 0 : index
    %136 = vector.load %arg12[%c7_236, %c1_237, %c8_238, %c0_239] : memref<10x5x16x32xf32, #tpu.memory_space<vmem>>, vector<1x4x8x32xf32>
    %137 = vector.shape_cast %136 : vector<1x4x8x32xf32> to vector<4x8x32xf32>
    %c8_240 = arith.constant 8 : index
    %c0_241 = arith.constant 0 : index
    %c0_242 = arith.constant 0 : index
    %c0_243 = arith.constant 0 : index
    %138 = vector.load %arg12[%c8_240, %c0_241, %c0_242, %c0_243] : memref<10x5x16x32xf32, #tpu.memory_space<vmem>>, vector<1x4x8x32xf32>
    %139 = vector.shape_cast %138 : vector<1x4x8x32xf32> to vector<4x8x32xf32>
    %c8_244 = arith.constant 8 : index
    %c0_245 = arith.constant 0 : index
    %c8_246 = arith.constant 8 : index
    %c0_247 = arith.constant 0 : index
    %140 = vector.load %arg12[%c8_244, %c0_245, %c8_246, %c0_247] : memref<10x5x16x32xf32, #tpu.memory_space<vmem>>, vector<1x4x8x32xf32>
    %141 = vector.shape_cast %140 : vector<1x4x8x32xf32> to vector<4x8x32xf32>
    %c8_248 = arith.constant 8 : index
    %c1_249 = arith.constant 1 : index
    %c0_250 = arith.constant 0 : index
    %c0_251 = arith.constant 0 : index
    %142 = vector.load %arg12[%c8_248, %c1_249, %c0_250, %c0_251] : memref<10x5x16x32xf32, #tpu.memory_space<vmem>>, vector<1x4x8x32xf32>
    %143 = vector.shape_cast %142 : vector<1x4x8x32xf32> to vector<4x8x32xf32>
    %c8_252 = arith.constant 8 : index
    %c1_253 = arith.constant 1 : index
    %c8_254 = arith.constant 8 : index
    %c0_255 = arith.constant 0 : index
    %144 = vector.load %arg12[%c8_252, %c1_253, %c8_254, %c0_255] : memref<10x5x16x32xf32, #tpu.memory_space<vmem>>, vector<1x4x8x32xf32>
    %145 = vector.shape_cast %144 : vector<1x4x8x32xf32> to vector<4x8x32xf32>
    %c9 = arith.constant 9 : index
    %c0_256 = arith.constant 0 : index
    %c0_257 = arith.constant 0 : index
    %c0_258 = arith.constant 0 : index
    %146 = vector.load %arg12[%c9, %c0_256, %c0_257, %c0_258] : memref<10x5x16x32xf32, #tpu.memory_space<vmem>>, vector<1x4x8x32xf32>
    %147 = vector.shape_cast %146 : vector<1x4x8x32xf32> to vector<4x8x32xf32>
    %c9_259 = arith.constant 9 : index
    %c0_260 = arith.constant 0 : index
    %c8_261 = arith.constant 8 : index
    %c0_262 = arith.constant 0 : index
    %148 = vector.load %arg12[%c9_259, %c0_260, %c8_261, %c0_262] : memref<10x5x16x32xf32, #tpu.memory_space<vmem>>, vector<1x4x8x32xf32>
    %149 = vector.shape_cast %148 : vector<1x4x8x32xf32> to vector<4x8x32xf32>
    %c9_263 = arith.constant 9 : index
    %c1_264 = arith.constant 1 : index
    %c0_265 = arith.constant 0 : index
    %c0_266 = arith.constant 0 : index
    %150 = vector.load %arg12[%c9_263, %c1_264, %c0_265, %c0_266] : memref<10x5x16x32xf32, #tpu.memory_space<vmem>>, vector<1x4x8x32xf32>
    %151 = vector.shape_cast %150 : vector<1x4x8x32xf32> to vector<4x8x32xf32>
    %c9_267 = arith.constant 9 : index
    %c1_268 = arith.constant 1 : index
    %c8_269 = arith.constant 8 : index
    %c0_270 = arith.constant 0 : index
    %152 = vector.load %arg12[%c9_267, %c1_268, %c8_269, %c0_270] : memref<10x5x16x32xf32, #tpu.memory_space<vmem>>, vector<1x4x8x32xf32>
    %153 = vector.shape_cast %152 : vector<1x4x8x32xf32> to vector<4x8x32xf32>
    %154 = tpu.concatenate %123, %125, %127, %129, %131, %133, %135, %137, %139, %141, %143, %145, %147, %149, %151, %153 in 2 : vector<4x8x32xf32>, vector<4x8x32xf32>, vector<4x8x32xf32>, vector<4x8x32xf32>, vector<4x8x32xf32>, vector<4x8x32xf32>, vector<4x8x32xf32>, vector<4x8x32xf32>, vector<4x8x32xf32>, vector<4x8x32xf32>, vector<4x8x32xf32>, vector<4x8x32xf32>, vector<4x8x32xf32>, vector<4x8x32xf32>, vector<4x8x32xf32>, vector<4x8x32xf32> -> vector<4x8x512xf32>
    %155 = vector.shape_cast %55 : vector<4x8x512xf32> to vector<1x4x8x512xf32>
    %156 = vector.shape_cast %88 : vector<4x8x512xf32> to vector<1x4x8x512xf32>
    %157 = vector.shape_cast %121 : vector<4x8x512xf32> to vector<1x4x8x512xf32>
    %158 = vector.shape_cast %154 : vector<4x8x512xf32> to vector<1x4x8x512xf32>
    %159 = tpu.concatenate %155, %156, %157, %158 in 0 : vector<1x4x8x512xf32>, vector<1x4x8x512xf32>, vector<1x4x8x512xf32>, vector<1x4x8x512xf32> -> vector<4x4x8x512xf32>
    %160 = vector.shape_cast %159 : vector<4x4x8x512xf32> to vector<128x512xf32>
    %161 = arith.truncf %160 : vector<128x512xf32> to vector<128x512xbf16>
    %c0_271 = arith.constant 0 : index
    %c0_272 = arith.constant 0 : index
    %162 = vector.load %arg3[%c0_271, %c0_272] : memref<512x64xbf16, #tpu.memory_space<vmem>>, vector<512x64xbf16>
    %cst_273 = arith.constant dense<0.000000e+00> : vector<128x64xf32>
    %163 = tpu.matmul %161, %162, %cst_273 {dimension_numbers = #tpu.dot_dimension_numbers<[1], [0], [0], [1], [0, 0, 1, 1], [], []>} : vector<128x512xbf16>, vector<512x64xbf16>, vector<128x64xf32> -> vector<128x64xf32>
    %c0_274 = arith.constant 0 : index
    %c0_275 = arith.constant 0 : index
    %164 = vector.load %arg4[%c0_274, %c0_275] : memref<1x64xf32, #tpu.memory_space<vmem>>, vector<1x64xf32>
    %165 = vector.broadcast %164 : vector<1x64xf32> to vector<128x64xf32>
    %166 = arith.addf %163, %165 : vector<128x64xf32>
    %cst_276 = arith.constant 0.000000e+00 : f32
    %167 = vector.broadcast %cst_276 : f32 to vector<128x64xf32>
    %168 = arith.maximumf %166, %167 : vector<128x64xf32>
    %169 = vector.shape_cast %168 : vector<128x64xf32> to vector<4x4x8x64xf32>
    %c0_277 = arith.constant 0 : index
    %c0_278 = arith.constant 0 : index
    %c0_279 = arith.constant 0 : index
    %c0_280 = arith.constant 0 : index
    %170 = vector.load %arg13[%c0_277, %c0_278, %c0_279, %c0_280] : memref<4x4x8x64xf32, #tpu.memory_space<vmem>>, vector<4x4x8x64xf32>
    tpu.vector_store %arg13[%c0_277, %c0_278, %c0_279, %c0_280], %169 {strides = array<i32>} : memref<4x4x8x64xf32, #tpu.memory_space<vmem>>, vector<4x4x8x64xf32>,
    %c0_281 = arith.constant 0 : index
    %c0_282 = arith.constant 0 : index
    %c0_283 = arith.constant 0 : index
    %c0_284 = arith.constant 0 : index
    %171 = vector.load %arg13[%c0_281, %c0_282, %c0_283, %c0_284] : memref<4x4x8x64xf32, #tpu.memory_space<vmem>>, vector<2x2x8x64xf32>
    %c0_285 = arith.constant 0 : index
    %c1_286 = arith.constant 1 : index
    %c0_287 = arith.constant 0 : index
    %c0_288 = arith.constant 0 : index
    %172 = vector.load %arg13[%c0_285, %c1_286, %c0_287, %c0_288] : memref<4x4x8x64xf32, #tpu.memory_space<vmem>>, vector<2x2x8x64xf32>
    %c0_289 = arith.constant 0 : index
    %c2_290 = arith.constant 2 : index
    %c0_291 = arith.constant 0 : index
    %c0_292 = arith.constant 0 : index
    %173 = vector.load %arg13[%c0_289, %c2_290, %c0_291, %c0_292] : memref<4x4x8x64xf32, #tpu.memory_space<vmem>>, vector<2x2x8x64xf32>
    %c1_293 = arith.constant 1 : index
    %c0_294 = arith.constant 0 : index
    %c0_295 = arith.constant 0 : index
    %c0_296 = arith.constant 0 : index
    %174 = vector.load %arg13[%c1_293, %c0_294, %c0_295, %c0_296] : memref<4x4x8x64xf32, #tpu.memory_space<vmem>>, vector<2x2x8x64xf32>
    %c1_297 = arith.constant 1 : index
    %c1_298 = arith.constant 1 : index
    %c0_299 = arith.constant 0 : index
    %c0_300 = arith.constant 0 : index
    %175 = vector.load %arg13[%c1_297, %c1_298, %c0_299, %c0_300] : memref<4x4x8x64xf32, #tpu.memory_space<vmem>>, vector<2x2x8x64xf32>
    %c1_301 = arith.constant 1 : index
    %c2_302 = arith.constant 2 : index
    %c0_303 = arith.constant 0 : index
    %c0_304 = arith.constant 0 : index
    %176 = vector.load %arg13[%c1_301, %c2_302, %c0_303, %c0_304] : memref<4x4x8x64xf32, #tpu.memory_space<vmem>>, vector<2x2x8x64xf32>
    %c2_305 = arith.constant 2 : index
    %c0_306 = arith.constant 0 : index
    %c0_307 = arith.constant 0 : index
    %c0_308 = arith.constant 0 : index
    %177 = vector.load %arg13[%c2_305, %c0_306, %c0_307, %c0_308] : memref<4x4x8x64xf32, #tpu.memory_space<vmem>>, vector<2x2x8x64xf32>
    %c2_309 = arith.constant 2 : index
    %c1_310 = arith.constant 1 : index
    %c0_311 = arith.constant 0 : index
    %c0_312 = arith.constant 0 : index
    %178 = vector.load %arg13[%c2_309, %c1_310, %c0_311, %c0_312] : memref<4x4x8x64xf32, #tpu.memory_space<vmem>>, vector<2x2x8x64xf32>
    %c2_313 = arith.constant 2 : index
    %c2_314 = arith.constant 2 : index
    %c0_315 = arith.constant 0 : index
    %c0_316 = arith.constant 0 : index
    %179 = vector.load %arg13[%c2_313, %c2_314, %c0_315, %c0_316] : memref<4x4x8x64xf32, #tpu.memory_space<vmem>>, vector<2x2x8x64xf32>
    %180 = tpu.concatenate %171, %172, %173, %174, %175, %176, %177, %178, %179 in 3 : vector<2x2x8x64xf32>, vector<2x2x8x64xf32>, vector<2x2x8x64xf32>, vector<2x2x8x64xf32>, vector<2x2x8x64xf32>, vector<2x2x8x64xf32>, vector<2x2x8x64xf32>, vector<2x2x8x64xf32>, vector<2x2x8x64xf32> -> vector<2x2x8x576xf32>
    %181 = vector.shape_cast %180 : vector<2x2x8x576xf32> to vector<32x576xf32>
    %182 = arith.truncf %181 : vector<32x576xf32> to vector<32x576xbf16>
    %c0_317 = arith.constant 0 : index
    %c0_318 = arith.constant 0 : index
    %183 = vector.load %arg5[%c0_317, %c0_318] : memref<576x64xbf16, #tpu.memory_space<vmem>>, vector<576x64xbf16>
    %cst_319 = arith.constant dense<0.000000e+00> : vector<32x64xf32>
    %184 = tpu.matmul %182, %183, %cst_319 {dimension_numbers = #tpu.dot_dimension_numbers<[1], [0], [0], [1], [0, 0, 1, 1], [], []>} : vector<32x576xbf16>, vector<576x64xbf16>, vector<32x64xf32> -> vector<32x64xf32>
    %c0_320 = arith.constant 0 : index
    %c0_321 = arith.constant 0 : index
    %185 = vector.load %arg6[%c0_320, %c0_321] : memref<1x64xf32, #tpu.memory_space<vmem>>, vector<1x64xf32>
    %186 = vector.broadcast %185 : vector<1x64xf32> to vector<32x64xf32>
    %187 = arith.addf %184, %186 : vector<32x64xf32>
    %cst_322 = arith.constant 0.000000e+00 : f32
    %188 = vector.broadcast %cst_322 : f32 to vector<32x64xf32>
    %189 = arith.maximumf %187, %188 : vector<32x64xf32>
    %190 = vector.shape_cast %189 : vector<32x64xf32> to vector<2x2x8x64xf32>
    %c0_323 = arith.constant 0 : index
    %c0_324 = arith.constant 0 : index
    %c0_325 = arith.constant 0 : index
    %c0_326 = arith.constant 0 : index
    %191 = vector.load %arg14[%c0_323, %c0_324, %c0_325, %c0_326] : memref<2x2x8x64xf32, #tpu.memory_space<vmem>>, vector<2x2x8x64xf32>
    tpu.vector_store %arg14[%c0_323, %c0_324, %c0_325, %c0_326], %190 {strides = array<i32>} : memref<2x2x8x64xf32, #tpu.memory_space<vmem>>, vector<2x2x8x64xf32>,
    %c0_327 = arith.constant 0 : index
    %c0_328 = arith.constant 0 : index
    %c0_329 = arith.constant 0 : index
    %c0_330 = arith.constant 0 : index
    %192 = vector.load %arg14[%c0_327, %c0_328, %c0_329, %c0_330] : memref<2x2x8x64xf32, #tpu.memory_space<vmem>>, vector<1x1x8x64xf32>
    %193 = vector.shape_cast %192 : vector<1x1x8x64xf32> to vector<8x64xf32>
    %c0_331 = arith.constant 0 : index
    %c1_332 = arith.constant 1 : index
    %c0_333 = arith.constant 0 : index
    %c0_334 = arith.constant 0 : index
    %194 = vector.load %arg14[%c0_331, %c1_332, %c0_333, %c0_334] : memref<2x2x8x64xf32, #tpu.memory_space<vmem>>, vector<1x1x8x64xf32>
    %195 = vector.shape_cast %194 : vector<1x1x8x64xf32> to vector<8x64xf32>
    %c1_335 = arith.constant 1 : index
    %c0_336 = arith.constant 0 : index
    %c0_337 = arith.constant 0 : index
    %c0_338 = arith.constant 0 : index
    %196 = vector.load %arg14[%c1_335, %c0_336, %c0_337, %c0_338] : memref<2x2x8x64xf32, #tpu.memory_space<vmem>>, vector<1x1x8x64xf32>
    %197 = vector.shape_cast %196 : vector<1x1x8x64xf32> to vector<8x64xf32>
    %c1_339 = arith.constant 1 : index
    %c1_340 = arith.constant 1 : index
    %c0_341 = arith.constant 0 : index
    %c0_342 = arith.constant 0 : index
    %198 = vector.load %arg14[%c1_339, %c1_340, %c0_341, %c0_342] : memref<2x2x8x64xf32, #tpu.memory_space<vmem>>, vector<1x1x8x64xf32>
    %199 = vector.shape_cast %198 : vector<1x1x8x64xf32> to vector<8x64xf32>
    %200 = tpu.concatenate %193, %195, %197, %199 in 1 : vector<8x64xf32>, vector<8x64xf32>, vector<8x64xf32>, vector<8x64xf32> -> vector<8x256xf32>
    %201 = arith.truncf %200 : vector<8x256xf32> to vector<8x256xbf16>
    %c0_343 = arith.constant 0 : index
    %c0_344 = arith.constant 0 : index
    %202 = vector.load %arg7[%c0_343, %c0_344] : memref<256x1024xbf16, #tpu.memory_space<vmem>>, vector<256x1024xbf16>
    %cst_345 = arith.constant dense<0.000000e+00> : vector<8x1024xf32>
    %203 = tpu.matmul %201, %202, %cst_345 {dimension_numbers = #tpu.dot_dimension_numbers<[1], [0], [0], [1], [0, 0, 1, 1], [], []>} : vector<8x256xbf16>, vector<256x1024xbf16>, vector<8x1024xf32> -> vector<8x1024xf32>
    %c0_346 = arith.constant 0 : index
    %c0_347 = arith.constant 0 : index
    %204 = vector.load %arg8[%c0_346, %c0_347] : memref<1x1024xf32, #tpu.memory_space<vmem>>, vector<1x1024xf32>
    %205 = vector.broadcast %204 : vector<1x1024xf32> to vector<8x1024xf32>
    %206 = arith.addf %203, %205 : vector<8x1024xf32>
    %cst_348 = arith.constant 0.000000e+00 : f32
    %207 = vector.broadcast %cst_348 : f32 to vector<8x1024xf32>
    %208 = arith.maximumf %206, %207 : vector<8x1024xf32>
    %209 = arith.truncf %208 : vector<8x1024xf32> to vector<8x1024xbf16>
    %c0_349 = arith.constant 0 : index
    %c0_350 = arith.constant 0 : index
    %210 = vector.load %arg9[%c0_349, %c0_350] : memref<1024x8xbf16, #tpu.memory_space<vmem>>, vector<1024x8xbf16>
    %cst_351 = arith.constant dense<0.000000e+00> : vector<8x8xf32>
    %211 = tpu.matmul %209, %210, %cst_351 {dimension_numbers = #tpu.dot_dimension_numbers<[1], [0], [0], [1], [0, 0, 1, 1], [], []>} : vector<8x1024xbf16>, vector<1024x8xbf16>, vector<8x8xf32> -> vector<8x8xf32>
    %c0_352 = arith.constant 0 : index
    %c0_353 = arith.constant 0 : index
    %212 = vector.load %arg10[%c0_352, %c0_353] : memref<1x8xf32, #tpu.memory_space<vmem>>, vector<1x8xf32>
    %213 = vector.broadcast %212 : vector<1x8xf32> to vector<8x8xf32>
    %214 = arith.addf %211, %213 : vector<8x8xf32>
    %215 = vector.extract_strided_slice %214 {offsets = [0, 0], sizes = [8, 6], strides = [1, 1]} : vector<8x8xf32> to vector<8x6xf32>
    %216 = vector.extract_strided_slice %214 {offsets = [0, 6], sizes = [8, 1], strides = [1, 1]} : vector<8x8xf32> to vector<8x1xf32>
    %217 = vector.broadcast %216 : vector<8x1xf32> to vector<8x8xf32>
    %218 = arith.addf %214, %217 : vector<8x8xf32>
    %219 = vector.shape_cast %215 : vector<8x6xf32> to vector<1x8x6xf32>
    %cst_354 = arith.constant dense<0.000000e+00> : vector<1xf32>
    %220 = vector.multi_reduction <add>, %219, %cst_354 [1, 2] : vector<1x8x6xf32> to vector<1xf32>
    %221 = vector.shape_cast %220 : vector<1xf32> to vector<1x1x1xf32>
    %222 = vector.extract %221[0, 0, 0] : f32 from vector<1x1x1xf32>
    %cst_355 = arith.constant 4.800000e+01 : f32
    %223 = arith.divf %222, %cst_355 : f32
    %224 = vector.broadcast %223 : f32 to vector<8x8xf32>
    %225 = arith.subf %218, %224 : vector<8x8xf32>
    %c0_356 = arith.constant 0 : index
    %c0_357 = arith.constant 0 : index
    %226 = vector.load %arg11[%c0_356, %c0_357] : memref<8x8xf32, #tpu.memory_space<vmem>>, vector<8x8xf32>
    tpu.vector_store %arg11[%c0_356, %c0_357], %225 {strides = array<i32>} : memref<8x8xf32, #tpu.memory_space<vmem>>, vector<8x8xf32>,
    return
  }
}

</mosaic_0001>

<bundles_post_ra>
// kernel: dueling_dqn_forward.1
= control target key start
LH: loop header
LB: loop body
LE: loop exit
PB: predicated region body
PF: predicated region fallthrough
CT: control target
= control target key end

     0   :  { %s9805_s12 = smov 64   ;;  %s13620_s0 = inlined_call_operand.vmem [shape: bf16[11,11,8,64], index: 0, kind: input, shape index: {}]   ;;  %s13621_s1 = inlined_call_operand.vmem [shape: bf16[256,32], index: 1, kind: input, shape index: {}]   ;;  %s13622_s2 = inlined_call_operand.vmem [shape: f32[1,32], index: 2, kind: input, shape index: {}]   ;;  %s13623_s3 = inlined_call_operand.vmem [shape: bf16[512,64], index: 3, kind: input, shape index: {}]   ;;  %s13624_s4 = inlined_call_operand.vmem [shape: f32[1,64], index: 4, kind: input, shape index: {}]   ;;  %s13625_s5 = inlined_call_operand.vmem [shape: bf16[576,64], index: 5, kind: input, shape index: {}]   ;;  %s13626_s6 = inlined_call_operand.vmem [shape: f32[1,64], index: 6, kind: input, shape index: {}]   ;;  %s13627_s7 = inlined_call_operand.vmem [shape: bf16[256,1024], index: 7, kind: input, shape index: {}]   ;;  %s13628_s8 = inlined_call_operand.vmem [shape: f32[1,1024], index: 8, kind: input, shape index: {}]   ;;  %s13629_s9 = inlined_call_operand.vmem [shape: bf16[1024,8], index: 9, kind: input, shape index: {}]   ;;  %s13630_s10 = inlined_call_operand.vmem [shape: f32[1,8], index: 10, kind: input, shape index: {}]   ;;  %s13631_s11 = inlined_call_operand.hbm [shape: f32[8,8], index: 11, kind: output, shape index: {}]  }
   0x1   :  { %v6313_v0 = vld [vmem:[%s13620_s0 + $0x4] sm:$0xf]  ;;  %v9877_v1 = vld [vmem:[%s13620_s0 + $0x8] sm:$0xff]   ;;  %v9883_v4 = vld [vmem:[%s13620_s0 + $0x10] sm:$0xff]  }
   0x2   :  { %v8177_v2 = vunpack.c.l.bf16 %v9877_v1  ;;  %v341_v3 = vunpack.c.l.bf16 %v6313_v0  ;;  %v9888_v5 = vld [vmem:[%s13620_s0 + $0x18] sm:$0xff]   ;;  %v8849_v6 = vld [vmem:[%s13620_s0 + $0x30] sm:$0xff]   ;;  %v8178_v7 = vunpack.c.h.bf16 %v9877_v1  ;;  %v8181_v8 = vunpack.c.l.bf16 %v9883_v4  ;;  %v9911_v14 = vld [vmem:[%s13620_s0 + $0x40] sm:$0xff]  }
   0x3   :  { %v9900_v10 = vld [vmem:[%s13620_s0 + $0x38] sm:$0xff]   ;;  %v8182_v11 = vunpack.c.h.bf16 %v9883_v4  ;;  %v8185_v12 = vunpack.c.l.bf16 %v9888_v5  ;;  %v9914_v15 = vunpack.c.l.bf16 %v8849_v6  ;;  %v9916_v16 = vunpack.c.h.bf16 %v8849_v6 }
   0x4   :  { %v8920_v9 = vpack.i.bf16 %v8177_v2, %v341_v3  ;;  %v8930_v13 = vpack.i.bf16 %v8181_v8, %v8178_v7 }
   0x5   :  { %v8940_v17 = vpack.i.bf16 %v8185_v12, %v8182_v11 }
   0x6   :  { %8921 = vrot.lane.b32.xlu0 %v8920_v9, %s9805_s12 }
   0x7   :  { %16 = vsyncpa [#allocation6], 0  ;;  %8931 = vrot.lane.b32.xlu1 %v8930_v13, %s9805_s12  ;;  %v8541_v18 = vunpack.c.l.bf16 %v9900_v10  ;;  %v8542_v19 = vunpack.c.h.bf16 %v9900_v10  ;;  %8941 = vrot.lane.b32.xlu2 %v8940_v17, %s9805_s12  ;;  %v8545_v20 = vunpack.c.l.bf16 %v9911_v14  ;;  %v8546_v21 = vunpack.c.h.bf16 %v9911_v14  ;;  %v9937_v24 = vld [vmem:[%s13620_s0 + $0x20] sm:$0xff]   ;;  %v9946_v26 = vld [vmem:[%s13620_s0 + $0x48] sm:$0xff]   ;;  %s9806_s29 = smov 32   ;;  %s9807_s14 = smov 96  }
   0x8   :  { %v8925_v22 = vpack.i.bf16 %v9916_v16, %v9914_v15  ;;  %v9951_v27 = vld [vmem:[%s13620_s0 + $0x28] sm:$0xff]   ;;  %v8186_v28 = vunpack.c.h.bf16 %v9888_v5  ;;  %v8189_v29 = vunpack.c.l.bf16 %v9937_v24  ;;  %v8549_v30 = vunpack.c.l.bf16 %v9946_v26  ;;  %v8853_v36 = vld [vmem:[%s13620_s0 + $0x50] sm:$0xff]   ;;  %v6523_v38 = vld [vmem:[%s13620_s0 + $0x5c] sm:$0xf]  ;;  %s9810_s26 = smov [#allocation5]   ;;  %s6304_s30 = sshll.u32 %s13631_s11, 4  ;;  %s6305_s30 = int_to_ptr.hbm [resolvable:$true] %s6304_s30 }
   0x9   :  { %v8935_v23 = vpack.i.bf16 %v8542_v19, %v8541_v18  ;;  %v8945_v25 = vpack.i.bf16 %v8546_v21, %v8545_v20  ;;  %v8550_v31 = vunpack.c.h.bf16 %v9946_v26  ;;  %v8190_v32 = vunpack.c.h.bf16 %v9937_v24  ;;  %v9981_v39 = vld [vmem:[%s13620_s0 + $0x60] sm:$0xff]   ;;  %v7726_v42 = vld [vmem:[%s13621_s1 + $0x38] sm:$0xff]  ;;  %v8855_v47 = vld [vmem:[%s13620_s0 + $0x68] sm:$0xff]   ;;  %s6302_s27 = sshll.u32 %s9810_s26, 4  ;;  %s6303_s27 = int_to_ptr.vmem [resolvable:$true] %s6302_s27 }
   0xa   :  { %v350_v33 = vunpack.c.l.bf16 %v9951_v27  ;;  %v8950_v34 = vpack.i.bf16 %v8189_v29, %v8186_v28  ;;  %v8553_v40 = vunpack.c.l.bf16 %v8853_v36  ;;  %v8554_v41 = vunpack.c.h.bf16 %v8853_v36  ;;  %2076 = vmatpush.bf16.msra.mxu0 %v7726_v42  ;;  %8894 = vmatpush.bf16.msra.mxu3 %v7726_v42  ;;  %v7725_v50 = vld [vmem:[%s13621_s1 + $0x30] sm:$0xff]  ;;  %v7734_v51 = vld [vmem:[%s13621_s1 + $0x78] sm:$0xff]  ;;  %v7724_v52 = vld [vmem:[%s13621_s1 + $0x28] sm:$0xff] }
   0xb   :  { %v8955_v35 = vpack.i.bf16 %v8550_v31, %v8549_v30  ;;  %v8557_v43 = vunpack.c.l.bf16 %v9981_v39  ;;  %v753_v44 = vunpack.c.l.bf16 %v6523_v38  ;;  %v8558_v48 = vunpack.c.h.bf16 %v9981_v39  ;;  %2335 = vmatpush.bf16.msra.mxu1 %v7734_v51  ;;  %8902 = vmatpush.bf16.msra.mxu2 %v7734_v51  ;;  %v8856_v54 = vld [vmem:[%s13620_s0 + $0x70] sm:$0xff]   ;;  %v10014_v55 = vld [vmem:[%s13620_s0 + $0x78] sm:$0xff]   ;;  %v7723_v58 = vld [vmem:[%s13621_s1 + $0x20] sm:$0xff] }
   0xc   :  { %v8960_v37 = vpack.i.bf16 %v350_v33, %v8190_v32  ;;  %v8965_v45 = vpack.i.bf16 %v8554_v41, %v8553_v40  ;;  %v8561_v49 = vunpack.c.l.bf16 %v8855_v47  ;;  %v8562_v56 = vunpack.c.h.bf16 %v8855_v47  ;;  %v7733_v59 = vld [vmem:[%s13621_s1 + $0x70] sm:$0xff]  ;;  %v7722_v62 = vld [vmem:[%s13621_s1 + $0x18] sm:$0xff]  ;;  %v7732_v63 = vld [vmem:[%s13621_s1 + $0x68] sm:$0xff] }
   0xd   :  { %v8975_v46 = vpack.i.bf16 %v8557_v43, %v753_v44  ;;  %v8565_v57 = vunpack.c.l.bf16 %v8856_v54  ;;  %v8566_v60 = vunpack.c.h.bf16 %v8856_v54  ;;  %v8569_v61 = vunpack.c.l.bf16 %v10014_v55  ;;  %v6532_v6 = vld [vmem:[%s13620_s0 + $0x80] sm:$0xf]  ;;  %v6333_v9 = vld [vmem:[%s13620_s0 + $0x5c] sm:$0xf]  ;;  %v7720_v33 = vld [vmem:[%s13621_s1 + $0x8] sm:$0xff] }
   0xe   :  { %8926 = vrot.lane.b32.xlu0 %v8925_v22, %s9805_s12  ;;  %2077 = vmatpush.bf16.msra.mxu0 %v7725_v50  ;;  %v8985_v53 = vpack.i.bf16 %v8561_v49, %v8558_v48  ;;  %v8570_v13 = vunpack.c.h.bf16 %v10014_v55  ;;  %v762_v17 = vunpack.c.l.bf16 %v6532_v6  ;;  %v8858_v36 = vld [vmem:[%s13620_s0 + $0x88] sm:$0xff]   ;;  %v8859_v38 = vld [vmem:[%s13620_s0 + $0x90] sm:$0xff]   ;;  %v6342_v49 = vld [vmem:[%s13620_s0 + $0x80] sm:$0xf]  ;;  %vm1643_vm0 = vcmask 523264  }
   0xf   :  { %8936 = vrot.lane.b32.xlu1 %v8935_v23, %s9805_s12  ;;  %8946 = vrot.lane.b32.xlu2 %v8945_v25, %s9805_s12  ;;  %v8995_v0 = vpack.i.bf16 %v8565_v57, %v8562_v56  ;;  %v9005_v3 = vpack.i.bf16 %v8569_v61, %v8566_v60  ;;  %v8573_v40 = vunpack.c.l.bf16 %v8858_v36  ;;  %v8574_v41 = vunpack.c.h.bf16 %v8858_v36  ;;  %v8863_v54 = vld [vmem:[%s13620_s0 + $0xb8] sm:$0xff]   ;;  %v7729_v6 = vld [vmem:[%s13621_s1 + $0x50] sm:$0xff] }
  0x10   :  { %8895 = vmatpush.bf16.msra.mxu3 %v7725_v50  ;;  %2336 = vmatpush.bf16.msra.mxu1 %v7733_v59  ;;  %v8577_v42 = vunpack.c.l.bf16 %v8859_v38  ;;  %v8578_v44 = vunpack.c.h.bf16 %v8859_v38  ;;  %v370_v50 = vunpack.c.l.bf16 %v6342_v49  ;;  %v8593_v57 = vunpack.c.l.bf16 %v8863_v54  ;;  %v6552_v49 = vld [vmem:[%s13620_s0 + $0xd8] sm:$0xf]  ;;  %v10252_v10 = vld [vmem:[%s13620_s0 + $0x128] sm:$0xff]  }
  0x11   :  { %8903 = vmatpush.bf16.msra.mxu2 %v7733_v59  ;;  %v9025_v39 = vpack.i.bf16 %v8574_v41, %v8573_v40  ;;  %v8861_v59 = vld [vmem:[%s13620_s0 + $0xa0] sm:$0xff]   ;;  %v6362_v1 = vld [vmem:[%s13620_s0 + $0xd8] sm:$0xf]  ;;  %vm2694_vm1 = vcmask 261120   ;;  %vm3066_vm2 = vcmask 785408   ;;  %vm6273_vm3 = vcmask 48128  }
  0x12   :  { %2078 = vmatpush.bf16.msra.mxu0 %v7724_v52  ;;  %v9060_v51 = vpack.i.bf16 %v370_v50, %v8570_v13  ;;  %v8585_v60 = vunpack.c.l.bf16 %v8861_v59  ;;  %v8586_v61 = vunpack.c.h.bf16 %v8861_v59  ;;  %vm6295_vm5 = vcmask 64512  }
  0x14   :  { %8896 = vmatpush.bf16.msra.mxu3 %v7724_v52  ;;  %2337 = vmatpush.bf16.msra.mxu1 %v7732_v63  ;;  %v8862_v52 = vld [vmem:[%s13620_s0 + $0xa8] sm:$0xff]  }
  0x15   :  { %8904 = vmatpush.bf16.msra.mxu2 %v7732_v63  ;;  %v8589_v55 = vunpack.c.l.bf16 %v8862_v52  ;;  %v8590_v56 = vunpack.c.h.bf16 %v8862_v52 }
  0x16   :  { %8951 = vrot.lane.b32.xlu0 %v8950_v34, %s9805_s12  ;;  %2079 = vmatpush.bf16.msra.mxu0 %v7723_v58  ;;  %v7730_v34 = vld [vmem:[%s13621_s1 + $0x58] sm:$0xff] }
  0x17   :  { %8956 = vrot.lane.b32.xlu1 %v8955_v35, %s9805_s12  ;;  %8961 = vrot.lane.b32.xlu2 %v8960_v37, %s9805_s12 }
  0x18   :  { %8897 = vmatpush.bf16.msra.mxu3 %v7723_v58 }
  0x1a   :  { %2080 = vmatpush.bf16.msra.mxu0 %v7722_v62 }
  0x1c   :  { %8898 = vmatpush.bf16.msra.mxu3 %v7722_v62  ;;  %v9065_v62 = vpack.i.bf16 %v8590_v56, %v8589_v55 }
  0x1e   :  { %8966 = vrot.lane.b32.xlu0 %v8965_v45, %s9805_s12 }
  0x1f   :  { %8971 = vrot.lane.b32.xlu1 %v8925_v22, %s9805_s12  ;;  %8976 = vrot.lane.b32.xlu2 %v8975_v46, %s9805_s12  ;;  %v7721_v22 = vld [vmem:[%s13621_s1 + $0x10] sm:$0xff]  ;;  %v8860_v46 = vld [vmem:[%s13620_s0 + $0x98] sm:$0xff]  }
  0x20   :  { %2081 = vmatpush.bf16.msra.mxu0 %v7721_v22  ;;  %8899 = vmatpush.bf16.msra.mxu3 %v7721_v22  ;;  %v8582_v47 = vunpack.c.h.bf16 %v8860_v46  ;;  %v8865_v22 = vld [vmem:[%s13620_s0 + $0xc8] sm:$0xff]  }
  0x24   :  { %2082 = vmatpush.bf16.msra.mxu0 %v7720_v33  ;;  %8900 = vmatpush.bf16.msra.mxu3 %v7720_v33  ;;  %v8601_v33 = vunpack.c.l.bf16 %v8865_v22 }
  0x26   :  { %8981 = vrot.lane.b32.xlu0 %v8935_v23, %s9805_s12  ;;  %v7731_v23 = vld [vmem:[%s13621_s1 + $0x60] sm:$0xff] }
  0x27   :  { %8986 = vrot.lane.b32.xlu1 %v8985_v53, %s9805_s12  ;;  %8991 = vrot.lane.b32.xlu2 %v8945_v25, %s9805_s12  ;;  %v361_v25 = vunpack.c.l.bf16 %v6333_v9  ;;  %v7728_v9 = vld [vmem:[%s13621_s1 + $0x48] sm:$0xff] }
  0x28   :  { %2338 = vmatpush.bf16.msra.mxu1 %v7731_v23  ;;  %8905 = vmatpush.bf16.msra.mxu2 %v7731_v23  ;;  %v10117_v23 = vld [vmem:[%s13620_s0 + $0xd0] sm:$0xff]  }
  0x29   :  { %v9020_v37 = vpack.i.bf16 %v8557_v43, %v361_v25  ;;  %v9035_v43 = vpack.i.bf16 %v8578_v44, %v8577_v42  ;;  %v6353_v44 = vld [vmem:[%s13620_s0 + $0xb4] sm:$0xf] }
  0x2c   :  { %2339 = vmatpush.bf16.msra.mxu1 %v7730_v34  ;;  %8906 = vmatpush.bf16.msra.mxu2 %v7730_v34  ;;  %v8602_v34 = vunpack.c.h.bf16 %v8865_v22  ;;  %v542_v22 = vunpack.c.h.bf16 %v9951_v27  ;;  %v8870_v27 = vld [vmem:[%s13620_s0 + $0xf8] sm:$0xff]  }
  0x2e   :  { %8996 = vrot.lane.b32.xlu0 %v8995_v0, %s9805_s12 }
  0x2f   :  { %9001 = vrot.lane.b32.xlu1 %v8955_v35, %s9805_s12  ;;  %9006 = vrot.lane.b32.xlu2 %v9005_v3, %s9805_s12  ;;  %v9015_v35 = vpack.i.bf16 %v762_v17, %v8570_v13  ;;  %v7727_v13 = vld [vmem:[%s13621_s1 + $0x40] sm:$0xff] }
  0x30   :  { %2340 = vmatpush.bf16.msra.mxu1 %v7729_v6  ;;  %8907 = vmatpush.bf16.msra.mxu2 %v7729_v6  ;;  %v8864_v17 = vld [vmem:[%s13620_s0 + $0xc0] sm:$0xff]  }
  0x31   :  { %v8598_v25 = vunpack.c.h.bf16 %v8864_v17  ;;  %v8597_v38 = vunpack.c.l.bf16 %v8864_v17 }
  0x33   :  { %v9095_v40 = vpack.i.bf16 %v8601_v33, %v8598_v25 }
  0x34   :  { %2341 = vmatpush.bf16.msra.mxu1 %v7728_v9  ;;  %8908 = vmatpush.bf16.msra.mxu2 %v7728_v9 }
  0x36   :  { %9011 = vrot.lane.b32.xlu0 %v8965_v45, %s9805_s12  ;;  %v8581_v45 = vunpack.c.l.bf16 %v8860_v46 }
  0x37   :  { %9016 = vrot.lane.b32.xlu1 %v9015_v35, %s9805_s12  ;;  %9021 = vrot.lane.b32.xlu2 %v9020_v37, %s9805_s12  ;;  %v8605_v35 = vunpack.c.l.bf16 %v10117_v23  ;;  %v8594_v37 = vunpack.c.h.bf16 %v8863_v54 }
  0x38   :  { %v9045_v48 = vpack.i.bf16 %v8582_v47, %v8581_v45  ;;  %2342 = vmatpush.bf16.msra.mxu1 %v7727_v13  ;;  %8909 = vmatpush.bf16.msra.mxu2 %v7727_v13  ;;  %v7996_v45 = vld [vmem:[%s13620_s0] sm:$0xff]  }
  0x39   :  { %v9105_v41 = vpack.i.bf16 %v8605_v35, %v8602_v34  ;;  %v9085_v42 = vpack.i.bf16 %v8597_v38, %v8594_v37  ;;  %v8867_v47 = vld [vmem:[%s13620_s0 + $0xe0] sm:$0xff]   ;;  %v7997_v55 = vunpack.c.l.bf16 %v7996_v45  ;;  %v7998_v56 = vunpack.c.h.bf16 %v7996_v45 }
  0x3a   :  { %v8609_v50 = vunpack.c.l.bf16 %v8867_v47  ;;  %v8622_v45 = vunpack.c.h.bf16 %v8870_v27 }
  0x3e   :  { %9026 = vrot.lane.b32.xlu0 %v9025_v39, %s9805_s12 }
  0x3f   :  { %9031 = vrot.lane.b32.xlu1 %v8985_v53, %s9805_s12  ;;  %9036 = vrot.lane.b32.xlu2 %v9035_v43, %s9805_s12  ;;  %v6543_v53 = vld [vmem:[%s13620_s0 + $0xb4] sm:$0xf] }
  0x40   :  { %v773_v58 = vunpack.c.l.bf16 %v6543_v53 }
  0x42   :  { %v9075_v63 = vpack.i.bf16 %v8593_v57, %v773_v58  ;;  %v782_v58 = vunpack.c.l.bf16 %v6552_v49 }
  0x46   :  { %9041 = vrot.lane.b32.xlu0 %v8995_v0, %s9805_s12  ;;  %v9055_v0 = vpack.i.bf16 %v8586_v61, %v8585_v60 }
  0x47   :  { %9046 = vrot.lane.b32.xlu1 %v9045_v48, %s9805_s12  ;;  %9051 = vrot.lane.b32.xlu2 %v9005_v3, %s9805_s12  ;;  %v7719_v3 = vld [vmem:[%s13621_s1] sm:$0xff] }
  0x48   :  { %2083 = vmatpush.bf16.msra.mxu0 %v7719_v3  ;;  %8901 = vmatpush.bf16.msra.mxu3 %v7719_v3 }
  0x4e   :  { %9056 = vrot.lane.b32.xlu0 %v9055_v0, %s9805_s12 }
  0x4f   :  { %9061 = vrot.lane.b32.xlu1 %v9060_v51, %s9805_s12  ;;  %9066 = vrot.lane.b32.xlu2 %v9065_v62, %s9805_s12  ;;  %v8610_v51 = vunpack.c.h.bf16 %v8867_v47 }
  0x51   :  { %v9125_v60 = vpack.i.bf16 %v8610_v51, %v8609_v50 }
  0x56   :  { %9071 = vrot.lane.b32.xlu0 %v9025_v39, %s9805_s12  ;;  %v381_v39 = vunpack.c.l.bf16 %v6353_v44 }
  0x57   :  { %9076 = vrot.lane.b32.xlu1 %v9075_v63, %s9805_s12  ;;  %9081 = vrot.lane.b32.xlu2 %v9035_v43, %s9805_s12 }
  0x58   :  { %v9120_v46 = vpack.i.bf16 %v8593_v57, %v381_v39  ;;  %v8606_v57 = vunpack.c.h.bf16 %v10117_v23 }
  0x5a   :  { %v9115_v3 = vpack.i.bf16 %v782_v58, %v8606_v57 }
  0x5e   :  { %9086 = vrot.lane.b32.xlu0 %v9085_v42, %s9805_s12 }
  0x5f   :  { %9091 = vrot.lane.b32.xlu1 %v9045_v48, %s9805_s12  ;;  %9096 = vrot.lane.b32.xlu2 %v9095_v40, %s9805_s12  ;;  %v8868_v48 = vld [vmem:[%s13620_s0 + $0xe8] sm:$0xff]  }
  0x60   :  { %v8613_v52 = vunpack.c.l.bf16 %v8868_v48  ;;  %v8614_v53 = vunpack.c.h.bf16 %v8868_v48 }
  0x61   :  { %v10120_v36 = vpop.permute.xlu2 %8941 }
  0x62   :  { %v9135_v61 = vpack.i.bf16 %v8614_v53, %v8613_v52 }
  0x66   :  { %9101 = vrot.lane.b32.xlu0 %v9055_v0, %s9805_s12 }
  0x67   :  { %9106 = vrot.lane.b32.xlu1 %v9105_v41, %s9805_s12  ;;  %9111 = vrot.lane.b32.xlu2 %v9065_v62, %s9805_s12 }
  0x69   :  { %v10128_v43 = vpop.permute.xlu2 %8946 }
  0x6e   :  { %9116 = vrot.lane.b32.xlu0 %v9115_v3, %s9805_s12 }
  0x6f   :  { %9121 = vrot.lane.b32.xlu1 %v9120_v46, %s9805_s12  ;;  %9126 = vrot.lane.b32.xlu2 %v9125_v60, %s9805_s12  ;;  %v8621_v46 = vunpack.c.l.bf16 %v8870_v27 }
  0x71   :  { %v10145_v54 = vpop.permute.xlu2 %8961  ;;  %v9155_v53 = vpack.i.bf16 %v8622_v45, %v8621_v46 }
  0x72   :  { %v8963_v14 = vunpack.i.l.bf16 %v10145_v54 }
  0x76   :  { %9131 = vrot.lane.b32.xlu0 %v9085_v42, %s9805_s12 }
  0x77   :  { %9136 = vrot.lane.b32.xlu1 %v9135_v61, %s9805_s12  ;;  %9141 = vrot.lane.b32.xlu2 %v9095_v40, %s9805_s12  ;;  %v8871_v40 = vld [vmem:[%s13620_s0 + $0x100] sm:$0xff]  }
  0x78   :  { %v8922_v59 = vpop.permute.xlu0 %8921  ;;  %v8625_v47 = vunpack.c.l.bf16 %v8871_v40  ;;  %v8626_v48 = vunpack.c.h.bf16 %v8871_v40 }
  0x79   :  { %v8924_v62 = vunpack.i.h.bf16 %v8922_v59  ;;  %v8923_v63 = vunpack.i.l.bf16 %v8922_v59  ;;  %v8932_v0 = vpop.permute.xlu1 %8931  ;;  %v10153_v17 = vpop.permute.xlu2 %8976 }
  0x7a   :  { %v8934_v38 = vunpack.i.h.bf16 %v8932_v0  ;;  %v8933_v44 = vunpack.i.l.bf16 %v8932_v0 }
  0x7b   :  { %v1644_v6 = vsel %vm1643_vm0, %v7997_v55, %v8923_v63  ;;  %v1645_v9 = vsel %vm1643_vm0, %v7998_v56, %v8924_v62  ;;  %v9165_v55 = vpack.i.bf16 %v8626_v48, %v8625_v47 }
  0x7c   :  { %v1844_v13 = vpack.c.bf16 %v1645_v9, %v1644_v6  ;;  %v1646_v42 = vsel %vm1643_vm0, %v8177_v2, %v8933_v44  ;;  %v1647_v50 = vsel %vm1643_vm0, %v8178_v7, %v8934_v38  ;;  %v390_v7 = vunpack.c.l.bf16 %v6362_v1 }
  0x7d   :  { %v1846_v59 = vpack.c.bf16 %v1647_v50, %v1646_v42  ;;  %v8949_v42 = vunpack.i.h.bf16 %v10128_v43 }
  0x7e   :  { %2084 = vmatmul.bf16.vlgmr.msra.gmra.mxu0 %v1844_v13  ;;  %v9160_v9 = vpack.i.bf16 %v390_v7, %v8606_v57  ;;  %v8874_v57 = vld [vmem:[%s13620_s0 + $0x120] sm:$0xff]  }
  0x7f   :  { %9151 = vrot.lane.b32.xlu1 %v9105_v41, %s9805_s12  ;;  %v8869_v41 = vld [vmem:[%s13620_s0 + $0xf0] sm:$0xff]   ;;  %9156 = vrot.lane.b32.xlu2 %v9155_v53, %s9805_s12  ;;  %v1749_v50 = vsel %vm1643_vm0, %v8545_v20, %v8949_v42  ;;  %v8876_v20 = vld [vmem:[%s13620_s0 + $0x138] sm:$0xff]  }
  0x80   :  { %v8927_v23 = vpop.permute.xlu0 %8926  ;;  %v8617_v51 = vunpack.c.l.bf16 %v8869_v41  ;;  %v8618_v52 = vunpack.c.h.bf16 %v8869_v41  ;;  %v8646_v1 = vunpack.c.h.bf16 %v8876_v20 }
  0x81   :  { %v8929_v25 = vunpack.i.h.bf16 %v8927_v23  ;;  %v8928_v33 = vunpack.i.l.bf16 %v8927_v23  ;;  %v8937_v34 = vpop.permute.xlu1 %8936  ;;  %v10171_v49 = vpop.permute.xlu2 %8991  ;;  %v8944_v23 = vunpack.i.h.bf16 %v10120_v36 }
  0x82   :  { %v9145_v56 = vpack.i.bf16 %v8618_v52, %v8617_v51  ;;  %v8939_v62 = vunpack.i.h.bf16 %v8937_v34  ;;  %v8938_v63 = vunpack.i.l.bf16 %v8937_v34  ;;  %v8637_v34 = vunpack.c.l.bf16 %v8874_v57 }
  0x83   :  { %v1744_v35 = vsel %vm1643_vm0, %v542_v22, %v8928_v33  ;;  %v1745_v37 = vsel %vm1643_vm0, %v9914_v15, %v8929_v25  ;;  %v8943_v25 = vunpack.i.l.bf16 %v10120_v36  ;;  %v10204_v33 = vld [vmem:[%s13620_s0 + $0x110] sm:$0xff]  }
  0x84   :  { %v1845_v39 = vpack.c.bf16 %v1745_v37, %v1744_v35  ;;  %9146 = vrot.lane.b32.xlu0 %v9145_v56, %s9805_s12  ;;  %v1746_v3 = vsel %vm1643_vm0, %v9916_v16, %v8938_v63  ;;  %v1747_v6 = vsel %vm1643_vm0, %v8541_v18, %v8939_v62  ;;  %v8873_v18 = vld [vmem:[%s13620_s0 + $0x118] sm:$0xff]   ;;  %v6563_v35 = vld [vmem:[%s13620_s0 + $0x10c] sm:$0xf]  ;;  %v8629_v27 = vunpack.c.l.bf16 %v10204_v33 }
  0x85   :  { %v1847_v22 = vpack.c.bf16 %v1747_v6, %v1746_v3  ;;  %v8634_v36 = vunpack.c.h.bf16 %v8873_v18  ;;  %v1648_v44 = vsel %vm1643_vm0, %v8181_v8, %v8943_v25  ;;  %v793_v40 = vunpack.c.l.bf16 %v6563_v35 }
  0x86   :  { %2343 = vmatmul.bf16.vlgmr.msra.gmra.mxu1 %v1845_v39  ;;  %v1649_v39 = vsel %vm1643_vm0, %v8182_v11, %v8944_v23  ;;  %v8948_v8 = vunpack.i.l.bf16 %v10128_v43  ;;  %v8645_v63 = vunpack.c.l.bf16 %v8876_v20  ;;  %v8638_v3 = vunpack.c.h.bf16 %v8874_v57 }
  0x87   :  { %9166 = vrot.lane.b32.xlu1 %v9165_v55, %s9805_s12  ;;  %9171 = vrot.lane.b32.xlu2 %v9125_v60, %s9805_s12  ;;  %v8630_v60 = vunpack.c.h.bf16 %v10204_v33  ;;  %v9195_v46 = vpack.i.bf16 %v8637_v34, %v8634_v36  ;;  %v9175_v45 = vpack.i.bf16 %v8629_v27, %v793_v40  ;;  %v1848_v48 = vpack.c.bf16 %v1649_v39, %v1648_v44  ;;  %v8879_v39 = vld [vmem:[%s13620_s0 + $0x150] sm:$0xff]  }
  0x88   :  { %v8952_v2 = vpop.permute.xlu0 %8951  ;;  %v1748_v11 = vsel %vm1643_vm0, %v8542_v19, %v8948_v8  ;;  %v6572_v19 = vld [vmem:[%s13620_s0 + $0x130] sm:$0xf]  ;;  %v8641_v6 = vunpack.c.l.bf16 %v10252_v10  ;;  %v8964_v44 = vunpack.i.h.bf16 %v10145_v54  ;;  %v8657_v54 = vunpack.c.l.bf16 %v8879_v39 }
  0x89   :  { %v10179_v58 = vpop.permute.xlu1 %8956  ;;  %v10187_v0 = vpop.permute.xlu2 %9006  ;;  %v8954_v43 = vunpack.i.h.bf16 %v8952_v2  ;;  %v8953_v62 = vunpack.i.l.bf16 %v8952_v2 }
  0x8a   :  { %v10272_v23 = vpack.i.bf16 %v8641_v6, %v8638_v3  ;;  %v8959_v5 = vunpack.i.h.bf16 %v10179_v58 }
  0x8b   :  { %v1650_v2 = vsel %vm1643_vm0, %v8185_v12, %v8953_v62  ;;  %v1651_v7 = vsel %vm1643_vm0, %v8186_v28, %v8954_v43  ;;  %v8958_v28 = vunpack.i.l.bf16 %v10179_v58 }
  0x8c   :  { %9161 = vrot.lane.b32.xlu0 %v9160_v9, %s9805_s12  ;;  %v1850_v33 = vpack.c.bf16 %v1651_v7, %v1650_v2 }
  0x8e   :  { %2089 = vmatmul.bf16.gmra.mxu0 %v1846_v59  ;;  %v1849_v59 = vpack.c.bf16 %v1749_v50, %v1748_v11  ;;  %v6422_v11 = vld [vmem:[%s13620_s0 + $0x50] sm:$0xf] }
  0x8f   :  { %9181 = vrot.lane.b32.xlu1 %v9135_v61, %s9805_s12  ;;  %v8633_v61 = vunpack.c.l.bf16 %v8873_v18  ;;  %v6373_v18 = vld [vmem:[%s13620_s0 + $0x10c] sm:$0xf]  ;;  %v551_v20 = vunpack.c.l.bf16 %v6422_v11  ;;  %v10420_v11 = vld [vmem:[%s13620_s0 + $0x38] sm:$0xff]  }
  0x90   :  { %v10218_v38 = vpop.permute.xlu0 %8966  ;;  %v401_v57 = vunpack.c.l.bf16 %v6373_v18 }
  0x91   :  { %v10194_v13 = vpop.permute.xlu1 %8971  ;;  %v10216_v37 = vpop.permute.xlu2 %9021  ;;  %v9185_v41 = vpack.i.bf16 %v8633_v61, %v8630_v60  ;;  %v1750_v60 = vsel %vm1643_vm0, %v8546_v21, %v8958_v28  ;;  %v1751_v61 = vsel %vm1643_vm0, %v8549_v30, %v8959_v5  ;;  %v8878_v30 = vld [vmem:[%s13620_s0 + $0x148] sm:$0xff]   ;;  %v8969_v24 = vunpack.i.h.bf16 %v10218_v38 }
  0x92   :  { %v9220_v58 = vpack.i.bf16 %v8629_v27, %v401_v57  ;;  %v1851_v35 = vpack.c.bf16 %v1751_v61, %v1750_v60  ;;  %v8877_v27 = vld [vmem:[%s13620_s0 + $0x140] sm:$0xff]   ;;  %v8653_v40 = vunpack.c.l.bf16 %v8878_v30  ;;  %v8974_v26 = vunpack.i.h.bf16 %v10194_v13  ;;  %v8880_v60 = vld [vmem:[%s13620_s0 + $0x158] sm:$0xff]  }
  0x93   :  { %9186 = vrot.lane.b32.xlu2 %v9185_v41, %s9805_s12  ;;  %v8649_v42 = vunpack.c.l.bf16 %v8877_v27  ;;  %v8650_v8 = vunpack.c.h.bf16 %v8877_v27  ;;  %v1753_v7 = vsel %vm1643_vm0, %v551_v20, %v8969_v24  ;;  %v8021_v20 = vunpack.c.l.bf16 %v10420_v11 }
  0x94   :  { %9176 = vrot.lane.b32.xlu0 %v9175_v45, %s9805_s12  ;;  %v1652_v45 = vsel %vm1643_vm0, %v8189_v29, %v8963_v14  ;;  %v10388_v14 = vld [vmem:[%s13620_s0 + $0x58] sm:$0xff]  }
  0x95   :  { %v10326_v43 = vpack.i.bf16 %v8650_v8, %v8649_v42 }
  0x96   :  { %2348 = vmatmul.bf16.gmra.mxu1 %v1847_v22  ;;  %v9225_v22 = vpack.i.bf16 %v8646_v1, %v8645_v63  ;;  %v6382_v63 = vld [vmem:[%s13620_s0 + $0x130] sm:$0xf] }
  0x97   :  { %9196 = vrot.lane.b32.xlu1 %v9195_v46, %s9805_s12  ;;  %v410_v1 = vunpack.c.l.bf16 %v6382_v63 }
  0x98   :  { %v10234_v4 = vpop.permute.xlu0 %8981 }
  0x99   :  { %v10227_v47 = vpop.permute.xlu1 %8986  ;;  %v10242_v51 = vpop.permute.xlu2 %9036  ;;  %v8983_v24 = vunpack.i.l.bf16 %v10234_v4 }
  0x9b   :  { %9201 = vrot.lane.b32.xlu2 %v9155_v53, %s9805_s12  ;;  %v8642_v53 = vunpack.c.h.bf16 %v10252_v10  ;;  %v6583_v10 = vld [vmem:[%s13620_s0 + $0x164] sm:$0xf] }
  0x9c   :  { %9191 = vrot.lane.b32.xlu0 %v9145_v56, %s9805_s12 }
  0x9d   :  { %v9260_v3 = vpack.i.bf16 %v410_v1, %v8642_v53 }
  0x9e   :  { %2094 = vmatmul.bf16.gmra.mxu0 %v1848_v48  ;;  %v1653_v48 = vsel %vm1643_vm0, %v8190_v32, %v8964_v44  ;;  %v8968_v32 = vunpack.i.l.bf16 %v10218_v38  ;;  %v50_v38 = vld [vmem:[%s13620_s0 + $0x2c] sm:$0xf]  ;;  %v8662_v44 = vunpack.c.h.bf16 %v8880_v60 }
  0x9f   :  { %9211 = vrot.lane.b32.xlu1 %v9165_v55, %s9805_s12  ;;  %v802_v55 = vunpack.c.l.bf16 %v6572_v19  ;;  %v1852_v29 = vpack.c.bf16 %v1653_v48, %v1652_v45 }
  0xa0   :  { %v10261_v56 = vpop.permute.xlu0 %8996  ;;  %v1752_v2 = vsel %vm1643_vm0, %v8550_v31, %v8968_v32  ;;  %v8973_v31 = vunpack.i.l.bf16 %v10194_v13  ;;  %v8882_v13 = vld [vmem:[%s13620_s0 + $0x170] sm:$0xff]  }
  0xa1   :  { %v10244_v52 = vpop.permute.xlu1 %9001  ;;  %v9215_v9 = vpack.i.bf16 %v802_v55, %v8642_v53  ;;  %v10278_v12 = vpop.permute.xlu2 %9051  ;;  %v1853_v6 = vpack.c.bf16 %v1753_v7, %v1752_v2  ;;  %v10372_v53 = vld [vmem:[%s13620_s0 + $0x168] sm:$0xff]   ;;  %v8669_v57 = vunpack.c.l.bf16 %v8882_v13 }
  0xa2   :  { %v8666_v18 = vunpack.c.h.bf16 %v10372_v53 }
  0xa3   :  { %9216 = vrot.lane.b32.xlu2 %v9215_v9, %s9805_s12 }
  0xa4   :  { %9206 = vrot.lane.b32.xlu0 %v10272_v23, %s9805_s12 }
  0xa6   :  { %2353 = vmatmul.bf16.gmra.mxu1 %v1849_v59 }
  0xa7   :  { %9226 = vrot.lane.b32.xlu1 %v9225_v22, %s9805_s12 }
  0xa8   :  { %v10293_v36 = vpop.permute.xlu0 %9011 }
  0xa9   :  { %v10274_v25 = vpop.permute.xlu1 %9016  ;;  %v10302_v21 = vpop.permute.xlu2 %9066 }
  0xab   :  { %9231 = vrot.lane.b32.xlu2 %v9185_v41, %s9805_s12  ;;  %v8654_v41 = vunpack.c.h.bf16 %v8878_v30 }
  0xac   :  { %9221 = vrot.lane.b32.xlu0 %v9220_v58, %s9805_s12  ;;  %v1655_v58 = vsel %vm1643_vm0, %v9914_v15, %v8974_v26  ;;  %v8979_v15 = vunpack.i.h.bf16 %v10153_v17 }
  0xad   :  { %v10322_v50 = vpack.i.bf16 %v8654_v41, %v8653_v40  ;;  %v8978_v41 = vunpack.i.l.bf16 %v10153_v17 }
  0xae   :  { %2099 = vmatmul.bf16.gmra.mxu0 %v1850_v33  ;;  %v150_v33 = vunpack.c.l.bf16 %v50_v38 }
  0xaf   :  { %9241 = vrot.lane.b32.xlu1 %v9195_v46, %s9805_s12  ;;  %v8658_v46 = vunpack.c.h.bf16 %v8879_v39  ;;  %v10392_v39 = vpack.i.bf16 %v8669_v57, %v8666_v18 }
  0xb0   :  { %v10330_v19 = vpop.permute.xlu0 %9026  ;;  %v1654_v61 = vsel %vm1643_vm0, %v150_v33, %v8973_v31  ;;  %v8670_v31 = vunpack.c.h.bf16 %v8882_v13  ;;  %v8988_v13 = vunpack.i.l.bf16 %v10227_v47 }
  0xb1   :  { %v10295_v34 = vpop.permute.xlu1 %9031  ;;  %v10324_v59 = vpack.i.bf16 %v8658_v46, %v8657_v54  ;;  %v10340_v55 = vpop.permute.xlu2 %9081  ;;  %v1854_v40 = vpack.c.bf16 %v1655_v58, %v1654_v61  ;;  %v13639_v54 = vunpack.c.l.bf16 %v10388_v14  ;;  %v13637_v46 = vunpack.c.h.bf16 %v10388_v14 }
  0xb3   :  { %9246 = vrot.lane.b32.xlu2 %v10322_v50, %s9805_s12  ;;  %v1754_v8 = vsel %vm1643_vm0, %v13639_v54, %v8978_v41  ;;  %v1755_v17 = vsel %vm1643_vm0, %v13637_v46, %v8979_v15 }
  0xb4   :  { %9236 = vrot.lane.b32.xlu0 %v10326_v43, %s9805_s12  ;;  %v1855_v32 = vpack.c.bf16 %v1755_v17, %v1754_v8 }
  0xb6   :  { %2358 = vmatmul.bf16.gmra.mxu1 %v1851_v35  ;;  %v8661_v35 = vunpack.c.l.bf16 %v8880_v60  ;;  %v8989_v60 = vunpack.i.h.bf16 %v10227_v47  ;;  %v10483_v47 = vld [vmem:[%s13620_s0 + $0x1c8] sm:$0xff]  }
  0xb7   :  { %9256 = vrot.lane.b32.xlu1 %v10324_v59, %s9805_s12  ;;  %v13632_v8 = vunpack.c.h.bf16 %v10483_v47 }
  0xb8   :  { %v10362_v5 = vpop.permute.xlu0 %9041  ;;  %v10394_v27 = vpack.i.bf16 %v8662_v44, %v8661_v35 }
  0xb9   :  { %v10328_v62 = vpop.permute.xlu1 %9046  ;;  %v10364_v28 = vpop.permute.xlu2 %9096 }
  0xbb   :  { %9261 = vrot.lane.b32.xlu2 %v9260_v3, %s9805_s12 }
  0xbc   :  { %9251 = vrot.lane.b32.xlu0 %v10272_v23, %s9805_s12  ;;  %v813_v23 = vunpack.c.l.bf16 %v6583_v10  ;;  %v10456_v10 = vld [vmem:[%s13620_s0 + $0x60] sm:$0xff]  }
  0xbd   :  { %v13636_v61 = vunpack.c.l.bf16 %v10456_v10  ;;  %v13635_v58 = vunpack.c.h.bf16 %v10456_v10 }
  0xbe   :  { %2104 = vmatmul.bf16.gmra.mxu0 %v1852_v29  ;;  %v8984_v29 = vunpack.i.h.bf16 %v10234_v4  ;;  %v8883_v4 = vld [vmem:[%s13620_s0 + $0x178] sm:$0xff]  }
  0xbf   :  { %9271 = vrot.lane.b32.xlu1 %v9225_v22, %s9805_s12  ;;  %v8665_v22 = vunpack.c.l.bf16 %v10372_v53  ;;  %v8674_v38 = vunpack.c.h.bf16 %v8883_v4  ;;  %v8673_v33 = vunpack.c.l.bf16 %v8883_v4  ;;  %v1756_v17 = vsel %vm1643_vm0, %v13636_v61, %v8988_v13 }
  0xc0   :  { %v10409_v42 = vpop.permute.xlu0 %9056  ;;  %v1657_v7 = vsel %vm1643_vm0, %v8021_v20, %v8984_v29  ;;  %v1757_v29 = vsel %vm1643_vm0, %v13635_v58, %v8989_v60 }
  0xc1   :  { %v10356_v9 = vpop.permute.xlu1 %9061  ;;  %v9275_v30 = vpack.i.bf16 %v8665_v22, %v813_v23  ;;  %v10405_v45 = vpop.permute.xlu2 %9111  ;;  %v10462_v18 = vpack.i.bf16 %v8673_v33, %v8670_v31 }
  0xc3   :  { %9276 = vrot.lane.b32.xlu2 %v9275_v30, %s9805_s12  ;;  %v6393_v30 = vld [vmem:[%s13620_s0 + $0x164] sm:$0xf] }
  0xc4   :  { %9266 = vrot.lane.b32.xlu0 %v10394_v27, %s9805_s12  ;;  %v421_v41 = vunpack.c.l.bf16 %v6393_v30 }
  0xc6   :  { %2363 = vmatmul.bf16.gmra.mxu1 %v1853_v6  ;;  %v9320_v20 = vpack.i.bf16 %v8665_v22, %v421_v41  ;;  %v10532_v41 = vld [vmem:[%s13620_s0 + $0x68] sm:$0xff]  }
  0xc7   :  { %9286 = vrot.lane.b32.xlu1 %v10392_v39, %s9805_s12 }
  0xc8   :  { %v10435_v2 = vpop.permute.xlu0 %9071 }
  0xc9   :  { %v10407_v48 = vpop.permute.xlu1 %9076  ;;  %v10431_v63 = vpop.permute.xlu2 %9126 }
  0xcb   :  { %9291 = vrot.lane.b32.xlu2 %v10322_v50, %s9805_s12  ;;  %v10443_v50 = vld [vmem:[%s13620_s0 + $0x180] sm:$0xff]  }
  0xcc   :  { %9281 = vrot.lane.b32.xlu0 %v10326_v43, %s9805_s12  ;;  %v1656_v43 = vsel %vm1643_vm0, %v9916_v16, %v8983_v24  ;;  %v8677_v3 = vunpack.c.l.bf16 %v10443_v50  ;;  %v8678_v6 = vunpack.c.h.bf16 %v10443_v50 }
  0xcd   :  { %v1856_v57 = vpack.c.bf16 %v1657_v7, %v1656_v43  ;;  %v1857_v43 = vpack.c.bf16 %v1757_v29, %v1756_v17  ;;  %v8022_v7 = vunpack.c.h.bf16 %v10420_v11  ;;  %v8886_v11 = vld [vmem:[%s13620_s0 + $0x198] sm:$0xff]  }
  0xce   :  { %2109 = vmatmul.bf16.gmra.mxu0 %v1854_v40  ;;  %v10458_v23 = vpack.i.bf16 %v8677_v3, %v8674_v38  ;;  %v8892_v40 = vld [vmem:[%s13620_s0 + $0x1d0] sm:$0xff]   ;;  %v8994_v38 = vunpack.i.h.bf16 %v10171_v49  ;;  %v8686_v60 = vunpack.c.h.bf16 %v8886_v11 }
  0xcf   :  { %9301 = vrot.lane.b32.xlu1 %v10324_v59, %s9805_s12  ;;  %v6592_v59 = vld [vmem:[%s13620_s0 + $0x188] sm:$0xf]  ;;  %v8709_v24 = vunpack.c.l.bf16 %v8892_v40 }
  0xd0   :  { %v822_v26 = vunpack.c.l.bf16 %v6592_v59  ;;  %v10475_v44 = vpop.permute.xlu0 %9086  ;;  %v8993_v59 = vunpack.i.l.bf16 %v10171_v49  ;;  %v8885_v49 = vld [vmem:[%s13620_s0 + $0x190] sm:$0xff]  }
  0xd1   :  { %v10433_v1 = vpop.permute.xlu1 %9091  ;;  %v10488_v15 = vpop.permute.xlu2 %9141  ;;  %v9330_v4 = vpack.i.bf16 %v8709_v24, %v13632_v8  ;;  %v8681_v13 = vunpack.c.l.bf16 %v8885_v49  ;;  %v8682_v30 = vunpack.c.h.bf16 %v8885_v49 }
  0xd2   :  { %v9315_v16 = vpack.i.bf16 %v822_v26, %v8678_v6  ;;  %v8801_v26 = vld [vmem:[%s13620_s0 + $0x1a0] sm:$0xff]   ;;  %v1658_v31 = vsel %vm1643_vm0, %v8022_v7, %v8993_v59  ;;  %v8999_v59 = vunpack.i.h.bf16 %v10261_v56  ;;  %v13634_v7 = vunpack.c.l.bf16 %v10532_v41 }
  0xd3   :  { %9306 = vrot.lane.b32.xlu2 %v10458_v23, %s9805_s12  ;;  %v8346_v33 = vunpack.c.h.bf16 %v8801_v26 }
  0xd4   :  { %9296 = vrot.lane.b32.xlu0 %v10462_v18, %s9805_s12 }
  0xd6   :  { %2368 = vmatmul.bf16.gmra.mxu1 %v1855_v32  ;;  %v10500_v32 = vld [vmem:[%s13620_s0 + $0x40] sm:$0xff]  }
  0xd7   :  { %9316 = vrot.lane.b32.xlu1 %v9315_v16, %s9805_s12  ;;  %v8025_v3 = vunpack.c.l.bf16 %v10500_v32  ;;  %v8685_v16 = vunpack.c.l.bf16 %v8886_v11  ;;  %v8893_v11 = vld [vmem:[%s13620_s0 + $0x1d8] sm:$0xff]  }
  0xd8   :  { %v10516_v22 = vpop.permute.xlu0 %9101  ;;  %v8713_v49 = vunpack.c.l.bf16 %v8893_v11 }
  0xd9   :  { %v10473_v35 = vpop.permute.xlu1 %9106  ;;  %v10534_v17 = vpop.permute.xlu2 %9156  ;;  %v9345_v24 = vpack.i.bf16 %v8686_v60, %v8685_v16 }
  0xdb   :  { %9321 = vrot.lane.b32.xlu2 %v9320_v20, %s9805_s12 }
  0xdc   :  { %9311 = vrot.lane.b32.xlu0 %v10394_v27, %s9805_s12  ;;  %v8345_v27 = vunpack.c.l.bf16 %v8801_v26 }
  0xde   :  { %2114 = vmatmul.bf16.gmra.mxu0 %v1856_v57  ;;  %v1659_v57 = vsel %vm1643_vm0, %v8025_v3, %v8994_v38  ;;  %v9335_v29 = vpack.i.bf16 %v8346_v33, %v8345_v27  ;;  %v13633_v38 = vunpack.c.h.bf16 %v10532_v41  ;;  %v10562_v33 = vld [vmem:[%s13620_s0 + $0x48] sm:$0xff]  }
  0xdf   :  { %9331 = vrot.lane.b32.xlu1 %v9330_v4, %s9805_s12  ;;  %v1858_v20 = vpack.c.bf16 %v1659_v57, %v1658_v31  ;;  %v10536_v4 = vpack.i.bf16 %v8682_v30, %v8681_v13  ;;  %v9003_v13 = vunpack.i.l.bf16 %v10244_v52  ;;  %v8026_v30 = vunpack.c.h.bf16 %v10500_v32  ;;  %v8802_v32 = vld [vmem:[%s13620_s0 + $0x1a8] sm:$0xff]  }
  0xe0   :  { %v10548_v26 = vpop.permute.xlu0 %9116  ;;  %v1759_v27 = vsel %vm1643_vm0, %v13633_v38, %v8999_v59  ;;  %v8030_v54 = vunpack.c.h.bf16 %v10562_v33 }
  0xe1   :  { %v10514_v53 = vpop.permute.xlu1 %9121  ;;  %v10564_v60 = vpop.permute.xlu2 %9171 }
  0xe3   :  { %9336 = vrot.lane.b32.xlu2 %v9335_v29, %s9805_s12 }
  0xe4   :  { %9326 = vrot.lane.b32.xlu0 %v10536_v4, %s9805_s12 }
  0xe6   :  { %2373 = vmatmul.bf16.gmra.mxu1 %v1857_v43  ;;  %v8998_v43 = vunpack.i.l.bf16 %v10261_v56  ;;  %v8710_v56 = vunpack.c.h.bf16 %v8892_v40  ;;  %v9004_v40 = vunpack.i.h.bf16 %v10244_v52  ;;  %v8803_v52 = vld [vmem:[%s13620_s0 + $0x1b0] sm:$0xff]  }
  0xe7   :  { %9346 = vrot.lane.b32.xlu1 %v9345_v24, %s9805_s12  ;;  %v8029_v24 = vunpack.c.l.bf16 %v10562_v33 }
  0xe8   :  { %v1758_v31 = vsel %vm1643_vm0, %v13634_v7, %v8998_v43  ;;  %v9350_v16 = vpack.i.bf16 %v8713_v49, %v8710_v56  ;;  %v10577_v59 = vpop.permute.xlu0 %9131  ;;  %v8353_v43 = vunpack.c.l.bf16 %v8803_v52  ;;  %v8354_v56 = vunpack.c.h.bf16 %v8803_v52 }
  0xe9   :  { %v10546_v3 = vpop.permute.xlu1 %9136  ;;  %v1859_v57 = vpack.c.bf16 %v1759_v27, %v1758_v31  ;;  %v8349_v49 = vunpack.c.l.bf16 %v8802_v32  ;;  %v1660_v31 = vsel %vm1643_vm0, %v8026_v30, %v9003_v13  ;;  %v10590_v27 = vld [vmem:[%s13620_s0 + $0x70] sm:$0xff]   ;;  %v9009_v7 = vunpack.i.h.bf16 %v10187_v0 }
  0xea   :  { %v13638_v52 = vunpack.c.l.bf16 %v10590_v27 }
  0xeb   :  { %9351 = vrot.lane.b32.xlu2 %v9350_v16, %s9805_s12  ;;  %v9375_v16 = vpack.i.bf16 %v8354_v56, %v8353_v43  ;;  %v8714_v56 = vunpack.c.h.bf16 %v8893_v11 }
  0xec   :  { %9341 = vrot.lane.b32.xlu0 %v10392_v39, %s9805_s12  ;;  %v1661_v39 = vsel %vm1643_vm0, %v8029_v24, %v9004_v40  ;;  %v6612_v24 = vld [vmem:[%s13620_s0 + $0x1e0] sm:$0xf] }
  0xed   :  { %v1860_v38 = vpack.c.bf16 %v1661_v39, %v1660_v31  ;;  %v10598_v40 = vpop.permute.xlu2 %9186  ;;  %v59_v39 = vld [vmem:[%s13620_s0 + $0x50] sm:$0xf] }
  0xee   :  { %2119 = vmatmul.bf16.gmra.mxu0 %v1858_v20 }
  0xef   :  { %9361 = vrot.lane.b32.xlu1 %v10462_v18, %s9805_s12  ;;  %v8350_v18 = vunpack.c.h.bf16 %v8802_v32  ;;  %v13642_v32 = vunpack.c.h.bf16 %v10590_v27 }
  0xf1   :  { %v10575_v20 = vpop.permute.xlu1 %9151  ;;  %v9355_v8 = vpack.i.bf16 %v8350_v18, %v8349_v49  ;;  %v842_v49 = vunpack.c.l.bf16 %v6612_v24  ;;  %v1761_v31 = vsel %vm1643_vm0, %v13642_v32, %v9009_v7  ;;  %v9013_v24 = vunpack.i.l.bf16 %v10293_v36 }
  0xf2   :  { %v159_v7 = vunpack.c.l.bf16 %v59_v39 }
  0xf3   :  { %9366 = vrot.lane.b32.xlu2 %v9335_v29, %s9805_s12  ;;  %v10614_v29 = vld [vmem:[%s13622_s2] ss:$0 sm:$0xff]  ;;  %v9370_v46 = vpack.i.bf16 %v842_v49, %v8714_v56  ;;  %v1662_v33 = vsel %vm1643_vm0, %v8030_v54, %v9013_v24  ;;  %v9018_v49 = vunpack.i.l.bf16 %v10274_v25 }
  0xf4   :  { %9356 = vrot.lane.b32.xlu0 %v9355_v8, %s9805_s12 }
  0xf6   :  { %2378 = vmatmul.bf16.gmra.mxu1 %v1859_v57  ;;  %v9008_v57 = vunpack.i.l.bf16 %v10187_v0  ;;  %v10603_v30 = vpop.permute.xlu0 %9146  ;;  %v6402_v0 = vld [vmem:[%s13620_s0 + $0x188] sm:$0xf] }
  0xf7   :  { %9376 = vrot.lane.b32.xlu1 %v9375_v16, %s9805_s12  ;;  %v430_v43 = vunpack.c.l.bf16 %v6402_v0  ;;  %v9014_v0 = vunpack.i.h.bf16 %v10293_v36  ;;  %v10639_v36 = vpop.permute.xlu2 %9201 }
  0xf8   :  { %v1760_v18 = vsel %vm1643_vm0, %v13638_v52, %v9008_v57 }
  0xf9   :  { %v10601_v13 = vpop.permute.xlu1 %9166  ;;  %v9390_v61 = vpack.i.bf16 %v430_v43, %v8678_v6  ;;  %v1861_v11 = vpack.c.bf16 %v1761_v31, %v1760_v18  ;;  %v1663_v56 = vsel %vm1643_vm0, %v159_v7, %v9014_v0 }
  0xfb   :  { %v2085_v58 = vpop.f32.mrf.mxu0  ;;  %9381 = vrot.lane.b32.xlu2 %v10458_v23, %s9805_s12  ;;  %v10647_v23 = vld [vmem:[%s13620_s0 + $0x78] sm:$0xff]  }
  0xfc   :  { %9371 = vrot.lane.b32.xlu0 %v9370_v46, %s9805_s12  ;;  %v13641_v54 = vunpack.c.l.bf16 %v10647_v23  ;;  %v13640_v39 = vunpack.c.h.bf16 %v10647_v23 }
  0xfe   :  { %2124 = vmatmul.bf16.gmra.mxu0 %v1860_v38  ;;  %v2086_v38 = vadd.f32 %v10614_v29, %v2085_v58  ;;  %v10637_v58 = vpop.permute.xlu0 %9161 }
  0xff   :  { %9391 = vrot.lane.b32.xlu1 %v9390_v61, %s9805_s12  ;;  %v1862_v61 = vpack.c.bf16 %v1663_v56, %v1662_v33 }
 0x101   :  { %v10635_v6 = vpop.permute.xlu1 %9181 }
 0x103   :  { %v2087_v57 = vpop.f32.mrf.mxu0  ;;  %v2344_v52 = vpop.f32.mrf.mxu1  ;;  %9396 = vrot.lane.b32.xlu2 %v9375_v16, %s9805_s12 }
 0x104   :  { %v2345_v50 = vadd.f32 %v2344_v52, %v2086_v38  ;;  %v2088_v46 = vadd.f32 %v10614_v29, %v2087_v57  ;;  %v9019_v52 = vunpack.i.h.bf16 %v10274_v25  ;;  %9386 = vrot.lane.b32.xlu0 %v9355_v8, %s9805_s12  ;;  %v1762_v25 = vsel %vm1643_vm0, %v13641_v54, %v9018_v49  ;;  %v10667_v16 = vpop.permute.xlu2 %9216 }
 0x106   :  { %v2594_v43 = vmax.f32 %v2345_v50, 0.0  ;;  %2383 = vmatmul.bf16.gmra.mxu1 %v1861_v11  ;;  %v10658_v0 = vpop.permute.xlu0 %9176  ;;  %v1763_v57 = vsel %vm1643_vm0, %v13640_v39, %v9019_v52  ;;  %v9024_v50 = vunpack.i.h.bf16 %v10216_v37 }
 0x107   :  { %v1863_v7 = vpack.c.bf16 %v1763_v57, %v1762_v25 }
 0x108   :  { %2695 = vst.msk [vmem:[#allocation2] sm:$0xff] %vm2694_vm1, %v2594_v43  ;;  %v9023_v43 = vunpack.i.l.bf16 %v10216_v37 }
 0x109   :  { %v10656_v11 = vpop.permute.xlu1 %9196 }
 0x10b   :  { %v2090_v18 = vpop.f32.mrf.mxu0  ;;  %v2346_v31 = vpop.f32.mrf.mxu1 }
 0x10c   :  { %v2347_v38 = vadd.f32 %v2346_v31, %v2088_v46  ;;  %v2091_v8 = vadd.f32 %v10614_v29, %v2090_v18  ;;  %9401 = vrot.lane.b32.xlu0 %v10536_v4, %s9805_s12  ;;  %v13684_v31 = vunpack.c.l.bf16 %v10388_v14  ;;  %v6433_v4 = vld [vmem:[%s13620_s0 + $0x84] sm:$0xf] }
 0x10e   :  { %v2595_v24 = vmax.f32 %v2347_v38, 0.0  ;;  %2129 = vmatmul.bf16.gmra.mxu0 %v1862_v61  ;;  %v10676_v52 = vpop.permute.xlu0 %9191  ;;  %v1664_v18 = vsel %vm1643_vm0, %v13684_v31, %v9023_v43  ;;  %v13685_v38 = vunpack.c.h.bf16 %v10388_v14  ;;  %v9029_v14 = vunpack.i.h.bf16 %v10330_v19 }
 0x110   :  { %2696 = vst.msk [vmem:[#allocation2 + $0x8] sm:$0xff] %vm2694_vm1, %v2595_v24  ;;  %v1665_v37 = vsel %vm1643_vm0, %v13685_v38, %v9024_v50  ;;  %v10691_v24 = vld [vmem:[%s13620_s0 + $0x88] sm:$0xff]  }
 0x111   :  { %v10674_v61 = vpop.permute.xlu1 %9211  ;;  %v1864_v57 = vpack.c.bf16 %v1665_v37, %v1664_v18 }
 0x113   :  { %v2092_v33 = vpop.f32.mrf.mxu0  ;;  %v2349_v56 = vpop.f32.mrf.mxu1 }
 0x114   :  { %v2350_v46 = vadd.f32 %v2349_v56, %v2091_v8  ;;  %v2093_v25 = vadd.f32 %v10614_v29, %v2092_v33  ;;  %v10694_v8 = vpop.permute.xlu2 %9231  ;;  %v13643_v56 = vunpack.c.l.bf16 %v10691_v24 }
 0x115   :  { %13686 = vst [vmem:[#allocation8_spill] sm:$0xff] %v10694_v8 }
 0x116   :  { %v2596_v49 = vmax.f32 %v2350_v46, 0.0  ;;  %2388 = vmatmul.bf16.gmra.mxu1 %v1863_v7  ;;  %v9028_v7 = vunpack.i.l.bf16 %v10330_v19  ;;  %v562_v46 = vunpack.c.l.bf16 %v6433_v4  ;;  %v10701_v38 = vpop.permute.xlu0 %9206  ;;  %v1765_v18 = vsel %vm1643_vm0, %v13643_v56, %v9029_v14 }
 0x117   :  { %v9034_v4 = vunpack.i.h.bf16 %v10295_v34  ;;  %v2799_v14 = vld [vmem:[#allocation2 + $0x8] sm:$0xff] }
 0x118   :  { %2697 = vst.msk [vmem:[#allocation2 + $0x10] sm:$0xff] %vm2694_vm1, %v2596_v49  ;;  %v1764_v33 = vsel %vm1643_vm0, %v562_v46, %v9028_v7 }
 0x119   :  { %v10699_v31 = vpop.permute.xlu1 %9226  ;;  %v1865_v37 = vpack.c.bf16 %v1765_v18, %v1764_v33  ;;  %v13690_v18 = vunpack.c.h.bf16 %v10456_v10 }
 0x11b   :  { %v2095_v50 = vpop.f32.mrf.mxu0  ;;  %v2351_v43 = vpop.f32.mrf.mxu1 }
 0x11c   :  { %v2352_v49 = vadd.f32 %v2351_v43, %v2093_v25  ;;  %v2096_v19 = vadd.f32 %v10614_v29, %v2095_v50  ;;  %v9033_v25 = vunpack.i.l.bf16 %v10295_v34  ;;  %v13689_v50 = vunpack.c.l.bf16 %v10456_v10 }
 0x11d   :  { %v1667_v34 = vsel %vm1643_vm0, %v13690_v18, %v9034_v4  ;;  %v9038_v10 = vunpack.i.l.bf16 %v10242_v51 }
 0x11e   :  { %v2597_v39 = vmax.f32 %v2352_v49, 0.0  ;;  %2134 = vmatmul.bf16.gmra.mxu0 %v1864_v57  ;;  %v10711_v49 = vpop.permute.xlu2 %9246  ;;  %v10715_v7 = vpop.permute.xlu0 %9221  ;;  %v1666_v33 = vsel %vm1643_vm0, %v13689_v50, %v9033_v25  ;;  %v9039_v25 = vunpack.i.h.bf16 %v10242_v51 }
 0x11f   :  { %13687 = vst [vmem:[#allocation9_spill] sm:$0xff] %v10711_v49 }
 0x120   :  { %2698 = vst.msk [vmem:[#allocation2 + $0x18] sm:$0xff] %vm2694_vm1, %v2597_v39 }
 0x121   :  { %v10713_v57 = vpop.permute.xlu1 %9241 }
 0x122   :  { %13688 = vst [vmem:[#allocation10_spill] sm:$0xff] %v10713_v57 }
 0x123   :  { %v2097_v43 = vpop.f32.mrf.mxu0  ;;  %v2354_v54 = vpop.f32.mrf.mxu1 }
 0x124   :  { %v2355_v32 = vadd.f32 %v2354_v54, %v2096_v19  ;;  %v10727_v19 = vld [vmem:[%s13620_s0 + $0x90] sm:$0xff]  }
 0x126   :  { %v2598_v46 = vmax.f32 %v2355_v32, 0.0  ;;  %2393 = vmatmul.bf16.gmra.mxu1 %v1865_v37  ;;  %v2098_v32 = vadd.f32 %v10614_v29, %v2097_v43  ;;  %v1866_v37 = vpack.c.bf16 %v1667_v34, %v1666_v33  ;;  %v10737_v49 = vpop.permute.xlu0 %9236  ;;  %v10739_v57 = vpop.permute.xlu2 %9261  ;;  %v10741_v33 = vld [vmem:[#allocation2 + $0x10] sm:$0xff] }
 0x127   :  { %v2800_v39 = vld [vmem:[#allocation2 + $0x18] sm:$0xff]  ;;  %13692 = vst [vmem:[#allocation12_spill] sm:$0xff] %v10737_v49 }
 0x128   :  { %2699 = vst.msk [vmem:[#allocation2 + $0x20] sm:$0xff] %vm2694_vm1, %v2598_v46  ;;  %v9405_v54 = vpack.i.bf16 %v2800_v39, %v2799_v14  ;;  %v13648_v46 = vunpack.c.h.bf16 %v10691_v24  ;;  %v13650_v14 = vunpack.c.l.bf16 %v10727_v19 }
 0x129   :  { %v10735_v56 = vpop.permute.xlu1 %9256  ;;  %13693 = vst [vmem:[#allocation13_spill] sm:$0xff] %v10739_v57  ;;  %v9043_v57 = vunpack.i.l.bf16 %v10362_v5 }
 0x12a   :  { %9406 = vrot.lane.b32.xlu1 %v9405_v54, %s9806_s29  ;;  %13691 = vst [vmem:[#allocation11_spill] sm:$0xff] %v10735_v56  ;;  %v1766_v51 = vsel %vm1643_vm0, %v13648_v46, %v9038_v10  ;;  %v1767_v54 = vsel %vm1643_vm0, %v13650_v14, %v9039_v25  ;;  %v13696_v14 = vunpack.c.l.bf16 %v10532_v41 }
 0x12b   :  { %v2100_v50 = vpop.f32.mrf.mxu0  ;;  %v2356_v4 = vpop.f32.mrf.mxu1 }
 0x12c   :  { %v2357_v18 = vadd.f32 %v2356_v4, %v2098_v32  ;;  %v2101_v32 = vadd.f32 %v10614_v29, %v2100_v50  ;;  %v1867_v4 = vpack.c.bf16 %v1767_v54, %v1766_v51  ;;  %v1668_v8 = vsel %vm1643_vm0, %v13696_v14, %v9043_v57 }
 0x12d   :  { %v13697_v51 = vunpack.c.h.bf16 %v10532_v41  ;;  %v9049_v41 = vunpack.i.h.bf16 %v10328_v62  ;;  %v9048_v14 = vunpack.i.l.bf16 %v10328_v62 }
 0x12e   :  { %v2599_v43 = vmax.f32 %v2357_v18, 0.0  ;;  %2139 = vmatmul.bf16.gmra.mxu0 %v1866_v37  ;;  %v9044_v18 = vunpack.i.h.bf16 %v10362_v5  ;;  %v10760_v25 = vpop.permute.xlu0 %9251 }
 0x12f   :  { %v10743_v34 = vld [vmem:[#allocation2 + $0x20] sm:$0xff]  ;;  %13695 = vst [vmem:[#allocation15_spill] sm:$0xff] %v10760_v25 }
 0x130   :  { %2700 = vst.msk [vmem:[#allocation2 + $0x28] sm:$0xff] %vm2694_vm1, %v2599_v43  ;;  %v9410_v37 = vpack.i.bf16 %v10743_v34, %v10741_v33  ;;  %v1669_v54 = vsel %vm1643_vm0, %v13697_v51, %v9044_v18 }
 0x131   :  { %v10758_v49 = vpop.permute.xlu1 %9271  ;;  %v1868_v57 = vpack.c.bf16 %v1669_v54, %v1668_v8 }
 0x132   :  { %9411 = vrot.lane.b32.xlu2 %v9410_v37, %s9805_s12  ;;  %13694 = vst [vmem:[#allocation14_spill] sm:$0xff] %v10758_v49  ;;  %v10769_v37 = vpop.permute.xlu2 %9276 }
 0x133   :  { %v2102_v56 = vpop.f32.mrf.mxu0  ;;  %v2359_v10 = vpop.f32.mrf.mxu1  ;;  %13698 = vst [vmem:[#allocation16_spill] sm:$0xff] %v10769_v37 }
 0x134   :  { %v2360_v46 = vadd.f32 %v2359_v10, %v2101_v32  ;;  %v10774_v32 = vld [vmem:[%s13620_s0 + $0x98] sm:$0xff]  }
 0x135   :  { %v13657_v10 = vunpack.c.l.bf16 %v10774_v32 }
 0x136   :  { %v2600_v50 = vmax.f32 %v2360_v46, 0.0  ;;  %2398 = vmatmul.bf16.gmra.mxu1 %v1867_v4  ;;  %v2103_v46 = vadd.f32 %v10614_v29, %v2102_v56  ;;  %v13656_v4 = vunpack.c.h.bf16 %v10727_v19  ;;  %v10784_v37 = vpop.permute.xlu0 %9266 }
 0x137   :  { %v2809_v43 = vld [vmem:[#allocation2 + $0x28] sm:$0xff]  ;;  %13700 = vst [vmem:[#allocation18_spill] sm:$0xff] %v10784_v37  ;;  %v1769_v62 = vsel %vm1643_vm0, %v13657_v10, %v9049_v41 }
 0x138   :  { %2701 = vst.msk [vmem:[#allocation2 + $0x30] sm:$0xff] %vm2694_vm1, %v2600_v50  ;;  %v9415_v5 = vpack.i.bf16 %v2809_v43, %v2800_v39  ;;  %v1768_v8 = vsel %vm1643_vm0, %v13656_v4, %v9048_v14 }
 0x139   :  { %v10782_v51 = vpop.permute.xlu1 %9286 }
 0x13a   :  { %9416 = vrot.lane.b32.xlu0 %v9415_v5, %s9807_s14  ;;  %13699 = vst [vmem:[#allocation17_spill] sm:$0xff] %v10782_v51  ;;  %v1869_v5 = vpack.c.bf16 %v1769_v62, %v1768_v8  ;;  %v13705_v8 = vunpack.c.h.bf16 %v10590_v27 }
 0x13b   :  { %v2105_v39 = vpop.f32.mrf.mxu0  ;;  %v2361_v18 = vpop.f32.mrf.mxu1 }
 0x13c   :  { %v2362_v50 = vadd.f32 %v2361_v18, %v2103_v46  ;;  %v2106_v54 = vadd.f32 %v10614_v29, %v2105_v39  ;;  %v10794_v46 = vpop.permute.xlu2 %9291  ;;  %v9054_v18 = vunpack.i.h.bf16 %v10278_v12  ;;  %v13704_v39 = vunpack.c.l.bf16 %v10590_v27 }
 0x13d   :  { %13701 = vst [vmem:[#allocation19_spill] sm:$0xff] %v10794_v46 }
 0x13e   :  { %v2601_v56 = vmax.f32 %v2362_v50, 0.0  ;;  %2144 = vmatmul.bf16.gmra.mxu0 %v1868_v57  ;;  %v9053_v50 = vunpack.i.l.bf16 %v10278_v12  ;;  %v10798_v37 = vpop.permute.xlu0 %9281  ;;  %v1671_v62 = vsel %vm1643_vm0, %v13705_v8, %v9054_v18  ;;  %v13660_v18 = vunpack.c.h.bf16 %v10774_v32 }
 0x13f   :  { %13702 = vst [vmem:[#allocation20_spill] sm:$0xff] %v10798_v37 }
 0x140   :  { %2702 = vst.msk [vmem:[#allocation2 + $0x38] sm:$0xff] %vm2694_vm1, %v2601_v56  ;;  %v1670_v56 = vsel %vm1643_vm0, %v13704_v39, %v9053_v50  ;;  %v9058_v50 = vunpack.i.l.bf16 %v10409_v42 }
 0x141   :  { %v10800_v4 = vpop.permute.xlu1 %9301 }
 0x142   :  { %13703 = vst [vmem:[#allocation21_spill] sm:$0xff] %v10800_v4 }
 0x143   :  { %v2107_v57 = vpop.f32.mrf.mxu0  ;;  %v2364_v51 = vpop.f32.mrf.mxu1 }
 0x144   :  { %v2365_v49 = vadd.f32 %v2364_v51, %v2106_v54  ;;  %v10812_v51 = vld [vmem:[%s13620_s0 + $0xa0] sm:$0xff]   ;;  %v1870_v54 = vpack.c.bf16 %v1671_v62, %v1670_v56  ;;  %v10820_v8 = vpop.permute.xlu2 %9306 }
 0x145   :  { %13706 = vst [vmem:[#allocation22_spill] sm:$0xff] %v10820_v8  ;;  %v9063_v8 = vunpack.i.l.bf16 %v10356_v9 }
 0x146   :  { %v2602_v14 = vmax.f32 %v2365_v49, 0.0  ;;  %2403 = vmatmul.bf16.gmra.mxu1 %v1869_v5  ;;  %v2108_v49 = vadd.f32 %v10614_v29, %v2107_v57  ;;  %v9059_v5 = vunpack.i.h.bf16 %v10409_v42  ;;  %v10822_v4 = vpop.permute.xlu0 %9296  ;;  %v10824_v57 = vld [vmem:[#allocation2 + $0x30] sm:$0xff]  ;;  %v1770_v42 = vsel %vm1643_vm0, %v13660_v18, %v9058_v50 }
 0x147   :  { %v2802_v41 = vld [vmem:[#allocation2 + $0x38] sm:$0xff]  ;;  %13707 = vst [vmem:[#allocation23_spill] sm:$0xff] %v10822_v4 }
 0x148   :  { %2703 = vst.msk [vmem:[#allocation2 + $0x40] sm:$0xff] %vm2694_vm1, %v2602_v14  ;;  %v9420_v12 = vpack.i.bf16 %v2802_v41, %v2809_v43  ;;  %v13663_v43 = vunpack.c.l.bf16 %v10812_v51 }
 0x14a   :  { %9421 = vrot.lane.b32.xlu0 %v9420_v12, %s9806_s29  ;;  %v1771_v62 = vsel %vm1643_vm0, %v13663_v43, %v9059_v5 }
 0x14b   :  { %v2110_v27 = vpop.f32.mrf.mxu0  ;;  %v2366_v39 = vpop.f32.mrf.mxu1 }
 0x14c   :  { %v2367_v14 = vadd.f32 %v2366_v39, %v2108_v49  ;;  %v2111_v12 = vadd.f32 %v10614_v29, %v2110_v27  ;;  %v1871_v39 = vpack.c.bf16 %v1771_v62, %v1770_v42  ;;  %v10840_v5 = vpop.permute.xlu2 %9321  ;;  %v13712_v42 = vunpack.c.h.bf16 %v10647_v23 }
 0x14d   :  { %13709 = vst [vmem:[#allocation25_spill] sm:$0xff] %v10840_v5  ;;  %v8525_v5 = vunpack.c.l.bf16 %v10483_v47 }
 0x14e   :  { %v2603_v10 = vmax.f32 %v2367_v14, 0.0  ;;  %2149 = vmatmul.bf16.gmra.mxu0 %v1870_v54  ;;  %v10835_v54 = vpop.permute.xlu1 %9316  ;;  %v9064_v14 = vunpack.i.h.bf16 %v10356_v9  ;;  %v10842_v27 = vpop.permute.xlu0 %9311 }
 0x14f   :  { %v2807_v56 = vld [vmem:[#allocation2 + $0x40] sm:$0xff]  ;;  %13708 = vst [vmem:[#allocation24_spill] sm:$0xff] %v10835_v54 }
 0x150   :  { %2704 = vst.msk [vmem:[#allocation2 + $0x48] sm:$0xff] %vm2694_vm1, %v2603_v10  ;;  %v9425_v49 = vpack.i.bf16 %v2807_v56, %v10824_v57  ;;  %v13711_v56 = vunpack.c.l.bf16 %v10647_v23  ;;  %v1673_v62 = vsel %vm1643_vm0, %v13712_v42, %v9064_v14  ;;  %v13669_v14 = vunpack.c.h.bf16 %v10812_v51 }
 0x151   :  { %13710 = vst [vmem:[#allocation26_spill] sm:$0xff] %v10842_v27 }
 0x152   :  { %9426 = vrot.lane.b32.xlu1 %v9425_v49, %s9805_s12  ;;  %v1672_v43 = vsel %vm1643_vm0, %v13711_v56, %v9063_v8 }
 0x153   :  { %v2112_v50 = vpop.f32.mrf.mxu0  ;;  %v2369_v18 = vpop.f32.mrf.mxu1  ;;  %v1872_v8 = vpack.c.bf16 %v1673_v62, %v1672_v43  ;;  %v13714_v62 = vunpack.c.h.bf16 %v10483_v47 }
 0x154   :  { %v2370_v4 = vadd.f32 %v2369_v18, %v2111_v12  ;;  %v9069_v18 = vunpack.i.h.bf16 %v10302_v21  ;;  %v9068_v12 = vunpack.i.l.bf16 %v10302_v21  ;;  %v2113_v49 = vadd.f32 %v10614_v29, %v2112_v50 }
 0x156   :  { %v2604_v46 = vmax.f32 %v2370_v4, 0.0  ;;  %2408 = vmatmul.bf16.gmra.mxu1 %v1871_v39  ;;  %v6442_v4 = vld [vmem:[%s13620_s0 + $0xa8] sm:$0xf]  ;;  %v9332_v39 = vpop.permute.xlu1 %9331  ;;  %v10860_v27 = vpop.permute.xlu0 %9326  ;;  %v1772_v21 = vsel %vm1643_vm0, %v13669_v14, %v9068_v12 }
 0x157   :  { %v2811_v10 = vld [vmem:[#allocation2 + $0x48] sm:$0xff]  ;;  %13713 = vst [vmem:[#allocation27_spill] sm:$0xff] %v10860_v27 }
 0x158   :  { %2705 = vst.msk [vmem:[#allocation2 + $0x50] sm:$0xff] %vm2694_vm1, %v2604_v46  ;;  %v9430_v9 = vpack.i.bf16 %v2811_v10, %v2802_v41  ;;  %v571_v46 = vunpack.c.l.bf16 %v6442_v4  ;;  %v9334_v41 = vunpack.i.h.bf16 %v9332_v39  ;;  %v9333_v10 = vunpack.i.l.bf16 %v9332_v39 }
 0x15a   :  { %9431 = vrot.lane.b32.xlu2 %v9430_v9, %s9807_s14  ;;  %v1773_v43 = vsel %vm1643_vm0, %v571_v46, %v9069_v18  ;;  %v1838_v50 = vsel %vm1643_vm0, %v8525_v5, %v9333_v10  ;;  %v1839_v9 = vsel %vm1643_vm0, %v13714_v62, %v9334_v41  ;;  %v9074_v18 = vunpack.i.h.bf16 %v10435_v2 }
 0x15b   :  { %v2115_v23 = vpop.f32.mrf.mxu0  ;;  %v2371_v56 = vpop.f32.mrf.mxu1  ;;  %v1939_v39 = vpack.c.bf16 %v1839_v9, %v1838_v50  ;;  %v1873_v12 = vpack.c.bf16 %v1773_v43, %v1772_v21  ;;  %v9073_v5 = vunpack.i.l.bf16 %v10435_v2  ;;  %v10889_v2 = vld [vmem:[%s13620_s0 + $0xb0] sm:$0xff]   ;;  %v9079_v21 = vunpack.i.h.bf16 %v10407_v48 }
 0x15c   :  { %v2372_v42 = vadd.f32 %v2371_v56, %v2113_v49  ;;  %v2116_v4 = vadd.f32 %v10614_v29, %v2115_v23  ;;  %v10872_v49 = vpop.permute.xlu2 %9336  ;;  %v9078_v43 = vunpack.i.l.bf16 %v10407_v48 }
 0x15d   :  { %2578 = vmatmul.bf16.vlgmr.msra.gmra.mxu2 %v1939_v39 }
 0x15e   :  { %v2605_v54 = vmax.f32 %v2372_v42, 0.0  ;;  %2154 = vmatmul.bf16.gmra.mxu0 %v1872_v8  ;;  %v70_v8 = vld [vmem:[%s13620_s0 + $0x84] sm:$0xf]  ;;  %v13716_v42 = vunpack.c.l.bf16 %v10691_v24  ;;  %v10952_v27 = vpop.permute.xlu1 %9346 }
 0x15f   :  { %v170_v46 = vunpack.c.l.bf16 %v70_v8  ;;  %13719 = vst [vmem:[#allocation29_spill] sm:$0xff] %v10952_v27 }
 0x160   :  { %2706 = vst.msk [vmem:[#allocation2 + $0x58] sm:$0xff] %vm2694_vm1, %v2605_v54  ;;  %v10879_v54 = vpop.permute.xlu0 %9341  ;;  %v1675_v50 = vsel %vm1643_vm0, %v13716_v42, %v9074_v18  ;;  %v13668_v18 = vunpack.c.l.bf16 %v10889_v2 }
 0x161   :  { %13715 = vst [vmem:[#allocation28_spill] sm:$0xff] %v10879_v54  ;;  %v1674_v10 = vsel %vm1643_vm0, %v170_v46, %v9073_v5 }
 0x163   :  { %v2117_v56 = vpop.f32.mrf.mxu0  ;;  %v2374_v47 = vpop.f32.mrf.mxu1 }
 0x164   :  { %v2375_v41 = vadd.f32 %v2374_v47, %v2116_v4  ;;  %v2118_v62 = vadd.f32 %v10614_v29, %v2117_v56  ;;  %v9352_v9 = vpop.permute.xlu2 %9351  ;;  %v1874_v4 = vpack.c.bf16 %v1675_v50, %v1674_v10  ;;  %v13667_v47 = vunpack.c.h.bf16 %v10889_v2 }
 0x165   :  { %v9353_v5 = vunpack.i.l.bf16 %v9352_v9  ;;  %v1774_v56 = vsel %vm1643_vm0, %v13668_v18, %v9078_v43 }
 0x166   :  { %v2606_v23 = vmax.f32 %v2375_v41, 0.0  ;;  %2413 = vmatmul.bf16.gmra.mxu1 %v1873_v12  ;;  %v9354_v12 = vunpack.i.h.bf16 %v9352_v9  ;;  %v8847_v41 = vld [vmem:[%s13620_s0 + $0x1d0] sm:$0xff]   ;;  %v1775_v10 = vsel %vm1643_vm0, %v13667_v47, %v9079_v21  ;;  %v9083_v21 = vunpack.i.l.bf16 %v10340_v55 }
 0x167   :  { %v8530_v42 = vunpack.c.h.bf16 %v8847_v41  ;;  %v1875_v43 = vpack.c.bf16 %v1775_v10, %v1774_v56  ;;  %v13717_v56 = vunpack.c.h.bf16 %v10691_v24  ;;  %v10940_v24 = vld [vmem:[%s13620_s0 + $0xb8] sm:$0xff]  }
 0x168   :  { %2707 = vst.msk [vmem:[#allocation2 + $0x60] sm:$0xff] %vm2694_vm1, %v2606_v23  ;;  %v8529_v23 = vunpack.c.l.bf16 %v8847_v41  ;;  %v9084_v41 = vunpack.i.h.bf16 %v10340_v55  ;;  %v13718_v55 = vunpack.c.l.bf16 %v10727_v19 }
 0x169   :  { %v1676_v10 = vsel %vm1643_vm0, %v13717_v56, %v9083_v21 }
 0x16a   :  { %v1840_v50 = vsel %vm1643_vm0, %v8529_v23, %v9353_v5 }
 0x16b   :  { %v2120_v8 = vpop.f32.mrf.mxu0  ;;  %v2376_v39 = vpop.f32.mrf.mxu1 }
 0x16c   :  { %v2377_v46 = vadd.f32 %v2376_v39, %v2118_v62  ;;  %v1841_v62 = vsel %vm1643_vm0, %v8530_v42, %v9354_v12  ;;  %v2121_v9 = vadd.f32 %v10614_v29, %v2120_v8  ;;  %v10909_v39 = vpop.permute.xlu0 %9356  ;;  %v7741_v8 = vld [vmem:[%s13623_s3 + $0x30] sm:$0xff]  ;;  %v2817_v42 = vld [vmem:[#allocation2 + $0x58] sm:$0xff] }
 0x16e   :  { %v2607_v48 = vmax.f32 %v2377_v46, 0.0  ;;  %2159 = vmatmul.bf16.gmra.mxu0 %v1874_v4  ;;  %v1941_v46 = vpack.c.bf16 %v1841_v62, %v1840_v50  ;;  %v7742_v4 = vld [vmem:[%s13623_s3 + $0x38] sm:$0xff]  ;;  %v1677_v50 = vsel %vm1643_vm0, %v13718_v55, %v9084_v41  ;;  %v7740_v41 = vld [vmem:[%s13623_s3 + $0x28] sm:$0xff] }
 0x16f   :  { %3855 = vmatpush.bf16.msrb.mxu2 %v7742_v4  ;;  %v6603_v62 = vld [vmem:[%s13620_s0 + $0x1bc] sm:$0xf]  ;;  %v9089_v4 = vunpack.i.h.bf16 %v10475_v44  ;;  %v10960_v18 = vld [vmem:[#allocation2 + $0x60] sm:$0xff] }
 0x170   :  { %2708 = vst.msk [vmem:[#allocation2 + $0x68] sm:$0xff] %vm2694_vm1, %v2607_v48  ;;  %2583 = vmatmul.bf16.gmra.mxu2 %v1941_v46 }
 0x173   :  { %v2122_v47 = vpop.f32.mrf.mxu0  ;;  %v2379_v5 = vpop.f32.mrf.mxu1  ;;  %3856 = vmatpush.bf16.msrb.mxu2 %v7741_v8 }
 0x174   :  { %v2380_v12 = vadd.f32 %v2379_v5, %v2121_v9  ;;  %v10933_v9 = vld [vmem:[%s13620_s0 + $0x1c0] sm:$0xff]   ;;  %v2123_v21 = vadd.f32 %v10614_v29, %v2122_v47  ;;  %v1876_v5 = vpack.c.bf16 %v1677_v50, %v1676_v10  ;;  %v8848_v47 = vld [vmem:[%s13620_s0 + $0x1d8] sm:$0xff]  }
 0x175   :  { %v7739_v10 = vld [vmem:[%s13623_s3 + $0x20] sm:$0xff]  ;;  %v8533_v50 = vunpack.c.l.bf16 %v8848_v47 }
 0x176   :  { %v2608_v23 = vmax.f32 %v2380_v12, 0.0  ;;  %2418 = vmatmul.bf16.gmra.mxu1 %v1875_v43  ;;  %v9088_v43 = vunpack.i.l.bf16 %v10475_v44  ;;  %v9372_v12 = vpop.permute.xlu0 %9371 }
 0x177   :  { %v10919_v48 = vld [vmem:[#allocation2 + $0x68] sm:$0xff]  ;;  %v9374_v44 = vunpack.i.h.bf16 %v9372_v12  ;;  %v9373_v14 = vunpack.i.l.bf16 %v9372_v12  ;;  %3857 = vmatpush.bf16.msrb.mxu2 %v7740_v41 }
 0x178   :  { %2709 = vst.msk [vmem:[#allocation2 + $0x70] sm:$0xff] %vm2694_vm1, %v2608_v23  ;;  %v9435_v46 = vpack.i.bf16 %v10919_v48, %v2817_v42  ;;  %v8701_v23 = vunpack.c.l.bf16 %v10933_v9  ;;  %v833_v42 = vunpack.c.l.bf16 %v6603_v62  ;;  %v8534_v62 = vunpack.c.h.bf16 %v8848_v47 }
 0x179   :  { %v1842_v37 = vsel %vm1643_vm0, %v8533_v50, %v9373_v14  ;;  %v9094_v14 = vunpack.i.h.bf16 %v10433_v1 }
 0x17a   :  { %9436 = vrot.lane.b32.xlu1 %v9435_v46, %s9806_s29  ;;  %v9440_v8 = vpack.i.bf16 %v8701_v23, %v833_v42  ;;  %v1843_v25 = vsel %vm1643_vm0, %v8534_v62, %v9374_v44  ;;  %v9093_v42 = vunpack.i.l.bf16 %v10433_v1  ;;  %v13723_v1 = vunpack.c.l.bf16 %v10774_v32 }
 0x17b   :  { %v2125_v56 = vpop.f32.mrf.mxu0  ;;  %v2381_v55 = vpop.f32.mrf.mxu1  ;;  %3858 = vmatpush.bf16.msrb.mxu2 %v7739_v10  ;;  %v1943_v23 = vpack.c.bf16 %v1843_v25, %v1842_v37  ;;  %v7737_v25 = vld [vmem:[%s13623_s3 + $0x10] sm:$0xff] }
 0x17c   :  { %v2382_v54 = vadd.f32 %v2381_v55, %v2123_v21  ;;  %v13720_v21 = vunpack.c.l.bf16 %v10940_v24  ;;  %v13721_v55 = vunpack.c.h.bf16 %v10940_v24  ;;  %v10986_v10 = vpop.permute.xlu1 %9361  ;;  %v1679_v62 = vsel %vm1643_vm0, %v13723_v1, %v9094_v14 }
 0x17d   :  { %v9103_v1 = vunpack.i.l.bf16 %v10516_v22 }
 0x17e   :  { %v2609_v46 = vmax.f32 %v2382_v54, 0.0  ;;  %2164 = vmatmul.bf16.gmra.mxu0 %v1876_v5  ;;  %v1776_v41 = vsel %vm1643_vm0, %v13720_v21, %v9088_v43  ;;  %v1777_v27 = vsel %vm1643_vm0, %v13721_v55, %v9089_v4  ;;  %v2126_v54 = vadd.f32 %v10614_v29, %v2125_v56  ;;  %v7738_v43 = vld [vmem:[%s13623_s3 + $0x18] sm:$0xff]  ;;  %v10999_v21 = vld [vmem:[%s13620_s0 + $0xc0] sm:$0xff]  }
 0x17f   :  { %v10962_v12 = vld [vmem:[#allocation2 + $0x70] sm:$0xff]  ;;  %v1877_v4 = vpack.c.bf16 %v1777_v27, %v1776_v41  ;;  %3859 = vmatpush.bf16.msrb.mxu2 %v7738_v43  ;;  %v11004_v41 = vpop.permute.xlu2 %9366  ;;  %v13677_v14 = vunpack.c.h.bf16 %v10999_v21 }
 0x180   :  { %2710 = vst.msk [vmem:[#allocation2 + $0x78] sm:$0xff] %vm2694_vm1, %v2609_v46  ;;  %v9445_v5 = vpack.i.bf16 %v10962_v12, %v10960_v18  ;;  %2588 = vmatmul.bf16.gmra.mxu2 %v1943_v23 }
 0x182   :  { %9446 = vrot.lane.b32.xlu2 %v9445_v5, %s9805_s12  ;;  %9441 = vrot.lane.b32.xlu1 %v9440_v8, %s9805_s12  ;;  %v13722_v8 = vunpack.c.h.bf16 %v10727_v19  ;;  %v7736_v19 = vld [vmem:[%s13623_s3 + $0x8] sm:$0xff]  ;;  %v9099_v5 = vunpack.i.h.bf16 %v10364_v28 }
 0x183   :  { %v2127_v56 = vpop.f32.mrf.mxu0  ;;  %v2384_v44 = vpop.f32.mrf.mxu1  ;;  %3860 = vmatpush.bf16.msrb.mxu2 %v7737_v25 }
 0x184   :  { %v2385_v47 = vadd.f32 %v2384_v44, %v2126_v54  ;;  %v1678_v50 = vsel %vm1643_vm0, %v13722_v8, %v9093_v42  ;;  %v2128_v55 = vadd.f32 %v10614_v29, %v2127_v56  ;;  %v7735_v44 = vld [vmem:[%s13623_s3] sm:$0xff] }
 0x185   :  { %v1878_v54 = vpack.c.bf16 %v1679_v62, %v1678_v50  ;;  %v9104_v50 = vunpack.i.h.bf16 %v10516_v22  ;;  %v11036_v22 = vpop.permute.xlu0 %9386 }
 0x186   :  { %v2610_v37 = vmax.f32 %v2385_v47, 0.0  ;;  %2423 = vmatmul.bf16.gmra.mxu1 %v1877_v4  ;;  %v13678_v4 = vunpack.c.l.bf16 %v10999_v21  ;;  %13727 = vst [vmem:[#allocation31_spill] sm:$0xff] %v11036_v22 }
 0x187   :  { %v2827_v27 = vld [vmem:[#allocation2 + $0x78] sm:$0xff]  ;;  %3861 = vmatpush.bf16.msrb.mxu2 %v7736_v19  ;;  %v11027_v19 = vpop.permute.xlu2 %9381 }
 0x188   :  { %2711 = vst.msk [vmem:[#allocation2 + $0x80] sm:$0xff] %vm2694_vm1, %v2610_v37  ;;  %v9450_v46 = vpack.i.bf16 %v2827_v27, %v10919_v48  ;;  %v9098_v48 = vunpack.i.l.bf16 %v10364_v28  ;;  %v1779_v28 = vsel %vm1643_vm0, %v13677_v14, %v9099_v5  ;;  %v11023_v37 = vpop.permute.xlu1 %9376 }
 0x189   :  { %13724 = vst [vmem:[#allocation30_spill] sm:$0xff] %v11027_v19 }
 0x18a   :  { %9451 = vrot.lane.b32.xlu0 %v9450_v46, %s9807_s14  ;;  %v1778_v47 = vsel %vm1643_vm0, %v13678_v4, %v9098_v48  ;;  %v13725_v48 = vunpack.c.h.bf16 %v10774_v32 }
 0x18b   :  { %v2130_v23 = vpop.f32.mrf.mxu0  ;;  %v2386_v43 = vpop.f32.mrf.mxu1  ;;  %3862 = vmatpush.bf16.msrb.mxu2 %v7735_v44  ;;  %v1879_v8 = vpack.c.bf16 %v1779_v28, %v1778_v47 }
 0x18c   :  { %v2387_v42 = vadd.f32 %v2386_v43, %v2128_v55  ;;  %v2131_v25 = vadd.f32 %v10614_v29, %v2130_v23  ;;  %v1680_v23 = vsel %vm1643_vm0, %v13725_v48, %v9103_v1  ;;  %v13726_v43 = vunpack.c.l.bf16 %v10812_v51 }
 0x18e   :  { %v2611_v56 = vmax.f32 %v2387_v42, 0.0  ;;  %2169 = vmatmul.bf16.gmra.mxu0 %v1878_v54  ;;  %v1681_v42 = vsel %vm1643_vm0, %v13726_v43, %v9104_v50 }
 0x18f   :  { %v1880_v32 = vpack.c.bf16 %v1681_v42, %v1680_v23 }
 0x190   :  { %2712 = vst.msk [vmem:[#allocation2 + $0x88] sm:$0xff] %vm2694_vm1, %v2611_v56  ;;  %v11041_v56 = vld [vmem:[%s13620_s0 + $0xc8] sm:$0xff]   ;;  %v11044_v28 = vpop.permute.xlu1 %9391 }
 0x191   :  { %13728 = vst [vmem:[#allocation32_spill] sm:$0xff] %v11044_v28  ;;  %v13676_v1 = vunpack.c.l.bf16 %v11041_v56 }
 0x193   :  { %v2132_v62 = vpop.f32.mrf.mxu0  ;;  %v2389_v46 = vpop.f32.mrf.mxu1 }
 0x194   :  { %v2390_v55 = vadd.f32 %v2389_v46, %v2131_v25  ;;  %v2133_v47 = vadd.f32 %v10614_v29, %v2132_v62  ;;  %v9109_v25 = vunpack.i.h.bf16 %v10473_v35  ;;  %v13675_v46 = vunpack.c.h.bf16 %v11041_v56  ;;  %v11053_v62 = vld [vmem:[#allocation2 + $0x80] sm:$0xff] }
 0x196   :  { %v2612_v54 = vmax.f32 %v2390_v55, 0.0  ;;  %2428 = vmatmul.bf16.gmra.mxu1 %v1879_v8  ;;  %v9108_v8 = vunpack.i.l.bf16 %v10473_v35  ;;  %v1781_v35 = vsel %vm1643_vm0, %v13675_v46, %v9109_v25 }
 0x197   :  { %v2820_v5 = vld [vmem:[#allocation2 + $0x88] sm:$0xff] }
 0x198   :  { %2713 = vst.msk [vmem:[#allocation2 + $0x90] sm:$0xff] %vm2694_vm1, %v2612_v54  ;;  %v9455_v44 = vpack.i.bf16 %v2820_v5, %v2827_v27  ;;  %v11051_v54 = vpop.permute.xlu2 %9396  ;;  %v1780_v23 = vsel %vm1643_vm0, %v13676_v1, %v9108_v8  ;;  %v9114_v8 = vunpack.i.h.bf16 %v10405_v45 }
 0x199   :  { %13729 = vst [vmem:[#allocation33_spill] sm:$0xff] %v11051_v54 }
 0x19a   :  { %9456 = vrot.lane.b32.xlu0 %v9455_v44, %s9806_s29 }
 0x19b   :  { %v2135_v50 = vpop.f32.mrf.mxu0  ;;  %v2391_v27 = vpop.f32.mrf.mxu1 }
 0x19c   :  { %v2392_v55 = vadd.f32 %v2391_v27, %v2133_v47  ;;  %v2136_v42 = vadd.f32 %v10614_v29, %v2135_v50  ;;  %v79_v47 = vld [vmem:[%s13620_s0 + $0xa8] sm:$0xf]  ;;  %v1881_v27 = vpack.c.bf16 %v1781_v35, %v1780_v23  ;;  %v9407_v1 = vpop.permute.xlu1 %9406  ;;  %v13731_v23 = vunpack.c.h.bf16 %v10812_v51 }
 0x19d   :  { %v179_v50 = vunpack.c.l.bf16 %v79_v47  ;;  %v9408_v4 = vunpack.i.l.bf16 %v9407_v1  ;;  %v9118_v47 = vunpack.i.l.bf16 %v10548_v26 }
 0x19e   :  { %v2613_v48 = vmax.f32 %v2392_v55, 0.0  ;;  %2174 = vmatmul.bf16.gmra.mxu0 %v1880_v32  ;;  %v11068_v32 = vpop.permute.xlu0 %9401  ;;  %v9113_v55 = vunpack.i.l.bf16 %v10405_v45 }
 0x19f   :  { %v2825_v43 = vld [vmem:[#allocation2 + $0x90] sm:$0xff]  ;;  %13730 = vst [vmem:[#allocation34_spill] sm:$0xff] %v11068_v32  ;;  %v1683_v45 = vsel %vm1643_vm0, %v179_v50, %v9114_v8 }
 0x1a0   :  { %2714 = vst.msk [vmem:[#allocation2 + $0x98] sm:$0xff] %vm2694_vm1, %v2613_v48  ;;  %v9460_v44 = vpack.i.bf16 %v2825_v43, %v11053_v62  ;;  %v11075_v43 = vld [vmem:[%s13620_s0 + $0xd0] sm:$0xff]   ;;  %v1682_v35 = vsel %vm1643_vm0, %v13731_v23, %v9113_v55  ;;  %v9412_v54 = vpop.permute.xlu2 %9411  ;;  %v9338_v55 = vunpack.i.l.bf16 %v10872_v49 }
 0x1a1   :  { %v1882_v51 = vpack.c.bf16 %v1683_v45, %v1682_v35  ;;  %v8426_v8 = vunpack.c.h.bf16 %v11075_v43  ;;  %v9414_v50 = vunpack.i.h.bf16 %v9412_v54  ;;  %v9413_v23 = vunpack.i.l.bf16 %v9412_v54 }
 0x1a2   :  { %9461 = vrot.lane.b32.xlu1 %v9460_v44, %s9805_s12  ;;  %v9409_v44 = vunpack.i.h.bf16 %v9407_v1  ;;  %v2795_v1 = vld [vmem:[#allocation2] sm:$0xff] }
 0x1a3   :  { %v2137_v25 = vpop.f32.mrf.mxu0  ;;  %v2394_v46 = vpop.f32.mrf.mxu1 }
 0x1a4   :  { %v2395_v48 = vadd.f32 %v2394_v46, %v2136_v42  ;;  %v2138_v28 = vadd.f32 %v10614_v29, %v2137_v25  ;;  %v13732_v25 = vunpack.c.l.bf16 %v11075_v43 }
 0x1a6   :  { %v2614_v14 = vmax.f32 %v2395_v48, 0.0  ;;  %2433 = vmatmul.bf16.gmra.mxu1 %v1881_v27  ;;  %v9119_v48 = vunpack.i.h.bf16 %v10548_v26  ;;  %v9339_v27 = vunpack.i.h.bf16 %v10872_v49  ;;  %v1782_v35 = vsel %vm1643_vm0, %v13732_v25, %v9118_v47  ;;  %v11099_v49 = vld [vmem:[%s13620_s0 + $0x198] sm:$0xff]  }
 0x1a7   :  { %v2829_v32 = vld [vmem:[#allocation2 + $0x98] sm:$0xff]  ;;  %v8166_v54 = vunpack.c.h.bf16 %v11099_v49 }
 0x1a8   :  { %2715 = vst.msk [vmem:[#allocation2 + $0xa0] sm:$0xff] %vm2694_vm1, %v2614_v14  ;;  %v9465_v46 = vpack.i.bf16 %v2829_v32, %v2820_v5  ;;  %v3059_v14 = vsel %vm2694_vm1, %v10741_v33, %v9409_v44  ;;  %v3058_v5 = vsel %vm2694_vm1, %v2795_v1, %v9408_v4  ;;  %v8757_v33 = vld [vmem:[%s13620_s0 + $0x1a0] sm:$0xff]   ;;  %v1783_v1 = vsel %vm1643_vm0, %v8426_v8, %v9119_v48 }
 0x1a9   :  { %v3063_v47 = vsel %vm1643_vm0, %v3059_v14, %v9414_v50  ;;  %v1883_v14 = vpack.c.bf16 %v1783_v1, %v1782_v35  ;;  %v9124_v48 = vunpack.i.h.bf16 %v10514_v53  ;;  %v6453_v35 = vld [vmem:[%s13620_s0 + $0xdc] sm:$0xf]  ;;  %v9359_v1 = vunpack.i.h.bf16 %v10909_v39 }
 0x1aa   :  { %9466 = vrot.lane.b32.xlu2 %v9465_v46, %s9807_s14  ;;  %v3062_v46 = vsel %vm1643_vm0, %v3058_v5, %v9413_v23  ;;  %v9123_v5 = vunpack.i.l.bf16 %v10514_v53  ;;  %v11133_v53 = vld [vmem:[%s13620_s0 + $0xe0] sm:$0xff]  }
 0x1ab   :  { %v2140_v32 = vpop.f32.mrf.mxu0  ;;  %v2396_v26 = vpop.f32.mrf.mxu1 }
 0x1ac   :  { %v2397_v42 = vadd.f32 %v2396_v26, %v2138_v28  ;;  %v9417_v22 = vpop.permute.xlu0 %9416  ;;  %v8169_v28 = vunpack.c.l.bf16 %v8757_v33 }
 0x1ad   :  { %v9419_v4 = vunpack.i.h.bf16 %v9417_v22  ;;  %v9418_v44 = vunpack.i.l.bf16 %v9417_v22  ;;  %v1738_v22 = vsel %vm1643_vm0, %v8166_v54, %v9338_v55 }
 0x1ae   :  { %v2615_v45 = vmax.f32 %v2397_v42, 0.0  ;;  %2179 = vmatmul.bf16.gmra.mxu0 %v1882_v51  ;;  %v1739_v19 = vsel %vm1643_vm0, %v8169_v28, %v9339_v27  ;;  %v2141_v42 = vadd.f32 %v10614_v29, %v2140_v32  ;;  %v13733_v27 = vunpack.c.l.bf16 %v10889_v2 }
 0x1af   :  { %v3067_v26 = vsel %vm3066_vm2, %v3062_v46, %v9418_v44  ;;  %v3068_v25 = vsel %vm3066_vm2, %v3063_v47, %v9419_v4  ;;  %v1938_v50 = vpack.c.bf16 %v1739_v19, %v1738_v22  ;;  %v13734_v32 = vunpack.c.h.bf16 %v10889_v2 }
 0x1b0   :  { %2716 = vst.msk [vmem:[#allocation2 + $0xa8] sm:$0xff] %vm2694_vm1, %v2615_v45  ;;  %v3575_v51 = vpack.c.bf16 %v3068_v25, %v3067_v26  ;;  %v1684_v55 = vsel %vm1643_vm0, %v13733_v27, %v9123_v5  ;;  %v9129_v28 = vunpack.i.h.bf16 %v10431_v63  ;;  %v9128_v45 = vunpack.i.l.bf16 %v10431_v63 }
 0x1b1   :  { %2319 = vmatmul.bf16.vlgmr.msra.gmra.mxu3 %v1938_v50  ;;  %v1685_v19 = vsel %vm1643_vm0, %v13734_v32, %v9124_v48  ;;  %v9358_v26 = vunpack.i.l.bf16 %v10909_v39  ;;  %v8170_v48 = vunpack.c.h.bf16 %v8757_v33 }
 0x1b2   :  { %3863 = vmatmul.bf16.vlgmr.msrb.gmra.mxu2 %v3575_v51  ;;  %v1884_v2 = vpack.c.bf16 %v1685_v19, %v1684_v55  ;;  %v582_v51 = vunpack.c.l.bf16 %v6453_v35  ;;  %v7750_v55 = vld [vmem:[%s13623_s3 + $0x78] sm:$0xff] }
 0x1b3   :  { %v2142_v23 = vpop.f32.mrf.mxu0  ;;  %v2399_v4 = vpop.f32.mrf.mxu1  ;;  %3904 = vmatpush.bf16.msrb.mxu3 %v7750_v55  ;;  %v13736_v55 = vunpack.c.h.bf16 %v10940_v24 }
 0x1b4   :  { %v2400_v44 = vadd.f32 %v2399_v4, %v2141_v42  ;;  %v2143_v47 = vadd.f32 %v10614_v29, %v2142_v23  ;;  %v8429_v42 = vunpack.c.l.bf16 %v11133_v53  ;;  %v1784_v23 = vsel %vm1643_vm0, %v582_v51, %v9128_v45  ;;  %v9432_v32 = vpop.permute.xlu2 %9431 }
 0x1b5   :  { %v1740_v4 = vsel %vm1643_vm0, %v8170_v48, %v9358_v26  ;;  %v9134_v45 = vunpack.i.h.bf16 %v10577_v59  ;;  %v7749_v48 = vld [vmem:[%s13623_s3 + $0x70] sm:$0xff] }
 0x1b6   :  { %v2616_v46 = vmax.f32 %v2400_v44, 0.0  ;;  %2438 = vmatmul.bf16.gmra.mxu1 %v1883_v14  ;;  %v11144_v14 = vld [vmem:[%s13620_s0 + $0x1a8] sm:$0xff]   ;;  %v1785_v39 = vsel %vm1643_vm0, %v8429_v42, %v9129_v28 }
 0x1b7   :  { %v8173_v63 = vunpack.c.l.bf16 %v11144_v14  ;;  %v1885_v28 = vpack.c.bf16 %v1785_v39, %v1784_v23  ;;  %v2835_v23 = vld [vmem:[#allocation2 + $0xa8] sm:$0xff]  ;;  %3905 = vmatpush.bf16.msrb.mxu3 %v7749_v48  ;;  %v8430_v48 = vunpack.c.h.bf16 %v11133_v53  ;;  %v8165_v53 = vunpack.c.l.bf16 %v11099_v49 }
 0x1b8   :  { %2717 = vst.msk [vmem:[#allocation2 + $0xb0] sm:$0xff] %vm2694_vm1, %v2616_v46  ;;  %v11156_v46 = vld [vmem:[%s13622_s2] ss:$0 sm:$0xff] }
 0x1b9   :  { %v1741_v44 = vsel %vm1643_vm0, %v8173_v63, %v9359_v1  ;;  %v9433_v63 = vunpack.i.l.bf16 %v9432_v32 }
 0x1ba   :  { %v1940_v27 = vpack.c.bf16 %v1741_v44, %v1740_v4 }
 0x1bb   :  { %v2145_v25 = vpop.f32.mrf.mxu0  ;;  %v2401_v22 = vpop.f32.mrf.mxu1 }
 0x1bc   :  { %v2402_v50 = vadd.f32 %v2401_v22, %v2143_v47  ;;  %v9422_v5 = vpop.permute.xlu0 %9421  ;;  %v2146_v33 = vadd.f32 %v11156_v46, %v2145_v25  ;;  %v9133_v47 = vunpack.i.l.bf16 %v10577_v59  ;;  %v9434_v22 = vunpack.i.h.bf16 %v9432_v32 }
 0x1bd   :  { %v9424_v19 = vunpack.i.h.bf16 %v9422_v5  ;;  %v9423_v35 = vunpack.i.l.bf16 %v9422_v5 }
 0x1be   :  { %v2617_v29 = vmax.f32 %v2402_v50, 0.0  ;;  %2184 = vmatmul.bf16.gmra.mxu0 %v1884_v2 }
 0x1bf   :  { %v3060_v5 = vsel %vm2694_vm1, %v10743_v34, %v9423_v35  ;;  %v11189_v35 = vld [vmem:[%s13620_s0 + $0xe8] sm:$0xff]  }
 0x1c0   :  { %2718 = vst.msk [vmem:[#allocation2 + $0xb8] sm:$0xff] %vm2694_vm1, %v2617_v29  ;;  %v3061_v29 = vsel %vm2694_vm1, %v10824_v57, %v9424_v19  ;;  %v1687_v57 = vsel %vm1643_vm0, %v13736_v55, %v9134_v45  ;;  %v9139_v45 = vunpack.i.h.bf16 %v10546_v3 }
 0x1c1   :  { %2324 = vmatmul.bf16.gmra.mxu3 %v1940_v27 }
 0x1c3   :  { %v2147_v2 = vpop.f32.mrf.mxu0  ;;  %v2404_v1 = vpop.f32.mrf.mxu1 }
 0x1c4   :  { %v2405_v26 = vadd.f32 %v2404_v1, %v2146_v33  ;;  %v9427_v25 = vpop.permute.xlu1 %9426  ;;  %v13735_v33 = vunpack.c.l.bf16 %v10940_v24  ;;  %v7748_v24 = vld [vmem:[%s13623_s3 + $0x68] sm:$0xff]  ;;  %v2148_v1 = vadd.f32 %v11156_v46, %v2147_v2  ;;  %v7747_v2 = vld [vmem:[%s13623_s3 + $0x60] sm:$0xff] }
 0x1c5   :  { %v9429_v51 = vunpack.i.h.bf16 %v9427_v25  ;;  %v9428_v50 = vunpack.i.l.bf16 %v9427_v25  ;;  %v9379_v25 = vunpack.i.h.bf16 %v11023_v37  ;;  %3906 = vmatpush.bf16.msrb.mxu3 %v7748_v24  ;;  %v9143_v24 = vunpack.i.l.bf16 %v10488_v15 }
 0x1c6   :  { %v2618_v59 = vmax.f32 %v2405_v26, 0.0  ;;  %2443 = vmatmul.bf16.gmra.mxu1 %v1885_v28  ;;  %v1686_v27 = vsel %vm1643_vm0, %v13735_v33, %v9133_v47  ;;  %v9138_v47 = vunpack.i.l.bf16 %v10546_v3  ;;  %v139_v3 = vld [vmem:[%s13620_s0 + $0x1b0] sm:$0xf] }
 0x1c7   :  { %v11172_v39 = vld [vmem:[#allocation2 + $0xb8] sm:$0xff]  ;;  %v3064_v4 = vsel %vm1643_vm0, %v3060_v5, %v9428_v50  ;;  %v3065_v44 = vsel %vm1643_vm0, %v3061_v29, %v9429_v51  ;;  %v1886_v26 = vpack.c.bf16 %v1687_v57, %v1686_v27  ;;  %v8174_v5 = vunpack.c.h.bf16 %v11144_v14 }
 0x1c8   :  { %2719 = vst.msk [vmem:[#allocation2 + $0xc0] sm:$0xff] %vm2694_vm1, %v2618_v59  ;;  %v9470_v34 = vpack.i.bf16 %v11172_v39, %v2835_v23  ;;  %v3069_v32 = vsel %vm3066_vm2, %v3064_v4, %v9433_v63  ;;  %v3070_v19 = vsel %vm3066_vm2, %v3065_v44, %v9434_v22  ;;  %v9378_v22 = vunpack.i.l.bf16 %v11023_v37  ;;  %v11209_v23 = vld [vmem:[#allocation2 + $0xb0] sm:$0xff] }
 0x1c9   :  { %v3579_v28 = vpack.c.bf16 %v3070_v19, %v3069_v32  ;;  %v8433_v63 = vunpack.c.l.bf16 %v11189_v35  ;;  %v239_v37 = vunpack.c.l.bf16 %v139_v3  ;;  %v1786_v44 = vsel %vm1643_vm0, %v8430_v48, %v9138_v47  ;;  %3907 = vmatpush.bf16.msrb.mxu3 %v7747_v2  ;;  %v7746_v32 = vld [vmem:[%s13623_s3 + $0x58] sm:$0xff]  ;;  %v11245_v2 = vld [vmem:[%s13620_s0 + $0xf0] sm:$0xff]  }
 0x1ca   :  { %9471 = vrot.lane.b32.xlu2 %v9470_v34, %s9806_s29  ;;  %v1742_v27 = vsel %vm1643_vm0, %v8174_v5, %v9378_v22  ;;  %v7744_v5 = vld [vmem:[%s13623_s3 + $0x48] sm:$0xff] }
 0x1cb   :  { %v2150_v51 = vpop.f32.mrf.mxu0  ;;  %v2406_v50 = vpop.f32.mrf.mxu1  ;;  %3868 = vmatmul.bf16.gmra.mxu2 %v3579_v28  ;;  %v1787_v33 = vsel %vm1643_vm0, %v8433_v63, %v9139_v45  ;;  %v1743_v55 = vsel %vm1643_vm0, %v239_v37, %v9379_v25  ;;  %v9144_v28 = vunpack.i.h.bf16 %v10488_v15 }
 0x1cc   :  { %v2407_v29 = vadd.f32 %v2406_v50, %v2148_v1  ;;  %v2151_v14 = vadd.f32 %v11156_v46, %v2150_v51  ;;  %v1942_v34 = vpack.c.bf16 %v1743_v55, %v1742_v27  ;;  %v1887_v19 = vpack.c.bf16 %v1787_v33, %v1786_v44 }
 0x1cd   :  { %3908 = vmatpush.bf16.msrb.mxu3 %v7746_v32  ;;  %v13737_v51 = vunpack.c.l.bf16 %v10999_v21  ;;  %v8434_v33 = vunpack.c.h.bf16 %v11189_v35  ;;  %v8437_v27 = vunpack.c.l.bf16 %v11245_v2 }
 0x1ce   :  { %v2619_v59 = vmax.f32 %v2407_v29, 0.0  ;;  %2189 = vmatmul.bf16.gmra.mxu0 %v1886_v26  ;;  %v7745_v26 = vld [vmem:[%s13623_s3 + $0x50] sm:$0xff]  ;;  %v13738_v29 = vunpack.c.h.bf16 %v10999_v21 }
 0x1cf   :  { %v2841_v4 = vld [vmem:[#allocation2 + $0xc0] sm:$0xff]  ;;  %v1688_v50 = vsel %vm1643_vm0, %v13737_v51, %v9143_v24  ;;  %v9153_v24 = vunpack.i.l.bf16 %v10575_v20 }
 0x1d0   :  { %2720 = vst.msk [vmem:[#allocation2 + $0xc8] sm:$0xff] %vm2694_vm1, %v2619_v59  ;;  %v9475_v57 = vpack.i.bf16 %v2841_v4, %v11209_v23  ;;  %v1689_v15 = vsel %vm1643_vm0, %v13738_v29, %v9144_v28  ;;  %v9149_v59 = vunpack.i.h.bf16 %v10603_v30  ;;  %v9148_v4 = vunpack.i.l.bf16 %v10603_v30 }
 0x1d1   :  { %2329 = vmatmul.bf16.gmra.mxu3 %v1942_v34  ;;  %v1888_v21 = vpack.c.bf16 %v1689_v15, %v1688_v50  ;;  %v9154_v28 = vunpack.i.h.bf16 %v10575_v20  ;;  %v13740_v50 = vunpack.c.h.bf16 %v11041_v56  ;;  %v11279_v15 = vld [vmem:[%s13620_s0 + $0xf8] sm:$0xff]  }
 0x1d2   :  { %9476 = vrot.lane.b32.xlu0 %v9475_v57, %s9805_s12  ;;  %3909 = vmatpush.bf16.msrb.mxu3 %v7745_v26  ;;  %v1788_v34 = vsel %vm1643_vm0, %v8434_v33, %v9148_v4  ;;  %v1789_v30 = vsel %vm1643_vm0, %v8437_v27, %v9149_v59  ;;  %v8441_v4 = vunpack.c.l.bf16 %v11279_v15 }
 0x1d3   :  { %v2152_v45 = vpop.f32.mrf.mxu0  ;;  %v2409_v47 = vpop.f32.mrf.mxu1  ;;  %v1691_v29 = vsel %vm1643_vm0, %v13740_v50, %v9154_v28 }
 0x1d4   :  { %v2410_v1 = vadd.f32 %v2409_v47, %v2151_v14  ;;  %v2153_v37 = vadd.f32 %v11156_v46, %v2152_v45  ;;  %v7743_v14 = vld [vmem:[%s13623_s3 + $0x40] sm:$0xff] }
 0x1d6   :  { %v2620_v25 = vmax.f32 %v2410_v1, 0.0  ;;  %2448 = vmatmul.bf16.gmra.mxu1 %v1887_v19  ;;  %3910 = vmatpush.bf16.msrb.mxu3 %v7744_v5  ;;  %v1889_v19 = vpack.c.bf16 %v1789_v30, %v1788_v34  ;;  %v9159_v5 = vunpack.i.h.bf16 %v10534_v17  ;;  %v9164_v34 = vunpack.i.h.bf16 %v10637_v58 }
 0x1d7   :  { %v11231_v22 = vld [vmem:[#allocation2 + $0xc8] sm:$0xff]  ;;  %v9163_v30 = vunpack.i.l.bf16 %v10637_v58  ;;  %v6462_v58 = vld [vmem:[%s13620_s0 + $0x100] sm:$0xf] }
 0x1d8   :  { %2721 = vst.msk [vmem:[#allocation2 + $0xd0] sm:$0xff] %vm2694_vm1, %v2620_v25  ;;  %v9480_v3 = vpack.i.bf16 %v11231_v22, %v11172_v39  ;;  %v13739_v25 = vunpack.c.l.bf16 %v11041_v56  ;;  %v8438_v56 = vunpack.c.h.bf16 %v11245_v2 }
 0x1da   :  { %9481 = vrot.lane.b32.xlu1 %v9480_v3, %s9807_s14  ;;  %3911 = vmatpush.bf16.msrb.mxu3 %v7743_v14  ;;  %v1690_v51 = vsel %vm1643_vm0, %v13739_v25, %v9153_v24  ;;  %v1791_v14 = vsel %vm1643_vm0, %v8441_v4, %v9159_v5 }
 0x1db   :  { %v2155_v44 = vpop.f32.mrf.mxu0  ;;  %v2411_v39 = vpop.f32.mrf.mxu1  ;;  %v1890_v3 = vpack.c.bf16 %v1691_v29, %v1690_v51  ;;  %v1693_v51 = vsel %vm1643_vm0, %v8426_v8, %v9164_v34  ;;  %v9169_v29 = vunpack.i.h.bf16 %v10601_v13 }
 0x1dc   :  { %v2412_v55 = vadd.f32 %v2411_v39, %v2153_v37  ;;  %v2156_v32 = vadd.f32 %v11156_v46, %v2155_v44  ;;  %v9158_v37 = vunpack.i.l.bf16 %v10534_v17  ;;  %v9447_v50 = vpop.permute.xlu2 %9446 }
 0x1de   :  { %v2621_v57 = vmax.f32 %v2412_v55, 0.0  ;;  %2194 = vmatmul.bf16.gmra.mxu0 %v1888_v21  ;;  %v1790_v55 = vsel %vm1643_vm0, %v8438_v56, %v9158_v37 }
 0x1df   :  { %v1891_v17 = vpack.c.bf16 %v1791_v14, %v1790_v55  ;;  %v9449_v55 = vunpack.i.h.bf16 %v9447_v50  ;;  %v9448_v14 = vunpack.i.l.bf16 %v9447_v50 }
 0x1e0   :  { %2722 = vst.msk [vmem:[#allocation2 + $0xd8] sm:$0xff] %vm2694_vm1, %v2621_v57 }
 0x1e3   :  { %v2157_v45 = vpop.f32.mrf.mxu0  ;;  %v2414_v47 = vpop.f32.mrf.mxu1 }
 0x1e4   :  { %v2415_v1 = vadd.f32 %v2414_v47, %v2156_v32  ;;  %v2158_v20 = vadd.f32 %v11156_v46, %v2157_v45 }
 0x1e6   :  { %v2622_v26 = vmax.f32 %v2415_v1, 0.0  ;;  %2453 = vmatmul.bf16.gmra.mxu1 %v1889_v19 }
 0x1e8   :  { %2723 = vst.msk [vmem:[#allocation2 + $0xe0] sm:$0xff] %vm2694_vm1, %v2622_v26  ;;  %v13741_v26 = vunpack.c.l.bf16 %v11075_v43 }
 0x1ea   :  { %v1692_v25 = vsel %vm1643_vm0, %v13741_v26, %v9163_v30  ;;  %v90_v26 = vld [vmem:[%s13620_s0 + $0xdc] sm:$0xf] }
 0x1eb   :  { %v2160_v21 = vpop.f32.mrf.mxu0  ;;  %v2416_v59 = vpop.f32.mrf.mxu1  ;;  %v1892_v37 = vpack.c.bf16 %v1693_v51, %v1692_v25  ;;  %v9174_v51 = vunpack.i.h.bf16 %v10564_v60 }
 0x1ec   :  { %v2417_v44 = vadd.f32 %v2416_v59, %v2158_v20  ;;  %v2161_v57 = vadd.f32 %v11156_v46, %v2160_v21  ;;  %v9437_v28 = vpop.permute.xlu1 %9436  ;;  %v9168_v20 = vunpack.i.l.bf16 %v10601_v13 }
 0x1ed   :  { %v9439_v47 = vunpack.i.h.bf16 %v9437_v28  ;;  %v9438_v1 = vunpack.i.l.bf16 %v9437_v28 }
 0x1ee   :  { %v2623_v39 = vmax.f32 %v2417_v44, 0.0  ;;  %2199 = vmatmul.bf16.gmra.mxu0 %v1890_v3  ;;  %v2813_v3 = vld [vmem:[#allocation2 + $0x50] sm:$0xff]  ;;  %v8442_v44 = vunpack.c.h.bf16 %v11279_v15 }
 0x1ef   :  { %v3072_v43 = vsel %vm2694_vm1, %v10960_v18, %v9439_v47  ;;  %v3071_v8 = vsel %vm2694_vm1, %v2813_v3, %v9438_v1 }
 0x1f0   :  { %2724 = vst.msk [vmem:[#allocation2 + $0xe8] sm:$0xff] %vm2694_vm1, %v2623_v39  ;;  %v591_v39 = vunpack.c.l.bf16 %v6462_v58  ;;  %v9173_v58 = vunpack.i.l.bf16 %v10564_v60 }
 0x1f3   :  { %v2162_v32 = vpop.f32.mrf.mxu0  ;;  %v2419_v19 = vpop.f32.mrf.mxu1 }
 0x1f4   :  { %v2420_v24 = vadd.f32 %v2419_v19, %v2161_v57  ;;  %v2163_v5 = vadd.f32 %v11156_v46, %v2162_v32  ;;  %v3075_v32 = vsel %vm1643_vm0, %v3071_v8, %v9448_v14  ;;  %v3076_v19 = vsel %vm1643_vm0, %v3072_v43, %v9449_v55  ;;  %v11336_v8 = vld [vmem:[%s13620_s0 + $0x108] sm:$0xff]  }
 0x1f5   :  { %v1695_v43 = vsel %vm1643_vm0, %v8429_v42, %v9174_v51  ;;  %v9178_v55 = vunpack.i.l.bf16 %v10658_v0  ;;  %v8445_v42 = vunpack.c.l.bf16 %v11336_v8 }
 0x1f6   :  { %v2624_v45 = vmax.f32 %v2420_v24, 0.0  ;;  %2458 = vmatmul.bf16.gmra.mxu1 %v1891_v17  ;;  %v1792_v24 = vsel %vm1643_vm0, %v8442_v44, %v9168_v20  ;;  %v190_v20 = vunpack.c.l.bf16 %v90_v26 }
 0x1f8   :  { %2725 = vst.msk [vmem:[#allocation2 + $0xf0] sm:$0xff] %vm2694_vm1, %v2624_v45  ;;  %v1793_v45 = vsel %vm1643_vm0, %v591_v39, %v9169_v29  ;;  %v9179_v39 = vunpack.i.h.bf16 %v10658_v0 }
 0x1f9   :  { %v1893_v25 = vpack.c.bf16 %v1793_v45, %v1792_v24 }
 0x1fb   :  { %v2165_v21 = vpop.f32.mrf.mxu0  ;;  %v2421_v59 = vpop.f32.mrf.mxu1 }
 0x1fc   :  { %v2422_v57 = vadd.f32 %v2421_v59, %v2163_v5  ;;  %v9452_v17 = vpop.permute.xlu0 %9451  ;;  %v2166_v47 = vadd.f32 %v11156_v46, %v2165_v21  ;;  %v11339_v21 = vpop.permute.xlu1 %9441 }
 0x1fd   :  { %v9454_v34 = vunpack.i.h.bf16 %v9452_v17  ;;  %v9453_v13 = vunpack.i.l.bf16 %v9452_v17  ;;  %v8446_v17 = vunpack.c.h.bf16 %v11336_v8  ;;  %v9229_v8 = vunpack.i.h.bf16 %v10699_v31 }
 0x1fe   :  { %v2625_v30 = vmax.f32 %v2422_v57, 0.0  ;;  %2204 = vmatmul.bf16.gmra.mxu0 %v1892_v37  ;;  %v1694_v37 = vsel %vm1643_vm0, %v190_v20, %v9173_v58 }
 0x1ff   :  { %v3079_v18 = vsel %vm3066_vm2, %v3075_v32, %v9453_v13  ;;  %v3080_v28 = vsel %vm3066_vm2, %v3076_v19, %v9454_v34  ;;  %v1894_v59 = vpack.c.bf16 %v1695_v43, %v1694_v37  ;;  %v1794_v32 = vsel %vm1643_vm0, %v8445_v42, %v9178_v55 }
 0x200   :  { %2726 = vst.msk [vmem:[#allocation2 + $0xf8] sm:$0xff] %vm2694_vm1, %v2625_v30  ;;  %v3576_v1 = vpack.c.bf16 %v3080_v28, %v3079_v18  ;;  %v1795_v19 = vsel %vm1643_vm0, %v8446_v17, %v9179_v39 }
 0x201   :  { %v1895_v45 = vpack.c.bf16 %v1795_v19, %v1794_v32  ;;  %v9188_v32 = vunpack.i.l.bf16 %v10598_v40 }
 0x202   :  { %3912 = vmatmul.bf16.vlgmr.msrb.gmra.mxu3 %v3576_v1  ;;  %v9183_v1 = vunpack.i.l.bf16 %v10635_v6 }
 0x203   :  { %v2167_v50 = vpop.f32.mrf.mxu0  ;;  %v2424_v3 = vpop.f32.mrf.mxu1 }
 0x204   :  { %v2425_v5 = vadd.f32 %v2424_v3, %v2166_v47  ;;  %v2168_v60 = vadd.f32 %v11156_v46, %v2167_v50  ;;  %v9467_v18 = vpop.permute.xlu2 %9466  ;;  %v9184_v47 = vunpack.i.h.bf16 %v10635_v6  ;;  %v1696_v55 = vsel %vm1643_vm0, %v8430_v48, %v9183_v1 }
 0x205   :  { %v9469_v50 = vunpack.i.h.bf16 %v9467_v18 }
 0x206   :  { %v2626_v29 = vmax.f32 %v2425_v5, 0.0  ;;  %2463 = vmatmul.bf16.gmra.mxu1 %v1893_v25  ;;  %v9468_v5 = vunpack.i.l.bf16 %v9467_v18 }
 0x208   :  { %2727 = vst.msk [vmem:[#allocation2 + $0x100] sm:$0xff] %vm2694_vm1, %v2626_v29 }
 0x20b   :  { %v2170_v14 = vpop.f32.mrf.mxu0  ;;  %v2426_v57 = vpop.f32.mrf.mxu1 }
 0x20c   :  { %v2427_v34 = vadd.f32 %v2426_v57, %v2168_v60  ;;  %v9457_v30 = vpop.permute.xlu0 %9456  ;;  %v2171_v0 = vadd.f32 %v11156_v46, %v2170_v14  ;;  %v2853_v60 = vld [vmem:[#allocation2 + $0xf8] sm:$0xff]  ;;  %v1697_v14 = vsel %vm1643_vm0, %v8433_v63, %v9184_v47  ;;  %v9490_v47 = vpack.i.bf16 %v8166_v54, %v8165_v53 }
 0x20d   :  { %v9459_v28 = vunpack.i.h.bf16 %v9457_v30  ;;  %v9458_v24 = vunpack.i.l.bf16 %v9457_v30  ;;  %v1896_v63 = vpack.c.bf16 %v1697_v14, %v1696_v55  ;;  %v9189_v30 = vunpack.i.h.bf16 %v10598_v40  ;;  %v11408_v14 = vld [vmem:[#allocation2 + $0xd0] sm:$0xff] }
 0x20e   :  { %v2627_v13 = vmax.f32 %v2427_v34, 0.0  ;;  %2209 = vmatmul.bf16.gmra.mxu0 %v1894_v59  ;;  %v11373_v34 = vld [vmem:[%s13620_s0 + $0x110] sm:$0xff]  }
 0x20f   :  { %v3074_v29 = vsel %vm2694_vm1, %v11053_v62, %v9459_v28  ;;  %v3073_v37 = vsel %vm2694_vm1, %v10962_v12, %v9458_v24  ;;  %v8449_v18 = vunpack.c.l.bf16 %v11373_v34  ;;  %v8450_v28 = vunpack.c.h.bf16 %v11373_v34  ;;  %v11386_v1 = vld [vmem:[#allocation2 + $0x100] sm:$0xff] }
 0x210   :  { %2728 = vst.msk [vmem:[#allocation2 + $0x108] sm:$0xff] %vm2694_vm1, %v2627_v13 }
 0x211   :  { %v1796_v40 = vsel %vm1643_vm0, %v8449_v18, %v9188_v32 }
 0x213   :  { %v2172_v26 = vpop.f32.mrf.mxu0  ;;  %v2429_v25 = vpop.f32.mrf.mxu1 }
 0x214   :  { %v2430_v51 = vadd.f32 %v2429_v25, %v2171_v0  ;;  %v9462_v58 = vpop.permute.xlu1 %9461  ;;  %v2173_v48 = vadd.f32 %v11156_v46, %v2172_v26  ;;  %v1797_v25 = vsel %vm1643_vm0, %v8450_v28, %v9189_v30 }
 0x215   :  { %v9464_v3 = vunpack.i.h.bf16 %v9462_v58  ;;  %v9463_v20 = vunpack.i.l.bf16 %v9462_v58  ;;  %v1897_v54 = vpack.c.bf16 %v1797_v25, %v1796_v40 }
 0x216   :  { %v2628_v43 = vmax.f32 %v2430_v51, 0.0  ;;  %2468 = vmatmul.bf16.gmra.mxu1 %v1895_v45 }
 0x217   :  { %v2854_v59 = vld [vmem:[#allocation2 + $0x108] sm:$0xff]  ;;  %v3077_v6 = vsel %vm1643_vm0, %v3073_v37, %v9463_v20  ;;  %v3078_v39 = vsel %vm1643_vm0, %v3074_v29, %v9464_v3  ;;  %v9193_v29 = vunpack.i.l.bf16 %v10676_v52 }
 0x218   :  { %2729 = vst.msk [vmem:[#allocation2 + $0x110] sm:$0xff] %vm2694_vm1, %v2628_v43  ;;  %v9485_v62 = vpack.i.bf16 %v2854_v59, %v2853_v60  ;;  %v3081_v12 = vsel %vm3066_vm2, %v3077_v6, %v9468_v5  ;;  %v3082_v57 = vsel %vm3066_vm2, %v3078_v39, %v9469_v50  ;;  %v8702_v50 = vunpack.c.h.bf16 %v10933_v9  ;;  %v9774_v3 = vld [vmem:[%s13620_s0 + $0x1c8] sm:$0xff]   ;;  %v2843_v6 = vld [vmem:[#allocation2 + $0xe0] sm:$0xff] }
 0x219   :  { %v3580_v13 = vpack.c.bf16 %v3082_v57, %v3081_v12  ;;  %v8705_v20 = vunpack.c.l.bf16 %v9774_v3  ;;  %v9194_v5 = vunpack.i.h.bf16 %v10676_v52  ;;  %v1698_v9 = vsel %vm1643_vm0, %v8434_v33, %v9193_v29 }
 0x21a   :  { %9486 = vrot.lane.b32.xlu2 %v9485_v62, %s9806_s29  ;;  %v9515_v52 = vpack.i.bf16 %v2843_v6, %v11408_v14  ;;  %v9199_v33 = vunpack.i.h.bf16 %v10656_v11  ;;  %v9203_v3 = vunpack.i.l.bf16 %v10639_v36 }
 0x21b   :  { %v2175_v19 = vpop.f32.mrf.mxu0  ;;  %v2431_v0 = vpop.f32.mrf.mxu1  ;;  %3917 = vmatmul.bf16.gmra.mxu3 %v3580_v13  ;;  %v9500_v55 = vpack.i.bf16 %v8705_v20, %v8702_v50  ;;  %v1699_v12 = vsel %vm1643_vm0, %v8437_v27, %v9194_v5  ;;  %v11421_v13 = vld [vmem:[%s13620_s0 + $0x118] sm:$0xff]   ;;  %v9198_v27 = vunpack.i.l.bf16 %v10656_v11  ;;  %v9204_v50 = vunpack.i.h.bf16 %v10639_v36 }
 0x21c   :  { %v2432_v24 = vadd.f32 %v2431_v0, %v2173_v48  ;;  %v2176_v51 = vadd.f32 %v11156_v46, %v2175_v19  ;;  %v1898_v35 = vpack.c.bf16 %v1699_v12, %v1698_v9  ;;  %v8453_v30 = vunpack.c.l.bf16 %v11421_v13  ;;  %v2847_v0 = vld [vmem:[#allocation2 + $0xe8] sm:$0xff] }
 0x21d   :  { %v8454_v32 = vunpack.c.h.bf16 %v11421_v13  ;;  %v1701_v6 = vsel %vm1643_vm0, %v8441_v4, %v9204_v50  ;;  %v9208_v4 = vunpack.i.l.bf16 %v10701_v38 }
 0x21e   :  { %v2629_v45 = vmax.f32 %v2432_v24, 0.0  ;;  %2214 = vmatmul.bf16.gmra.mxu0 %v1896_v63  ;;  %v2579_v24 = vpop.f32.mrf.mxu2  ;;  %v1798_v40 = vsel %vm1643_vm0, %v8453_v30, %v9198_v27 }
 0x21f   :  { %v11388_v26 = vld [vmem:[#allocation2 + $0x110] sm:$0xff]  ;;  %v1799_v11 = vsel %vm1643_vm0, %v8454_v32, %v9199_v33 }
 0x220   :  { %2730 = vst.msk [vmem:[#allocation2 + $0x118] sm:$0xff] %vm2694_vm1, %v2629_v45  ;;  %v9495_v58 = vpack.i.bf16 %v11388_v26, %v11386_v1 }
 0x222   :  { %9496 = vrot.lane.b32.xlu0 %v9495_v58, %s9805_s12  ;;  %9491 = vrot.lane.b32.xlu2 %v9490_v47, %s9805_s12  ;;  %v2846_v47 = vld [vmem:[#allocation2 + $0xd8] sm:$0xff] }
 0x223   :  { %v2177_v37 = vpop.f32.mrf.mxu0  ;;  %v2434_v43 = vpop.f32.mrf.mxu1  ;;  %v9510_v58 = vpack.i.bf16 %v2846_v47, %v11231_v22  ;;  %v1700_v22 = vsel %vm1643_vm0, %v8438_v56, %v9203_v3 }
 0x224   :  { %v2435_v60 = vadd.f32 %v2434_v43, %v2176_v51  ;;  %v2178_v48 = vadd.f32 %v11156_v46, %v2177_v37  ;;  %v9520_v51 = vpack.i.bf16 %v2847_v0, %v2846_v47  ;;  %v1900_v12 = vpack.c.bf16 %v1701_v6, %v1700_v22 }
 0x226   :  { %v2630_v39 = vmax.f32 %v2435_v60, 0.0  ;;  %2473 = vmatmul.bf16.gmra.mxu1 %v1897_v54  ;;  %v1899_v54 = vpack.c.bf16 %v1799_v11, %v1798_v40 }
 0x227   :  { %v2863_v62 = vld [vmem:[#allocation2 + $0x118] sm:$0xff] }
 0x228   :  { %2731 = vst.msk [vmem:[#allocation2 + $0x120] sm:$0xff] %vm2694_vm1, %v2630_v39  ;;  %v9505_v57 = vpack.i.bf16 %v2863_v62, %v2854_v59  ;;  %v2581_v39 = vpop.f32.mrf.mxu2 }
 0x22a   :  { %9501 = vrot.lane.b32.xlu0 %v9500_v55, %s9805_s12  ;;  %9516 = vrot.lane.b32.xlu2 %v9515_v52, %s9805_s12  ;;  %v11457_v55 = vld [vmem:[%s13620_s0 + $0x120] sm:$0xff]   ;;  %v9209_v52 = vunpack.i.h.bf16 %v10701_v38 }
 0x22b   :  { %9506 = vrot.lane.b32.xlu1 %v9505_v57, %s9807_s14  ;;  %v2180_v63 = vpop.f32.mrf.mxu0  ;;  %v2436_v59 = vpop.f32.mrf.mxu1 }
 0x22c   :  { %v2437_v19 = vadd.f32 %v2436_v59, %v2178_v48  ;;  %v2181_v25 = vadd.f32 %v11156_v46, %v2180_v63 }
 0x22e   :  { %v2631_v45 = vmax.f32 %v2437_v19, 0.0  ;;  %2219 = vmatmul.bf16.gmra.mxu0 %v1898_v35  ;;  %v8458_v35 = vunpack.c.h.bf16 %v11457_v55 }
 0x22f   :  { %v11467_v19 = vld [vmem:[#allocation2 + $0x120] sm:$0xff] }
 0x230   :  { %2732 = vst.msk [vmem:[#allocation2 + $0x128] sm:$0xff] %vm2694_vm1, %v2631_v45  ;;  %v99_v45 = vld [vmem:[%s13620_s0 + $0x100] sm:$0xf] }
 0x231   :  { %v199_v50 = vunpack.c.l.bf16 %v99_v45 }
 0x232   :  { %9521 = vrot.lane.b32.xlu0 %v9520_v51, %s9807_s14  ;;  %v9213_v51 = vunpack.i.l.bf16 %v10674_v61 }
 0x233   :  { %9511 = vrot.lane.b32.xlu1 %v9510_v58, %s9806_s29  ;;  %v2182_v20 = vpop.f32.mrf.mxu0  ;;  %v2439_v5 = vpop.f32.mrf.mxu1 }
 0x234   :  { %v2440_v29 = vadd.f32 %v2439_v5, %v2181_v25  ;;  %v2320_v43 = vpop.f32.mrf.mxu3  ;;  %v2183_v2 = vadd.f32 %v11156_v46, %v2182_v20  ;;  %v9214_v25 = vunpack.i.h.bf16 %v10674_v61  ;;  %v2584_v58 = vpop.f32.mrf.mxu2  ;;  %v1702_v6 = vsel %vm1643_vm0, %v8442_v44, %v9213_v51 }
 0x235   :  { %v2321_v9 = vadd.f32 %v11156_v46, %v2320_v43  ;;  %v9472_v43 = vpop.permute.xlu2 %9471 }
 0x236   :  { %v2632_v37 = vmax.f32 %v2440_v29, 0.0  ;;  %2478 = vmatmul.bf16.gmra.mxu1 %v1899_v54  ;;  %v9473_v44 = vunpack.i.l.bf16 %v9472_v43 }
 0x237   :  { %v11444_v60 = vld [vmem:[#allocation2 + $0x128] sm:$0xff]  ;;  %v2580_v56 = vadd.f32 %v2579_v24, %v2321_v9  ;;  %v1801_v24 = vsel %vm1643_vm0, %v8458_v35, %v9209_v52 }
 0x238   :  { %2733 = vst.msk [vmem:[#allocation2 + $0x130] sm:$0xff] %vm2694_vm1, %v2632_v37  ;;  %v9525_v36 = vpack.i.bf16 %v11444_v60, %v2863_v62  ;;  %v8457_v62 = vunpack.c.l.bf16 %v11457_v55 }
 0x239   :  { %v2688_v27 = vmax.f32 %v2580_v56, 0.0  ;;  %v9474_v56 = vunpack.i.h.bf16 %v9472_v43 }
 0x23a   :  { %v1800_v38 = vsel %vm1643_vm0, %v8457_v62, %v9208_v4 }
 0x23b   :  { %9526 = vrot.lane.b32.xlu1 %v9525_v36, %s9806_s29  ;;  %v2185_v57 = vpop.f32.mrf.mxu0  ;;  %v2441_v48 = vpop.f32.mrf.mxu1  ;;  %2789 = vst.msk [vmem:[#allocation2 + $0x2f0] sm:$0xff] %vm2694_vm1, %v2688_v27  ;;  %v1901_v54 = vpack.c.bf16 %v1801_v24, %v1800_v38  ;;  %v1703_v36 = vsel %vm1643_vm0, %v199_v50, %v9214_v25  ;;  %v9219_v27 = vunpack.i.h.bf16 %v10667_v16  ;;  %v2831_v24 = vld [vmem:[#allocation2 + $0xa0] sm:$0xff]  ;;  %v3084_v25 = vsel %vm2694_vm1, %v11209_v23, %v9474_v56 }
 0x23c   :  { %v2442_v33 = vadd.f32 %v2441_v48, %v2183_v2  ;;  %v2322_v59 = vpop.f32.mrf.mxu3  ;;  %v2186_v47 = vadd.f32 %v11156_v46, %v2185_v57  ;;  %v1902_v52 = vpack.c.bf16 %v1703_v36, %v1702_v6  ;;  %v3083_v51 = vsel %vm2694_vm1, %v2831_v24, %v9473_v44 }
 0x23d   :  { %v2323_v11 = vadd.f32 %v11156_v46, %v2322_v59 }
 0x23e   :  { %v2633_v63 = vmax.f32 %v2442_v33, 0.0  ;;  %2224 = vmatmul.bf16.gmra.mxu0 %v1900_v12  ;;  %v11495_v12 = vld [vmem:[%s13620_s0 + $0x128] sm:$0xff]  }
 0x23f   :  { %v2861_v0 = vld [vmem:[#allocation2 + $0x130] sm:$0xff]  ;;  %v2582_v3 = vadd.f32 %v2581_v39, %v2323_v11  ;;  %v8462_v38 = vunpack.c.h.bf16 %v11495_v12  ;;  %v2586_v11 = vpop.f32.mrf.mxu2 }
 0x240   :  { %2734 = vst.msk [vmem:[#allocation2 + $0x138] sm:$0xff] %vm2694_vm1, %v2633_v63  ;;  %v9530_v40 = vpack.i.bf16 %v2861_v0, %v11467_v19  ;;  %v8461_v0 = vunpack.c.l.bf16 %v11495_v12 }
 0x241   :  { %v2689_v37 = vmax.f32 %v2582_v3, 0.0 }
 0x242   :  { %9531 = vrot.lane.b32.xlu2 %v9530_v40, %s9805_s12 }
 0x243   :  { %v2187_v20 = vpop.f32.mrf.mxu0  ;;  %v2444_v5 = vpop.f32.mrf.mxu1  ;;  %2790 = vst.msk [vmem:[#allocation2 + $0x2f8] sm:$0xff] %vm2694_vm1, %v2689_v37  ;;  %v1803_v37 = vsel %vm1643_vm0, %v8462_v38, %v9219_v27  ;;  %v11540_v27 = vld [vmem:[%s13620_s0 + $0x138] sm:$0xff]  }
 0x244   :  { %v2445_v29 = vadd.f32 %v2444_v5, %v2186_v47  ;;  %v2325_v61 = vpop.f32.mrf.mxu3  ;;  %v9477_v9 = vpop.permute.xlu0 %9476  ;;  %v2188_v4 = vadd.f32 %v11156_v46, %v2187_v20 }
 0x245   :  { %v2326_v15 = vadd.f32 %v11156_v46, %v2325_v61  ;;  %v9479_v57 = vunpack.i.h.bf16 %v9477_v9  ;;  %v9478_v48 = vunpack.i.l.bf16 %v9477_v9  ;;  %v9224_v9 = vunpack.i.h.bf16 %v10715_v7 }
 0x246   :  { %v2634_v22 = vmax.f32 %v2445_v29, 0.0  ;;  %2483 = vmatmul.bf16.gmra.mxu1 %v1901_v54 }
 0x247   :  { %v2865_v2 = vld [vmem:[#allocation2 + $0x138] sm:$0xff]  ;;  %v2585_v33 = vadd.f32 %v2584_v58, %v2326_v15  ;;  %v3088_v3 = vsel %vm1643_vm0, %v3084_v25, %v9479_v57  ;;  %v2589_v57 = vpop.f32.mrf.mxu2 }
 0x248   :  { %2735 = vst.msk [vmem:[#allocation2 + $0x140] sm:$0xff] %vm2694_vm1, %v2634_v22  ;;  %v9535_v39 = vpack.i.bf16 %v2865_v2, %v11444_v60  ;;  %v9218_v60 = vunpack.i.l.bf16 %v10667_v16  ;;  %v3087_v16 = vsel %vm1643_vm0, %v3083_v51, %v9478_v48  ;;  %v9223_v2 = vunpack.i.l.bf16 %v10715_v7  ;;  %v6473_v7 = vld [vmem:[%s13620_s0 + $0x134] sm:$0xf] }
 0x249   :  { %v2690_v40 = vmax.f32 %v2585_v33, 0.0  ;;  %v1705_v33 = vsel %vm1643_vm0, %v8446_v17, %v9224_v9  ;;  %v9228_v17 = vunpack.i.l.bf16 %v10699_v31 }
 0x24a   :  { %9536 = vrot.lane.b32.xlu0 %v9535_v39, %s9807_s14  ;;  %v1802_v23 = vsel %vm1643_vm0, %v8461_v0, %v9218_v60  ;;  %v1704_v48 = vsel %vm1643_vm0, %v8445_v42, %v9223_v2 }
 0x24b   :  { %v2190_v63 = vpop.f32.mrf.mxu0  ;;  %v2446_v59 = vpop.f32.mrf.mxu1  ;;  %2791 = vst.msk [vmem:[#allocation2 + $0x300] sm:$0xff] %vm2694_vm1, %v2690_v40  ;;  %v1903_v36 = vpack.c.bf16 %v1803_v37, %v1802_v23  ;;  %v1904_v42 = vpack.c.bf16 %v1705_v33, %v1704_v48  ;;  %v602_v40 = vunpack.c.l.bf16 %v6473_v7  ;;  %v13743_v48 = vld [vmem:[#allocation12_spill] sm:$0xff] }
 0x24c   :  { %v2447_v45 = vadd.f32 %v2446_v59, %v2188_v4  ;;  %v9482_v47 = vpop.permute.xlu1 %9481  ;;  %v2327_v20 = vpop.f32.mrf.mxu3  ;;  %v2191_v43 = vadd.f32 %v11156_v46, %v2190_v63  ;;  %v9239_v33 = vunpack.i.h.bf16 %v13743_v48 }
 0x24d   :  { %v9484_v58 = vunpack.i.h.bf16 %v9482_v47  ;;  %v9483_v54 = vunpack.i.l.bf16 %v9482_v47  ;;  %v2328_v6 = vadd.f32 %v11156_v46, %v2327_v20  ;;  %v8465_v47 = vunpack.c.l.bf16 %v11540_v27 }
 0x24e   :  { %v2635_v50 = vmax.f32 %v2447_v45, 0.0  ;;  %2229 = vmatmul.bf16.gmra.mxu0 %v1902_v52 }
 0x24f   :  { %v3091_v5 = vsel %vm3066_vm2, %v3087_v16, %v9483_v54  ;;  %v3092_v29 = vsel %vm3066_vm2, %v3088_v3, %v9484_v58  ;;  %v2587_v61 = vadd.f32 %v2586_v11, %v2328_v6  ;;  %v1804_v58 = vsel %vm1643_vm0, %v602_v40, %v9228_v17  ;;  %v2591_v3 = vpop.f32.mrf.mxu2 }
 0x250   :  { %2736 = vst.msk [vmem:[#allocation2 + $0x148] sm:$0xff] %vm2694_vm1, %v2635_v50  ;;  %v11520_v22 = vpack.c.bf16 %v3092_v29, %v3091_v5  ;;  %v1805_v54 = vsel %vm1643_vm0, %v8465_v47, %v9229_v8  ;;  %v13742_v29 = vld [vmem:[#allocation8_spill] sm:$0xff] }
 0x251   :  { %v2691_v44 = vmax.f32 %v2587_v61, 0.0  ;;  %v1905_v20 = vpack.c.bf16 %v1805_v54, %v1804_v58  ;;  %v9234_v23 = vunpack.i.h.bf16 %v13742_v29  ;;  %v9233_v37 = vunpack.i.l.bf16 %v13742_v29 }
 0x252   :  { %3873 = vmatmul.bf16.gmra.mxu2 %v11520_v22 }
 0x253   :  { %v2192_v39 = vpop.f32.mrf.mxu0  ;;  %v2449_v15 = vpop.f32.mrf.mxu1  ;;  %2792 = vst.msk [vmem:[#allocation2 + $0x308] sm:$0xff] %vm2694_vm1, %v2691_v44 }
 0x254   :  { %v2450_v56 = vadd.f32 %v2449_v15, %v2191_v43  ;;  %v2330_v4 = vpop.f32.mrf.mxu3  ;;  %v2193_v63 = vadd.f32 %v11156_v46, %v2192_v39  ;;  %v1706_v15 = vsel %vm1643_vm0, %v8449_v18, %v9233_v37  ;;  %v9238_v18 = vunpack.i.l.bf16 %v13743_v48 }
 0x255   :  { %v2331_v60 = vadd.f32 %v11156_v46, %v2330_v4 }
 0x256   :  { %v2636_v52 = vmax.f32 %v2450_v56, 0.0  ;;  %2488 = vmatmul.bf16.gmra.mxu1 %v1903_v36  ;;  %v1707_v56 = vsel %vm1643_vm0, %v8450_v28, %v9234_v23  ;;  %v8466_v28 = vunpack.c.h.bf16 %v11540_v27  ;;  %v11603_v23 = vld [vmem:[%s13620_s0 + $0x148] sm:$0xff]  }
 0x257   :  { %v2590_v59 = vadd.f32 %v2589_v57, %v2331_v60  ;;  %v3112_v2 = vld [vmem:[#allocation2 + $0x148] sm:$0xff]  ;;  %v1906_v57 = vpack.c.bf16 %v1707_v56, %v1706_v15  ;;  %v11620_v56 = vld [vmem:[%s13624_s4] ss:$0 sm:$0xff]  ;;  %v8474_v55 = vunpack.c.h.bf16 %v11603_v23 }
 0x258   :  { %2737 = vst.msk [vmem:[#allocation2 + $0x150] sm:$0xff] %vm2694_vm1, %v2636_v52  ;;  %v11568_v52 = vld [vmem:[%s13620_s0 + $0x140] sm:$0xff]   ;;  %v1806_v17 = vsel %vm1643_vm0, %v8466_v28, %v9238_v18 }
 0x259   :  { %v2692_v25 = vmax.f32 %v2590_v59, 0.0  ;;  %v8469_v60 = vunpack.c.l.bf16 %v11568_v52 }
 0x25b   :  { %v2195_v24 = vpop.f32.mrf.mxu0  ;;  %v2451_v45 = vpop.f32.mrf.mxu1  ;;  %2793 = vst.msk [vmem:[#allocation2 + $0x310] sm:$0xff] %vm2694_vm1, %v2692_v25  ;;  %v13744_v25 = vld [vmem:[#allocation10_spill] sm:$0xff] }
 0x25c   :  { %v2452_v11 = vadd.f32 %v2451_v45, %v2193_v63  ;;  %v2332_v50 = vpop.f32.mrf.mxu3  ;;  %v2196_v31 = vadd.f32 %v11156_v46, %v2195_v24  ;;  %v1807_v24 = vsel %vm1643_vm0, %v8469_v60, %v9239_v33  ;;  %v9243_v58 = vunpack.i.l.bf16 %v13744_v25  ;;  %v13746_v33 = vld [vmem:[#allocation15_spill] sm:$0xff] }
 0x25d   :  { %v2333_v16 = vadd.f32 %v11156_v46, %v2332_v50  ;;  %v9254_v18 = vunpack.i.h.bf16 %v13746_v33 }
 0x25e   :  { %v2637_v51 = vmax.f32 %v2452_v11, 0.0  ;;  %2234 = vmatmul.bf16.gmra.mxu0 %v1904_v42  ;;  %v1907_v11 = vpack.c.bf16 %v1807_v24, %v1806_v17 }
 0x25f   :  { %v2592_v5 = vadd.f32 %v2591_v3, %v2333_v16  ;;  %v11576_v59 = vld [vmem:[#allocation2 + $0x150] sm:$0xff] }
 0x260   :  { %2738 = vst.msk [vmem:[#allocation2 + $0x158] sm:$0xff] %vm2694_vm1, %v2637_v51  ;;  %v9244_v51 = vunpack.i.h.bf16 %v13744_v25  ;;  %v11644_v25 = vld [vmem:[%s13620_s0 + $0x150] sm:$0xff]  }
 0x261   :  { %v2693_v61 = vmax.f32 %v2592_v5, 0.0  ;;  %v8478_v12 = vunpack.c.h.bf16 %v11644_v25 }
 0x262   :  { %v1709_v5 = vsel %vm1643_vm0, %v8454_v32, %v9244_v51 }
 0x263   :  { %v2197_v43 = vpop.f32.mrf.mxu0  ;;  %v2454_v6 = vpop.f32.mrf.mxu1  ;;  %2794 = vst.msk [vmem:[#allocation2 + $0x318] sm:$0xff] %vm2694_vm1, %v2693_v61  ;;  %v8470_v61 = vunpack.c.h.bf16 %v11568_v52 }
 0x264   :  { %v2455_v36 = vadd.f32 %v2454_v6, %v2196_v31  ;;  %v2198_v4 = vadd.f32 %v11156_v46, %v2197_v43  ;;  %v13745_v6 = vld [vmem:[#allocation9_spill] sm:$0xff] }
 0x265   :  { %v9248_v13 = vunpack.i.l.bf16 %v13745_v6 }
 0x266   :  { %v2638_v9 = vmax.f32 %v2455_v36, 0.0  ;;  %2493 = vmatmul.bf16.gmra.mxu1 %v1905_v20  ;;  %v1708_v20 = vsel %vm1643_vm0, %v8453_v30, %v9243_v58  ;;  %v9249_v30 = vunpack.i.h.bf16 %v13745_v6 }
 0x267   :  { %v3113_v39 = vld [vmem:[#allocation2 + $0x158] sm:$0xff]  ;;  %v1908_v43 = vpack.c.bf16 %v1709_v5, %v1708_v20 }
 0x268   :  { %2739 = vst.msk [vmem:[#allocation2 + $0x160] sm:$0xff] %vm2694_vm1, %v2638_v9  ;;  %v9540_v44 = vpack.i.bf16 %v3113_v39, %v3112_v2  ;;  %v8473_v9 = vunpack.c.l.bf16 %v11603_v23  ;;  %v13757_v23 = vld [vmem:[#allocation22_spill] sm:$0xff] }
 0x26a   :  { %9541 = vrot.lane.b32.xlu1 %v9540_v44, %s9806_s29  ;;  %v1809_v15 = vsel %vm1643_vm0, %v8473_v9, %v9249_v30  ;;  %v11625_v44 = vld [vmem:[%s13622_s2] ss:$0 sm:$0xff] }
 0x26b   :  { %v2200_v34 = vpop.f32.mrf.mxu0  ;;  %v2456_v7 = vpop.f32.mrf.mxu1 }
 0x26c   :  { %v2457_v63 = vadd.f32 %v2456_v7, %v2198_v4  ;;  %v2201_v45 = vadd.f32 %v11156_v46, %v2200_v34  ;;  %v9253_v34 = vunpack.i.l.bf16 %v13746_v33 }
 0x26e   :  { %v2639_v42 = vmax.f32 %v2457_v63, 0.0  ;;  %2239 = vmatmul.bf16.gmra.mxu0 %v1906_v57  ;;  %v3864_v57 = vpop.f32.mrf.mxu2 }
 0x26f   :  { %v3118_v8 = vld [vmem:[#allocation2 + $0x160] sm:$0xff] }
 0x270   :  { %2740 = vst.msk [vmem:[#allocation2 + $0x168] sm:$0xff] %vm2694_vm1, %v2639_v42  ;;  %v9545_v40 = vpack.i.bf16 %v3118_v8, %v11576_v59  ;;  %v3865_v42 = vadd.f32 %v11620_v56, %v3864_v57 }
 0x272   :  { %9546 = vrot.lane.b32.xlu2 %v9545_v40, %s9805_s12  ;;  %v1710_v40 = vsel %vm1643_vm0, %v8457_v62, %v9253_v34  ;;  %v6482_v34 = vld [vmem:[%s13620_s0 + $0x158] sm:$0xf] }
 0x273   :  { %v2202_v54 = vpop.f32.mrf.mxu0  ;;  %v2459_v50 = vpop.f32.mrf.mxu1 }
 0x274   :  { %v2460_v31 = vadd.f32 %v2459_v50, %v2201_v45  ;;  %v2203_v37 = vadd.f32 %v11156_v46, %v2202_v54  ;;  %v1808_v46 = vsel %vm1643_vm0, %v8470_v61, %v9248_v13  ;;  %v13747_v54 = vld [vmem:[#allocation11_spill] sm:$0xff] }
 0x275   :  { %v1909_v48 = vpack.c.bf16 %v1809_v15, %v1808_v46  ;;  %v9259_v50 = vunpack.i.h.bf16 %v13747_v54 }
 0x276   :  { %v2640_v16 = vmax.f32 %v2460_v31, 0.0  ;;  %2498 = vmatmul.bf16.gmra.mxu1 %v1907_v11  ;;  %v1711_v11 = vsel %vm1643_vm0, %v8458_v35, %v9254_v18  ;;  %v9258_v31 = vunpack.i.l.bf16 %v13747_v54  ;;  %v8477_v35 = vunpack.c.l.bf16 %v11644_v25  ;;  %v11659_v30 = vpop.f32.mrf.mxu2 }
 0x277   :  { %v11590_v3 = vld [vmem:[#allocation2 + $0x168] sm:$0xff]  ;;  %v1910_v58 = vpack.c.bf16 %v1711_v11, %v1710_v40 }
 0x278   :  { %2741 = vst.msk [vmem:[#allocation2 + $0x170] sm:$0xff] %vm2694_vm1, %v2640_v16  ;;  %v9550_v29 = vpack.i.bf16 %v11590_v3, %v3113_v39 }
 0x27a   :  { %9551 = vrot.lane.b32.xlu0 %v9550_v29, %s9807_s14  ;;  %v1810_v29 = vsel %vm1643_vm0, %v8474_v55, %v9258_v31  ;;  %v2849_v31 = vld [vmem:[#allocation2 + $0xf0] sm:$0xff] }
 0x27b   :  { %v2205_v36 = vpop.f32.mrf.mxu0  ;;  %v2461_v32 = vpop.f32.mrf.mxu1 }
 0x27c   :  { %v2462_v2 = vadd.f32 %v2461_v32, %v2203_v37  ;;  %v2206_v4 = vadd.f32 %v11625_v44, %v2205_v36  ;;  %v1811_v37 = vsel %vm1643_vm0, %v8477_v35, %v9259_v50  ;;  %v13748_v36 = vld [vmem:[#allocation13_spill] sm:$0xff]  ;;  %v611_v50 = vunpack.c.l.bf16 %v6482_v34 }
 0x27d   :  { %v1911_v13 = vpack.c.bf16 %v1811_v37, %v1810_v29  ;;  %v9264_v32 = vunpack.i.h.bf16 %v13748_v36 }
 0x27e   :  { %v2641_v39 = vmax.f32 %v2462_v2, 0.0  ;;  %2244 = vmatmul.bf16.gmra.mxu0 %v1908_v43  ;;  %v9487_v43 = vpop.permute.xlu2 %9486  ;;  %v9263_v2 = vunpack.i.l.bf16 %v13748_v36 }
 0x27f   :  { %v1713_v18 = vsel %vm1643_vm0, %v8462_v38, %v9264_v32 }
 0x280   :  { %2742 = vst.msk [vmem:[#allocation2 + $0x178] sm:$0xff] %vm2694_vm1, %v2641_v39  ;;  %v1712_v33 = vsel %vm1643_vm0, %v8461_v0, %v9263_v2 }
 0x281   :  { %v1912_v0 = vpack.c.bf16 %v1713_v18, %v1712_v33  ;;  %v110_v33 = vld [vmem:[%s13620_s0 + $0x134] sm:$0xf] }
 0x283   :  { %v2207_v7 = vpop.f32.mrf.mxu0  ;;  %v2464_v63 = vpop.f32.mrf.mxu1 }
 0x284   :  { %v2465_v8 = vadd.f32 %v2464_v63, %v2206_v4  ;;  %v2208_v51 = vadd.f32 %v11625_v44, %v2207_v7  ;;  %v9489_v7 = vunpack.i.h.bf16 %v9487_v43  ;;  %v9488_v63 = vunpack.i.l.bf16 %v9487_v43 }
 0x285   :  { %v3913_v17 = vpop.f32.mrf.mxu3 }
 0x286   :  { %v2642_v24 = vmax.f32 %v2465_v8, 0.0  ;;  %v11632_v45 = vadd.f32 %v3913_v17, %v3865_v42  ;;  %2503 = vmatmul.bf16.gmra.mxu1 %v1909_v48  ;;  %v13749_v42 = vld [vmem:[#allocation18_spill] sm:$0xff]  ;;  %v3869_v17 = vpop.f32.mrf.mxu2  ;;  %v3095_v29 = vsel %vm2694_vm1, %v2849_v31, %v9488_v63 }
 0x287   :  { %v9268_v8 = vunpack.i.l.bf16 %v13749_v42  ;;  %v9269_v38 = vunpack.i.h.bf16 %v13749_v42 }
 0x288   :  { %2743 = vst.msk [vmem:[#allocation2 + $0x180] sm:$0xff] %vm2694_vm1, %v2642_v24  ;;  %v11676_v24 = vpop.permute.xlu2 %9491 }
 0x289   :  { %v1812_v32 = vsel %vm1643_vm0, %v8478_v12, %v9268_v8 }
 0x28b   :  { %v2210_v16 = vpop.f32.mrf.mxu0  ;;  %v2466_v62 = vpop.f32.mrf.mxu1 }
 0x28c   :  { %v2467_v20 = vadd.f32 %v2466_v62, %v2208_v51  ;;  %v2211_v6 = vadd.f32 %v11625_v44, %v2210_v16 }
 0x28d   :  { %v11663_v57 = vpop.f32.mrf.mxu3 }
 0x28e   :  { %v2643_v5 = vmax.f32 %v2467_v20, 0.0  ;;  %2249 = vmatmul.bf16.gmra.mxu0 %v1910_v58  ;;  %v3870_v20 = vadd.f32 %v11620_v56, %v3869_v17 }
 0x290   :  { %2744 = vst.msk [vmem:[#allocation2 + $0x188] sm:$0xff] %vm2694_vm1, %v2643_v5  ;;  %v3096_v5 = vsel %vm2694_vm1, %v11386_v1, %v9489_v7  ;;  %v1813_v1 = vsel %vm1643_vm0, %v611_v50, %v9269_v38  ;;  %v13750_v7 = vld [vmem:[#allocation14_spill] sm:$0xff] }
 0x291   :  { %v1913_v34 = vpack.c.bf16 %v1813_v1, %v1812_v32  ;;  %v9274_v63 = vunpack.i.h.bf16 %v13750_v7  ;;  %v9273_v42 = vunpack.i.l.bf16 %v13750_v7  ;;  %v13751_v32 = vld [vmem:[#allocation16_spill] sm:$0xff] }
 0x293   :  { %v2212_v39 = vpop.f32.mrf.mxu0  ;;  %v2469_v46 = vpop.f32.mrf.mxu1 }
 0x294   :  { %v2470_v15 = vadd.f32 %v2469_v46, %v2211_v6  ;;  %v9497_v4 = vpop.permute.xlu0 %9496  ;;  %v2213_v40 = vadd.f32 %v11625_v44, %v2212_v39 }
 0x295   :  { %v9499_v11 = vunpack.i.h.bf16 %v9497_v4  ;;  %v9498_v51 = vunpack.i.l.bf16 %v9497_v4 }
 0x296   :  { %v2644_v48 = vmax.f32 %v2470_v15, 0.0  ;;  %2508 = vmatmul.bf16.gmra.mxu1 %v1911_v13 }
 0x297   :  { %v3099_v39 = vsel %vm1643_vm0, %v3095_v29, %v9498_v51  ;;  %v3100_v46 = vsel %vm1643_vm0, %v3096_v5, %v9499_v11  ;;  %v1715_v29 = vsel %vm1643_vm0, %v8465_v47, %v9274_v63 }
 0x298   :  { %2745 = vst.msk [vmem:[#allocation2 + $0x190] sm:$0xff] %vm2694_vm1, %v2644_v48 }
 0x29b   :  { %v2215_v58 = vpop.f32.mrf.mxu0  ;;  %v2471_v54 = vpop.f32.mrf.mxu1 }
 0x29c   :  { %v2472_v16 = vadd.f32 %v2471_v54, %v2213_v40  ;;  %v11681_v62 = vpop.permute.xlu0 %9501  ;;  %v2216_v15 = vadd.f32 %v11625_v44, %v2215_v58  ;;  %v210_v40 = vunpack.c.l.bf16 %v110_v33 }
 0x29d   :  { %v9507_v37 = vpop.permute.xlu1 %9506 }
 0x29e   :  { %v2645_v43 = vmax.f32 %v2472_v16, 0.0  ;;  %v9509_v6 = vunpack.i.h.bf16 %v9507_v37  ;;  %v9508_v13 = vunpack.i.l.bf16 %v9507_v37  ;;  %2254 = vmatmul.bf16.gmra.mxu0 %v1912_v0  ;;  %v3918_v36 = vpop.f32.mrf.mxu3  ;;  %v9517_v0 = vpop.permute.xlu2 %9516  ;;  %v1714_v5 = vsel %vm1643_vm0, %v210_v40, %v9273_v42 }
 0x29f   :  { %v11690_v2 = vadd.f32 %v3918_v36, %v3870_v20  ;;  %v9519_v31 = vunpack.i.h.bf16 %v9517_v0  ;;  %v9518_v16 = vunpack.i.l.bf16 %v9517_v0  ;;  %v2833_v20 = vld [vmem:[#allocation2 + $0xc0] sm:$0xff] }
 0x2a0   :  { %2746 = vst.msk [vmem:[#allocation2 + $0x198] sm:$0xff] %vm2694_vm1, %v2645_v43  ;;  %v3103_v4 = vsel %vm3066_vm2, %v3099_v39, %v9508_v13  ;;  %v3104_v48 = vsel %vm3066_vm2, %v3100_v46, %v9509_v6  ;;  %v11718_v36 = vld [vmem:[%s13620_s0 + $0x160] sm:$0xff]   ;;  %v9279_v39 = vunpack.i.h.bf16 %v13751_v32 }
 0x2a1   :  { %v11702_v18 = vpack.c.bf16 %v3104_v48, %v3103_v4  ;;  %v9278_v48 = vunpack.i.l.bf16 %v13751_v32  ;;  %v8481_v63 = vunpack.c.l.bf16 %v11718_v36  ;;  %v8482_v42 = vunpack.c.h.bf16 %v11718_v36 }
 0x2a3   :  { %3922 = vmatmul.bf16.gmra.mxu3 %v11702_v18  ;;  %v2217_v8 = vpop.f32.mrf.mxu0  ;;  %v2474_v17 = vpop.f32.mrf.mxu1  ;;  %v1815_v0 = vsel %vm1643_vm0, %v8482_v42, %v9279_v39 }
 0x2a4   :  { %v2475_v38 = vadd.f32 %v2474_v17, %v2216_v15  ;;  %v9522_v11 = vpop.permute.xlu0 %9521  ;;  %v2218_v1 = vadd.f32 %v11625_v44, %v2217_v8  ;;  %v1814_v8 = vsel %vm1643_vm0, %v8481_v63, %v9278_v48 }
 0x2a5   :  { %v9512_v51 = vpop.permute.xlu1 %9511  ;;  %v9524_v37 = vunpack.i.h.bf16 %v9522_v11  ;;  %v9523_v43 = vunpack.i.l.bf16 %v9522_v11  ;;  %v1915_v11 = vpack.c.bf16 %v1815_v0, %v1814_v8 }
 0x2a6   :  { %v2646_v58 = vmax.f32 %v2475_v38, 0.0  ;;  %v9514_v54 = vunpack.i.h.bf16 %v9512_v51  ;;  %v9513_v50 = vunpack.i.l.bf16 %v9512_v51  ;;  %2513 = vmatmul.bf16.gmra.mxu1 %v1913_v34  ;;  %v13752_v51 = vld [vmem:[#allocation20_spill] sm:$0xff] }
 0x2a8   :  { %2747 = vst.msk [vmem:[#allocation2 + $0x1a0] sm:$0xff] %vm2694_vm1, %v2646_v58  ;;  %v3086_v6 = vsel %vm2694_vm1, %v11408_v14, %v9514_v54  ;;  %v3085_v13 = vsel %vm2694_vm1, %v2833_v20, %v9513_v50  ;;  %v1914_v14 = vpack.c.bf16 %v1715_v29, %v1714_v5  ;;  %v9284_v58 = vunpack.i.h.bf16 %v13752_v51 }
 0x2a9   :  { %v3089_v46 = vsel %vm1643_vm0, %v3085_v13, %v9518_v16  ;;  %v3090_v47 = vsel %vm1643_vm0, %v3086_v6, %v9519_v31  ;;  %v9283_v54 = vunpack.i.l.bf16 %v13752_v51 }
 0x2aa   :  { %v3093_v15 = vsel %vm3066_vm2, %v3089_v46, %v9523_v43  ;;  %v3094_v4 = vsel %vm3066_vm2, %v3090_v47, %v9524_v37  ;;  %v3130_v43 = vld [vmem:[#allocation2 + $0x198] sm:$0xff]  ;;  %v1717_v32 = vsel %vm1643_vm0, %v8469_v60, %v9284_v58  ;;  %v11752_v46 = vld [vmem:[%s13620_s0 + $0x168] sm:$0xff]   ;;  %v9532_v47 = vpop.permute.xlu2 %9531 }
 0x2ab   :  { %v2220_v33 = vpop.f32.mrf.mxu0  ;;  %v2476_v34 = vpop.f32.mrf.mxu1  ;;  %v11727_v7 = vpack.c.bf16 %v3094_v4, %v3093_v15  ;;  %v1716_v13 = vsel %vm1643_vm0, %v8466_v28, %v9283_v54  ;;  %v9533_v8 = vunpack.i.l.bf16 %v9532_v47  ;;  %v3115_v58 = vld [vmem:[#allocation2 + $0x178] sm:$0xff] }
 0x2ac   :  { %v2477_v17 = vadd.f32 %v2476_v34, %v2218_v1  ;;  %v2221_v38 = vadd.f32 %v11625_v44, %v2220_v33  ;;  %v13753_v1 = vld [vmem:[#allocation17_spill] sm:$0xff]  ;;  %v1916_v28 = vpack.c.bf16 %v1717_v32, %v1716_v13  ;;  %v8485_v34 = vunpack.c.l.bf16 %v11752_v46 }
 0x2ad   :  { %3878 = vmatmul.bf16.gmra.mxu2 %v11727_v7  ;;  %v9527_v16 = vpop.permute.xlu1 %9526  ;;  %v9289_v15 = vunpack.i.h.bf16 %v13753_v1  ;;  %v9288_v4 = vunpack.i.l.bf16 %v13753_v1  ;;  %v9560_v13 = vpack.i.bf16 %v3115_v58, %v11590_v3 }
 0x2ae   :  { %v2647_v40 = vmax.f32 %v2477_v17, 0.0  ;;  %2259 = vmatmul.bf16.gmra.mxu0 %v1914_v14  ;;  %v9529_v29 = vunpack.i.h.bf16 %v9527_v16  ;;  %v9528_v37 = vunpack.i.l.bf16 %v9527_v16  ;;  %v8486_v17 = vunpack.c.h.bf16 %v11752_v46 }
 0x2b0   :  { %2748 = vst.msk [vmem:[#allocation2 + $0x1a8] sm:$0xff] %vm2694_vm1, %v2647_v40  ;;  %v3098_v60 = vsel %vm2694_vm1, %v11467_v19, %v9529_v29  ;;  %v3097_v14 = vsel %vm2694_vm1, %v11388_v26, %v9528_v37  ;;  %v9534_v40 = vunpack.i.h.bf16 %v9532_v47  ;;  %v11766_v26 = vld [vmem:[#allocation2 + $0x1a0] sm:$0xff]  ;;  %v1817_v29 = vsel %vm1643_vm0, %v8486_v17, %v9289_v15 }
 0x2b1   :  { %v3101_v19 = vsel %vm1643_vm0, %v3097_v14, %v9533_v8  ;;  %v13754_v47 = vld [vmem:[#allocation19_spill] sm:$0xff] }
 0x2b2   :  { %v9294_v1 = vunpack.i.h.bf16 %v13754_v47  ;;  %v9293_v15 = vunpack.i.l.bf16 %v13754_v47  ;;  %v13756_v47 = vld [vmem:[#allocation21_spill] sm:$0xff] }
 0x2b3   :  { %v2222_v50 = vpop.f32.mrf.mxu0  ;;  %v2479_v31 = vpop.f32.mrf.mxu1 }
 0x2b4   :  { %v2480_v20 = vadd.f32 %v2479_v31, %v2221_v38  ;;  %v2223_v27 = vadd.f32 %v11625_v44, %v2222_v50  ;;  %v3102_v50 = vsel %vm1643_vm0, %v3098_v60, %v9534_v40  ;;  %v3120_v60 = vld [vmem:[#allocation2 + $0x180] sm:$0xff]  ;;  %v1719_v40 = vsel %vm1643_vm0, %v8473_v9, %v9294_v1 }
 0x2b5   :  { %v9304_v1 = vunpack.i.h.bf16 %v13756_v47 }
 0x2b6   :  { %v2648_v5 = vmax.f32 %v2480_v20, 0.0  ;;  %2518 = vmatmul.bf16.gmra.mxu1 %v1915_v11 }
 0x2b7   :  { %v3131_v6 = vld [vmem:[#allocation2 + $0x1a8] sm:$0xff] }
 0x2b8   :  { %2749 = vst.msk [vmem:[#allocation2 + $0x1b0] sm:$0xff] %vm2694_vm1, %v2648_v5  ;;  %v9555_v39 = vpack.i.bf16 %v3131_v6, %v3130_v43  ;;  %v1816_v5 = vsel %vm1643_vm0, %v8485_v34, %v9288_v4 }
 0x2ba   :  { %9556 = vrot.lane.b32.xlu1 %v9555_v39, %s9806_s29  ;;  %v1917_v39 = vpack.c.bf16 %v1817_v29, %v1816_v5 }
 0x2bb   :  { %v2225_v48 = vpop.f32.mrf.mxu0  ;;  %v2481_v33 = vpop.f32.mrf.mxu1 }
 0x2bc   :  { %v2482_v0 = vadd.f32 %v2481_v33, %v2223_v27  ;;  %v9537_v38 = vpop.permute.xlu0 %9536  ;;  %v2226_v37 = vadd.f32 %v11625_v44, %v2225_v48  ;;  %v11790_v48 = vld [vmem:[#allocation2 + $0x170] sm:$0xff]  ;;  %v1718_v33 = vsel %vm1643_vm0, %v8470_v61, %v9293_v15  ;;  %v13755_v61 = vld [vmem:[#allocation23_spill] sm:$0xff]  ;;  %v9303_v15 = vunpack.i.l.bf16 %v13756_v47 }
 0x2bd   :  { %v9539_v11 = vunpack.i.h.bf16 %v9537_v38  ;;  %v9538_v51 = vunpack.i.l.bf16 %v9537_v38  ;;  %v11803_v38 = vld [vmem:[%s13620_s0 + $0x170] sm:$0xff]   ;;  %v1918_v52 = vpack.c.bf16 %v1719_v40, %v1718_v33  ;;  %v9298_v9 = vunpack.i.l.bf16 %v13755_v61 }
 0x2be   :  { %v2649_v54 = vmax.f32 %v2482_v0, 0.0  ;;  %2264 = vmatmul.bf16.gmra.mxu0 %v1916_v28  ;;  %v9570_v0 = vpack.i.bf16 %v3120_v60, %v11790_v48  ;;  %v1720_v33 = vsel %vm1643_vm0, %v8474_v55, %v9303_v15  ;;  %v9308_v55 = vunpack.i.l.bf16 %v13757_v23 }
 0x2bf   :  { %v11768_v31 = vld [vmem:[#allocation2 + $0x1b0] sm:$0xff]  ;;  %v3105_v16 = vsel %vm3066_vm2, %v3101_v19, %v9538_v51  ;;  %v3106_v20 = vsel %vm3066_vm2, %v3102_v50, %v9539_v11  ;;  %v9299_v51 = vunpack.i.h.bf16 %v13755_v61  ;;  %v8489_v19 = vunpack.c.l.bf16 %v11803_v38 }
 0x2c0   :  { %2750 = vst.msk [vmem:[#allocation2 + $0x1b8] sm:$0xff] %vm2694_vm1, %v2649_v54  ;;  %v9565_v43 = vpack.i.bf16 %v11768_v31, %v11766_v26  ;;  %v11783_v32 = vpack.c.bf16 %v3106_v20, %v3105_v16  ;;  %v8490_v50 = vunpack.c.h.bf16 %v11803_v38  ;;  %v3124_v20 = vld [vmem:[#allocation2 + $0x188] sm:$0xff]  ;;  %v9368_v38 = vunpack.i.l.bf16 %v11004_v41 }
 0x2c1   :  { %v1818_v29 = vsel %vm1643_vm0, %v8489_v19, %v9298_v9 }
 0x2c2   :  { %9566 = vrot.lane.b32.xlu2 %v9565_v43, %s9805_s12  ;;  %9561 = vrot.lane.b32.xlu1 %v9560_v13, %s9806_s29  ;;  %v9580_v13 = vpack.i.bf16 %v3124_v20, %v3115_v58  ;;  %v1721_v58 = vsel %vm1643_vm0, %v8477_v35, %v9304_v1 }
 0x2c3   :  { %3927 = vmatmul.bf16.gmra.mxu3 %v11783_v32  ;;  %v2227_v4 = vpop.f32.mrf.mxu0  ;;  %v2484_v27 = vpop.f32.mrf.mxu1 }
 0x2c4   :  { %v2485_v28 = vadd.f32 %v2484_v27, %v2226_v37  ;;  %v2228_v11 = vadd.f32 %v11625_v44, %v2227_v4  ;;  %v1819_v37 = vsel %vm1643_vm0, %v8490_v50, %v9299_v51 }
 0x2c6   :  { %v2650_v14 = vmax.f32 %v2485_v28, 0.0  ;;  %2523 = vmatmul.bf16.gmra.mxu1 %v1917_v39  ;;  %v1919_v39 = vpack.c.bf16 %v1819_v37, %v1818_v29 }
 0x2c7   :  { %v3140_v3 = vld [vmem:[#allocation2 + $0x1b8] sm:$0xff] }
 0x2c8   :  { %2751 = vst.msk [vmem:[#allocation2 + $0x1c0] sm:$0xff] %vm2694_vm1, %v2650_v14  ;;  %v9575_v8 = vpack.i.bf16 %v3140_v3, %v3131_v6 }
 0x2ca   :  { %9576 = vrot.lane.b32.xlu0 %v9575_v8, %s9807_s14  ;;  %9571 = vrot.lane.b32.xlu2 %v9570_v0, %s9805_s12  ;;  %v11833_v8 = vld [vmem:[%s13620_s0 + $0x178] sm:$0xff]  }
 0x2cb   :  { %v2230_v54 = vpop.f32.mrf.mxu0  ;;  %v2486_v6 = vpop.f32.mrf.mxu1  ;;  %v8493_v35 = vunpack.c.l.bf16 %v11833_v8 }
 0x2cc   :  { %v2487_v16 = vadd.f32 %v2486_v6, %v2228_v11  ;;  %v2231_v43 = vadd.f32 %v11625_v44, %v2230_v54  ;;  %v1920_v11 = vpack.c.bf16 %v1721_v58, %v1720_v33 }
 0x2cd   :  { %v1820_v20 = vsel %vm1643_vm0, %v8493_v35, %v9308_v55  ;;  %v11866_v55 = vld [vmem:[%s13620_s0 + $0x180] sm:$0xff]  }
 0x2ce   :  { %v2651_v5 = vmax.f32 %v2487_v16, 0.0  ;;  %2269 = vmatmul.bf16.gmra.mxu0 %v1918_v52  ;;  %v9309_v52 = vunpack.i.h.bf16 %v13757_v23 }
 0x2cf   :  { %v11841_v6 = vld [vmem:[#allocation2 + $0x1c0] sm:$0xff] }
 0x2d0   :  { %2752 = vst.msk [vmem:[#allocation2 + $0x1c8] sm:$0xff] %vm2694_vm1, %v2651_v5 }
 0x2d2   :  { %9581 = vrot.lane.b32.xlu0 %v9580_v13, %s9807_s14 }
 0x2d3   :  { %v2232_v4 = vpop.f32.mrf.mxu0  ;;  %v2489_v27 = vpop.f32.mrf.mxu1 }
 0x2d4   :  { %v2490_v28 = vadd.f32 %v2489_v27, %v2231_v43  ;;  %v2233_v0 = vadd.f32 %v11625_v44, %v2232_v4  ;;  %v119_v43 = vld [vmem:[%s13620_s0 + $0x158] sm:$0xf] }
 0x2d5   :  { %v219_v27 = vunpack.c.l.bf16 %v119_v43  ;;  %v8498_v43 = vunpack.c.h.bf16 %v11866_v55 }
 0x2d6   :  { %v2652_v60 = vmax.f32 %v2490_v28, 0.0  ;;  %2528 = vmatmul.bf16.gmra.mxu1 %v1919_v39  ;;  %v13758_v39 = vld [vmem:[#allocation26_spill] sm:$0xff] }
 0x2d7   :  { %v3133_v14 = vld [vmem:[#allocation2 + $0x1c8] sm:$0xff]  ;;  %v9314_v47 = vunpack.i.h.bf16 %v13758_v39  ;;  %v9313_v1 = vunpack.i.l.bf16 %v13758_v39 }
 0x2d8   :  { %2753 = vst.msk [vmem:[#allocation2 + $0x1d0] sm:$0xff] %vm2694_vm1, %v2652_v60  ;;  %v9585_v40 = vpack.i.bf16 %v3133_v14, %v3140_v3  ;;  %v8494_v3 = vunpack.c.h.bf16 %v11833_v8 }
 0x2d9   :  { %v1723_v23 = vsel %vm1643_vm0, %v219_v27, %v9314_v47 }
 0x2da   :  { %9586 = vrot.lane.b32.xlu1 %v9585_v40, %s9806_s29  ;;  %v1821_v5 = vsel %vm1643_vm0, %v8494_v3, %v9309_v52 }
 0x2db   :  { %v2235_v61 = vpop.f32.mrf.mxu0  ;;  %v2491_v51 = vpop.f32.mrf.mxu1  ;;  %v1921_v13 = vpack.c.bf16 %v1821_v5, %v1820_v20 }
 0x2dc   :  { %v2492_v9 = vadd.f32 %v2491_v51, %v2233_v0  ;;  %v2236_v29 = vadd.f32 %v11625_v44, %v2235_v61  ;;  %v9542_v28 = vpop.permute.xlu1 %9541  ;;  %v9547_v61 = vpop.permute.xlu2 %9546  ;;  %v13759_v51 = vld [vmem:[#allocation24_spill] sm:$0xff] }
 0x2dd   :  { %v9544_v58 = vunpack.i.h.bf16 %v9542_v28  ;;  %v9543_v40 = vunpack.i.l.bf16 %v9542_v28  ;;  %v9548_v39 = vunpack.i.l.bf16 %v9547_v61 }
 0x2de   :  { %v2653_v54 = vmax.f32 %v2492_v9, 0.0  ;;  %2274 = vmatmul.bf16.gmra.mxu0 %v1920_v11  ;;  %v1722_v11 = vsel %vm1643_vm0, %v8478_v12, %v9313_v1  ;;  %v9319_v9 = vunpack.i.h.bf16 %v13759_v51 }
 0x2df   :  { %v3138_v16 = vld [vmem:[#allocation2 + $0x1d0] sm:$0xff]  ;;  %v1922_v12 = vpack.c.bf16 %v1723_v23, %v1722_v11  ;;  %v3240_v20 = vsel %vm2694_vm1, %v11576_v59, %v9544_v58 }
 0x2e0   :  { %2754 = vst.msk [vmem:[#allocation2 + $0x1d8] sm:$0xff] %vm2694_vm1, %v2653_v54  ;;  %v9590_v37 = vpack.i.bf16 %v3138_v16, %v11841_v6  ;;  %v9318_v54 = vunpack.i.l.bf16 %v13759_v51  ;;  %v3108_v16 = vld [vmem:[#allocation2 + $0x140] sm:$0xff] }
 0x2e2   :  { %9591 = vrot.lane.b32.xlu2 %v9590_v37, %s9805_s12  ;;  %v8497_v37 = vunpack.c.l.bf16 %v11866_v55 }
 0x2e3   :  { %v2237_v15 = vpop.f32.mrf.mxu0  ;;  %v2494_v4 = vpop.f32.mrf.mxu1 }
 0x2e4   :  { %v2495_v60 = vadd.f32 %v2494_v4, %v2236_v29  ;;  %v2238_v25 = vadd.f32 %v11625_v44, %v2237_v15  ;;  %v1822_v58 = vsel %vm1643_vm0, %v8497_v37, %v9318_v54 }
 0x2e6   :  { %v2654_v33 = vmax.f32 %v2495_v60, 0.0  ;;  %2533 = vmatmul.bf16.gmra.mxu1 %v1921_v13  ;;  %v9549_v13 = vunpack.i.h.bf16 %v9547_v61 }
 0x2e7   :  { %v3142_v0 = vld [vmem:[#allocation2 + $0x1d8] sm:$0xff] }
 0x2e8   :  { %2755 = vst.msk [vmem:[#allocation2 + $0x1e0] sm:$0xff] %vm2694_vm1, %v2654_v33  ;;  %v9595_v52 = vpack.i.bf16 %v3142_v0, %v3133_v14  ;;  %v3239_v14 = vsel %vm2694_vm1, %v3108_v16, %v9543_v40  ;;  %v3244_v59 = vsel %vm1643_vm0, %v3240_v20, %v9549_v13  ;;  %v1823_v40 = vsel %vm1643_vm0, %v8498_v43, %v9319_v9 }
 0x2e9   :  { %v3243_v28 = vsel %vm1643_vm0, %v3239_v14, %v9548_v39  ;;  %v1923_v23 = vpack.c.bf16 %v1823_v40, %v1822_v58  ;;  %v6493_v14 = vld [vmem:[%s13620_s0 + $0x18c] sm:$0xf]  ;;  %v13761_v39 = vld [vmem:[#allocation27_spill] sm:$0xff] }
 0x2ea   :  { %9596 = vrot.lane.b32.xlu0 %v9595_v52, %s9807_s14  ;;  %v13760_v52 = vld [vmem:[#allocation25_spill] sm:$0xff]  ;;  %v9328_v36 = vunpack.i.l.bf16 %v13761_v39  ;;  %v13762_v58 = vld [vmem:[#allocation28_spill] sm:$0xff] }
 0x2eb   :  { %v2240_v5 = vpop.f32.mrf.mxu0  ;;  %v2496_v29 = vpop.f32.mrf.mxu1  ;;  %v9324_v61 = vunpack.i.h.bf16 %v13760_v52  ;;  %v9323_v51 = vunpack.i.l.bf16 %v13760_v52  ;;  %v9344_v40 = vunpack.i.h.bf16 %v13762_v58 }
 0x2ec   :  { %v2497_v47 = vadd.f32 %v2496_v29, %v2238_v25  ;;  %v9552_v1 = vpop.permute.xlu0 %9551  ;;  %v2241_v0 = vadd.f32 %v11625_v44, %v2240_v5  ;;  %v11907_v5 = vld [vmem:[%s13620_s0 + $0x190] sm:$0xff]  }
 0x2ed   :  { %v9554_v4 = vunpack.i.h.bf16 %v9552_v1  ;;  %v9553_v15 = vunpack.i.l.bf16 %v9552_v1  ;;  %v1724_v9 = vsel %vm1643_vm0, %v8481_v63, %v9323_v51  ;;  %v1725_v20 = vsel %vm1643_vm0, %v8482_v42, %v9324_v61 }
 0x2ee   :  { %v2655_v27 = vmax.f32 %v2497_v47, 0.0  ;;  %2279 = vmatmul.bf16.gmra.mxu0 %v1922_v12  ;;  %v1924_v13 = vpack.c.bf16 %v1725_v20, %v1724_v9  ;;  %v9329_v63 = vunpack.i.h.bf16 %v13761_v39  ;;  %v8501_v1 = vunpack.c.l.bf16 %v11907_v5  ;;  %v8841_v20 = vld [vmem:[%s13620_s0 + $0x198] sm:$0xff]  }
 0x2ef   :  { %v3247_v60 = vsel %vm3066_vm2, %v3243_v28, %v9553_v15  ;;  %v3248_v33 = vsel %vm3066_vm2, %v3244_v59, %v9554_v4  ;;  %v622_v4 = vunpack.c.l.bf16 %v6493_v14 }
 0x2f0   :  { %2756 = vst.msk [vmem:[#allocation2 + $0x1e8] sm:$0xff] %vm2694_vm1, %v2655_v27  ;;  %v11889_v11 = vpack.c.bf16 %v3248_v33, %v3247_v60  ;;  %v1825_v59 = vsel %vm1643_vm0, %v8501_v1, %v9329_v63 }
 0x2f1   :  { %v1824_v28 = vsel %vm1643_vm0, %v622_v4, %v9328_v36  ;;  %v8505_v36 = vunpack.c.l.bf16 %v8841_v20 }
 0x2f2   :  { %3883 = vmatmul.bf16.gmra.mxu2 %v11889_v11  ;;  %v1925_v33 = vpack.c.bf16 %v1825_v59, %v1824_v28 }
 0x2f3   :  { %v2242_v16 = vpop.f32.mrf.mxu0  ;;  %v2499_v25 = vpop.f32.mrf.mxu1 }
 0x2f4   :  { %v2500_v54 = vadd.f32 %v2499_v25, %v2241_v0  ;;  %v2243_v29 = vadd.f32 %v11625_v44, %v2242_v16  ;;  %v9343_v0 = vunpack.i.l.bf16 %v13762_v58  ;;  %v9364_v58 = vunpack.i.h.bf16 %v10986_v10 }
 0x2f6   :  { %v2656_v12 = vmax.f32 %v2500_v54, 0.0  ;;  %2538 = vmatmul.bf16.gmra.mxu1 %v1923_v23  ;;  %v1726_v54 = vsel %vm1643_vm0, %v8485_v34, %v9343_v0 }
 0x2f7   :  { %v3268_v16 = vld [vmem:[#allocation2 + $0x1e8] sm:$0xff] }
 0x2f8   :  { %2757 = vst.msk [vmem:[#allocation2 + $0x1f0] sm:$0xff] %vm2694_vm1, %v2656_v12  ;;  %v1727_v12 = vsel %vm1643_vm0, %v8486_v17, %v9344_v40  ;;  %v8502_v17 = vunpack.c.h.bf16 %v11907_v5  ;;  %v9363_v40 = vunpack.i.l.bf16 %v10986_v10  ;;  %v8842_v10 = vld [vmem:[%s13620_s0 + $0x1a0] sm:$0xff]  }
 0x2fb   :  { %v2245_v47 = vpop.f32.mrf.mxu0  ;;  %v2501_v42 = vpop.f32.mrf.mxu1 }
 0x2fc   :  { %v2502_v15 = vadd.f32 %v2501_v42, %v2243_v29  ;;  %v2246_v60 = vadd.f32 %v11625_v44, %v2245_v47  ;;  %v1926_v29 = vpack.c.bf16 %v1727_v12, %v1726_v54  ;;  %v1729_v54 = vsel %vm1643_vm0, %v8490_v50, %v9364_v58 }
 0x2fe   :  { %v2657_v27 = vmax.f32 %v2502_v15, 0.0  ;;  %2284 = vmatmul.bf16.gmra.mxu0 %v1924_v13  ;;  %v13763_v13 = vld [vmem:[#allocation29_spill] sm:$0xff] }
 0x2ff   :  { %v9349_v39 = vunpack.i.h.bf16 %v13763_v13  ;;  %v9348_v34 = vunpack.i.l.bf16 %v13763_v13  ;;  %v11936_v4 = vld [vmem:[#allocation2 + $0x1f0] sm:$0xff] }
 0x300   :  { %2758 = vst.msk [vmem:[#allocation2 + $0x1f8] sm:$0xff] %vm2694_vm1, %v2657_v27 }
 0x301   :  { %v1826_v27 = vsel %vm1643_vm0, %v8502_v17, %v9348_v34  ;;  %v1827_v28 = vsel %vm1643_vm0, %v8505_v36, %v9349_v39  ;;  %v8506_v39 = vunpack.c.h.bf16 %v8841_v20  ;;  %v8509_v34 = vunpack.c.l.bf16 %v8842_v10 }
 0x303   :  { %v2247_v23 = vpop.f32.mrf.mxu0  ;;  %v2504_v52 = vpop.f32.mrf.mxu1  ;;  %v1828_v36 = vsel %vm1643_vm0, %v8506_v39, %v9368_v38 }
 0x304   :  { %v2505_v61 = vadd.f32 %v2504_v52, %v2246_v60  ;;  %v2248_v14 = vadd.f32 %v11625_v44, %v2247_v23 }
 0x306   :  { %v2658_v51 = vmax.f32 %v2505_v61, 0.0  ;;  %2543 = vmatmul.bf16.gmra.mxu1 %v1925_v33  ;;  %v1927_v33 = vpack.c.bf16 %v1827_v28, %v1826_v27 }
 0x307   :  { %v3269_v25 = vld [vmem:[#allocation2 + $0x1f8] sm:$0xff] }
 0x308   :  { %2759 = vst.msk [vmem:[#allocation2 + $0x200] sm:$0xff] %vm2694_vm1, %v2658_v51  ;;  %v9600_v9 = vpack.i.bf16 %v3269_v25, %v3268_v16  ;;  %v1728_v16 = vsel %vm1643_vm0, %v8489_v19, %v9363_v40  ;;  %v9369_v19 = vunpack.i.h.bf16 %v11004_v41  ;;  %v13764_v41 = vld [vmem:[#allocation30_spill] sm:$0xff] }
 0x309   :  { %v9383_v20 = vunpack.i.l.bf16 %v13764_v41 }
 0x30a   :  { %9601 = vrot.lane.b32.xlu1 %v9600_v9, %s9806_s29  ;;  %v11964_v9 = vpop.f32.mrf.mxu2 }
 0x30b   :  { %v2250_v63 = vpop.f32.mrf.mxu0  ;;  %v2506_v46 = vpop.f32.mrf.mxu1 }
 0x30c   :  { %v2507_v47 = vadd.f32 %v2506_v46, %v2248_v14  ;;  %v2251_v59 = vadd.f32 %v11625_v44, %v2250_v63  ;;  %v11970_v63 = vpop.f32.mrf.mxu3 }
 0x30e   :  { %v2659_v42 = vmax.f32 %v2507_v47, 0.0  ;;  %2289 = vmatmul.bf16.gmra.mxu0 %v1926_v29  ;;  %v1928_v29 = vpack.c.bf16 %v1729_v54, %v1728_v16  ;;  %v1829_v47 = vsel %vm1643_vm0, %v8509_v34, %v9369_v19  ;;  %v8843_v54 = vld [vmem:[%s13620_s0 + $0x1a8] sm:$0xff]  }
 0x30f   :  { %v11938_v15 = vld [vmem:[#allocation2 + $0x200] sm:$0xff]  ;;  %v1929_v28 = vpack.c.bf16 %v1829_v47, %v1828_v36  ;;  %v8513_v39 = vunpack.c.l.bf16 %v8843_v54 }
 0x310   :  { %2760 = vst.msk [vmem:[#allocation2 + $0x208] sm:$0xff] %vm2694_vm1, %v2659_v42  ;;  %v9605_v60 = vpack.i.bf16 %v11938_v15, %v11936_v4 }
 0x312   :  { %9606 = vrot.lane.b32.xlu2 %v9605_v60, %s9805_s12  ;;  %v3874_v27 = vpop.f32.mrf.mxu2 }
 0x313   :  { %v2252_v0 = vpop.f32.mrf.mxu0  ;;  %v2509_v23 = vpop.f32.mrf.mxu1  ;;  %v3875_v40 = vadd.f32 %v11620_v56, %v3874_v27 }
 0x314   :  { %v2510_v52 = vadd.f32 %v2509_v23, %v2251_v59  ;;  %v2253_v14 = vadd.f32 %v11625_v44, %v2252_v0  ;;  %v9384_v59 = vunpack.i.h.bf16 %v13764_v41 }
 0x316   :  { %v2660_v61 = vmax.f32 %v2510_v52, 0.0  ;;  %2548 = vmatmul.bf16.gmra.mxu1 %v1927_v33  ;;  %v1731_v16 = vsel %vm1643_vm0, %v8494_v3, %v9384_v59 }
 0x317   :  { %v11951_v51 = vld [vmem:[#allocation2 + $0x208] sm:$0xff] }
 0x318   :  { %2761 = vst.msk [vmem:[#allocation2 + $0x210] sm:$0xff] %vm2694_vm1, %v2660_v61  ;;  %v9610_v12 = vpack.i.bf16 %v11951_v51, %v3269_v25  ;;  %v1730_v61 = vsel %vm1643_vm0, %v8493_v35, %v9383_v20  ;;  %v8510_v35 = vunpack.c.h.bf16 %v8842_v10 }
 0x31a   :  { %9611 = vrot.lane.b32.xlu0 %v9610_v12, %s9807_s14 }
 0x31b   :  { %v2255_v50 = vpop.f32.mrf.mxu0  ;;  %v2511_v13 = vpop.f32.mrf.mxu1 }
 0x31c   :  { %v2512_v25 = vadd.f32 %v2511_v13, %v2253_v14  ;;  %v2256_v42 = vadd.f32 %v11625_v44, %v2255_v50  ;;  %v1930_v14 = vpack.c.bf16 %v1731_v16, %v1730_v61  ;;  %v13767_v61 = vld [vmem:[#allocation33_spill] sm:$0xff] }
 0x31d   :  { %v9398_v16 = vunpack.i.l.bf16 %v13767_v61 }
 0x31e   :  { %v2661_v46 = vmax.f32 %v2512_v25, 0.0  ;;  %2294 = vmatmul.bf16.gmra.mxu0 %v1928_v29  ;;  %v13765_v29 = vld [vmem:[#allocation31_spill] sm:$0xff] }
 0x31f   :  { %v9389_v19 = vunpack.i.h.bf16 %v13765_v29  ;;  %v9388_v38 = vunpack.i.l.bf16 %v13765_v29  ;;  %v12012_v29 = vpop.f32.mrf.mxu2 }
 0x320   :  { %2762 = vst.msk [vmem:[#allocation2 + $0x218] sm:$0xff] %vm2694_vm1, %v2661_v46 }
 0x321   :  { %v1830_v3 = vsel %vm1643_vm0, %v8510_v35, %v9388_v38  ;;  %v1831_v25 = vsel %vm1643_vm0, %v8513_v39, %v9389_v19  ;;  %v3126_v19 = vld [vmem:[#allocation2 + $0x190] sm:$0xff] }
 0x322   :  { %v1931_v47 = vpack.c.bf16 %v1831_v25, %v1830_v3 }
 0x323   :  { %v2257_v60 = vpop.f32.mrf.mxu0  ;;  %v2514_v33 = vpop.f32.mrf.mxu1 }
 0x324   :  { %v2515_v58 = vadd.f32 %v2514_v33, %v2256_v42  ;;  %v2258_v12 = vadd.f32 %v11625_v44, %v2257_v60  ;;  %v13766_v42 = vld [vmem:[#allocation32_spill] sm:$0xff]  ;;  %v9567_v60 = vpop.permute.xlu2 %9566 }
 0x325   :  { %v9394_v27 = vunpack.i.h.bf16 %v13766_v42  ;;  %v9569_v39 = vunpack.i.h.bf16 %v9567_v60 }
 0x326   :  { %v2662_v0 = vmax.f32 %v2515_v58, 0.0  ;;  %v3923_v23 = vpop.f32.mrf.mxu3  ;;  %2553 = vmatmul.bf16.gmra.mxu1 %v1929_v28  ;;  %v9393_v28 = vunpack.i.l.bf16 %v13766_v42 }
 0x327   :  { %v11979_v52 = vadd.f32 %v3923_v23, %v3875_v40  ;;  %v6502_v23 = vld [vmem:[%s13620_s0 + $0x1b0] sm:$0xf] }
 0x328   :  { %2763 = vst.msk [vmem:[#allocation2 + $0x220] sm:$0xff] %vm2694_vm1, %v2662_v0  ;;  %v1732_v40 = vsel %vm1643_vm0, %v8497_v37, %v9393_v28  ;;  %v1733_v0 = vsel %vm1643_vm0, %v8498_v43, %v9394_v27  ;;  %v631_v55 = vunpack.c.l.bf16 %v6502_v23  ;;  %v130_v23 = vld [vmem:[%s13620_s0 + $0x18c] sm:$0xf] }
 0x329   :  { %v1932_v38 = vpack.c.bf16 %v1733_v0, %v1732_v40 }
 0x32b   :  { %v2260_v50 = vpop.f32.mrf.mxu0  ;;  %v2516_v13 = vpop.f32.mrf.mxu1 }
 0x32c   :  { %v2517_v8 = vadd.f32 %v2516_v13, %v2258_v12  ;;  %v2261_v46 = vadd.f32 %v11625_v44, %v2260_v50  ;;  %v9557_v36 = vpop.permute.xlu1 %9556  ;;  %v8514_v12 = vunpack.c.h.bf16 %v8843_v54 }
 0x32d   :  { %v9559_v33 = vunpack.i.h.bf16 %v9557_v36  ;;  %v9558_v58 = vunpack.i.l.bf16 %v9557_v36 }
 0x32e   :  { %v2663_v34 = vmax.f32 %v2517_v8, 0.0  ;;  %2299 = vmatmul.bf16.gmra.mxu0 %v1930_v14  ;;  %v9399_v14 = vunpack.i.h.bf16 %v13767_v61  ;;  %v9568_v8 = vunpack.i.l.bf16 %v9567_v60  ;;  %v1832_v36 = vsel %vm1643_vm0, %v8514_v12, %v9398_v16  ;;  %v13768_v61 = vld [vmem:[#allocation34_spill] sm:$0xff] }
 0x32f   :  { %v3252_v43 = vsel %vm2694_vm1, %v11766_v26, %v9559_v33  ;;  %v3251_v50 = vsel %vm2694_vm1, %v3126_v19, %v9558_v58  ;;  %v9572_v58 = vpop.permute.xlu2 %9571  ;;  %v9404_v16 = vunpack.i.h.bf16 %v13768_v61 }
 0x330   :  { %2764 = vst.msk [vmem:[#allocation2 + $0x228] sm:$0xff] %vm2694_vm1, %v2663_v34  ;;  %v3255_v27 = vsel %vm1643_vm0, %v3251_v50, %v9568_v8  ;;  %v3256_v26 = vsel %vm1643_vm0, %v3252_v43, %v9569_v39  ;;  %v1833_v28 = vsel %vm1643_vm0, %v631_v55, %v9399_v14  ;;  %v3879_v40 = vpop.f32.mrf.mxu2  ;;  %v9776_v14 = vld [vmem:[#allocation2 + $0x160] sm:$0xff]  ;;  %v9574_v55 = vunpack.i.h.bf16 %v9572_v58 }
 0x331   :  { %v1933_v0 = vpack.c.bf16 %v1833_v28, %v1832_v36  ;;  %v9573_v43 = vunpack.i.l.bf16 %v9572_v58  ;;  %v1735_v28 = vsel %vm1643_vm0, %v8501_v1, %v9404_v16 }
 0x333   :  { %v2262_v41 = vpop.f32.mrf.mxu0  ;;  %v2519_v10 = vpop.f32.mrf.mxu1 }
 0x334   :  { %v2520_v59 = vadd.f32 %v2519_v10, %v2261_v46  ;;  %v2263_v37 = vadd.f32 %v11625_v44, %v2262_v41  ;;  %v9562_v34 = vpop.permute.xlu1 %9561 }
 0x335   :  { %v9564_v41 = vunpack.i.h.bf16 %v9562_v34  ;;  %v9563_v10 = vunpack.i.l.bf16 %v9562_v34  ;;  %v230_v34 = vunpack.c.l.bf16 %v130_v23 }
 0x336   :  { %v2664_v20 = vmax.f32 %v2520_v59, 0.0  ;;  %2558 = vmatmul.bf16.gmra.mxu1 %v1931_v47  ;;  %v12019_v47 = vpop.f32.mrf.mxu3 }
 0x337   :  { %v3242_v12 = vsel %vm2694_vm1, %v11790_v48, %v9564_v41  ;;  %v12059_v41 = vld [vmem:[%s13622_s2] ss:$0 sm:$0xff] }
 0x338   :  { %2765 = vst.msk [vmem:[#allocation2 + $0x230] sm:$0xff] %vm2694_vm1, %v2664_v20 }
 0x33b   :  { %v2265_v13 = vpop.f32.mrf.mxu0  ;;  %v2521_v35 = vpop.f32.mrf.mxu1 }
 0x33c   :  { %v2522_v54 = vadd.f32 %v2521_v35, %v2263_v37  ;;  %v9577_v3 = vpop.permute.xlu0 %9576  ;;  %v2266_v60 = vadd.f32 %v11625_v44, %v2265_v13  ;;  %v3241_v44 = vsel %vm2694_vm1, %v9776_v14, %v9563_v10  ;;  %v3880_v35 = vadd.f32 %v11620_v56, %v3879_v40  ;;  %v8844_v56 = vld [vmem:[%s13620_s0 + $0x1b8] sm:$0xff]  }
 0x33d   :  { %v9579_v25 = vunpack.i.h.bf16 %v9577_v3  ;;  %v9578_v46 = vunpack.i.l.bf16 %v9577_v3  ;;  %v3245_v48 = vsel %vm1643_vm0, %v3241_v44, %v9573_v43  ;;  %v8517_v40 = vunpack.c.l.bf16 %v8844_v56 }
 0x33e   :  { %v2665_v42 = vmax.f32 %v2522_v54, 0.0  ;;  %2304 = vmatmul.bf16.gmra.mxu0 %v1932_v38  ;;  %v9403_v38 = vunpack.i.l.bf16 %v13768_v61 }
 0x33f   :  { %v3259_v59 = vsel %vm3066_vm2, %v3255_v27, %v9578_v46  ;;  %v3260_v20 = vsel %vm3066_vm2, %v3256_v26, %v9579_v25  ;;  %v3246_v25 = vsel %vm1643_vm0, %v3242_v12, %v9574_v55 }
 0x340   :  { %2766 = vst.msk [vmem:[#allocation2 + $0x238] sm:$0xff] %vm2694_vm1, %v2665_v42  ;;  %v12028_v33 = vpack.c.bf16 %v3260_v20, %v3259_v59  ;;  %v1734_v26 = vsel %vm1643_vm0, %v230_v34, %v9403_v38  ;;  %v9444_v59 = vunpack.i.h.bf16 %v11339_v21  ;;  %v9443_v20 = vunpack.i.l.bf16 %v11339_v21 }
 0x341   :  { %v1934_v61 = vpack.c.bf16 %v1735_v28, %v1734_v26  ;;  %v9493_v21 = vunpack.i.l.bf16 %v11676_v24 }
 0x342   :  { %3932 = vmatmul.bf16.gmra.mxu3 %v12028_v33  ;;  %v1834_v16 = vsel %vm1643_vm0, %v8517_v40, %v9443_v20  ;;  %v3271_v40 = vld [vmem:[#allocation2 + $0x218] sm:$0xff] }
 0x343   :  { %v2267_v19 = vpop.f32.mrf.mxu0  ;;  %v2524_v37 = vpop.f32.mrf.mxu1  ;;  %v1736_v34 = vsel %vm1643_vm0, %v8502_v17, %v9493_v21  ;;  %v9620_v21 = vpack.i.bf16 %v3271_v40, %v11951_v51 }
 0x344   :  { %v2525_v50 = vadd.f32 %v2524_v37, %v2266_v60  ;;  %v9582_v13 = vpop.permute.xlu0 %9581  ;;  %v2268_v10 = vadd.f32 %v12059_v41, %v2267_v19  ;;  %v9494_v19 = vunpack.i.h.bf16 %v11676_v24 }
 0x345   :  { %v9584_v39 = vunpack.i.h.bf16 %v9582_v13  ;;  %v9583_v8 = vunpack.i.l.bf16 %v9582_v13 }
 0x346   :  { %v2666_v54 = vmax.f32 %v2525_v50, 0.0  ;;  %v3928_v3 = vpop.f32.mrf.mxu3  ;;  %2563 = vmatmul.bf16.gmra.mxu1 %v1933_v0  ;;  %v8518_v0 = vunpack.c.h.bf16 %v8844_v56 }
 0x347   :  { %v12042_v46 = vadd.f32 %v3928_v3, %v3880_v35  ;;  %v3249_v36 = vsel %vm3066_vm2, %v3245_v48, %v9583_v8  ;;  %v3250_v42 = vsel %vm3066_vm2, %v3246_v25, %v9584_v39  ;;  %v3286_v39 = vld [vmem:[#allocation2 + $0x238] sm:$0xff]  ;;  %v8845_v3 = vld [vmem:[%s13620_s0 + $0x1c0] sm:$0xff]   ;;  %v9592_v48 = vpop.permute.xlu2 %9591  ;;  %v9504_v25 = vunpack.i.h.bf16 %v11681_v62 }
 0x348   :  { %2767 = vst.msk [vmem:[#allocation2 + $0x240] sm:$0xff] %vm2694_vm1, %v2666_v54  ;;  %v12047_v27 = vpack.c.bf16 %v3250_v42, %v3249_v36  ;;  %v1835_v12 = vsel %vm1643_vm0, %v8518_v0, %v9444_v59  ;;  %v1737_v54 = vsel %vm1643_vm0, %v8165_v53, %v9494_v19  ;;  %v9503_v36 = vunpack.i.l.bf16 %v11681_v62 }
 0x349   :  { %v1935_v44 = vpack.c.bf16 %v1835_v12, %v1834_v16  ;;  %v1936_v17 = vpack.c.bf16 %v1737_v54, %v1736_v34  ;;  %v8521_v26 = vunpack.c.l.bf16 %v8845_v3  ;;  %v8522_v28 = vunpack.c.h.bf16 %v8845_v3  ;;  %v12109_v34 = vld [vmem:[#allocation2 + $0x210] sm:$0xff] }
 0x34a   :  { %3888 = vmatmul.bf16.gmra.mxu2 %v12047_v27  ;;  %v9593_v59 = vunpack.i.l.bf16 %v9592_v48 }
 0x34b   :  { %v2270_v60 = vpop.f32.mrf.mxu0  ;;  %v2526_v58 = vpop.f32.mrf.mxu1  ;;  %v1836_v12 = vsel %vm1643_vm0, %v8521_v26, %v9503_v36  ;;  %v3280_v36 = vld [vmem:[#allocation2 + $0x228] sm:$0xff] }
 0x34c   :  { %v2527_v23 = vadd.f32 %v2526_v58, %v2268_v10  ;;  %v2271_v14 = vadd.f32 %v12059_v41, %v2270_v60  ;;  %v9587_v55 = vpop.permute.xlu1 %9586  ;;  %v9594_v10 = vunpack.i.h.bf16 %v9592_v48 }
 0x34d   :  { %v9589_v13 = vunpack.i.h.bf16 %v9587_v55  ;;  %v9588_v35 = vunpack.i.l.bf16 %v9587_v55 }
 0x34e   :  { %v2667_v1 = vmax.f32 %v2527_v23, 0.0  ;;  %2309 = vmatmul.bf16.gmra.mxu0 %v1934_v61 }
 0x34f   :  { %v3254_v49 = vsel %vm2694_vm1, %v11841_v6, %v9589_v13  ;;  %v3253_v53 = vsel %vm2694_vm1, %v11768_v31, %v9588_v35  ;;  %v12091_v6 = vld [vmem:[#allocation2 + $0x240] sm:$0xff] }
 0x350   :  { %2768 = vst.msk [vmem:[#allocation2 + $0x248] sm:$0xff] %vm2694_vm1, %v2667_v1  ;;  %v3257_v23 = vsel %vm1643_vm0, %v3253_v53, %v9593_v59  ;;  %v3258_v61 = vsel %vm1643_vm0, %v3254_v49, %v9594_v10  ;;  %v3276_v13 = vld [vmem:[#allocation2 + $0x220] sm:$0xff]  ;;  %v9640_v49 = vpack.i.bf16 %v3280_v36, %v3271_v40 }
 0x351   :  { %v9630_v54 = vpack.i.bf16 %v3276_v13, %v12109_v34 }
 0x353   :  { %v2272_v37 = vpop.f32.mrf.mxu0  ;;  %v2529_v38 = vpop.f32.mrf.mxu1 }
 0x354   :  { %v2530_v43 = vadd.f32 %v2529_v38, %v2271_v14  ;;  %v2273_v5 = vadd.f32 %v12059_v41, %v2272_v37  ;;  %v1837_v14 = vsel %vm1643_vm0, %v8522_v28, %v9504_v25 }
 0x355   :  { %v1937_v38 = vpack.c.bf16 %v1837_v14, %v1836_v12 }
 0x356   :  { %v2668_v50 = vmax.f32 %v2530_v43, 0.0  ;;  %2568 = vmatmul.bf16.gmra.mxu1 %v1935_v44 }
 0x357   :  { %v3287_v8 = vld [vmem:[#allocation2 + $0x248] sm:$0xff] }
 0x358   :  { %2769 = vst.msk [vmem:[#allocation2 + $0x250] sm:$0xff] %vm2694_vm1, %v2668_v50  ;;  %v9615_v24 = vpack.i.bf16 %v3287_v8, %v3286_v39 }
 0x35a   :  { %9616 = vrot.lane.b32.xlu1 %v9615_v24, %s9806_s29 }
 0x35b   :  { %v2275_v42 = vpop.f32.mrf.mxu0  ;;  %v2531_v56 = vpop.f32.mrf.mxu1 }
 0x35c   :  { %v2532_v20 = vadd.f32 %v2531_v56, %v2273_v5  ;;  %v9597_v60 = vpop.permute.xlu0 %9596  ;;  %v2276_v44 = vadd.f32 %v12059_v41, %v2275_v42 }
 0x35d   :  { %v9599_v62 = vunpack.i.h.bf16 %v9597_v60  ;;  %v9598_v58 = vunpack.i.l.bf16 %v9597_v60 }
 0x35e   :  { %v2669_v0 = vmax.f32 %v2532_v20, 0.0  ;;  %2314 = vmatmul.bf16.gmra.mxu0 %v1936_v17 }
 0x35f   :  { %v12093_v31 = vld [vmem:[#allocation2 + $0x250] sm:$0xff]  ;;  %v3261_v1 = vsel %vm3066_vm2, %v3257_v23, %v9598_v58  ;;  %v3262_v16 = vsel %vm3066_vm2, %v3258_v61, %v9599_v62 }
 0x360   :  { %2770 = vst.msk [vmem:[#allocation2 + $0x258] sm:$0xff] %vm2694_vm1, %v2669_v0  ;;  %v9625_v19 = vpack.i.bf16 %v12093_v31, %v12091_v6  ;;  %v12104_v37 = vpack.c.bf16 %v3262_v16, %v3261_v1 }
 0x362   :  { %9626 = vrot.lane.b32.xlu2 %v9625_v19, %s9805_s12  ;;  %9621 = vrot.lane.b32.xlu1 %v9620_v21, %s9806_s29 }
 0x363   :  { %3937 = vmatmul.bf16.gmra.mxu3 %v12104_v37  ;;  %v2277_v55 = vpop.f32.mrf.mxu0  ;;  %v2534_v43 = vpop.f32.mrf.mxu1 }
 0x364   :  { %v2535_v50 = vadd.f32 %v2534_v43, %v2276_v44  ;;  %v2278_v24 = vadd.f32 %v12059_v41, %v2277_v55 }
 0x366   :  { %v2670_v35 = vmax.f32 %v2535_v50, 0.0  ;;  %2573 = vmatmul.bf16.gmra.mxu1 %v1937_v38  ;;  %v3264_v50 = vld [vmem:[#allocation2 + $0x1e0] sm:$0xff] }
 0x367   :  { %v3296_v39 = vld [vmem:[#allocation2 + $0x258] sm:$0xff] }
 0x368   :  { %2771 = vst.msk [vmem:[#allocation2 + $0x260] sm:$0xff] %vm2694_vm1, %v2670_v35  ;;  %v9635_v51 = vpack.i.bf16 %v3296_v39, %v3287_v8 }
 0x36a   :  { %9636 = vrot.lane.b32.xlu0 %v9635_v51, %s9807_s14  ;;  %9631 = vrot.lane.b32.xlu2 %v9630_v54, %s9805_s12 }
 0x36b   :  { %v2280_v3 = vpop.f32.mrf.mxu0  ;;  %v2536_v48 = vpop.f32.mrf.mxu1 }
 0x36c   :  { %v2537_v25 = vadd.f32 %v2536_v48, %v2278_v24  ;;  %v2281_v17 = vadd.f32 %v12059_v41, %v2280_v3  ;;  %v9607_v43 = vpop.permute.xlu2 %9606 }
 0x36d   :  { %v9609_v54 = vunpack.i.h.bf16 %v9607_v43  ;;  %v9608_v24 = vunpack.i.l.bf16 %v9607_v43 }
 0x36e   :  { %v2671_v5 = vmax.f32 %v2537_v25, 0.0 }
 0x36f   :  { %v12122_v58 = vld [vmem:[#allocation2 + $0x260] sm:$0xff] }
 0x370   :  { %2772 = vst.msk [vmem:[#allocation2 + $0x268] sm:$0xff] %vm2694_vm1, %v2671_v5 }
 0x372   :  { %9641 = vrot.lane.b32.xlu0 %v9640_v49, %s9807_s14 }
 0x373   :  { %v2282_v8 = vpop.f32.mrf.mxu0  ;;  %v2539_v53 = vpop.f32.mrf.mxu1 }
 0x374   :  { %v2540_v42 = vadd.f32 %v2539_v53, %v2281_v17  ;;  %v2283_v10 = vadd.f32 %v12059_v41, %v2282_v8 }
 0x376   :  { %v2672_v56 = vmax.f32 %v2540_v42, 0.0 }
 0x377   :  { %v3289_v26 = vld [vmem:[#allocation2 + $0x268] sm:$0xff] }
 0x378   :  { %2773 = vst.msk [vmem:[#allocation2 + $0x270] sm:$0xff] %vm2694_vm1, %v2672_v56  ;;  %v9645_v28 = vpack.i.bf16 %v3289_v26, %v3296_v39 }
 0x37a   :  { %9646 = vrot.lane.b32.xlu1 %v9645_v28, %s9806_s29 }
 0x37b   :  { %v2285_v59 = vpop.f32.mrf.mxu0  ;;  %v2541_v20 = vpop.f32.mrf.mxu1 }
 0x37c   :  { %v2542_v60 = vadd.f32 %v2541_v20, %v2283_v10  ;;  %v2286_v0 = vadd.f32 %v12059_v41, %v2285_v59  ;;  %v9602_v16 = vpop.permute.xlu1 %9601 }
 0x37d   :  { %v9604_v44 = vunpack.i.h.bf16 %v9602_v16  ;;  %v9603_v19 = vunpack.i.l.bf16 %v9602_v16 }
 0x37e   :  { %v2673_v62 = vmax.f32 %v2542_v60, 0.0 }
 0x37f   :  { %v3294_v40 = vld [vmem:[#allocation2 + $0x270] sm:$0xff]  ;;  %v3396_v13 = vsel %vm2694_vm1, %v11936_v4, %v9604_v44  ;;  %v3395_v35 = vsel %vm2694_vm1, %v3264_v50, %v9603_v19 }
 0x380   :  { %2774 = vst.msk [vmem:[#allocation2 + $0x278] sm:$0xff] %vm2694_vm1, %v2673_v62  ;;  %v9650_v23 = vpack.i.bf16 %v3294_v40, %v12122_v58  ;;  %v3399_v17 = vsel %vm1643_vm0, %v3395_v35, %v9608_v24  ;;  %v3400_v49 = vsel %vm1643_vm0, %v3396_v13, %v9609_v54  ;;  %v7766_v54 = vld [vmem:[%s13623_s3 + $0xf8] sm:$0xff] }
 0x381   :  { %4002 = vmatpush.bf16.msra.mxu3 %v7766_v54 }
 0x382   :  { %9651 = vrot.lane.b32.xlu2 %v9650_v23, %s9805_s12 }
 0x383   :  { %v2287_v61 = vpop.f32.mrf.mxu0  ;;  %v2544_v1 = vpop.f32.mrf.mxu1 }
 0x384   :  { %v2545_v12 = vadd.f32 %v2544_v1, %v2286_v0  ;;  %v2288_v38 = vadd.f32 %v12059_v41, %v2287_v61 }
 0x386   :  { %v2674_v14 = vmax.f32 %v2545_v12, 0.0 }
 0x387   :  { %v3298_v21 = vld [vmem:[#allocation2 + $0x278] sm:$0xff] }
 0x388   :  { %2775 = vst.msk [vmem:[#allocation2 + $0x280] sm:$0xff] %vm2694_vm1, %v2674_v14  ;;  %v9655_v55 = vpack.i.bf16 %v3298_v21, %v3289_v26 }
 0x38a   :  { %9656 = vrot.lane.b32.xlu0 %v9655_v55, %s9807_s14 }
 0x38b   :  { %v2290_v39 = vpop.f32.mrf.mxu0  ;;  %v2546_v51 = vpop.f32.mrf.mxu1 }
 0x38c   :  { %v2547_v3 = vadd.f32 %v2546_v51, %v2288_v38  ;;  %v9612_v48 = vpop.permute.xlu0 %9611  ;;  %v2291_v4 = vadd.f32 %v12059_v41, %v2290_v39  ;;  %v7758_v51 = vld [vmem:[%s13623_s3 + $0xb8] sm:$0xff] }
 0x38d   :  { %v9614_v25 = vunpack.i.h.bf16 %v9612_v48  ;;  %v9613_v36 = vunpack.i.l.bf16 %v9612_v48  ;;  %3953 = vmatpush.bf16.msra.mxu2 %v7758_v51 }
 0x38e   :  { %v2675_v5 = vmax.f32 %v2547_v3, 0.0 }
 0x38f   :  { %v3403_v8 = vsel %vm3066_vm2, %v3399_v17, %v9613_v36  ;;  %v3404_v53 = vsel %vm3066_vm2, %v3400_v49, %v9614_v25  ;;  %v12170_v49 = vpop.f32.mrf.mxu2 }
 0x390   :  { %2776 = vst.msk [vmem:[#allocation2 + $0x288] sm:$0xff] %vm2694_vm1, %v2675_v5  ;;  %v12140_v42 = vpack.c.bf16 %v3404_v53, %v3403_v8 }
 0x392   :  { %3893 = vmatmul.bf16.gmra.mxu2 %v12140_v42 }
 0x393   :  { %v2292_v56 = vpop.f32.mrf.mxu0  ;;  %v2549_v26 = vpop.f32.mrf.mxu1 }
 0x394   :  { %v2550_v28 = vadd.f32 %v2549_v26, %v2291_v4  ;;  %v2293_v59 = vadd.f32 %v12059_v41, %v2292_v56  ;;  %v12173_v56 = vpop.f32.mrf.mxu3 }
 0x396   :  { %v2676_v10 = vmax.f32 %v2550_v28, 0.0  ;;  %v7757_v28 = vld [vmem:[%s13623_s3 + $0xb0] sm:$0xff] }
 0x397   :  { %v3424_v16 = vld [vmem:[#allocation2 + $0x288] sm:$0xff]  ;;  %3954 = vmatpush.bf16.msra.mxu2 %v7757_v28  ;;  %v3282_v28 = vld [vmem:[#allocation2 + $0x230] sm:$0xff] }
 0x398   :  { %2777 = vst.msk [vmem:[#allocation2 + $0x290] sm:$0xff] %vm2694_vm1, %v2676_v10 }
 0x39b   :  { %v2295_v20 = vpop.f32.mrf.mxu0  ;;  %v2551_v60 = vpop.f32.mrf.mxu1 }
 0x39c   :  { %v2552_v62 = vadd.f32 %v2551_v60, %v2293_v59  ;;  %v2296_v0 = vadd.f32 %v12059_v41, %v2295_v20  ;;  %v3884_v59 = vpop.f32.mrf.mxu2  ;;  %v7765_v20 = vld [vmem:[%s13623_s3 + $0xf0] sm:$0xff]  ;;  %v7756_v60 = vld [vmem:[%s13623_s3 + $0xa8] sm:$0xff] }
 0x39d   :  { %4003 = vmatpush.bf16.msra.mxu3 %v7765_v20  ;;  %3955 = vmatpush.bf16.msra.mxu2 %v7756_v60 }
 0x39e   :  { %v2677_v40 = vmax.f32 %v2552_v62, 0.0 }
 0x39f   :  { %v12150_v43 = vld [vmem:[#allocation2 + $0x290] sm:$0xff] }
 0x3a0   :  { %2778 = vst.msk [vmem:[#allocation2 + $0x298] sm:$0xff] %vm2694_vm1, %v2677_v40 }
 0x3a3   :  { %v2297_v23 = vpop.f32.mrf.mxu0  ;;  %v2554_v61 = vpop.f32.mrf.mxu1 }
 0x3a4   :  { %v2555_v1 = vadd.f32 %v2554_v61, %v2296_v0  ;;  %v2298_v44 = vadd.f32 %v12059_v41, %v2297_v23  ;;  %v12189_v0 = vld [vmem:[%s13624_s4] ss:$0 sm:$0xff] }
 0x3a5   :  { %v3885_v23 = vadd.f32 %v12189_v0, %v3884_v59 }
 0x3a6   :  { %v2678_v12 = vmax.f32 %v2555_v1, 0.0 }
 0x3a7   :  { %v3425_v14 = vld [vmem:[#allocation2 + $0x298] sm:$0xff] }
 0x3a8   :  { %2779 = vst.msk [vmem:[#allocation2 + $0x2a0] sm:$0xff] %vm2694_vm1, %v2678_v12  ;;  %v9660_v19 = vpack.i.bf16 %v3425_v14, %v3424_v16 }
 0x3aa   :  { %9661 = vrot.lane.b32.xlu1 %v9660_v19, %s9806_s29  ;;  %v7754_v19 = vld [vmem:[%s13623_s3 + $0x98] sm:$0xff] }
 0x3ab   :  { %v2300_v21 = vpop.f32.mrf.mxu0  ;;  %v2556_v38 = vpop.f32.mrf.mxu1 }
 0x3ac   :  { %v2557_v55 = vadd.f32 %v2556_v38, %v2298_v44  ;;  %v2301_v35 = vadd.f32 %v12059_v41, %v2300_v21 }
 0x3ae   :  { %v2679_v50 = vmax.f32 %v2557_v55, 0.0 }
 0x3af   :  { %v12152_v13 = vld [vmem:[#allocation2 + $0x2a0] sm:$0xff] }
 0x3b0   :  { %2780 = vst.msk [vmem:[#allocation2 + $0x2a8] sm:$0xff] %vm2694_vm1, %v2679_v50  ;;  %v9665_v39 = vpack.i.bf16 %v12152_v13, %v12150_v43 }
 0x3b2   :  { %9666 = vrot.lane.b32.xlu2 %v9665_v39, %s9805_s12  ;;  %v7764_v39 = vld [vmem:[%s13623_s3 + $0xe8] sm:$0xff] }
 0x3b3   :  { %v2302_v24 = vpop.f32.mrf.mxu0  ;;  %v2559_v3 = vpop.f32.mrf.mxu1  ;;  %4004 = vmatpush.bf16.msra.mxu3 %v7764_v39 }
 0x3b4   :  { %v2560_v48 = vadd.f32 %v2559_v3, %v2301_v35  ;;  %v2303_v5 = vadd.f32 %v12059_v41, %v2302_v24  ;;  %v7753_v35 = vld [vmem:[%s13623_s3 + $0x90] sm:$0xff]  ;;  %v7752_v24 = vld [vmem:[%s13623_s3 + $0x88] sm:$0xff] }
 0x3b6   :  { %v2680_v25 = vmax.f32 %v2560_v48, 0.0 }
 0x3b7   :  { %v12165_v36 = vld [vmem:[#allocation2 + $0x2a8] sm:$0xff] }
 0x3b8   :  { %2781 = vst.msk [vmem:[#allocation2 + $0x2b0] sm:$0xff] %vm2694_vm1, %v2680_v25  ;;  %v9670_v17 = vpack.i.bf16 %v12165_v36, %v3425_v14  ;;  %v7755_v14 = vld [vmem:[%s13623_s3 + $0xa0] sm:$0xff] }
 0x3b9   :  { %3956 = vmatpush.bf16.msra.mxu2 %v7755_v14 }
 0x3ba   :  { %9671 = vrot.lane.b32.xlu0 %v9670_v17, %s9807_s14 }
 0x3bb   :  { %v2305_v8 = vpop.f32.mrf.mxu0  ;;  %v2561_v53 = vpop.f32.mrf.mxu1 }
 0x3bc   :  { %v2562_v4 = vadd.f32 %v2561_v53, %v2303_v5  ;;  %v2306_v10 = vadd.f32 %v12059_v41, %v2305_v8  ;;  %v7751_v5 = vld [vmem:[%s13623_s3 + $0x80] sm:$0xff]  ;;  %v9627_v8 = vpop.permute.xlu2 %9626 }
 0x3bd   :  { %3957 = vmatpush.bf16.msra.mxu2 %v7754_v19  ;;  %v7763_v19 = vld [vmem:[%s13623_s3 + $0xe0] sm:$0xff] }
 0x3be   :  { %v2681_v26 = vmax.f32 %v2562_v4, 0.0  ;;  %4005 = vmatpush.bf16.msra.mxu3 %v7763_v19 }
 0x3c0   :  { %2782 = vst.msk [vmem:[#allocation2 + $0x2b8] sm:$0xff] %vm2694_vm1, %v2681_v26  ;;  %v12217_v26 = vpop.f32.mrf.mxu2 }
 0x3c1   :  { %3958 = vmatpush.bf16.msra.mxu2 %v7753_v35 }
 0x3c3   :  { %v2307_v62 = vpop.f32.mrf.mxu0  ;;  %v2564_v40 = vpop.f32.mrf.mxu1 }
 0x3c4   :  { %v2565_v61 = vadd.f32 %v2564_v40, %v2306_v10  ;;  %v2308_v44 = vadd.f32 %v12059_v41, %v2307_v62  ;;  %v9629_v40 = vunpack.i.h.bf16 %v9627_v8 }
 0x3c5   :  { %v3933_v1 = vpop.f32.mrf.mxu3  ;;  %3959 = vmatpush.bf16.msra.mxu2 %v7752_v24 }
 0x3c6   :  { %v2682_v16 = vmax.f32 %v2565_v61, 0.0  ;;  %v12192_v12 = vadd.f32 %v3933_v1, %v3885_v23  ;;  %v9628_v23 = vunpack.i.l.bf16 %v9627_v8 }
 0x3c8   :  { %2783 = vst.msk [vmem:[#allocation2 + $0x2c0] sm:$0xff] %vm2694_vm1, %v2682_v16 }
 0x3c9   :  { %3960 = vmatpush.bf16.msra.mxu2 %v7751_v5 }
 0x3cb   :  { %v2310_v21 = vpop.f32.mrf.mxu0  ;;  %v2566_v38 = vpop.f32.mrf.mxu1 }
 0x3cc   :  { %v2567_v55 = vadd.f32 %v2566_v38, %v2308_v44  ;;  %v2311_v51 = vadd.f32 %v12059_v41, %v2310_v21  ;;  %v9617_v54 = vpop.permute.xlu1 %9616 }
 0x3cd   :  { %v9619_v53 = vunpack.i.h.bf16 %v9617_v54  ;;  %v9618_v4 = vunpack.i.l.bf16 %v9617_v54  ;;  %v12226_v21 = vpop.f32.mrf.mxu3 }
 0x3ce   :  { %v2683_v50 = vmax.f32 %v2567_v55, 0.0 }
 0x3cf   :  { %v3408_v59 = vsel %vm2694_vm1, %v12091_v6, %v9619_v53  ;;  %v3407_v20 = vsel %vm2694_vm1, %v3282_v28, %v9618_v4 }
 0x3d0   :  { %2784 = vst.msk [vmem:[#allocation2 + $0x2c8] sm:$0xff] %vm2694_vm1, %v2683_v50  ;;  %v3411_v6 = vsel %vm1643_vm0, %v3407_v20, %v9628_v23  ;;  %v3412_v55 = vsel %vm1643_vm0, %v3408_v59, %v9629_v40  ;;  %v7761_v59 = vld [vmem:[%s13623_s3 + $0xd0] sm:$0xff] }
 0x3d3   :  { %v2312_v3 = vpop.f32.mrf.mxu0  ;;  %v2569_v48 = vpop.f32.mrf.mxu1 }
 0x3d4   :  { %v2570_v25 = vadd.f32 %v2569_v48, %v2311_v51  ;;  %v2313_v10 = vadd.f32 %v12059_v41, %v2312_v3  ;;  %v9622_v61 = vpop.permute.xlu1 %9621  ;;  %v9632_v3 = vpop.permute.xlu2 %9631 }
 0x3d5   :  { %v9624_v50 = vunpack.i.h.bf16 %v9622_v61  ;;  %v9623_v35 = vunpack.i.l.bf16 %v9622_v61  ;;  %v3889_v48 = vpop.f32.mrf.mxu2  ;;  %v9634_v53 = vunpack.i.h.bf16 %v9632_v3  ;;  %v9633_v4 = vunpack.i.l.bf16 %v9632_v3  ;;  %v3432_v3 = vld [vmem:[#allocation2 + $0x2c0] sm:$0xff] }
 0x3d6   :  { %v2684_v17 = vmax.f32 %v2570_v25, 0.0  ;;  %v7762_v25 = vld [vmem:[%s13623_s3 + $0xd8] sm:$0xff]  ;;  %v3890_v20 = vadd.f32 %v12189_v0, %v3889_v48 }
 0x3d7   :  { %v3398_v5 = vsel %vm2694_vm1, %v12109_v34, %v9624_v50  ;;  %4006 = vmatpush.bf16.msra.mxu3 %v7762_v25  ;;  %v7759_v50 = vld [vmem:[%s13623_s3 + $0xc0] sm:$0xff]  ;;  %v3452_v48 = vld [vmem:[#allocation2 + $0x2f8] sm:$0xff] }
 0x3d8   :  { %2785 = vst.msk [vmem:[#allocation2 + $0x2d0] sm:$0xff] %vm2694_vm1, %v2684_v17  ;;  %v3397_v17 = vsel %vm2694_vm1, %v11938_v15, %v9623_v35  ;;  %v3402_v15 = vsel %vm1643_vm0, %v3398_v5, %v9634_v53 }
 0x3d9   :  { %v3401_v61 = vsel %vm1643_vm0, %v3397_v17, %v9633_v4 }
 0x3db   :  { %v2571_v60 = vpop.f32.mrf.mxu1  ;;  %v2315_v62 = vpop.f32.mrf.mxu0  ;;  %4007 = vmatpush.bf16.msra.mxu3 %v7761_v59 }
 0x3dc   :  { %v2572_v1 = vadd.f32 %v2571_v60, %v2313_v10  ;;  %v9637_v16 = vpop.permute.xlu0 %9636  ;;  %v2316_v54 = vadd.f32 %v12059_v41, %v2315_v62  ;;  %v9652_v59 = vpop.permute.xlu2 %9651 }
 0x3dd   :  { %v9639_v14 = vunpack.i.h.bf16 %v9637_v16  ;;  %v9638_v44 = vunpack.i.l.bf16 %v9637_v16 }
 0x3de   :  { %v2685_v38 = vmax.f32 %v2572_v1, 0.0 }
 0x3df   :  { %v3415_v39 = vsel %vm3066_vm2, %v3411_v6, %v9638_v44  ;;  %v3416_v51 = vsel %vm3066_vm2, %v3412_v55, %v9639_v14 }
 0x3e0   :  { %2786 = vst.msk [vmem:[#allocation2 + $0x2d8] sm:$0xff] %vm2694_vm1, %v2685_v38  ;;  %v12234_v24 = vpack.c.bf16 %v3416_v51, %v3415_v39  ;;  %v7760_v38 = vld [vmem:[%s13623_s3 + $0xc8] sm:$0xff] }
 0x3e1   :  { %4008 = vmatpush.bf16.msra.mxu3 %v7760_v38 }
 0x3e2   :  { %3942 = vmatmul.bf16.gmra.mxu3 %v12234_v24 }
 0x3e3   :  { %v2574_v8 = vpop.f32.mrf.mxu1  ;;  %v2317_v40 = vpop.f32.mrf.mxu0 }
 0x3e4   :  { %v2575_v28 = vadd.f32 %v2574_v8, %v2316_v54  ;;  %v9642_v10 = vpop.permute.xlu0 %9641  ;;  %v2318_v44 = vadd.f32 %v12059_v41, %v2317_v40  ;;  %v12267_v41 = vld [vmem:[#allocation2 + $0x2f0] sm:$0xff]  ;;  %v9653_v40 = vunpack.i.l.bf16 %v9652_v59 }
 0x3e5   :  { %v9644_v60 = vunpack.i.h.bf16 %v9642_v10  ;;  %v9643_v62 = vunpack.i.l.bf16 %v9642_v10  ;;  %4009 = vmatpush.bf16.msra.mxu3 %v7759_v50  ;;  %v12273_v8 = vld [vmem:[#allocation2 + $0x2b0] sm:$0xff] }
 0x3e6   :  { %v2686_v23 = vmax.f32 %v2575_v28, 0.0  ;;  %v3938_v34 = vpop.f32.mrf.mxu3  ;;  %v9690_v28 = vpack.i.bf16 %v3432_v3, %v12273_v8 }
 0x3e7   :  { %v12250_v1 = vadd.f32 %v3938_v34, %v3890_v20  ;;  %v3405_v16 = vsel %vm3066_vm2, %v3401_v61, %v9643_v62  ;;  %v3406_v14 = vsel %vm3066_vm2, %v3402_v15, %v9644_v60  ;;  %v3442_v53 = vld [vmem:[#allocation2 + $0x2d8] sm:$0xff]  ;;  %v9654_v62 = vunpack.i.h.bf16 %v9652_v59  ;;  %v3436_v15 = vld [vmem:[#allocation2 + $0x2c8] sm:$0xff] }
 0x3e8   :  { %2787 = vst.msk [vmem:[#allocation2 + $0x2e0] sm:$0xff] %vm2694_vm1, %v2686_v23  ;;  %v12256_v19 = vpack.c.bf16 %v3406_v14, %v3405_v16  ;;  %v12284_v16 = vld [vmem:[#allocation2 + $0x300] sm:$0xff]  ;;  %v3450_v14 = vld [vmem:[#allocation2 + $0x310] sm:$0xff] }
 0x3ea   :  { %3898 = vmatmul.bf16.gmra.mxu2 %v12256_v19 }
 0x3eb   :  { %v2576_v6 = vpop.f32.mrf.mxu1 }
 0x3ec   :  { %v2577_v55 = vadd.f32 %v2576_v6, %v2318_v44  ;;  %v9647_v54 = vpop.permute.xlu1 %9646  ;;  %v3435_v44 = vld [vmem:[#allocation2 + $0x2b8] sm:$0xff] }
 0x3ed   :  { %v9649_v25 = vunpack.i.h.bf16 %v9647_v54  ;;  %v9648_v5 = vunpack.i.l.bf16 %v9647_v54  ;;  %v3453_v54 = vld [vmem:[#allocation2 + $0x308] sm:$0xff] }
 0x3ee   :  { %v2687_v35 = vmax.f32 %v2577_v55, 0.0  ;;  %v9700_v55 = vpack.i.bf16 %v3436_v15, %v3435_v44 }
 0x3ef   :  { %v12265_v39 = vld [vmem:[#allocation2 + $0x2e0] sm:$0xff]  ;;  %v3410_v20 = vsel %vm2694_vm1, %v12122_v58, %v9649_v25  ;;  %v3409_v60 = vsel %vm2694_vm1, %v12093_v31, %v9648_v5  ;;  %v9705_v25 = vpack.i.bf16 %v3453_v54, %v3452_v48 }
 0x3f0   :  { %2788 = vst.msk [vmem:[#allocation2 + $0x2e8] sm:$0xff] %vm2694_vm1, %v2687_v35  ;;  %v9675_v51 = vpack.i.bf16 %v12267_v41, %v12265_v39  ;;  %v3413_v38 = vsel %vm1643_vm0, %v3409_v60, %v9653_v40  ;;  %v3414_v58 = vsel %vm1643_vm0, %v3410_v20, %v9654_v62  ;;  %v9685_v35 = vpack.i.bf16 %v3435_v44, %v12165_v36  ;;  %v12316_v20 = vpop.f32.mrf.mxu3 }
 0x3f2   :  { %9676 = vrot.lane.b32.xlu2 %v9675_v51, %s9805_s12  ;;  %v3454_v51 = vld [vmem:[#allocation2 + $0x318] sm:$0xff] }
 0x3f3   :  { %v9715_v3 = vpack.i.bf16 %v3454_v51, %v3453_v54 }
 0x3f7   :  { %v3451_v17 = vld [vmem:[#allocation2 + $0x2e8] sm:$0xff] }
 0x3f8   :  { %v9695_v4 = vpack.i.bf16 %v3452_v48, %v3451_v17  ;;  %v9680_v10 = vpack.i.bf16 %v3451_v17, %v3442_v53 }
 0x3fa   :  { %9696 = vrot.lane.b32.xlu0 %v9695_v4, %s9807_s14  ;;  %9691 = vrot.lane.b32.xlu2 %v9690_v28, %s9805_s12 }
 0x3fb   :  { %9681 = vrot.lane.b32.xlu1 %v9680_v10, %s9806_s29  ;;  %3961 = vmatmul.bf16.vlgmr.msra.gmra.mxu2 %v11520_v22  ;;  %v9710_v22 = vpack.i.bf16 %v3450_v14, %v12284_v16 }
 0x3fc   :  { %v9657_v23 = vpop.permute.xlu0 %9656 }
 0x3fd   :  { %v9659_v34 = vunpack.i.h.bf16 %v9657_v23  ;;  %v9658_v61 = vunpack.i.l.bf16 %v9657_v23 }
 0x3ff   :  { %v3417_v31 = vsel %vm3066_vm2, %v3413_v38, %v9658_v61  ;;  %v3418_v6 = vsel %vm3066_vm2, %v3414_v58, %v9659_v34 }
 0x400   :  { %v3590_v50 = vpack.c.bf16 %v3418_v6, %v3417_v31  ;;  %v3438_v31 = vld [vmem:[#allocation2 + $0x2d0] sm:$0xff] }
 0x402   :  { %9701 = vrot.lane.b32.xlu0 %v9700_v55, %s9807_s14  ;;  %9711 = vrot.lane.b32.xlu2 %v9710_v22, %s9805_s12 }
 0x403   :  { %9686 = vrot.lane.b32.xlu1 %v9685_v35, %s9806_s29  ;;  %3947 = vmatmul.bf16.gmra.mxu3 %v3590_v50 }
 0x40a   :  { %9716 = vrot.lane.b32.xlu0 %v9715_v3, %s9807_s14 }
 0x40b   :  { %9706 = vrot.lane.b32.xlu1 %v9705_v25, %s9806_s29  ;;  %3966 = vmatmul.bf16.gmra.mxu2 %v11727_v7 }
 0x40c   :  { %v9667_v17 = vpop.permute.xlu2 %9666 }
 0x40d   :  { %v9668_v4 = vunpack.i.l.bf16 %v9667_v17 }
 0x413   :  { %4010 = vmatmul.bf16.vlgmr.msra.gmra.mxu3 %v11702_v18  ;;  %v3420_v18 = vld [vmem:[#allocation2 + $0x280] sm:$0xff] }
 0x41b   :  { %3971 = vmatmul.bf16.gmra.mxu2 %v11889_v11 }
 0x41c   :  { %v9662_v36 = vpop.permute.xlu1 %9661 }
 0x41d   :  { %v9664_v48 = vunpack.i.h.bf16 %v9662_v36  ;;  %v9663_v5 = vunpack.i.l.bf16 %v9662_v36 }
 0x41f   :  { %v3552_v11 = vsel %vm2694_vm1, %v12150_v43, %v9664_v48 }
 0x423   :  { %4015 = vmatmul.bf16.gmra.mxu3 %v11783_v32  ;;  %v3551_v32 = vsel %vm2694_vm1, %v3420_v18, %v9663_v5 }
 0x42b   :  { %3976 = vmatmul.bf16.gmra.mxu2 %v12047_v27 }
 0x42c   :  { %v9672_v7 = vpop.permute.xlu0 %9671 }
 0x42d   :  { %v9674_v27 = vunpack.i.h.bf16 %v9672_v7  ;;  %v9673_v53 = vunpack.i.l.bf16 %v9672_v7 }
 0x433   :  { %4020 = vmatmul.bf16.gmra.mxu3 %v12028_v33  ;;  %v12309_v33 = vpop.f32.mrf.mxu2 }
 0x43b   :  { %3981 = vmatmul.bf16.gmra.mxu2 %v12140_v42  ;;  %v9669_v42 = vunpack.i.h.bf16 %v9667_v17  ;;  %v3894_v43 = vpop.f32.mrf.mxu2 }
 0x43c   :  { %v3895_v60 = vadd.f32 %v12189_v0, %v3894_v43 }
 0x443   :  { %4025 = vmatmul.bf16.gmra.mxu3 %v12104_v37  ;;  %v3555_v37 = vsel %vm1643_vm0, %v3551_v32, %v9668_v4  ;;  %v12319_v62 = vpop.f32.mrf.mxu2 }
 0x444   :  { %v3559_v28 = vsel %vm3066_vm2, %v3555_v37, %v9673_v53 }
 0x44b   :  { %3986 = vmatmul.bf16.gmra.mxu2 %v12256_v19  ;;  %v3556_v19 = vsel %vm1643_vm0, %v3552_v11, %v9669_v42 }
 0x44c   :  { %v3560_v10 = vsel %vm3066_vm2, %v3556_v19, %v9674_v27  ;;  %v9677_v23 = vpop.permute.xlu2 %9676 }
 0x44d   :  { %v3591_v59 = vpack.c.bf16 %v3560_v10, %v3559_v28  ;;  %v9679_v38 = vunpack.i.h.bf16 %v9677_v23  ;;  %v9678_v58 = vunpack.i.l.bf16 %v9677_v23 }
 0x453   :  { %4030 = vmatmul.bf16.gmra.mxu3 %v12234_v24 }
 0x454   :  { %v9692_v54 = vpop.permute.xlu2 %9691 }
 0x455   :  { %v9693_v11 = vunpack.i.l.bf16 %v9692_v54 }
 0x45b   :  { %3991 = vmatmul.bf16.gmra.mxu2 %v3591_v59 }
 0x45c   :  { %v9712_v59 = vpop.permute.xlu2 %9711 }
 0x463   :  { %4035 = vmatmul.bf16.gmra.mxu3 %v3590_v50 }
 0x465   :  { %v3943_v40 = vpop.f32.mrf.mxu3 }
 0x466   :  { %v12321_v24 = vadd.f32 %v3943_v40, %v3895_v60 }
 0x46c   :  { %v9697_v34 = vpop.permute.xlu0 %9696 }
 0x46d   :  { %v9682_v61 = vpop.permute.xlu1 %9681  ;;  %v3899_v15 = vpop.f32.mrf.mxu2  ;;  %v9699_v6 = vunpack.i.h.bf16 %v9697_v34  ;;  %v9698_v55 = vunpack.i.l.bf16 %v9697_v34 }
 0x46e   :  { %v9684_v14 = vunpack.i.h.bf16 %v9682_v61  ;;  %v9683_v44 = vunpack.i.l.bf16 %v9682_v61  ;;  %v12340_v40 = vpop.f32.mrf.mxu3  ;;  %v9714_v61 = vunpack.i.h.bf16 %v9712_v59 }
 0x470   :  { %v3564_v22 = vsel %vm2694_vm1, %v12265_v39, %v9684_v14  ;;  %v3563_v50 = vsel %vm2694_vm1, %v3438_v31, %v9683_v44  ;;  %v9694_v39 = vunpack.i.h.bf16 %v9692_v54 }
 0x471   :  { %v3567_v35 = vsel %vm1643_vm0, %v3563_v50, %v9678_v58  ;;  %v3568_v51 = vsel %vm1643_vm0, %v3564_v22, %v9679_v38 }
 0x472   :  { %v3571_v3 = vsel %vm3066_vm2, %v3567_v35, %v9698_v55  ;;  %v3572_v25 = vsel %vm3066_vm2, %v3568_v51, %v9699_v6  ;;  %v3900_v35 = vadd.f32 %v12189_v0, %v3899_v15 }
 0x473   :  { %v3592_v36 = vpack.c.bf16 %v3572_v25, %v3571_v3 }
 0x474   :  { %v9702_v48 = vpop.permute.xlu0 %9701 }
 0x475   :  { %v9687_v5 = vpop.permute.xlu1 %9686  ;;  %4040 = vmatmul.bf16.gmra.mxu3 %v3592_v36  ;;  %v12330_v7 = vpop.f32.mrf.mxu2  ;;  %v9704_v32 = vunpack.i.h.bf16 %v9702_v48  ;;  %v9703_v27 = vunpack.i.l.bf16 %v9702_v48 }
 0x476   :  { %v9689_v17 = vunpack.i.h.bf16 %v9687_v5  ;;  %v9688_v18 = vunpack.i.l.bf16 %v9687_v5 }
 0x478   :  { %v3554_v53 = vsel %vm2694_vm1, %v12273_v8, %v9689_v17  ;;  %v3553_v42 = vsel %vm2694_vm1, %v12152_v13, %v9688_v18  ;;  %v9713_v13 = vunpack.i.l.bf16 %v9712_v59  ;;  %v3867_v17 = vadd.f32 %v12189_v0, %v11659_v30 }
 0x479   :  { %v3557_v4 = vsel %vm1643_vm0, %v3553_v42, %v9693_v11  ;;  %v3558_v37 = vsel %vm1643_vm0, %v3554_v53, %v9694_v39 }
 0x47a   :  { %v3561_v19 = vsel %vm3066_vm2, %v3557_v4, %v9703_v27  ;;  %v3562_v28 = vsel %vm3066_vm2, %v3558_v37, %v9704_v32  ;;  %v3916_v39 = vadd.f32 %v11663_v57, %v3867_v17  ;;  %v3872_v37 = vadd.f32 %v12189_v0, %v11964_v9 }
 0x47b   :  { %v3593_v10 = vpack.c.bf16 %v3562_v28, %v3561_v19 }
 0x47c   :  { %v9717_v43 = vpop.permute.xlu0 %9716  ;;  %v3921_v57 = vadd.f32 %v11970_v63, %v3872_v37 }
 0x47d   :  { %v9707_v60 = vpop.permute.xlu1 %9706  ;;  %3996 = vmatmul.bf16.gmra.mxu2 %v3593_v10  ;;  %v9719_v14 = vunpack.i.h.bf16 %v9717_v43  ;;  %v9718_v44 = vunpack.i.l.bf16 %v9717_v43 }
 0x47e   :  { %v9709_v23 = vunpack.i.h.bf16 %v9707_v60  ;;  %v9708_v8 = vunpack.i.l.bf16 %v9707_v60  ;;  %v3962_v34 = vpop.f32.mrf.mxu2 }
 0x480   :  { %v3566_v38 = vsel %vm2694_vm1, %v12284_v16, %v9709_v23  ;;  %v3565_v58 = vsel %vm2694_vm1, %v12267_v41, %v9708_v8  ;;  %v3963_v41 = vadd.f32 %v3962_v34, %v11632_v45 }
 0x481   :  { %v3569_v31 = vsel %vm1643_vm0, %v3565_v58, %v9713_v13  ;;  %v3570_v6 = vsel %vm1643_vm0, %v3566_v38, %v9714_v61  ;;  %v3877_v61 = vadd.f32 %v12189_v0, %v12012_v29  ;;  %v3882_v29 = vadd.f32 %v12189_v0, %v12170_v49 }
 0x482   :  { %v3573_v55 = vsel %vm3066_vm2, %v3569_v31, %v9718_v44  ;;  %v3574_v22 = vsel %vm3066_vm2, %v3570_v6, %v9719_v14 }
 0x483   :  { %v3594_v50 = vpack.c.bf16 %v3574_v22, %v3573_v55  ;;  %v3926_v14 = vadd.f32 %v12019_v47, %v3877_v61 }
 0x485   :  { %4045 = vmatmul.bf16.gmra.mxu3 %v3594_v50 }
 0x486   :  { %v3948_v51 = vpop.f32.mrf.mxu3  ;;  %v3964_v54 = vpop.f32.mrf.mxu2 }
 0x487   :  { %v12351_v3 = vadd.f32 %v3948_v51, %v3900_v35  ;;  %v3965_v15 = vadd.f32 %v3964_v54, %v3916_v39  ;;  %v3931_v54 = vadd.f32 %v12173_v56, %v3882_v29 }
 0x48e   :  { %v12353_v16 = vpop.f32.mrf.mxu3  ;;  %v3967_v25 = vpop.f32.mrf.mxu2 }
 0x48f   :  { %v3968_v45 = vadd.f32 %v3967_v25, %v11690_v2 }
 0x496   :  { %v3969_v36 = vpop.f32.mrf.mxu2  ;;  %v4011_v48 = vpop.f32.mrf.mxu3 }
 0x497   :  { %v4012_v5 = vadd.f32 %v4011_v48, %v3963_v41  ;;  %v3970_v28 = vadd.f32 %v3969_v36, %v3921_v57 }
 0x499   :  { %v4051_v18 = vmax.f32 %v4012_v5, 0.0 }
 0x49b   :  { %4067 = vst.msk [vmem:[#allocation3] sm:$0xff] %vm1643_vm0, %v4051_v18 }
 0x49e   :  { %v4013_v11 = vpop.f32.mrf.mxu3  ;;  %v3972_v27 = vpop.f32.mrf.mxu2 }
 0x49f   :  { %v4014_v32 = vadd.f32 %v4013_v11, %v3965_v15  ;;  %v3973_v8 = vadd.f32 %v3972_v27, %v11979_v52  ;;  %v3887_v15 = vadd.f32 %v12189_v0, %v12217_v26 }
 0x4a1   :  { %v4052_v53 = vmax.f32 %v4014_v32, 0.0  ;;  %v3936_v27 = vadd.f32 %v12226_v21, %v3887_v15  ;;  %v7774_v21 = vld [vmem:[%s13625_s5 + $0x38] sm:$0xff] }
 0x4a2   :  { %4515 = vmatpush.bf16.msrb.mxu2 %v7774_v21 }
 0x4a3   :  { %4068 = vst.msk [vmem:[#allocation3 + $0x8] sm:$0xff] %vm1643_vm0, %v4052_v53 }
 0x4a6   :  { %v4016_v42 = vpop.f32.mrf.mxu3  ;;  %v3974_v19 = vpop.f32.mrf.mxu2 }
 0x4a7   :  { %v4017_v4 = vadd.f32 %v4016_v42, %v3968_v45  ;;  %v3975_v44 = vadd.f32 %v3974_v19, %v3926_v14  ;;  %v7772_v14 = vld [vmem:[%s13625_s5 + $0x28] sm:$0xff] }
 0x4a9   :  { %v4053_v30 = vmax.f32 %v4017_v4, 0.0 }
 0x4aa   :  { %v12366_v60 = vld [vmem:[#allocation3 + $0x8] sm:$0xff] }
 0x4ab   :  { %4069 = vst.msk [vmem:[#allocation3 + $0x10] sm:$0xff] %vm1643_vm0, %v4053_v30 }
 0x4ae   :  { %v4018_v10 = vpop.f32.mrf.mxu3  ;;  %v3977_v9 = vpop.f32.mrf.mxu2 }
 0x4af   :  { %v4019_v59 = vadd.f32 %v4018_v10, %v3970_v28  ;;  %v3978_v52 = vadd.f32 %v3977_v9, %v12042_v46  ;;  %v3892_v28 = vadd.f32 %v12189_v0, %v12309_v33  ;;  %v7773_v33 = vld [vmem:[%s13625_s5 + $0x30] sm:$0xff] }
 0x4b0   :  { %4516 = vmatpush.bf16.msrb.mxu2 %v7773_v33  ;;  %v4083_v33 = vld [vmem:[#allocation3] sm:$0xff] }
 0x4b1   :  { %v4054_v43 = vmax.f32 %v4019_v59, 0.0 }
 0x4b2   :  { %v12368_v23 = vld [vmem:[#allocation3 + $0x10] sm:$0xff] }
 0x4b3   :  { %4070 = vst.msk [vmem:[#allocation3 + $0x18] sm:$0xff] %vm1643_vm0, %v4054_v43  ;;  %v9720_v2 = vpack.i.bf16 %v12368_v23, %v12366_v60 }
 0x4b4   :  { %4517 = vmatpush.bf16.msrb.mxu2 %v7772_v14  ;;  %v7784_v14 = vld [vmem:[%s13625_s5 + $0x88] sm:$0xff] }
 0x4b5   :  { %9721 = vrot.lane.b32.xlu1 %v9720_v2, %s9805_s12  ;;  %v3941_v2 = vadd.f32 %v12316_v20, %v3892_v28  ;;  %v7775_v28 = vld [vmem:[%s13625_s5 + $0x40] sm:$0xff] }
 0x4b6   :  { %v4021_v63 = vpop.f32.mrf.mxu3  ;;  %v3979_v38 = vpop.f32.mrf.mxu2 }
 0x4b7   :  { %v4022_v34 = vadd.f32 %v4021_v63, %v3973_v8  ;;  %v3980_v41 = vadd.f32 %v3979_v38, %v3931_v54  ;;  %v7771_v38 = vld [vmem:[%s13625_s5 + $0x20] sm:$0xff]  ;;  %v7769_v54 = vld [vmem:[%s13625_s5 + $0x10] sm:$0xff] }
 0x4b8   :  { %4518 = vmatpush.bf16.msrb.mxu2 %v7771_v38  ;;  %v7783_v38 = vld [vmem:[%s13625_s5 + $0x80] sm:$0xff] }
 0x4b9   :  { %v4055_v13 = vmax.f32 %v4022_v34, 0.0 }
 0x4bb   :  { %4071 = vst.msk [vmem:[#allocation3 + $0x20] sm:$0xff] %vm1643_vm0, %v4055_v13 }
 0x4be   :  { %v4023_v58 = vpop.f32.mrf.mxu3  ;;  %v3982_v50 = vpop.f32.mrf.mxu2 }
 0x4bf   :  { %v4024_v31 = vadd.f32 %v4023_v58, %v3975_v44  ;;  %v3983_v56 = vadd.f32 %v3982_v50, %v12192_v12 }
 0x4c1   :  { %v4056_v6 = vmax.f32 %v4024_v31, 0.0  ;;  %v7782_v31 = vld [vmem:[%s13625_s5 + $0x78] sm:$0xff] }
 0x4c2   :  { %v12383_v51 = vld [vmem:[#allocation3 + $0x20] sm:$0xff]  ;;  %4534 = vmatpush.bf16.msrb.mxu3 %v7782_v31 }
 0x4c3   :  { %4072 = vst.msk [vmem:[#allocation3 + $0x28] sm:$0xff] %vm1643_vm0, %v4056_v6 }
 0x4c6   :  { %v4026_v55 = vpop.f32.mrf.mxu3  ;;  %v3984_v5 = vpop.f32.mrf.mxu2 }
 0x4c7   :  { %v4027_v22 = vadd.f32 %v4026_v55, %v3978_v52  ;;  %v3985_v42 = vadd.f32 %v3984_v5, %v3936_v27 }
 0x4c9   :  { %v4057_v35 = vmax.f32 %v4027_v22, 0.0  ;;  %v7770_v22 = vld [vmem:[%s13625_s5 + $0x18] sm:$0xff] }
 0x4ca   :  { %v12385_v47 = vld [vmem:[#allocation3 + $0x28] sm:$0xff]  ;;  %4519 = vmatpush.bf16.msrb.mxu2 %v7770_v22  ;;  %v7795_v22 = vld [vmem:[%s13625_s5 + $0xe0] sm:$0xff] }
 0x4cb   :  { %4073 = vst.msk [vmem:[#allocation3 + $0x30] sm:$0xff] %vm1643_vm0, %v4057_v35  ;;  %v9730_v25 = vpack.i.bf16 %v12385_v47, %v12383_v51 }
 0x4cd   :  { %9731 = vrot.lane.b32.xlu0 %v9730_v25, %s9805_s12 }
 0x4ce   :  { %v4028_v46 = vpop.f32.mrf.mxu3  ;;  %v3987_v45 = vpop.f32.mrf.mxu2  ;;  %4520 = vmatpush.bf16.msrb.mxu2 %v7769_v54  ;;  %v7793_v54 = vld [vmem:[%s13625_s5 + $0xd0] sm:$0xff] }
 0x4cf   :  { %v4029_v36 = vadd.f32 %v4028_v46, %v3980_v41  ;;  %v3988_v26 = vadd.f32 %v3987_v45, %v12250_v1 }
 0x4d1   :  { %v4058_v48 = vmax.f32 %v4029_v36, 0.0 }
 0x4d2   :  { %v12392_v49 = vld [vmem:[#allocation3 + $0x30] sm:$0xff] }
 0x4d3   :  { %4074 = vst.msk [vmem:[#allocation3 + $0x38] sm:$0xff] %vm1643_vm0, %v4058_v48  ;;  %v9725_v17 = vpack.i.bf16 %v12392_v49, %v12385_v47 }
 0x4d5   :  { %9726 = vrot.lane.b32.xlu2 %v9725_v17, %s9805_s12  ;;  %v7767_v17 = vld [vmem:[%s13625_s5] sm:$0xff] }
 0x4d6   :  { %v4031_v18 = vpop.f32.mrf.mxu3  ;;  %v3989_v30 = vpop.f32.mrf.mxu2 }
 0x4d7   :  { %v4032_v39 = vadd.f32 %v4031_v18, %v3983_v56  ;;  %v3990_v9 = vadd.f32 %v3989_v30, %v3941_v2  ;;  %v7781_v56 = vld [vmem:[%s13625_s5 + $0x70] sm:$0xff]  ;;  %v7786_v2 = vld [vmem:[%s13625_s5 + $0x98] sm:$0xff] }
 0x4d8   :  { %4535 = vmatpush.bf16.msrb.mxu3 %v7781_v56  ;;  %v7777_v30 = vld [vmem:[%s13625_s5 + $0x50] sm:$0xff] }
 0x4d9   :  { %v4059_v11 = vmax.f32 %v4032_v39, 0.0  ;;  %v3902_v39 = vadd.f32 %v12189_v0, %v12330_v7 }
 0x4da   :  { %v12401_v32 = vld [vmem:[#allocation3 + $0x38] sm:$0xff] }
 0x4db   :  { %4075 = vst.msk [vmem:[#allocation3 + $0x40] sm:$0xff] %vm1643_vm0, %v4059_v11  ;;  %v9735_v53 = vpack.i.bf16 %v12401_v32, %v12392_v49  ;;  %v3951_v27 = vadd.f32 %v12353_v16, %v3902_v39  ;;  %v7789_v16 = vld [vmem:[%s13625_s5 + $0xb0] sm:$0xff] }
 0x4dd   :  { %9736 = vrot.lane.b32.xlu1 %v9735_v53, %s9805_s12 }
 0x4de   :  { %v4033_v12 = vpop.f32.mrf.mxu3  ;;  %v3992_v34 = vpop.f32.mrf.mxu2 }
 0x4df   :  { %v4034_v4 = vadd.f32 %v4033_v12, %v3985_v42  ;;  %v3993_v44 = vadd.f32 %v3992_v34, %v12321_v24  ;;  %v3897_v24 = vadd.f32 %v12189_v0, %v12319_v62  ;;  %v7768_v62 = vld [vmem:[%s13625_s5 + $0x8] sm:$0xff]  ;;  %v7779_v42 = vld [vmem:[%s13625_s5 + $0x60] sm:$0xff]  ;;  %v7790_v0 = vld [vmem:[%s13625_s5 + $0xb8] sm:$0xff] }
 0x4e0   :  { %4521 = vmatpush.bf16.msrb.mxu2 %v7768_v62  ;;  %v7778_v12 = vld [vmem:[%s13625_s5 + $0x58] sm:$0xff] }
 0x4e1   :  { %v4060_v37 = vmax.f32 %v4034_v4, 0.0  ;;  %v3946_v35 = vadd.f32 %v12340_v40, %v3897_v24  ;;  %v7798_v34 = vld [vmem:[%s13625_s5 + $0xf8] sm:$0xff] }
 0x4e2   :  { %v12415_v59 = vld [vmem:[#allocation3 + $0x40] sm:$0xff] }
 0x4e3   :  { %4076 = vst.msk [vmem:[#allocation3 + $0x48] sm:$0xff] %vm1643_vm0, %v4060_v37 }
 0x4e4   :  { %4522 = vmatpush.bf16.msrb.mxu2 %v7767_v17 }
 0x4e6   :  { %v4036_v19 = vpop.f32.mrf.mxu3  ;;  %v3994_v52 = vpop.f32.mrf.mxu2 }
 0x4e7   :  { %v4037_v57 = vadd.f32 %v4036_v19, %v3988_v26  ;;  %v3995_v25 = vadd.f32 %v3994_v52, %v3946_v35  ;;  %v7776_v19 = vld [vmem:[%s13625_s5 + $0x48] sm:$0xff] }
 0x4e8   :  { %4553 = vmatpush.bf16.msra.mxu2 %v7790_v0  ;;  %v7796_v52 = vld [vmem:[%s13625_s5 + $0xe8] sm:$0xff]  ;;  %v7802_v0 = vld [vmem:[%s13625_s5 + $0x118] sm:$0xff] }
 0x4e9   :  { %v4061_v10 = vmax.f32 %v4037_v57, 0.0  ;;  %v7788_v57 = vld [vmem:[%s13625_s5 + $0xa8] sm:$0xff] }
 0x4ea   :  { %v12417_v43 = vld [vmem:[#allocation3 + $0x48] sm:$0xff] }
 0x4eb   :  { %4077 = vst.msk [vmem:[#allocation3 + $0x50] sm:$0xff] %vm1643_vm0, %v4061_v10  ;;  %v9740_v1 = vpack.i.bf16 %v12417_v43, %v12415_v59  ;;  %v7787_v10 = vld [vmem:[%s13625_s5 + $0xa0] sm:$0xff] }
 0x4ec   :  { %4554 = vmatpush.bf16.msra.mxu2 %v7789_v16 }
 0x4ed   :  { %9741 = vrot.lane.b32.xlu2 %v9740_v1, %s9805_s12 }
 0x4ee   :  { %v4038_v8 = vpop.f32.mrf.mxu3 }
 0x4ef   :  { %v4039_v63 = vadd.f32 %v4038_v8, %v3990_v9 }
 0x4f0   :  { %4555 = vmatpush.bf16.msra.mxu2 %v7788_v57 }
 0x4f1   :  { %v4062_v61 = vmax.f32 %v4039_v63, 0.0  ;;  %v7785_v63 = vld [vmem:[%s13625_s5 + $0x90] sm:$0xff] }
 0x4f2   :  { %v12427_v13 = vld [vmem:[#allocation3 + $0x50] sm:$0xff] }
 0x4f3   :  { %4078 = vst.msk [vmem:[#allocation3 + $0x58] sm:$0xff] %vm1643_vm0, %v4062_v61  ;;  %v9750_v20 = vpack.i.bf16 %v12427_v13, %v12417_v43 }
 0x4f4   :  { %4556 = vmatpush.bf16.msra.mxu2 %v7787_v10 }
 0x4f5   :  { %9751 = vrot.lane.b32.xlu1 %v9750_v20, %s9805_s12 }
 0x4f8   :  { %v4041_v58 = vpop.f32.mrf.mxu3  ;;  %4557 = vmatpush.bf16.msra.mxu2 %v7786_v2 }
 0x4f9   :  { %v4042_v6 = vadd.f32 %v4041_v58, %v3993_v44  ;;  %v7797_v58 = vld [vmem:[%s13625_s5 + $0xf0] sm:$0xff] }
 0x4fa   :  { %v12443_v55 = vld [vmem:[#allocation3 + $0x58] sm:$0xff] }
 0x4fb   :  { %v4063_v50 = vmax.f32 %v4042_v6, 0.0  ;;  %v9745_v29 = vpack.i.bf16 %v12443_v55, %v12427_v13 }
 0x4fc   :  { %4558 = vmatpush.bf16.msra.mxu2 %v7785_v63 }
 0x4fd   :  { %4079 = vst.msk [vmem:[#allocation3 + $0x60] sm:$0xff] %vm1643_vm0, %v4063_v50  ;;  %9746 = vrot.lane.b32.xlu0 %v9745_v29, %s9805_s12  ;;  %v7794_v29 = vld [vmem:[%s13625_s5 + $0xd8] sm:$0xff] }
 0x500   :  { %v4043_v41 = vpop.f32.mrf.mxu3  ;;  %v3997_v36 = vpop.f32.mrf.mxu2  ;;  %4559 = vmatpush.bf16.msra.mxu2 %v7784_v14 }
 0x501   :  { %v4044_v46 = vadd.f32 %v4043_v41, %v3995_v25  ;;  %v3998_v40 = vadd.f32 %v3997_v36, %v12351_v3  ;;  %v7780_v3 = vld [vmem:[%s13625_s5 + $0x68] sm:$0xff]  ;;  %v4094_v36 = vld [vmem:[#allocation3 + $0x18] sm:$0xff] }
 0x502   :  { %4536 = vmatpush.bf16.msrb.mxu3 %v7780_v3 }
 0x503   :  { %v4064_v48 = vmax.f32 %v4044_v46, 0.0 }
 0x504   :  { %4560 = vmatpush.bf16.msra.mxu2 %v7783_v38 }
 0x505   :  { %4080 = vst.msk [vmem:[#allocation3 + $0x68] sm:$0xff] %vm1643_vm0, %v4064_v48  ;;  %v7792_v48 = vld [vmem:[%s13625_s5 + $0xc8] sm:$0xff] }
 0x506   :  { %4537 = vmatpush.bf16.msrb.mxu3 %v7779_v42 }
 0x508   :  { %v4046_v5 = vpop.f32.mrf.mxu3  ;;  %v3999_v11 = vpop.f32.mrf.mxu2 }
 0x509   :  { %v4047_v18 = vadd.f32 %v4046_v5, %v3998_v40  ;;  %v4000_v53 = vadd.f32 %v3999_v11, %v3951_v27  ;;  %v7791_v5 = vld [vmem:[%s13625_s5 + $0xc0] sm:$0xff] }
 0x50a   :  { %4538 = vmatpush.bf16.msrb.mxu3 %v7778_v12 }
 0x50b   :  { %v4065_v15 = vmax.f32 %v4047_v18, 0.0 }
 0x50c   :  { %v12488_v37 = vld [vmem:[#allocation3 + $0x68] sm:$0xff] }
 0x50d   :  { %4081 = vst.msk [vmem:[#allocation3 + $0x70] sm:$0xff] %vm1643_vm0, %v4065_v15 }
 0x50e   :  { %4539 = vmatpush.bf16.msrb.mxu3 %v7777_v30 }
 0x510   :  { %v4048_v45 = vpop.f32.mrf.mxu3 }
 0x511   :  { %v4049_v7 = vadd.f32 %v4048_v45, %v4000_v53 }
 0x512   :  { %4540 = vmatpush.bf16.msrb.mxu3 %v7776_v19 }
 0x513   :  { %v4066_v4 = vmax.f32 %v4049_v7, 0.0  ;;  %v7801_v7 = vld [vmem:[%s13625_s5 + $0x110] sm:$0xff] }
 0x514   :  { %v12490_v26 = vld [vmem:[#allocation3 + $0x70] sm:$0xff] }
 0x515   :  { %4082 = vst.msk [vmem:[#allocation3 + $0x78] sm:$0xff] %vm1643_vm0, %v4066_v4  ;;  %v9755_v21 = vpack.i.bf16 %v12490_v26, %v12488_v37 }
 0x516   :  { %4541 = vmatpush.bf16.msrb.mxu3 %v7775_v28 }
 0x517   :  { %9756 = vrot.lane.b32.xlu2 %v9755_v21, %s9805_s12 }
 0x51a   :  { %4572 = vmatpush.bf16.msra.mxu3 %v7798_v34  ;;  %v4115_v34 = vld [vmem:[#allocation3 + $0x60] sm:$0xff] }
 0x51e   :  { %4573 = vmatpush.bf16.msra.mxu3 %v7797_v58 }
 0x522   :  { %4574 = vmatpush.bf16.msra.mxu3 %v7796_v52 }
 0x526   :  { %4575 = vmatpush.bf16.msra.mxu3 %v7795_v22 }
 0x527   :  { %v9722_v1 = vpop.permute.xlu1 %9721 }
 0x528   :  { %v9724_v9 = vunpack.i.h.bf16 %v9722_v1  ;;  %v9723_v8 = vunpack.i.l.bf16 %v9722_v1 }
 0x52a   :  { %v4191_v61 = vsel %vm1643_vm0, %v4083_v33, %v9723_v8  ;;  %v4192_v20 = vsel %vm1643_vm0, %v12366_v60, %v9724_v9  ;;  %4576 = vmatpush.bf16.msra.mxu3 %v7794_v29 }
 0x52b   :  { %v4207_v44 = vpack.c.bf16 %v4192_v20, %v4191_v61  ;;  %v4211_v20 = vpack.c.bf16 %v12443_v55, %v12427_v13 }
 0x52d   :  { %4523 = vmatmul.bf16.vlgmr.msrb.gmra.mxu2 %v4207_v44 }
 0x52e   :  { %4577 = vmatpush.bf16.msra.mxu3 %v7793_v54  ;;  %4595 = vmatpush.bf16.msrb.mxu2 %v7802_v0  ;;  %v7919_v0 = vld [vmem:[%s13627_s7 + $0x39c] sm:$0xf0] }
 0x52f   :  { %v9727_v31 = vpop.permute.xlu2 %9726 }
 0x530   :  { %v9729_v60 = vunpack.i.h.bf16 %v9727_v31  ;;  %v9728_v6 = vunpack.i.l.bf16 %v9727_v31 }
 0x532   :  { %v4193_v24 = vsel %vm1643_vm0, %v12383_v51, %v9728_v6  ;;  %v4194_v50 = vsel %vm1643_vm0, %v12385_v47, %v9729_v60  ;;  %4578 = vmatpush.bf16.msra.mxu3 %v7792_v48  ;;  %4596 = vmatpush.bf16.msrb.mxu2 %v7801_v7 }
 0x533   :  { %v4212_v35 = vpack.c.bf16 %v4194_v50, %v4193_v24 }
 0x536   :  { %4579 = vmatpush.bf16.msra.mxu3 %v7791_v5 }
 0x53d   :  { %4528 = vmatmul.bf16.gmra.mxu2 %v4212_v35 }
 0x53f   :  { %v9732_v25 = vpop.permute.xlu0 %9731 }
 0x540   :  { %v9734_v41 = vunpack.i.h.bf16 %v9732_v25  ;;  %v9733_v46 = vunpack.i.l.bf16 %v9732_v25 }
 0x542   :  { %v4195_v51 = vsel %vm1643_vm0, %v12368_v23, %v9733_v46  ;;  %v4196_v62 = vsel %vm1643_vm0, %v4094_v36, %v9734_v41 }
 0x543   :  { %v4208_v40 = vpack.c.bf16 %v4196_v62, %v4195_v51 }
 0x545   :  { %4542 = vmatmul.bf16.vlgmr.msrb.gmra.mxu3 %v4208_v40 }
 0x547   :  { %v9742_v17 = vpop.permute.xlu2 %9741 }
 0x548   :  { %v9744_v56 = vunpack.i.h.bf16 %v9742_v17  ;;  %v9743_v18 = vunpack.i.l.bf16 %v9742_v17  ;;  %v7177_v17 = vld [vmem:[%s13627_s7 + $0x1c0] sm:$0xf] }
 0x54a   :  { %v4197_v11 = vsel %vm1643_vm0, %v12392_v49, %v9743_v18  ;;  %v4198_v3 = vsel %vm1643_vm0, %v12401_v32, %v9744_v56  ;;  %v7863_v56 = vld [vmem:[%s13627_s7 + $0x1dc] sm:$0xf0] }
 0x54b   :  { %v4213_v42 = vpack.c.bf16 %v4198_v3, %v4197_v11  ;;  %v7433_v18 = vld [vmem:[%s13627_s7 + $0x3c0] sm:$0xf] }
 0x54c   :  { %v7145_v11 = vld [vmem:[%s13627_s7 + $0x180] sm:$0xf] }
 0x54d   :  { %v7855_v3 = vld [vmem:[%s13627_s7 + $0x19c] sm:$0xf0] }
 0x54f   :  { %v9737_v39 = vpop.permute.xlu1 %9736 }
 0x550   :  { %v9739_v23 = vunpack.i.h.bf16 %v9737_v39  ;;  %v9738_v15 = vunpack.i.l.bf16 %v9737_v39 }
 0x552   :  { %v4200_v27 = vsel %vm1643_vm0, %v12392_v49, %v9739_v23  ;;  %v4199_v53 = vsel %vm1643_vm0, %v12385_v47, %v9738_v15  ;;  %v7800_v49 = vld [vmem:[%s13625_s5 + $0x108] sm:$0xff]  ;;  %v7799_v47 = vld [vmem:[%s13625_s5 + $0x100] sm:$0xff]  ;;  %v7178_v23 = vor.u32 %v7863_v56, %v7177_v17 }
 0x553   :  { %v4209_v45 = vpack.c.bf16 %v4200_v27, %v4199_v53  ;;  %4597 = vmatpush.bf16.msrb.mxu2 %v7800_v49  ;;  %v7927_v15 = vld [vmem:[%s13627_s7 + $0x3dc] sm:$0xf0]  ;;  %v7146_v49 = vor.u32 %v7855_v3, %v7145_v11  ;;  %v7859_v56 = vld [vmem:[%s13627_s7 + $0x1c4] sm:$0xf] }
 0x554   :  { %5423 = vmatpush.bf16.msrb.mxu3 %v7178_v23  ;;  %v7871_v17 = vld [vmem:[%s13627_s7 + $0x21c] sm:$0xf0]  ;;  %v7435_v23 = vld [vmem:[%s13627_s7 + $0x3e0] sm:$0xf0] }
 0x555   :  { %4547 = vmatmul.bf16.gmra.mxu3 %v4213_v42  ;;  %4561 = vmatmul.bf16.vlgmr.msra.gmra.mxu2 %v4209_v45  ;;  %v7434_v45 = vor.u32 %v7927_v15, %v7433_v18  ;;  %v7401_v42 = vld [vmem:[%s13627_s7 + $0x380] sm:$0xf]  ;;  %v7179_v18 = vld [vmem:[%s13627_s7 + $0x1e0] sm:$0xf0] }
 0x557   :  { %4598 = vmatpush.bf16.msrb.mxu2 %v7799_v47 }
 0x558   :  { %5424 = vmatpush.bf16.msrb.mxu3 %v7146_v49  ;;  %v7915_v49 = vld [vmem:[%s13627_s7 + $0x384] sm:$0xf] }
 0x55b   :  { %5436 = vmatpush.bf16.msra.mxu2 %v7434_v45 }
 0x567   :  { %v9752_v32 = vpop.permute.xlu1 %9751 }
 0x568   :  { %v9754_v12 = vunpack.i.h.bf16 %v9752_v32  ;;  %v9753_v16 = vunpack.i.l.bf16 %v9752_v32 }
 0x56a   :  { %v4204_v4 = vsel %vm1643_vm0, %v12417_v43, %v9754_v12  ;;  %v4203_v21 = vsel %vm1643_vm0, %v12415_v59, %v9753_v16  ;;  %v7402_v12 = vor.u32 %v7919_v0, %v7401_v42  ;;  %v7113_v16 = vld [vmem:[%s13627_s7 + $0x140] sm:$0xf]  ;;  %v7851_v42 = vld [vmem:[%s13627_s7 + $0x184] sm:$0xf] }
 0x56b   :  { %v4210_v30 = vpack.c.bf16 %v4204_v4, %v4203_v21  ;;  %v7847_v4 = vld [vmem:[%s13627_s7 + $0x15c] sm:$0xf0] }
 0x56c   :  { %v7369_v21 = vld [vmem:[%s13627_s7 + $0x340] sm:$0xf]  ;;  %5437 = vmatpush.bf16.msra.mxu2 %v7402_v12 }
 0x56d   :  { %4580 = vmatmul.bf16.vlgmr.msra.gmra.mxu3 %v4210_v30  ;;  %v7911_v30 = vld [vmem:[%s13627_s7 + $0x35c] sm:$0xf0] }
 0x56f   :  { %v9747_v19 = vpop.permute.xlu0 %9746 }
 0x570   :  { %v9749_v57 = vunpack.i.h.bf16 %v9747_v19  ;;  %v9748_v28 = vunpack.i.l.bf16 %v9747_v19 }
 0x571   :  { %v9757_v10 = vpop.permute.xlu2 %9756 }
 0x572   :  { %v4201_v2 = vsel %vm1643_vm0, %v12417_v43, %v9748_v28  ;;  %v4202_v1 = vsel %vm1643_vm0, %v12427_v13, %v9749_v57  ;;  %v9759_v8 = vunpack.i.h.bf16 %v9757_v10  ;;  %v9758_v63 = vunpack.i.l.bf16 %v9757_v10  ;;  %v4126_v43 = vld [vmem:[#allocation3 + $0x78] sm:$0xff]  ;;  %v9769_v13 = vld [vmem:[%s13626_s6] ss:$0 sm:$0xff] }
 0x573   :  { %v4214_v9 = vpack.c.bf16 %v4202_v1, %v4201_v2  ;;  %v4216_v14 = vpack.c.bf16 %v4126_v43, %v12490_v26  ;;  %v7114_v57 = vor.u32 %v7847_v4, %v7113_v16  ;;  %v7370_v10 = vor.u32 %v7911_v30, %v7369_v21  ;;  %v7081_v2 = vld [vmem:[%s13627_s7 + $0x100] sm:$0xf]  ;;  %v7843_v16 = vld [vmem:[%s13627_s7 + $0x144] sm:$0xf] }
 0x574   :  { %v4205_v33 = vsel %vm1643_vm0, %v4115_v34, %v9758_v63  ;;  %v4206_v59 = vsel %vm1643_vm0, %v12488_v37, %v9759_v8  ;;  %v7839_v1 = vld [vmem:[%s13627_s7 + $0x11c] sm:$0xf0]  ;;  %v7115_v4 = vld [vmem:[%s13627_s7 + $0x160] sm:$0xf0] }
 0x575   :  { %4566 = vmatmul.bf16.gmra.mxu2 %v4214_v9  ;;  %v4215_v61 = vpack.c.bf16 %v4206_v59, %v4205_v33  ;;  %v7337_v8 = vld [vmem:[%s13627_s7 + $0x300] sm:$0xf]  ;;  %5425 = vmatpush.bf16.msrb.mxu3 %v7114_v57  ;;  %v7082_v59 = vor.u32 %v7839_v1, %v7081_v2  ;;  %v7907_v21 = vld [vmem:[%s13627_s7 + $0x344] sm:$0xf] }
 0x576   :  { %v7903_v63 = vld [vmem:[%s13627_s7 + $0x31c] sm:$0xf0]  ;;  %5438 = vmatpush.bf16.msra.mxu2 %v7370_v10  ;;  %v7371_v30 = vld [vmem:[%s13627_s7 + $0x360] sm:$0xf0] }
 0x577   :  { %v7338_v43 = vor.u32 %v7903_v63, %v7337_v8  ;;  %v7374_v57 = vor.u32 %v7907_v21, %v7371_v30  ;;  %v7083_v10 = vld [vmem:[%s13627_s7 + $0x120] sm:$0xf0]  ;;  %v7904_v21 = vld [vmem:[%s13627_s7 + $0x324] sm:$0xf0] }
 0x578   :  { %v7899_v2 = vld [vmem:[%s13627_s7 + $0x304] sm:$0xf] }
 0x579   :  { %5426 = vmatpush.bf16.msrb.mxu3 %v7082_v59  ;;  %v7339_v1 = vld [vmem:[%s13627_s7 + $0x320] sm:$0xf0] }
 0x57a   :  { %5439 = vmatpush.bf16.msra.mxu2 %v7338_v43  ;;  %v7342_v8 = vor.u32 %v7899_v2, %v7339_v1  ;;  %v7827_v63 = vld [vmem:[%s13627_s7 + $0xc4] sm:$0xf]  ;;  %v7896_v2 = vld [vmem:[%s13627_s7 + $0x2e4] sm:$0xf0] }
 0x57b   :  { %v7307_v59 = vld [vmem:[%s13627_s7 + $0x2e0] sm:$0xf0] }
 0x57c   :  { %v7819_v43 = vld [vmem:[%s13627_s7 + $0x84] sm:$0xf] }
 0x57d   :  { %4585 = vmatmul.bf16.gmra.mxu3 %v4215_v61 }
 0x585   :  { %6949 = vmatmul.msk.bf16.vlgmr.msrb.gmra.mxu2 %vm1643_vm0, %v4211_v20 }
 0x595   :  { %6950 = vmatmul.msk.bf16.gmra.mxu2 %vm1643_vm0, %v4216_v14  ;;  %v7049_v14 = vld [vmem:[%s13627_s7 + $0xc0] sm:$0xf] }
 0x5b0   :  { %v4524_v44 = vpop.f32.mrf.mxu2 }
 0x5b1   :  { %v4525_v26 = vadd.f32 %v9769_v13, %v4524_v44  ;;  %v7831_v44 = vld [vmem:[%s13627_s7 + $0xdc] sm:$0xf0] }
 0x5b8   :  { %v4526_v38 = vpop.f32.mrf.mxu2 }
 0x5b9   :  { %v4527_v36 = vadd.f32 %v9769_v13, %v4526_v38 }
 0x5c0   :  { %v4529_v58 = vpop.f32.mrf.mxu2 }
 0x5c1   :  { %v4530_v27 = vadd.f32 %v9769_v13, %v4529_v58  ;;  %v7305_v58 = vld [vmem:[%s13627_s7 + $0x2c0] sm:$0xf] }
 0x5c8   :  { %v4543_v31 = vpop.f32.mrf.mxu3  ;;  %v4531_v60 = vpop.f32.mrf.mxu2 }
 0x5c9   :  { %v4544_v35 = vadd.f32 %v4543_v31, %v4525_v26  ;;  %v4532_v34 = vadd.f32 %v9769_v13, %v4531_v60  ;;  %v7895_v31 = vld [vmem:[%s13627_s7 + $0x2dc] sm:$0xf0] }
 0x5ca   :  { %v7273_v13 = vld [vmem:[%s13627_s7 + $0x280] sm:$0xf] }
 0x5d0   :  { %v4545_v6 = vpop.f32.mrf.mxu3 }
 0x5d1   :  { %v4546_v62 = vadd.f32 %v4545_v6, %v4527_v36  ;;  %v7050_v6 = vor.u32 %v7831_v44, %v7049_v14  ;;  %v7879_v36 = vld [vmem:[%s13627_s7 + $0x25c] sm:$0xf0]  ;;  %v7019_v14 = vld [vmem:[%s13627_s7 + $0xa0] sm:$0xf0] }
 0x5d2   :  { %v7883_v44 = vld [vmem:[%s13627_s7 + $0x284] sm:$0xf] }
 0x5d3   :  { %5427 = vmatpush.bf16.msrb.mxu3 %v7050_v6  ;;  %v6987_v6 = vld [vmem:[%s13627_s7 + $0x60] sm:$0xf0] }
 0x5d8   :  { %v4562_v52 = vpop.f32.mrf.mxu2  ;;  %v4548_v37 = vpop.f32.mrf.mxu3 }
 0x5d9   :  { %v4563_v54 = vadd.f32 %v4562_v52, %v4544_v35  ;;  %v4549_v47 = vadd.f32 %v4548_v37, %v4530_v27  ;;  %v7306_v37 = vor.u32 %v7895_v31, %v7305_v58  ;;  %v7022_v58 = vor.u32 %v7819_v43, %v7019_v14  ;;  %v7816_v43 = vld [vmem:[%s13627_s7 + $0x64] sm:$0xf0] }
 0x5da   :  { %v7249_v14 = vld [vmem:[%s13627_s7 + $0x248] sm:$0xf] }
 0x5db   :  { %5440 = vmatpush.bf16.msra.mxu2 %v7306_v37 }
 0x5e0   :  { %v4564_v22 = vpop.f32.mrf.mxu2  ;;  %v4550_v24 = vpop.f32.mrf.mxu3 }
 0x5e1   :  { %v4565_v40 = vadd.f32 %v4564_v22, %v4546_v62  ;;  %v4551_v61 = vadd.f32 %v4550_v24, %v4532_v34  ;;  %v7017_v22 = vld [vmem:[%s13627_s7 + $0x80] sm:$0xf]  ;;  %v7051_v34 = vld [vmem:[%s13627_s7 + $0xe0] sm:$0xf0] }
 0x5e2   :  { %v7823_v24 = vld [vmem:[%s13627_s7 + $0x9c] sm:$0xf0] }
 0x5e3   :  { %v7018_v26 = vor.u32 %v7823_v24, %v7017_v22  ;;  %v7243_v22 = vld [vmem:[%s13627_s7 + $0x260] sm:$0xf0] }
 0x5e5   :  { %5428 = vmatpush.bf16.msrb.mxu3 %v7018_v26  ;;  %v7211_v26 = vld [vmem:[%s13627_s7 + $0x220] sm:$0xf0] }
 0x5f0   :  { %v4581_v55 = vpop.f32.mrf.mxu3 }
 0x5f1   :  { %v4582_v25 = vadd.f32 %v4581_v55, %v4563_v54  ;;  %v7887_v55 = vld [vmem:[%s13627_s7 + $0x29c] sm:$0xf0] }
 0x5f2   :  { %v7274_v54 = vor.u32 %v7887_v55, %v7273_v13  ;;  %v6955_v13 = vld [vmem:[%s13627_s7 + $0x20] sm:$0xf0] }
 0x5f3   :  { %v7867_v55 = vld [vmem:[%s13627_s7 + $0x204] sm:$0xf] }
 0x5f4   :  { %5441 = vmatpush.bf16.msra.mxu2 %v7274_v54  ;;  %v7185_v54 = vld [vmem:[%s13627_s7 + $0x1c8] sm:$0xf] }
 0x5f8   :  { %v4567_v50 = vpop.f32.mrf.mxu2  ;;  %v4583_v41 = vpop.f32.mrf.mxu3 }
 0x5f9   :  { %v4584_v5 = vadd.f32 %v4583_v41, %v4565_v40  ;;  %v4568_v19 = vadd.f32 %v4567_v50, %v4549_v47  ;;  %v7815_v41 = vld [vmem:[%s13627_s7 + $0x5c] sm:$0xf0]  ;;  %v7403_v47 = vld [vmem:[%s13627_s7 + $0x3a0] sm:$0xf0] }
 0x5fa   :  { %v7807_v40 = vld [vmem:[%s13627_s7 + $0x1c] sm:$0xf0]  ;;  %v7406_v12 = vor.u32 %v7915_v49, %v7403_v47  ;;  %v7912_v49 = vld [vmem:[%s13627_s7 + $0x364] sm:$0xf0] }
 0x600   :  { %v12596_v29 = vpop.f32.mrf.mxu2  ;;  %v4586_v7 = vpop.f32.mrf.mxu3 }
 0x601   :  { %v4587_v28 = vadd.f32 %v4586_v7, %v4568_v19  ;;  %v4570_v60 = vadd.f32 %v12596_v29, %v4551_v61  ;;  %v7147_v7 = vld [vmem:[%s13627_s7 + $0x1a0] sm:$0xf0]  ;;  %v7118_v19 = vor.u32 %v7843_v16, %v7115_v4  ;;  %v7054_v61 = vor.u32 %v7827_v63, %v7051_v34  ;;  %v7840_v16 = vld [vmem:[%s13627_s7 + $0x124] sm:$0xf0] }
 0x602   :  { %v7345_v4 = vld [vmem:[%s13627_s7 + $0x308] sm:$0xf] }
 0x603   :  { %v7824_v63 = vld [vmem:[%s13627_s7 + $0xa4] sm:$0xf0] }
 0x604   :  { %v7281_v34 = vld [vmem:[%s13627_s7 + $0x288] sm:$0xf] }
 0x608   :  { %v4600_v46 = vpop.f32.mrf.mxu2  ;;  %v4588_v38 = vpop.f32.mrf.mxu3 }
 0x609   :  { %v4601_v51 = vadd.f32 %v4600_v46, %v4582_v25  ;;  %v4589_v52 = vadd.f32 %v4588_v38, %v4570_v60  ;;  %v6985_v25 = vld [vmem:[%s13627_s7 + $0x40] sm:$0xf]  ;;  %v7275_v38 = vld [vmem:[%s13627_s7 + $0x2a0] sm:$0xf0] }
 0x60a   :  { %v7241_v46 = vld [vmem:[%s13627_s7 + $0x240] sm:$0xf]  ;;  %v7278_v31 = vor.u32 %v7883_v44, %v7275_v38  ;;  %v7811_v60 = vld [vmem:[%s13627_s7 + $0x44] sm:$0xf]  ;;  %v7880_v44 = vld [vmem:[%s13627_s7 + $0x264] sm:$0xf0] }
 0x60b   :  { %v4610_v48 = vmax.f32 %v4601_v51, 0.0  ;;  %v6986_v51 = vor.u32 %v7815_v41, %v6985_v25  ;;  %v7242_v62 = vor.u32 %v7879_v36, %v7241_v46  ;;  %v6990_v37 = vor.u32 %v7811_v60, %v6987_v6  ;;  %v7864_v41 = vld [vmem:[%s13627_s7 + $0x1e4] sm:$0xf0] }
 0x60c   :  { %v7441_v46 = vld [vmem:[%s13627_s7 + $0x3c8] sm:$0xf] }
 0x60d   :  { %4614 = vst.msk [vmem:[#allocation4] sm:$0xff] %vm1643_vm0, %v4610_v48  ;;  %v6953_v48 = vld [vmem:[%s13627_s7] sm:$0xf]  ;;  %5429 = vmatpush.bf16.msrb.mxu3 %v6986_v51  ;;  %5442 = vmatpush.bf16.msra.mxu2 %v7242_v62  ;;  %v7928_v36 = vld [vmem:[%s13627_s7 + $0x3e4] sm:$0xf0] }
 0x60e   :  { %v6954_v15 = vor.u32 %v7807_v40, %v6953_v48  ;;  %v7808_v60 = vld [vmem:[%s13627_s7 + $0x24] sm:$0xf0] }
 0x60f   :  { %v7217_v6 = vld [vmem:[%s13627_s7 + $0x208] sm:$0xf] }
 0x610   :  { %v4602_v39 = vpop.f32.mrf.mxu2 }
 0x611   :  { %v4603_v53 = vadd.f32 %v4602_v39, %v4584_v5  ;;  %v7209_v5 = vld [vmem:[%s13627_s7 + $0x200] sm:$0xf]  ;;  %v7923_v39 = vld [vmem:[%s13627_s7 + $0x3c4] sm:$0xf]  ;;  %5430 = vmatpush.bf16.msrb.mxu3 %v6954_v15 }
 0x612   :  { %v7210_v11 = vor.u32 %v7871_v17, %v7209_v5  ;;  %v7438_v45 = vor.u32 %v7923_v39, %v7435_v23  ;;  %v7153_v39 = vld [vmem:[%s13627_s7 + $0x188] sm:$0xf] }
 0x613   :  { %v4611_v32 = vmax.f32 %v4603_v53, 0.0  ;;  %v7182_v53 = vor.u32 %v7859_v56, %v7179_v18  ;;  %v7186_v56 = vor.u32 %v7864_v41, %v7185_v54  ;;  %v7442_v18 = vor.u32 %v7928_v36, %v7441_v46  ;;  %v7155_v54 = vld [vmem:[%s13627_s7 + $0x1a8] sm:$0xf0] }
 0x614   :  { %5443 = vmatpush.bf16.msra.mxu2 %v7210_v11  ;;  %v4618_v40 = vld [vmem:[#allocation4] sm:$0xff]  ;;  %v7856_v11 = vld [vmem:[%s13627_s7 + $0x1a4] sm:$0xf0]  ;;  %v7411_v41 = vld [vmem:[%s13627_s7 + $0x3a8] sm:$0xf0] }
 0x615   :  { %4615 = vst.msk [vmem:[#allocation4 + $0x8] sm:$0xff] %vm1643_vm0, %v4611_v32  ;;  %5449 = vmatpush.bf16.msra.mxu3 %v7182_v53  ;;  %v7150_v32 = vor.u32 %v7851_v42, %v7147_v7  ;;  %v7154_v53 = vor.u32 %v7856_v11, %v7153_v39  ;;  %v7121_v42 = vld [vmem:[%s13627_s7 + $0x148] sm:$0xf]  ;;  %v7900_v39 = vld [vmem:[%s13627_s7 + $0x30c] sm:$0xf] }
 0x616   :  { %v7377_v7 = vld [vmem:[%s13627_s7 + $0x348] sm:$0xf]  ;;  %v7347_v11 = vld [vmem:[%s13627_s7 + $0x328] sm:$0xf0] }
 0x618   :  { %v4605_v9 = vpop.f32.mrf.mxu2  ;;  %5462 = vmatpush.bf16.msrb.mxu2 %v7438_v45 }
 0x619   :  { %v4606_v33 = vadd.f32 %v4605_v9, %v4587_v28  ;;  %5450 = vmatpush.bf16.msra.mxu3 %v7150_v32  ;;  %v7835_v28 = vld [vmem:[%s13627_s7 + $0x104] sm:$0xf]  ;;  %v7378_v32 = vor.u32 %v7912_v49, %v7377_v7 }
 0x61a   :  { %v7086_v9 = vor.u32 %v7835_v28, %v7083_v10  ;;  %v7832_v28 = vld [vmem:[%s13627_s7 + $0xe4] sm:$0xf0] }
 0x61b   :  { %v4612_v20 = vmax.f32 %v4606_v33, 0.0  ;;  %v7891_v33 = vld [vmem:[%s13627_s7 + $0x2c4] sm:$0xf]  ;;  %v7313_v10 = vld [vmem:[%s13627_s7 + $0x2c8] sm:$0xf] }
 0x61c   :  { %v4620_v3 = vld [vmem:[#allocation4 + $0x8] sm:$0xff]  ;;  %5463 = vmatpush.bf16.msrb.mxu2 %v7406_v12 }
 0x61d   :  { %4616 = vst.msk [vmem:[#allocation4 + $0x10] sm:$0xff] %vm1643_vm0, %v4612_v20  ;;  %5451 = vmatpush.bf16.msra.mxu3 %v7118_v19  ;;  %v7310_v20 = vor.u32 %v7891_v33, %v7307_v59  ;;  %v7089_v12 = vld [vmem:[%s13627_s7 + $0x108] sm:$0xf]  ;;  %v7346_v19 = vor.u32 %v7904_v21, %v7345_v4 }
 0x61e   :  { %v7090_v30 = vor.u32 %v7840_v16, %v7089_v12  ;;  %v7888_v33 = vld [vmem:[%s13627_s7 + $0x2a4] sm:$0xf0]  ;;  %v7884_v12 = vld [vmem:[%s13627_s7 + $0x28c] sm:$0xf] }
 0x61f   :  { %v7283_v16 = vld [vmem:[%s13627_s7 + $0x2a8] sm:$0xf0] }
 0x620   :  { %v4607_v50 = vpop.f32.mrf.mxu2  ;;  %5464 = vmatpush.bf16.msrb.mxu2 %v7374_v57  ;;  %v7057_v57 = vld [vmem:[%s13627_s7 + $0xc8] sm:$0xf]  ;;  %v7286_v21 = vor.u32 %v7884_v12, %v7283_v16  ;;  %v7861_v12 = vld [vmem:[%s13627_s7 + $0x1d4] sm:$0xf] }
 0x621   :  { %v4608_v29 = vadd.f32 %v4607_v50, %v4589_v52  ;;  %5452 = vmatpush.bf16.msra.mxu3 %v7086_v9  ;;  %v7875_v52 = vld [vmem:[%s13627_s7 + $0x244] sm:$0xf]  ;;  %v7058_v1 = vor.u32 %v7832_v28, %v7057_v57  ;;  %v7314_v9 = vor.u32 %v7896_v2, %v7313_v10  ;;  %v7876_v57 = vld [vmem:[%s13627_s7 + $0x24c] sm:$0xf]  ;;  %v7195_v16 = vld [vmem:[%s13627_s7 + $0x1f0] sm:$0xf0] }
 0x622   :  { %v7246_v24 = vor.u32 %v7875_v52, %v7243_v22  ;;  %v7803_v50 = vld [vmem:[%s13627_s7 + $0x4] sm:$0xf]  ;;  %v7872_v52 = vld [vmem:[%s13627_s7 + $0x224] sm:$0xf0]  ;;  %v7187_v22 = vld [vmem:[%s13627_s7 + $0x1e8] sm:$0xf0] }
 0x623   :  { %v4613_v35 = vmax.f32 %v4608_v29, 0.0  ;;  %v6958_v29 = vor.u32 %v7803_v50, %v6955_v13  ;;  %v7443_v50 = vld [vmem:[%s13627_s7 + $0x3e8] sm:$0xf0] }
 0x624   :  { %5465 = vmatpush.bf16.msrb.mxu2 %v7342_v8  ;;  %v4622_v48 = vld [vmem:[#allocation4 + $0x10] sm:$0xff]  ;;  %v7025_v8 = vld [vmem:[%s13627_s7 + $0x88] sm:$0xf]  ;;  %v7251_v28 = vld [vmem:[%s13627_s7 + $0x268] sm:$0xf0] }
 0x625   :  { %4617 = vst.msk [vmem:[#allocation4 + $0x18] sm:$0xff] %vm1643_vm0, %v4613_v35  ;;  %5453 = vmatpush.bf16.msra.mxu3 %v7054_v61  ;;  %v7214_v35 = vor.u32 %v7867_v55, %v7211_v26  ;;  %v7026_v59 = vor.u32 %v7824_v63, %v7025_v8  ;;  %v7282_v61 = vor.u32 %v7888_v33, %v7281_v34  ;;  %v7868_v8 = vld [vmem:[%s13627_s7 + $0x20c] sm:$0xf]  ;;  %v7193_v34 = vld [vmem:[%s13627_s7 + $0x1d0] sm:$0xf] }
 0x626   :  { %v7218_v55 = vor.u32 %v7872_v52, %v7217_v6  ;;  %v7254_v2 = vor.u32 %v7876_v57, %v7251_v28  ;;  %v7219_v63 = vld [vmem:[%s13627_s7 + $0x228] sm:$0xf0]  ;;  %v7865_v33 = vld [vmem:[%s13627_s7 + $0x1ec] sm:$0xf0]  ;;  %v7198_v57 = vor.u32 %v7861_v12, %v7195_v16  ;;  %v7137_v12 = vld [vmem:[%s13627_s7 + $0x158] sm:$0xf] }
 0x627   :  { %v7850_v16 = vld [vmem:[%s13627_s7 + $0x174] sm:$0xf0] }
 0x628   :  { %5466 = vmatpush.bf16.msrb.mxu2 %v7310_v20  ;;  %v6993_v20 = vld [vmem:[%s13627_s7 + $0x48] sm:$0xf] }
 0x629   :  { %5454 = vmatpush.bf16.msra.mxu3 %v7022_v58  ;;  %v6994_v38 = vor.u32 %v7816_v43, %v6993_v20  ;;  %v7250_v58 = vor.u32 %v7880_v44, %v7249_v14  ;;  %v7222_v43 = vor.u32 %v7868_v8, %v7219_v63  ;;  %v7194_v14 = vor.u32 %v7865_v33, %v7193_v34  ;;  %v7845_v34 = vld [vmem:[%s13627_s7 + $0x154] sm:$0xf] }
 0x62a   :  { %v7131_v33 = vld [vmem:[%s13627_s7 + $0x170] sm:$0xf0] }
 0x62c   :  { %v4624_v27 = vld [vmem:[#allocation4 + $0x18] sm:$0xff]  ;;  %5467 = vmatpush.bf16.msrb.mxu2 %v7278_v31  ;;  %v6961_v31 = vld [vmem:[%s13627_s7 + $0x8] sm:$0xf] }
 0x62d   :  { %v9760_v0 = vpack.i.bf16 %v4624_v27, %v4620_v3  ;;  %5455 = vmatpush.bf16.msra.mxu3 %v6990_v37  ;;  %v7409_v3 = vld [vmem:[%s13627_s7 + $0x388] sm:$0xf]  ;;  %v7860_v37 = vld [vmem:[%s13627_s7 + $0x1cc] sm:$0xf]  ;;  %v6962_v13 = vor.u32 %v7808_v60, %v6961_v31  ;;  %v7417_v31 = vld [vmem:[%s13627_s7 + $0x390] sm:$0xf] }
 0x62e   :  { %v7920_v27 = vld [vmem:[%s13627_s7 + $0x3a4] sm:$0xf0]  ;;  %v7921_v60 = vld [vmem:[%s13627_s7 + $0x3ac] sm:$0xf0] }
 0x62f   :  { %9761 = vrot.lane.b32.xlu0 %v9760_v0, %s9805_s12  ;;  %v7410_v45 = vor.u32 %v7920_v27, %v7409_v3  ;;  %v7848_v0 = vld [vmem:[%s13627_s7 + $0x164] sm:$0xf0]  ;;  %v7350_v27 = vor.u32 %v7900_v39, %v7347_v11  ;;  %v7418_v52 = vor.u32 %v7921_v60, %v7417_v31 }
 0x630   :  { %5468 = vmatpush.bf16.msrb.mxu2 %v7246_v24  ;;  %v7122_v47 = vor.u32 %v7848_v0, %v7121_v42  ;;  %v7924_v24 = vld [vmem:[%s13627_s7 + $0x3cc] sm:$0xf] }
 0x631   :  { %5456 = vmatpush.bf16.msra.mxu3 %v6958_v29  ;;  %v7190_v29 = vor.u32 %v7860_v37, %v7187_v22  ;;  %v7446_v26 = vor.u32 %v7924_v24, %v7443_v50  ;;  %v7892_v42 = vld [vmem:[%s13627_s7 + $0x2cc] sm:$0xf]  ;;  %v7129_v37 = vld [vmem:[%s13627_s7 + $0x150] sm:$0xf] }
 0x632   :  { %v7315_v0 = vld [vmem:[%s13627_s7 + $0x2e8] sm:$0xf0]  ;;  %v7849_v22 = vld [vmem:[%s13627_s7 + $0x16c] sm:$0xf0] }
 0x633   :  { %v7318_v49 = vor.u32 %v7892_v42, %v7315_v0  ;;  %v7385_v24 = vld [vmem:[%s13627_s7 + $0x350] sm:$0xf] }
 0x634   :  { %5469 = vmatpush.bf16.msrb.mxu2 %v7214_v35  ;;  %v7852_v35 = vld [vmem:[%s13627_s7 + $0x18c] sm:$0xf]  ;;  %v7913_v50 = vld [vmem:[%s13627_s7 + $0x36c] sm:$0xf0] }
 0x635   :  { %v7158_v46 = vor.u32 %v7852_v35, %v7155_v54  ;;  %v7353_v35 = vld [vmem:[%s13627_s7 + $0x310] sm:$0xf] }
 0x636   :  { %v7905_v54 = vld [vmem:[%s13627_s7 + $0x32c] sm:$0xf0] }
 0x6a1   :  { %v9762_v25 = vpop.permute.xlu0 %9761 }
 0x6a2   :  { %v9764_v51 = vunpack.i.h.bf16 %v9762_v25  ;;  %v9763_v62 = vunpack.i.l.bf16 %v9762_v25  ;;  %v7916_v25 = vld [vmem:[%s13627_s7 + $0x38c] sm:$0xf] }
 0x6a3   :  { %v7414_v36 = vor.u32 %v7916_v25, %v7411_v41  ;;  %v7354_v41 = vor.u32 %v7905_v54, %v7353_v35 }
 0x6a4   :  { %v4634_v5 = vsel %vm1643_vm0, %v4622_v48, %v9764_v51  ;;  %v4633_v17 = vsel %vm1643_vm0, %v4618_v40, %v9763_v62  ;;  %v7844_v51 = vld [vmem:[%s13627_s7 + $0x14c] sm:$0xf] }
 0x6a5   :  { %v12813_v23 = vpack.c.bf16 %v4634_v5, %v4634_v5  ;;  %v12815_v15 = vpack.c.bf16 %v4633_v17, %v4633_v17  ;;  %v7123_v62 = vld [vmem:[%s13627_s7 + $0x168] sm:$0xf0] }
 0x6a6   :  { %v7908_v48 = vld [vmem:[%s13627_s7 + $0x34c] sm:$0xf]  ;;  %v7126_v5 = vor.u32 %v7844_v51, %v7123_v62  ;;  %v7321_v51 = vld [vmem:[%s13627_s7 + $0x2d0] sm:$0xf] }
 0x6a7   :  { %5431 = vmatmul.bf16.vlgmr.msrb.gmra.mxu3 %v12815_v15  ;;  %5444 = vmatmul.bf16.vlgmr.msra.gmra.mxu2 %v12813_v23  ;;  %v7379_v40 = vld [vmem:[%s13627_s7 + $0x368] sm:$0xf0]  ;;  %v7897_v62 = vld [vmem:[%s13627_s7 + $0x2ec] sm:$0xf0] }
 0x6a8   :  { %5475 = vmatpush.bf16.msrb.mxu3 %v7186_v56  ;;  %5488 = vmatpush.bf16.msra.mxu2 %v7442_v18  ;;  %v7382_v17 = vor.u32 %v7908_v48, %v7379_v40  ;;  %v7836_v56 = vld [vmem:[%s13627_s7 + $0x10c] sm:$0xf]  ;;  %v7322_v40 = vor.u32 %v7897_v62, %v7321_v51 }
 0x6a9   :  { %v7091_v18 = vld [vmem:[%s13627_s7 + $0x128] sm:$0xf0] }
 0x6aa   :  { %v7094_v3 = vor.u32 %v7836_v56, %v7091_v18  ;;  %v7289_v56 = vld [vmem:[%s13627_s7 + $0x290] sm:$0xf] }
 0x6ab   :  { %v7889_v18 = vld [vmem:[%s13627_s7 + $0x2ac] sm:$0xf0] }
 0x6ac   :  { %5476 = vmatpush.bf16.msrb.mxu3 %v7154_v53  ;;  %5489 = vmatpush.bf16.msra.mxu2 %v7410_v45  ;;  %v7828_v53 = vld [vmem:[%s13627_s7 + $0xcc] sm:$0xf]  ;;  %v7290_v11 = vor.u32 %v7889_v18, %v7289_v56  ;;  %v7201_v56 = vld [vmem:[%s13627_s7 + $0x1d8] sm:$0xf] }
 0x6ad   :  { %v7059_v45 = vld [vmem:[%s13627_s7 + $0xe8] sm:$0xf0]  ;;  %v7866_v18 = vld [vmem:[%s13627_s7 + $0x1f4] sm:$0xf0] }
 0x6ae   :  { %v7062_v7 = vor.u32 %v7828_v53, %v7059_v45  ;;  %v7257_v53 = vld [vmem:[%s13627_s7 + $0x250] sm:$0xf] }
 0x6af   :  { %v7881_v45 = vld [vmem:[%s13627_s7 + $0x26c] sm:$0xf0] }
 0x6b0   :  { %5477 = vmatpush.bf16.msrb.mxu3 %v7122_v47  ;;  %5490 = vmatpush.bf16.msra.mxu2 %v7378_v32  ;;  %v7820_v47 = vld [vmem:[%s13627_s7 + $0x8c] sm:$0xf]  ;;  %v7258_v0 = vor.u32 %v7881_v45, %v7257_v53  ;;  %v7202_v53 = vor.u32 %v7866_v18, %v7201_v56 }
 0x6b1   :  { %v7027_v32 = vld [vmem:[%s13627_s7 + $0xa8] sm:$0xf0] }
 0x6b2   :  { %v7030_v4 = vor.u32 %v7820_v47, %v7027_v32  ;;  %v7225_v47 = vld [vmem:[%s13627_s7 + $0x210] sm:$0xf] }
 0x6b3   :  { %v7873_v32 = vld [vmem:[%s13627_s7 + $0x22c] sm:$0xf0] }
 0x6b4   :  { %5478 = vmatpush.bf16.msrb.mxu3 %v7090_v30  ;;  %5491 = vmatpush.bf16.msra.mxu2 %v7346_v19  ;;  %v7812_v30 = vld [vmem:[%s13627_s7 + $0x4c] sm:$0xf] }
 0x6b5   :  { %v6995_v19 = vld [vmem:[%s13627_s7 + $0x68] sm:$0xf0] }
 0x6b6   :  { %v6998_v10 = vor.u32 %v7812_v30, %v6995_v19  ;;  %v7226_v19 = vor.u32 %v7873_v32, %v7225_v47 }
 0x6b7   :  { %5457 = vmatmul.bf16.vlgmr.msra.gmra.mxu3 %v12815_v15  ;;  %5470 = vmatmul.bf16.vlgmr.msrb.gmra.mxu2 %v12813_v23 }
 0x6b8   :  { %5479 = vmatpush.bf16.msrb.mxu3 %v7058_v1  ;;  %5492 = vmatpush.bf16.msra.mxu2 %v7314_v9  ;;  %v7804_v1 = vld [vmem:[%s13627_s7 + $0xc] sm:$0xf] }
 0x6b9   :  { %v6963_v9 = vld [vmem:[%s13627_s7 + $0x28] sm:$0xf0] }
 0x6ba   :  { %v6966_v20 = vor.u32 %v7804_v1, %v6963_v9  ;;  %v7917_v1 = vld [vmem:[%s13627_s7 + $0x394] sm:$0xf] }
 0x6bb   :  { %v7419_v9 = vld [vmem:[%s13627_s7 + $0x3b0] sm:$0xf0] }
 0x6bc   :  { %5480 = vmatpush.bf16.msrb.mxu3 %v7026_v59  ;;  %5493 = vmatpush.bf16.msra.mxu2 %v7282_v61  ;;  %v7449_v59 = vld [vmem:[%s13627_s7 + $0x3d0] sm:$0xf]  ;;  %v7422_v63 = vor.u32 %v7917_v1, %v7419_v9 }
 0x6bd   :  { %v7929_v61 = vld [vmem:[%s13627_s7 + $0x3ec] sm:$0xf0] }
 0x6be   :  { %v7450_v44 = vor.u32 %v7929_v61, %v7449_v59  ;;  %v7909_v59 = vld [vmem:[%s13627_s7 + $0x354] sm:$0xf] }
 0x6bf   :  { %v7387_v61 = vld [vmem:[%s13627_s7 + $0x370] sm:$0xf0] }
 0x6c0   :  { %5481 = vmatpush.bf16.msrb.mxu3 %v6994_v38  ;;  %5494 = vmatpush.bf16.msra.mxu2 %v7250_v58  ;;  %v7161_v38 = vld [vmem:[%s13627_s7 + $0x190] sm:$0xf] }
 0x6c1   :  { %v7857_v58 = vld [vmem:[%s13627_s7 + $0x1ac] sm:$0xf0] }
 0x6c2   :  { %v7162_v6 = vor.u32 %v7857_v58, %v7161_v38  ;;  %v7901_v38 = vld [vmem:[%s13627_s7 + $0x314] sm:$0xf] }
 0x6c3   :  { %v7355_v58 = vld [vmem:[%s13627_s7 + $0x330] sm:$0xf0] }
 0x6c4   :  { %5482 = vmatpush.bf16.msrb.mxu3 %v6962_v13  ;;  %5495 = vmatpush.bf16.msra.mxu2 %v7218_v55  ;;  %v7130_v13 = vor.u32 %v7849_v22, %v7129_v37  ;;  %v7386_v55 = vor.u32 %v7913_v50, %v7385_v24  ;;  %v7358_v60 = vor.u32 %v7901_v38, %v7355_v58  ;;  %v7893_v37 = vld [vmem:[%s13627_s7 + $0x2d4] sm:$0xf]  ;;  %v7297_v38 = vld [vmem:[%s13627_s7 + $0x298] sm:$0xf] }
 0x6c5   :  { %v7323_v22 = vld [vmem:[%s13627_s7 + $0x2f0] sm:$0xf0]  ;;  %v7890_v58 = vld [vmem:[%s13627_s7 + $0x2b4] sm:$0xf0] }
 0x6c6   :  { %v7326_v50 = vor.u32 %v7893_v37, %v7323_v22  ;;  %v7298_v37 = vor.u32 %v7890_v58, %v7297_v38  ;;  %v7009_v22 = vld [vmem:[%s13627_s7 + $0x58] sm:$0xf]  ;;  %v7814_v58 = vld [vmem:[%s13627_s7 + $0x5c] sm:$0xf] }
 0x6c7   :  { %5483 = vmatmul.bf16.vlgmr.msrb.gmra.mxu3 %v12815_v15  ;;  %5496 = vmatmul.bf16.vlgmr.msra.gmra.mxu2 %v12813_v23 }
 0x6c8   :  { %5501 = vmatpush.bf16.msra.mxu3 %v7190_v29  ;;  %5514 = vmatpush.bf16.msrb.mxu2 %v7446_v26  ;;  %v7097_v29 = vld [vmem:[%s13627_s7 + $0x110] sm:$0xf] }
 0x6c9   :  { %v7841_v26 = vld [vmem:[%s13627_s7 + $0x12c] sm:$0xf0] }
 0x6ca   :  { %v7098_v25 = vor.u32 %v7841_v26, %v7097_v29  ;;  %v7885_v29 = vld [vmem:[%s13627_s7 + $0x294] sm:$0xf] }
 0x6cb   :  { %v7291_v26 = vld [vmem:[%s13627_s7 + $0x2b0] sm:$0xf0] }
 0x6cc   :  { %5502 = vmatpush.bf16.msra.mxu3 %v7158_v46  ;;  %5515 = vmatpush.bf16.msrb.mxu2 %v7414_v36  ;;  %v7065_v46 = vld [vmem:[%s13627_s7 + $0xd0] sm:$0xf]  ;;  %v7294_v54 = vor.u32 %v7885_v29, %v7291_v26 }
 0x6cd   :  { %v7833_v36 = vld [vmem:[%s13627_s7 + $0xec] sm:$0xf0] }
 0x6ce   :  { %v7066_v48 = vor.u32 %v7833_v36, %v7065_v46  ;;  %v7877_v46 = vld [vmem:[%s13627_s7 + $0x254] sm:$0xf] }
 0x6cf   :  { %v7259_v36 = vld [vmem:[%s13627_s7 + $0x270] sm:$0xf0] }
 0x6d0   :  { %5503 = vmatpush.bf16.msra.mxu3 %v7126_v5  ;;  %5516 = vmatpush.bf16.msrb.mxu2 %v7382_v17  ;;  %v7033_v5 = vld [vmem:[%s13627_s7 + $0x90] sm:$0xf]  ;;  %v7262_v62 = vor.u32 %v7877_v46, %v7259_v36  ;;  %v7862_v46 = vld [vmem:[%s13627_s7 + $0x1dc] sm:$0xf] }
 0x6d1   :  { %v7825_v17 = vld [vmem:[%s13627_s7 + $0xac] sm:$0xf0] }
 0x6d2   :  { %v7034_v39 = vor.u32 %v7825_v17, %v7033_v5  ;;  %v7869_v5 = vld [vmem:[%s13627_s7 + $0x214] sm:$0xf] }
 0x6d3   :  { %v7227_v17 = vld [vmem:[%s13627_s7 + $0x230] sm:$0xf0] }
 0x6d4   :  { %5504 = vmatpush.bf16.msra.mxu3 %v7094_v3  ;;  %5517 = vmatpush.bf16.msrb.mxu2 %v7350_v27  ;;  %v7001_v3 = vld [vmem:[%s13627_s7 + $0x50] sm:$0xf] }
 0x6d5   :  { %v7817_v27 = vld [vmem:[%s13627_s7 + $0x6c] sm:$0xf0] }
 0x6d6   :  { %v7002_v42 = vor.u32 %v7817_v27, %v7001_v3  ;;  %v7230_v27 = vor.u32 %v7869_v5, %v7227_v17 }
 0x6d8   :  { %5505 = vmatpush.bf16.msra.mxu3 %v7062_v7  ;;  %5518 = vmatpush.bf16.msrb.mxu2 %v7318_v49  ;;  %v6969_v7 = vld [vmem:[%s13627_s7 + $0x10] sm:$0xf] }
 0x6d9   :  { %v7809_v49 = vld [vmem:[%s13627_s7 + $0x2c] sm:$0xf0] }
 0x6da   :  { %v6970_v30 = vor.u32 %v7809_v49, %v6969_v7  ;;  %v7425_v7 = vld [vmem:[%s13627_s7 + $0x398] sm:$0xf] }
 0x6db   :  { %v7922_v49 = vld [vmem:[%s13627_s7 + $0x3b4] sm:$0xf0] }
 0x6dc   :  { %5506 = vmatpush.bf16.msra.mxu3 %v7030_v4  ;;  %5519 = vmatpush.bf16.msrb.mxu2 %v7286_v21  ;;  %v7925_v4 = vld [vmem:[%s13627_s7 + $0x3d4] sm:$0xf]  ;;  %v7426_v32 = vor.u32 %v7922_v49, %v7425_v7  ;;  %v7139_v49 = vld [vmem:[%s13627_s7 + $0x178] sm:$0xf0] }
 0x6dd   :  { %v7451_v21 = vld [vmem:[%s13627_s7 + $0x3f0] sm:$0xf0] }
 0x6de   :  { %v7454_v28 = vor.u32 %v7925_v4, %v7451_v21  ;;  %v7393_v4 = vld [vmem:[%s13627_s7 + $0x358] sm:$0xf] }
 0x6df   :  { %v7914_v21 = vld [vmem:[%s13627_s7 + $0x374] sm:$0xf0] }
 0x6e0   :  { %5507 = vmatpush.bf16.msra.mxu3 %v6998_v10  ;;  %5520 = vmatpush.bf16.msrb.mxu2 %v7254_v2  ;;  %v7853_v10 = vld [vmem:[%s13627_s7 + $0x194] sm:$0xf] }
 0x6e1   :  { %v7163_v2 = vld [vmem:[%s13627_s7 + $0x1b0] sm:$0xf0] }
 0x6e2   :  { %v7166_v8 = vor.u32 %v7853_v10, %v7163_v2  ;;  %v7361_v10 = vld [vmem:[%s13627_s7 + $0x318] sm:$0xf] }
 0x6e3   :  { %v7906_v2 = vld [vmem:[%s13627_s7 + $0x334] sm:$0xf0] }
 0x6e4   :  { %5508 = vmatpush.bf16.msra.mxu3 %v6966_v20  ;;  %5521 = vmatpush.bf16.msrb.mxu2 %v7222_v43  ;;  %v7134_v20 = vor.u32 %v7845_v34, %v7131_v33  ;;  %v7390_v43 = vor.u32 %v7909_v59, %v7387_v61  ;;  %v7362_v9 = vor.u32 %v7906_v2, %v7361_v10  ;;  %v7834_v34 = vld [vmem:[%s13627_s7 + $0xf4] sm:$0xf0]  ;;  %v7830_v10 = vld [vmem:[%s13627_s7 + $0xdc] sm:$0xf] }
 0x6e5   :  { %v7329_v33 = vld [vmem:[%s13627_s7 + $0x2d8] sm:$0xf] }
 0x6e6   :  { %v7898_v59 = vld [vmem:[%s13627_s7 + $0x2f4] sm:$0xf0] }
 0x6e7   :  { %5509 = vmatmul.bf16.vlgmr.msra.gmra.mxu3 %v12815_v15  ;;  %5522 = vmatmul.bf16.vlgmr.msrb.gmra.mxu2 %v12813_v23 }
 0x6e8   :  { %5527 = vmatpush.bf16.msrb.mxu3 %v7194_v14  ;;  %5540 = vmatpush.bf16.msra.mxu2 %v7450_v44  ;;  %v7837_v14 = vld [vmem:[%s13627_s7 + $0x114] sm:$0xf] }
 0x6e9   :  { %v7099_v44 = vld [vmem:[%s13627_s7 + $0x130] sm:$0xf0] }
 0x6ea   :  { %v7102_v31 = vor.u32 %v7837_v14, %v7099_v44  ;;  %v7041_v14 = vld [vmem:[%s13627_s7 + $0x98] sm:$0xf] }
 0x6eb   :  { %v7826_v44 = vld [vmem:[%s13627_s7 + $0xb4] sm:$0xf0] }
 0x6ec   :  { %5528 = vmatpush.bf16.msrb.mxu3 %v7162_v6  ;;  %5541 = vmatpush.bf16.msra.mxu2 %v7418_v52  ;;  %v7829_v6 = vld [vmem:[%s13627_s7 + $0xd4] sm:$0xf] }
 0x6ed   :  { %v7067_v52 = vld [vmem:[%s13627_s7 + $0xf0] sm:$0xf0] }
 0x6ee   :  { %v7070_v24 = vor.u32 %v7829_v6, %v7067_v52  ;;  %v7042_v52 = vor.u32 %v7826_v44, %v7041_v14  ;;  %v7299_v14 = vld [vmem:[%s13627_s7 + $0x2b8] sm:$0xf0] }
 0x6f0   :  { %5529 = vmatpush.bf16.msrb.mxu3 %v7130_v13  ;;  %5542 = vmatpush.bf16.msra.mxu2 %v7386_v55  ;;  %v7821_v13 = vld [vmem:[%s13627_s7 + $0x94] sm:$0xf] }
 0x6f1   :  { %v7035_v55 = vld [vmem:[%s13627_s7 + $0xb0] sm:$0xf0] }
 0x6f2   :  { %v7038_v35 = vor.u32 %v7821_v13, %v7035_v55  ;;  %v7265_v13 = vld [vmem:[%s13627_s7 + $0x258] sm:$0xf] }
 0x6f3   :  { %v7882_v55 = vld [vmem:[%s13627_s7 + $0x274] sm:$0xf0] }
 0x6f4   :  { %5530 = vmatpush.bf16.msrb.mxu3 %v7098_v25  ;;  %5543 = vmatpush.bf16.msra.mxu2 %v7354_v41  ;;  %v7813_v25 = vld [vmem:[%s13627_s7 + $0x54] sm:$0xf]  ;;  %v7266_v26 = vor.u32 %v7882_v55, %v7265_v13  ;;  %v7806_v13 = vld [vmem:[%s13627_s7 + $0x1c] sm:$0xf] }
 0x6f5   :  { %v7003_v41 = vld [vmem:[%s13627_s7 + $0x70] sm:$0xf0]  ;;  %v6979_v55 = vld [vmem:[%s13627_s7 + $0x38] sm:$0xf0] }
 0x6f6   :  { %v7006_v51 = vor.u32 %v7813_v25, %v7003_v41  ;;  %v7233_v25 = vld [vmem:[%s13627_s7 + $0x218] sm:$0xf] }
 0x6f7   :  { %v7874_v41 = vld [vmem:[%s13627_s7 + $0x234] sm:$0xf0] }
 0x6f8   :  { %5531 = vmatpush.bf16.msrb.mxu3 %v7066_v48  ;;  %5544 = vmatpush.bf16.msra.mxu2 %v7322_v40  ;;  %v7805_v48 = vld [vmem:[%s13627_s7 + $0x14] sm:$0xf]  ;;  %v7234_v17 = vor.u32 %v7874_v41, %v7233_v25 }
 0x6f9   :  { %v6971_v40 = vld [vmem:[%s13627_s7 + $0x30] sm:$0xf0] }
 0x6fa   :  { %v6974_v3 = vor.u32 %v7805_v48, %v6971_v40  ;;  %v7926_v48 = vld [vmem:[%s13627_s7 + $0x3dc] sm:$0xf] }
 0x6fb   :  { %v7459_v40 = vld [vmem:[%s13627_s7 + $0x3f8] sm:$0xf0] }
 0x6fc   :  { %5532 = vmatpush.bf16.msrb.mxu3 %v7034_v39  ;;  %5545 = vmatpush.bf16.msra.mxu2 %v7290_v11  ;;  %v7457_v39 = vld [vmem:[%s13627_s7 + $0x3d8] sm:$0xf]  ;;  %v7462_v18 = vor.u32 %v7926_v48, %v7459_v40  ;;  %v7936_v48 = vld [vmem:[%s13629_s9 + $0x28] sm:$0xff] }
 0x6fd   :  { %v7930_v11 = vld [vmem:[%s13627_s7 + $0x3f4] sm:$0xf0]  ;;  %v7944_v40 = vld [vmem:[%s13629_s9 + $0x68] sm:$0xff] }
 0x6fe   :  { %v7458_v45 = vor.u32 %v7930_v11, %v7457_v39  ;;  %v7854_v39 = vld [vmem:[%s13627_s7 + $0x19c] sm:$0xf] }
 0x6ff   :  { %v7171_v11 = vld [vmem:[%s13627_s7 + $0x1b8] sm:$0xf0] }
 0x700   :  { %5533 = vmatpush.bf16.msrb.mxu3 %v7002_v42  ;;  %5546 = vmatpush.bf16.msra.mxu2 %v7258_v0  ;;  %v7169_v42 = vld [vmem:[%s13627_s7 + $0x198] sm:$0xf] }
 0x701   :  { %v7858_v0 = vld [vmem:[%s13627_s7 + $0x1b4] sm:$0xf0] }
 0x702   :  { %v7170_v47 = vor.u32 %v7858_v0, %v7169_v42  ;;  %v7846_v42 = vld [vmem:[%s13627_s7 + $0x15c] sm:$0xf] }
 0x704   :  { %5534 = vmatpush.bf16.msrb.mxu3 %v6970_v30  ;;  %5547 = vmatpush.bf16.msra.mxu2 %v7226_v19  ;;  %v7138_v30 = vor.u32 %v7850_v16, %v7137_v12  ;;  %v7394_v19 = vor.u32 %v7914_v21, %v7393_v4  ;;  %v7142_v12 = vor.u32 %v7846_v42, %v7139_v49  ;;  %v7838_v4 = vld [vmem:[%s13627_s7 + $0x11c] sm:$0xf]  ;;  %v7939_v49 = vld [vmem:[%s13629_s9 + $0x40] sm:$0xff] }
 0x705   :  { %v7107_v21 = vld [vmem:[%s13627_s7 + $0x138] sm:$0xf0] }
 0x707   :  { %5535 = vmatmul.bf16.vlgmr.msrb.gmra.mxu3 %v12815_v15  ;;  %5548 = vmatmul.bf16.vlgmr.msra.gmra.mxu2 %v12813_v23 }
 0x708   :  { %5553 = vmatpush.bf16.msra.mxu3 %v7198_v57  ;;  %5566 = vmatpush.bf16.msrb.mxu2 %v7454_v28  ;;  %v7105_v57 = vld [vmem:[%s13627_s7 + $0x118] sm:$0xf] }
 0x709   :  { %v7842_v28 = vld [vmem:[%s13627_s7 + $0x134] sm:$0xf0] }
 0x70a   :  { %v7106_v1 = vor.u32 %v7842_v28, %v7105_v57  ;;  %v7110_v57 = vor.u32 %v7838_v4, %v7107_v21  ;;  %v7954_v4 = vld [vmem:[%s13629_s9 + $0xb8] sm:$0xff] }
 0x70c   :  { %5554 = vmatpush.bf16.msra.mxu3 %v7166_v8  ;;  %5567 = vmatpush.bf16.msrb.mxu2 %v7422_v63  ;;  %v13249_v8 = vld [vmem:[%s13628_s8] sm:$0xff]  ;;  %v7073_v63 = vld [vmem:[%s13627_s7 + $0xd8] sm:$0xf] }
 0x70d   :  { %v4767_v61 = vperm.slane %v13249_v8, 0 }
 0x710   :  { %5555 = vmatpush.bf16.msra.mxu3 %v7134_v20  ;;  %5568 = vmatpush.bf16.msrb.mxu2 %v7390_v43  ;;  %v7074_v20 = vor.u32 %v7834_v34, %v7073_v63  ;;  %v7330_v43 = vor.u32 %v7898_v59, %v7329_v33  ;;  %v7894_v63 = vld [vmem:[%s13627_s7 + $0x2dc] sm:$0xf] }
 0x711   :  { %v7331_v34 = vld [vmem:[%s13627_s7 + $0x2f8] sm:$0xf0] }
 0x712   :  { %v7334_v59 = vor.u32 %v7894_v63, %v7331_v34  ;;  %v4769_v63 = vperm.slane %v13249_v8, 2  ;;  %v4770_v34 = vperm.slane %v13249_v8, 3 }
 0x714   :  { %5556 = vmatpush.bf16.msra.mxu3 %v7102_v31  ;;  %5569 = vmatpush.bf16.msrb.mxu2 %v7358_v60 }
 0x718   :  { %5557 = vmatpush.bf16.msra.mxu3 %v7070_v24  ;;  %5570 = vmatpush.bf16.msrb.mxu2 %v7326_v50  ;;  %v7818_v50 = vld [vmem:[%s13627_s7 + $0x74] sm:$0xf0] }
 0x719   :  { %v7010_v29 = vor.u32 %v7818_v50, %v7009_v22 }
 0x71c   :  { %5558 = vmatpush.bf16.msra.mxu3 %v7038_v35  ;;  %5571 = vmatpush.bf16.msrb.mxu2 %v7294_v54  ;;  %v6977_v35 = vld [vmem:[%s13627_s7 + $0x18] sm:$0xf] }
 0x71d   :  { %v7810_v54 = vld [vmem:[%s13627_s7 + $0x34] sm:$0xf0] }
 0x71e   :  { %v6978_v5 = vor.u32 %v7810_v54, %v6977_v35  ;;  %v6982_v35 = vor.u32 %v7806_v13, %v6979_v55  ;;  %v7970_v55 = vld [vmem:[%s13629_s9 + $0x138] sm:$0xff] }
 0x720   :  { %5559 = vmatpush.bf16.msra.mxu3 %v7006_v51  ;;  %5572 = vmatpush.bf16.msrb.mxu2 %v7262_v62  ;;  %v7203_v62 = vld [vmem:[%s13627_s7 + $0x1f8] sm:$0xf0] }
 0x721   :  { %v7206_v56 = vor.u32 %v7862_v46, %v7203_v62  ;;  %v7938_v46 = vld [vmem:[%s13629_s9 + $0x38] sm:$0xff]  ;;  %v7945_v62 = vld [vmem:[%s13629_s9 + $0x70] sm:$0xff] }
 0x724   :  { %5560 = vmatpush.bf16.msra.mxu3 %v6974_v3  ;;  %5573 = vmatpush.bf16.msrb.mxu2 %v7230_v27  ;;  %v7918_v3 = vld [vmem:[%s13627_s7 + $0x39c] sm:$0xf] }
 0x725   :  { %v7427_v27 = vld [vmem:[%s13627_s7 + $0x3b8] sm:$0xf0] }
 0x727   :  { %5561 = vmatmul.bf16.vlgmr.msra.gmra.mxu3 %v12815_v15  ;;  %5574 = vmatmul.bf16.vlgmr.msrb.gmra.mxu2 %v12813_v23 }
 0x728   :  { %5579 = vmatpush.bf16.msrb.mxu3 %v7202_v53  ;;  %5592 = vmatpush.bf16.msra.mxu2 %v7458_v45  ;;  %v7174_v53 = vor.u32 %v7854_v39, %v7171_v11  ;;  %v7430_v45 = vor.u32 %v7918_v3, %v7427_v27  ;;  %v7941_v39 = vld [vmem:[%s13629_s9 + $0x50] sm:$0xff] }
 0x72a   :  { %v5432_v31 = vpop.f32.mrf.mxu3  ;;  %v5445_v60 = vpop.f32.mrf.mxu2 }
 0x72b   :  { %v5433_v6 = vadd.f32 %v5432_v31, %v4767_v61  ;;  %v7822_v61 = vld [vmem:[%s13627_s7 + $0x9c] sm:$0xf] }
 0x72c   :  { %5580 = vmatpush.bf16.msrb.mxu3 %v7170_v47  ;;  %5593 = vmatpush.bf16.msra.mxu2 %v7426_v32  ;;  %v7910_v47 = vld [vmem:[%s13627_s7 + $0x35c] sm:$0xf] }
 0x72d   :  { %v13279_v24 = vadd.f32 %v5445_v60, %v5433_v6  ;;  %v7395_v32 = vld [vmem:[%s13627_s7 + $0x378] sm:$0xf0] }
 0x72e   :  { %v7398_v16 = vor.u32 %v7910_v47, %v7395_v32  ;;  %v7011_v6 = vld [vmem:[%s13627_s7 + $0x78] sm:$0xf0] }
 0x72f   :  { %v7014_v22 = vor.u32 %v7814_v58, %v7011_v6  ;;  %v5631_v47 = vmax.f32 %v13279_v24, 0.0  ;;  %v7953_v24 = vld [vmem:[%s13629_s9 + $0xb0] sm:$0xff] }
 0x730   :  { %5581 = vmatpush.bf16.msrb.mxu3 %v7138_v30  ;;  %5594 = vmatpush.bf16.msra.mxu2 %v7394_v19  ;;  %v7902_v30 = vld [vmem:[%s13627_s7 + $0x31c] sm:$0xf] }
 0x731   :  { %v7363_v19 = vld [vmem:[%s13627_s7 + $0x338] sm:$0xf0]  ;;  %v5639_v21 = vpack.c.bf16 %v5631_v47, %v5631_v47 }
 0x732   :  { %v5434_v36 = vpop.f32.mrf.mxu3  ;;  %v5447_v51 = vpop.f32.mrf.mxu2  ;;  %v7366_v28 = vor.u32 %v7902_v30, %v7363_v19  ;;  %v7961_v19 = vld [vmem:[%s13629_s9 + $0xf0] sm:$0xff] }
 0x733   :  { %v7946_v36 = vld [vmem:[%s13629_s9 + $0x78] sm:$0xff]  ;;  %v7937_v51 = vld [vmem:[%s13629_s9 + $0x30] sm:$0xff] }
 0x734   :  { %5582 = vmatpush.bf16.msrb.mxu3 %v7106_v1  ;;  %5595 = vmatpush.bf16.msra.mxu2 %v7362_v9  ;;  %v7075_v9 = vld [vmem:[%s13627_s7 + $0xf8] sm:$0xf0] }
 0x735   :  { %v7078_v33 = vor.u32 %v7830_v10, %v7075_v9  ;;  %v7951_v10 = vld [vmem:[%s13629_s9 + $0xa0] sm:$0xff]  ;;  %v7958_v9 = vld [vmem:[%s13629_s9 + $0xd8] sm:$0xff] }
 0x738   :  { %5583 = vmatpush.bf16.msrb.mxu3 %v7074_v20  ;;  %5596 = vmatpush.bf16.msra.mxu2 %v7330_v43  ;;  %v7043_v20 = vld [vmem:[%s13627_s7 + $0xb8] sm:$0xf0] }
 0x739   :  { %v7886_v43 = vld [vmem:[%s13627_s7 + $0x29c] sm:$0xf]  ;;  %v7046_v44 = vor.u32 %v7822_v61, %v7043_v20 }
 0x73a   :  { %v13329_v0 = vpop.f32.mrf.mxu3  ;;  %v13331_v7 = vpop.f32.mrf.mxu2  ;;  %v7302_v38 = vor.u32 %v7886_v43, %v7299_v14 }
 0x73c   :  { %5584 = vmatpush.bf16.msrb.mxu3 %v7042_v52  ;;  %5597 = vmatpush.bf16.msra.mxu2 %v7298_v37  ;;  %v7878_v52 = vld [vmem:[%s13627_s7 + $0x25c] sm:$0xf] }
 0x73d   :  { %v7267_v37 = vld [vmem:[%s13627_s7 + $0x278] sm:$0xf0] }
 0x73e   :  { %v7270_v50 = vor.u32 %v7878_v52, %v7267_v37  ;;  %v7955_v52 = vld [vmem:[%s13629_s9 + $0xc0] sm:$0xff] }
 0x740   :  { %5585 = vmatpush.bf16.msrb.mxu3 %v7010_v29  ;;  %5598 = vmatpush.bf16.msra.mxu2 %v7266_v26  ;;  %v7870_v29 = vld [vmem:[%s13627_s7 + $0x21c] sm:$0xf] }
 0x741   :  { %v7235_v26 = vld [vmem:[%s13627_s7 + $0x238] sm:$0xf0] }
 0x742   :  { %v5460_v2 = vpop.f32.mrf.mxu3  ;;  %v5473_v1 = vpop.f32.mrf.mxu2  ;;  %v7238_v54 = vor.u32 %v7870_v29, %v7235_v26 }
 0x743   :  { %v7959_v2 = vld [vmem:[%s13629_s9 + $0xe0] sm:$0xff]  ;;  %v7950_v1 = vld [vmem:[%s13629_s9 + $0x98] sm:$0xff] }
 0x744   :  { %5586 = vmatpush.bf16.msrb.mxu3 %v6978_v5  ;;  %5599 = vmatpush.bf16.msra.mxu2 %v7234_v17  ;;  %v7935_v5 = vld [vmem:[%s13629_s9 + $0x20] sm:$0xff]  ;;  %v7942_v17 = vld [vmem:[%s13629_s9 + $0x58] sm:$0xff] }
 0x747   :  { %5587 = vmatmul.bf16.vlgmr.msrb.gmra.mxu3 %v12815_v15  ;;  %5600 = vmatmul.bf16.vlgmr.msra.gmra.mxu2 %v12813_v23 }
 0x748   :  { %5605 = vmatpush.bf16.msra.mxu3 %v7206_v56  ;;  %5618 = vmatpush.bf16.msrb.mxu2 %v7462_v18  ;;  %v4768_v56 = vperm.slane %v13249_v8, 1  ;;  %v7933_v18 = vld [vmem:[%s13629_s9 + $0x10] sm:$0xff] }
 0x74a   :  { %v13383_v31 = vpop.f32.mrf.mxu3  ;;  %v13385_v60 = vpop.f32.mrf.mxu2  ;;  %v5459_v11 = vadd.f32 %v13329_v0, %v4768_v56  ;;  %v7931_v0 = vld [vmem:[%s13629_s9] sm:$0xff] }
 0x74b   :  { %v5485_v61 = vadd.f32 %v13383_v31, %v4769_v63  ;;  %v7947_v31 = vld [vmem:[%s13629_s9 + $0x80] sm:$0xff] }
 0x74c   :  { %5606 = vmatpush.bf16.msra.mxu3 %v7174_v53  ;;  %5619 = vmatpush.bf16.msrb.mxu2 %v7430_v45  ;;  %v7932_v53 = vld [vmem:[%s13629_s9 + $0x8] sm:$0xff]  ;;  %v5472_v42 = vadd.f32 %v13331_v7, %v5459_v11  ;;  %v7962_v7 = vld [vmem:[%s13629_s9 + $0xf8] sm:$0xff] }
 0x74d   :  { %v7940_v45 = vld [vmem:[%s13629_s9 + $0x48] sm:$0xff]  ;;  %v5498_v58 = vadd.f32 %v13385_v60, %v5485_v61  ;;  %v7978_v60 = vld [vmem:[%s13629_s9 + $0x178] sm:$0xff] }
 0x74e   :  { %v5632_v32 = vmax.f32 %v5472_v42, 0.0  ;;  %v7972_v11 = vld [vmem:[%s13629_s9 + $0x148] sm:$0xff] }
 0x74f   :  { %v5633_v37 = vmax.f32 %v5498_v58, 0.0  ;;  %v7988_v61 = vld [vmem:[%s13629_s9 + $0x1c8] sm:$0xff] }
 0x750   :  { %5607 = vmatpush.bf16.msra.mxu3 %v7142_v12  ;;  %5620 = vmatpush.bf16.msrb.mxu2 %v7398_v16  ;;  %v5640_v30 = vpack.c.bf16 %v5632_v32, %v5632_v32  ;;  %v7986_v32 = vld [vmem:[%s13629_s9 + $0x1b8] sm:$0xff] }
 0x751   :  { %v5641_v29 = vpack.c.bf16 %v5633_v37, %v5633_v37 }
 0x752   :  { %v5486_v25 = vpop.f32.mrf.mxu3  ;;  %v5499_v41 = vpop.f32.mrf.mxu2 }
 0x753   :  { %v7968_v25 = vld [vmem:[%s13629_s9 + $0x128] sm:$0xff] }
 0x754   :  { %5608 = vmatpush.bf16.msra.mxu3 %v7110_v57  ;;  %5621 = vmatpush.bf16.msrb.mxu2 %v7366_v28  ;;  %v7952_v57 = vld [vmem:[%s13629_s9 + $0xa8] sm:$0xff] }
 0x755   :  { %v7960_v28 = vld [vmem:[%s13629_s9 + $0xe8] sm:$0xff] }
 0x756   :  { %v7976_v41 = vld [vmem:[%s13629_s9 + $0x168] sm:$0xff] }
 0x758   :  { %5609 = vmatpush.bf16.msra.mxu3 %v7078_v33  ;;  %5622 = vmatpush.bf16.msrb.mxu2 %v7334_v59  ;;  %v7949_v33 = vld [vmem:[%s13629_s9 + $0x90] sm:$0xff] }
 0x759   :  { %v7957_v59 = vld [vmem:[%s13629_s9 + $0xd0] sm:$0xff] }
 0x75c   :  { %5610 = vmatpush.bf16.msra.mxu3 %v7046_v44  ;;  %5623 = vmatpush.bf16.msrb.mxu2 %v7302_v38  ;;  %v7948_v44 = vld [vmem:[%s13629_s9 + $0x88] sm:$0xff] }
 0x75d   :  { %v7956_v38 = vld [vmem:[%s13629_s9 + $0xc8] sm:$0xff] }
 0x760   :  { %5611 = vmatpush.bf16.msra.mxu3 %v7014_v22  ;;  %5624 = vmatpush.bf16.msrb.mxu2 %v7270_v50 }
 0x764   :  { %5612 = vmatpush.bf16.msra.mxu3 %v6982_v35  ;;  %5625 = vmatpush.bf16.msrb.mxu2 %v7238_v54  ;;  %v7969_v35 = vld [vmem:[%s13629_s9 + $0x130] sm:$0xff] }
 0x765   :  { %v7977_v54 = vld [vmem:[%s13629_s9 + $0x170] sm:$0xff] }
 0x767   :  { %5613 = vmatmul.bf16.vlgmr.msra.gmra.mxu3 %v12815_v15  ;;  %5626 = vmatmul.bf16.vlgmr.msrb.gmra.mxu2 %v12813_v23  ;;  %v7943_v23 = vld [vmem:[%s13629_s9 + $0x60] sm:$0xff]  ;;  %v7934_v15 = vld [vmem:[%s13629_s9 + $0x18] sm:$0xff] }
 0x768   :  { %6163 = vmatpush.bf16.msrb.mxu3 %v7938_v46  ;;  %6176 = vmatpush.bf16.msra.mxu2 %v7946_v36  ;;  %v7967_v46 = vld [vmem:[%s13629_s9 + $0x120] sm:$0xff] }
 0x769   :  { %v7975_v36 = vld [vmem:[%s13629_s9 + $0x160] sm:$0xff] }
 0x76a   :  { %v5510_v3 = vpop.f32.mrf.mxu3  ;;  %v5523_v27 = vpop.f32.mrf.mxu2 }
 0x76b   :  { %v5511_v20 = vadd.f32 %v5510_v3, %v4770_v34 }
 0x76c   :  { %6164 = vmatpush.bf16.msrb.mxu3 %v7937_v51  ;;  %6177 = vmatpush.bf16.msra.mxu2 %v7945_v62  ;;  %v7966_v51 = vld [vmem:[%s13629_s9 + $0x118] sm:$0xff] }
 0x76d   :  { %v5524_v6 = vadd.f32 %v5523_v27, %v5511_v20  ;;  %v7974_v62 = vld [vmem:[%s13629_s9 + $0x158] sm:$0xff] }
 0x76f   :  { %v5634_v22 = vmax.f32 %v5524_v6, 0.0 }
 0x770   :  { %6165 = vmatpush.bf16.msrb.mxu3 %v7936_v48  ;;  %6178 = vmatpush.bf16.msra.mxu2 %v7944_v40  ;;  %v4771_v48 = vperm.slane %v13249_v8, 4  ;;  %v4772_v40 = vperm.slane %v13249_v8, 5 }
 0x771   :  { %v5642_v26 = vpack.c.bf16 %v5634_v22, %v5634_v22 }
 0x772   :  { %v5512_v12 = vpop.f32.mrf.mxu3  ;;  %v5525_v16 = vpop.f32.mrf.mxu2 }
 0x773   :  { %v7994_v12 = vld [vmem:[%s13629_s9 + $0x1f8] sm:$0xff] }
 0x774   :  { %6166 = vmatpush.bf16.msrb.mxu3 %v7935_v5  ;;  %6179 = vmatpush.bf16.msra.mxu2 %v7943_v23  ;;  %v7965_v5 = vld [vmem:[%s13629_s9 + $0x110] sm:$0xff] }
 0x775   :  { %v7973_v23 = vld [vmem:[%s13629_s9 + $0x150] sm:$0xff] }
 0x778   :  { %6167 = vmatpush.bf16.msrb.mxu3 %v7934_v15  ;;  %6180 = vmatpush.bf16.msra.mxu2 %v7942_v17 }
 0x77c   :  { %6168 = vmatpush.bf16.msrb.mxu3 %v7933_v18  ;;  %6181 = vmatpush.bf16.msra.mxu2 %v7941_v39  ;;  %v7964_v39 = vld [vmem:[%s13629_s9 + $0x108] sm:$0xff] }
 0x780   :  { %6169 = vmatpush.bf16.msrb.mxu3 %v7932_v53  ;;  %6182 = vmatpush.bf16.msra.mxu2 %v7940_v45  ;;  %v7963_v53 = vld [vmem:[%s13629_s9 + $0x100] sm:$0xff] }
 0x781   :  { %v7971_v45 = vld [vmem:[%s13629_s9 + $0x140] sm:$0xff] }
 0x784   :  { %6170 = vmatpush.bf16.msrb.mxu3 %v7931_v0  ;;  %6183 = vmatpush.bf16.msra.mxu2 %v7939_v49 }
 0x787   :  { %6171 = vmatmul.bf16.vlgmr.msrb.gmra.mxu3 %v5639_v21  ;;  %6184 = vmatmul.bf16.vlgmr.msra.gmra.mxu2 %v5640_v30  ;;  %v7993_v21 = vld [vmem:[%s13629_s9 + $0x1f0] sm:$0xff]  ;;  %v7984_v30 = vld [vmem:[%s13629_s9 + $0x1a8] sm:$0xff] }
 0x788   :  { %6189 = vmatpush.bf16.msra.mxu3 %v7954_v4  ;;  %6202 = vmatpush.bf16.msrb.mxu2 %v7962_v7  ;;  %v7985_v7 = vld [vmem:[%s13629_s9 + $0x1b0] sm:$0xff] }
 0x78a   :  { %v5536_v43 = vpop.f32.mrf.mxu3  ;;  %v5549_v14 = vpop.f32.mrf.mxu2 }
 0x78b   :  { %v5537_v15 = vadd.f32 %v5536_v43, %v4771_v48  ;;  %v7979_v43 = vld [vmem:[%s13629_s9 + $0x180] sm:$0xff] }
 0x78c   :  { %6190 = vmatpush.bf16.msra.mxu3 %v7953_v24  ;;  %6203 = vmatpush.bf16.msrb.mxu2 %v7961_v19  ;;  %v7992_v24 = vld [vmem:[%s13629_s9 + $0x1e8] sm:$0xff]  ;;  %v7983_v19 = vld [vmem:[%s13629_s9 + $0x1a0] sm:$0xff] }
 0x78d   :  { %v5550_v3 = vadd.f32 %v5549_v14, %v5537_v15  ;;  %v7987_v14 = vld [vmem:[%s13629_s9 + $0x1c0] sm:$0xff] }
 0x78f   :  { %v5635_v42 = vmax.f32 %v5550_v3, 0.0 }
 0x790   :  { %6191 = vmatpush.bf16.msra.mxu3 %v7952_v57  ;;  %6204 = vmatpush.bf16.msrb.mxu2 %v7960_v28  ;;  %v7991_v57 = vld [vmem:[%s13629_s9 + $0x1e0] sm:$0xff]  ;;  %v7982_v28 = vld [vmem:[%s13629_s9 + $0x198] sm:$0xff] }
 0x791   :  { %v5643_v16 = vpack.c.bf16 %v5635_v42, %v5635_v42 }
 0x792   :  { %v5538_v50 = vpop.f32.mrf.mxu3  ;;  %v5551_v13 = vpop.f32.mrf.mxu2 }
 0x794   :  { %6192 = vmatpush.bf16.msra.mxu3 %v7951_v10  ;;  %6205 = vmatpush.bf16.msrb.mxu2 %v7959_v2  ;;  %v7990_v10 = vld [vmem:[%s13629_s9 + $0x1d8] sm:$0xff]  ;;  %v4773_v2 = vperm.slane %v13249_v8, 6 }
 0x798   :  { %6193 = vmatpush.bf16.msra.mxu3 %v7950_v1  ;;  %6206 = vmatpush.bf16.msrb.mxu2 %v7958_v9  ;;  %v7981_v1 = vld [vmem:[%s13629_s9 + $0x190] sm:$0xff] }
 0x799   :  { %v7989_v9 = vld [vmem:[%s13629_s9 + $0x1d0] sm:$0xff] }
 0x79c   :  { %6194 = vmatpush.bf16.msra.mxu3 %v7949_v33  ;;  %6207 = vmatpush.bf16.msrb.mxu2 %v7957_v59  ;;  %v7980_v59 = vld [vmem:[%s13629_s9 + $0x188] sm:$0xff] }
 0x7a0   :  { %6195 = vmatpush.bf16.msra.mxu3 %v7948_v44  ;;  %6208 = vmatpush.bf16.msrb.mxu2 %v7956_v38 }
 0x7a4   :  { %6196 = vmatpush.bf16.msra.mxu3 %v7947_v31  ;;  %6209 = vmatpush.bf16.msrb.mxu2 %v7955_v52  ;;  %v4774_v31 = vperm.slane %v13249_v8, 7 }
 0x7a7   :  { %6197 = vmatmul.bf16.vlgmr.msra.gmra.mxu3 %v5641_v29  ;;  %6210 = vmatmul.bf16.vlgmr.msrb.gmra.mxu2 %v5642_v26  ;;  %v9770_v26 = vld [vmem:[%s13630_s10] ss:$0 sm:$0xff] }
 0x7a8   :  { %6215 = vmatpush.bf16.msrb.mxu3 %v7970_v55  ;;  %6228 = vmatpush.bf16.msra.mxu2 %v7978_v60 }
 0x7aa   :  { %v5562_v17 = vpop.f32.mrf.mxu3  ;;  %v5575_v56 = vpop.f32.mrf.mxu2 }
 0x7ab   :  { %v5563_v18 = vadd.f32 %v5562_v17, %v4772_v40 }
 0x7ac   :  { %6216 = vmatpush.bf16.msrb.mxu3 %v7969_v35  ;;  %6229 = vmatpush.bf16.msra.mxu2 %v7977_v54 }
 0x7ad   :  { %v5576_v27 = vadd.f32 %v5575_v56, %v5563_v18  ;;  %v9808_v18 = vmov 6  }
 0x7ae   :  { %9765 = vset.pattern.permute.xlu2 %v9808_v18  ;;  %9766 = vset.pattern.permute.xlu0 %v9808_v18 }
 0x7af   :  { %v5636_v0 = vmax.f32 %v5576_v27, 0.0 }
 0x7b0   :  { %6217 = vmatpush.bf16.msrb.mxu3 %v7968_v25  ;;  %6230 = vmatpush.bf16.msra.mxu2 %v7976_v41 }
 0x7b1   :  { %v5644_v4 = vpack.c.bf16 %v5636_v0, %v5636_v0 }
 0x7b2   :  { %v5564_v49 = vpop.f32.mrf.mxu3  ;;  %v5577_v47 = vpop.f32.mrf.mxu2 }
 0x7b3   :  { %v9809_v47 = vmov 48.0  }
 0x7b4   :  { %6218 = vmatpush.bf16.msrb.mxu3 %v7967_v46  ;;  %6231 = vmatpush.bf16.msra.mxu2 %v7975_v36  ;;  %9771 = vrcp.f32 %v9809_v47 }
 0x7b8   :  { %6219 = vmatpush.bf16.msrb.mxu3 %v7966_v51  ;;  %6232 = vmatpush.bf16.msra.mxu2 %v7974_v62 }
 0x7bc   :  { %6220 = vmatpush.bf16.msrb.mxu3 %v7965_v5  ;;  %6233 = vmatpush.bf16.msra.mxu2 %v7973_v23 }
 0x7c0   :  { %6221 = vmatpush.bf16.msrb.mxu3 %v7964_v39  ;;  %6234 = vmatpush.bf16.msra.mxu2 %v7972_v11 }
 0x7c4   :  { %6222 = vmatpush.bf16.msrb.mxu3 %v7963_v53  ;;  %6235 = vmatpush.bf16.msra.mxu2 %v7971_v45 }
 0x7c7   :  { %6223 = vmatmul.bf16.vlgmr.msrb.gmra.mxu3 %v5643_v16  ;;  %6236 = vmatmul.bf16.vlgmr.msra.gmra.mxu2 %v5644_v4 }
 0x7c8   :  { %6241 = vmatpush.bf16.msra.mxu3 %v7986_v32  ;;  %6254 = vmatpush.bf16.msrb.mxu2 %v7994_v12  ;;  %v9772_v32 = vpop.eup %9771 }
 0x7c9   :  { %v6285_v12 = vmul.f32 48.0, %v9772_v32  ;;  %vm6289_vm4 = vweird.f32 %v9772_v32 }
 0x7ca   :  { %v5588_v63 = vpop.f32.mrf.mxu3  ;;  %v5601_v34 = vpop.f32.mrf.mxu2 }
 0x7cb   :  { %v5589_v33 = vadd.f32 %v5588_v63, %v4773_v2  ;;  %v6286_v16 = vsub.f32 1.0, %v6285_v12 }
 0x7cc   :  { %6242 = vmatpush.bf16.msra.mxu3 %v7985_v7  ;;  %6255 = vmatpush.bf16.msrb.mxu2 %v7993_v21 }
 0x7cd   :  { %v5602_v20 = vadd.f32 %v5601_v34, %v5589_v33 }
 0x7cf   :  { %v5637_v44 = vmax.f32 %v5602_v20, 0.0 }
 0x7d0   :  { %6243 = vmatpush.bf16.msra.mxu3 %v7984_v30  ;;  %6256 = vmatpush.bf16.msrb.mxu2 %v7992_v24  ;;  %v6287_v30 = vmul.f32 %v9772_v32, %v6286_v16 }
 0x7d1   :  { %v5645_v6 = vpack.c.bf16 %v5637_v44, %v5637_v44 }
 0x7d2   :  { %v5590_v38 = vpop.f32.mrf.mxu3  ;;  %v5603_v58 = vpop.f32.mrf.mxu2 }
 0x7d4   :  { %6244 = vmatpush.bf16.msra.mxu3 %v7983_v19  ;;  %6257 = vmatpush.bf16.msrb.mxu2 %v7991_v57  ;;  %v6288_v57 = vadd.f32 %v9772_v32, %v6287_v30 }
 0x7d6   :  { %v6290_v2 = vsel %vm6289_vm4, %v9772_v32, %v6288_v57 }
 0x7d8   :  { %6245 = vmatpush.bf16.msra.mxu3 %v7982_v28  ;;  %6258 = vmatpush.bf16.msrb.mxu2 %v7990_v10 }
 0x7dc   :  { %6246 = vmatpush.bf16.msra.mxu3 %v7981_v1  ;;  %6259 = vmatpush.bf16.msrb.mxu2 %v7989_v9 }
 0x7e0   :  { %6247 = vmatpush.bf16.msra.mxu3 %v7980_v59  ;;  %6260 = vmatpush.bf16.msrb.mxu2 %v7988_v61 }
 0x7e4   :  { %6248 = vmatpush.bf16.msra.mxu3 %v7979_v43  ;;  %6261 = vmatpush.bf16.msrb.mxu2 %v7987_v14 }
 0x7e7   :  { %6249 = vmatmul.bf16.vlgmr.msra.gmra.mxu3 %v5645_v6 }
 0x7ea   :  { %v5614_v52 = vpop.f32.mrf.mxu3  ;;  %v5627_v37 = vpop.f32.mrf.mxu2 }
 0x7eb   :  { %v5615_v22 = vadd.f32 %v5614_v52, %v4774_v31 }
 0x7ed   :  { %v5628_v50 = vadd.f32 %v5627_v37, %v5615_v22 }
 0x7ef   :  { %v5638_v13 = vmax.f32 %v5628_v50, 0.0 }
 0x7f1   :  { %v5646_v55 = vpack.c.bf16 %v5638_v13, %v5638_v13 }
 0x7f2   :  { %v5616_v60 = vpop.f32.mrf.mxu3  ;;  %v5629_v29 = vpop.f32.mrf.mxu2 }
 0x7f3   :  { %6262 = vmatmul.bf16.vlgmr.msrb.gmra.mxu2 %v5646_v55 }
 0x80a   :  { %v6172_v35 = vpop.f32.mrf.mxu3  ;;  %v6185_v54 = vpop.f32.mrf.mxu2 }
 0x80b   :  { %v6173_v25 = vadd.f32 %v9770_v26, %v6172_v35 }
 0x80d   :  { %v6186_v41 = vadd.f32 %v6185_v54, %v6173_v25 }
 0x812   :  { %v6174_v46 = vpop.f32.mrf.mxu3  ;;  %v6187_v36 = vpop.f32.mrf.mxu2 }
 0x82a   :  { %v6198_v8 = vpop.f32.mrf.mxu3  ;;  %v6211_v51 = vpop.f32.mrf.mxu2 }
 0x82b   :  { %v6199_v62 = vadd.f32 %v6198_v8, %v6186_v41 }
 0x82d   :  { %v6212_v48 = vadd.f32 %v6211_v51, %v6199_v62 }
 0x832   :  { %v6200_v40 = vpop.f32.mrf.mxu3  ;;  %v6213_v5 = vpop.f32.mrf.mxu2 }
 0x84a   :  { %v6224_v23 = vpop.f32.mrf.mxu3  ;;  %v6237_v15 = vpop.f32.mrf.mxu2 }
 0x84b   :  { %v6225_v3 = vadd.f32 %v6224_v23, %v6212_v48 }
 0x84d   :  { %v6238_v27 = vadd.f32 %v6237_v15, %v6225_v3 }
 0x852   :  { %v6226_v17 = vpop.f32.mrf.mxu3  ;;  %v6239_v56 = vpop.f32.mrf.mxu2 }
 0x86a   :  { %v6250_v39 = vpop.f32.mrf.mxu3 }
 0x86b   :  { %v6251_v53 = vadd.f32 %v6250_v39, %v6238_v27 }
 0x872   :  { %v6252_v11 = vpop.f32.mrf.mxu3 }
 0x876   :  { %v6263_v45 = vpop.f32.mrf.mxu2 }
 0x877   :  { %v6264_v42 = vadd.f32 %v6263_v45, %v6251_v53 }
 0x879   :  { %6269 = vperm.xlu2 %9765, %v6264_v42   ;;  %v6274_v0 = vsel %vm6273_vm3, %v6264_v42, 0.0 }
 0x87a   :  { %6275 = vadd.xlane.f32.xlu1 %v6274_v0 }
 0x87e   :  { %v6265_v49 = vpop.f32.mrf.mxu2 }
 0x8d3   :  { %v6270_v1 = vpop.permute.xlu2 %6269 }
 0x8d4   :  { %v6272_v9 = vadd.f32 %v6270_v1, %v6264_v42 }
 0x8ed   :  { %v6276_v4 = vpop.xlane.xlu1 %6275 }
 0x8ee   :  { %v6277_v7 = vrot.slane %v6276_v4, 4 }
 0x8f0   :  { %v6278_v21 = vadd.f32 %v6277_v7, %v6276_v4 }
 0x8f2   :  { %v6279_v24 = vrot.slane %v6278_v21, 2 }
 0x8f4   :  { %v6280_v19 = vadd.f32 %v6279_v24, %v6278_v21 }
 0x8f6   :  { %v6281_v28 = vrot.slane %v6280_v19, 1 }
 0x8f8   :  { %v6282_v10 = vadd.f32 %v6281_v28, %v6280_v19 }
 0x8fa   :  { %8910 = vpush %v6282_v10 }
 0x8fb   :  { %8912 = vpush %v6290_v2 }
 0x92b   :  { %s8911_s10 = spop %8910 }
 0x92c   :  { %s8913_s25 = spop %8912 }
 0x92d   :  { %s6292_s28 = smul.f32 %s8913_s25, %s8911_s10 }
 0x92f   :  { %v6293_v63 = vstv %s6292_s28 }
 0x930   :  { %v6294_v34 = vsub.f32 %v6272_v9, %v6293_v63 }
 0x932   :  { %6296 = vst.msk [vmem:[#allocation5] sm:$0xff] %vm6295_vm5, %v6294_v34 }
 0x933   :  { %6307 = dma.vmem_to_hbm [thread:$0]  %s6303_s27, 128, %s6305_s30, [#allocation6]  }
 0x934   :  { %9803 = dma.done.wait [#allocation6], 128  }
 0x935   :  { %9804 = vsyncadd [#allocation6], 4294967168 }
 0x936   :  { %6312 = vsyncpa [#allocation6], 1 }

</bundles_post_ra>
